<compile_context>
chip_gen: v7x
topology: tpu7x:2x2x1
jax: 0.10.0
libtpu: 0.0.40
codegen_flags: <defaults>
</compile_context>

<pallas_src>
import jax
import jax.numpy as jnp
from jax import lax
from jax.experimental import pallas as pl
from jax.experimental.pallas import tpu as pltpu

BN_EPS = 1e-5
CPAD = 128                    # lane width: conv-output / BN / store lane-dense width
MXU_DTYPE = jnp.bfloat16      # dot operands (f32 accumulate); BN/ReLU stay f32
OUT_DTYPE = jnp.bfloat16      # HBM writeback dtype (halves output traffic)


def _round_up(x, m):
    return (x + m - 1) // m * m


# ------------------------------ kernel ------------------------------
def _conv_block_kernel(x_ref, w_ref, bn_ref, o_ref, pad_ref, patch_ref):
    # x_ref:     (B, H, W, C8)        f32 NHWC input, channels zero-padded to C8
    # w_ref:     (2, KPAD, CPAD)      bf16 packed conv weights, rows = (ky,kx,ci)
    # bn_ref:    (4, CPAD)            f32 rows = [gamma1, beta1, gamma2, beta2]
    # o_ref:     (B*H*W, CPAD)        bf16 lane-dense output (padding stripped outside)
    # pad_ref:   (B, H+2, W+2, C8)    f32 VMEM scratch, reused by both stages
    # patch_ref: (B*H*W, KPAD)        bf16 VMEM staging slab for the single MXU matmul
    B, Hp, Wp, C8 = pad_ref.shape
    H, W = Hp - 2, Wp - 2
    n_px = B * H * W
    KPAD = patch_ref.shape[-1]
    k_real = 9 * C8

    # ---- one-time zeroing: only what is actually padding -------------------------
    # 1-pixel spatial halo (never overwritten; shared by both stages).
    zrow = jnp.zeros((B, 1, Wp, C8), jnp.float32)
    zcol = jnp.zeros((B, H, 1, C8), jnp.float32)
    pad_ref[:, 0:1, :, :] = zrow
    pad_ref[:, H + 1:H + 2, :, :] = zrow
    pad_ref[:, 1:H + 1, 0:1, :] = zcol
    pad_ref[:, 1:H + 1, W + 1:W + 2, :] = zcol
    # Unused K lanes of the staging slab (must be finite: matching weight rows are 0).
    if KPAD > k_real:
        patch_ref[:, k_real:] = jnp.zeros((n_px, KPAD - k_real), MXU_DTYPE)

    def stage(s):
        """conv3x3 (single native bf16 MXU matmul) => BN (batch stats) => ReLU."""
        w_s = w_ref[s]                                   # (KPAD, CPAD) bf16
        gamma = bn_ref[2 * s:2 * s + 1, :]               # (1, CPAD) f32
        beta = bn_ref[2 * s + 1:2 * s + 2, :]            # (1, CPAD) f32

        # Stage the 9 shifted windows directly into the lane-aligned bf16 slab
        # (no f32 concat, no K=9*128 fake contraction).
        xp = pad_ref[...]                                # (B, H+2, W+2, C8) f32
        for k in range(9):                               # static unroll over taps
            ky, kx = divmod(k, 3)
            win = xp[:, ky:ky + H, kx:kx + W, :]         # (B, H, W, C8)
            patch_ref[:, k * C8:(k + 1) * C8] = (
                win.reshape(n_px, C8).astype(MXU_DTYPE))
        acc = jnp.dot(patch_ref[...], w_s,               # (n_px, CPAD) f32
                      preferred_element_type=jnp.float32)

        # Fused BN epilogue: one stats pass (sum, sum-of-squares), one apply pass.
        inv_n = 1.0 / n_px
        s1 = jnp.sum(acc, axis=0, keepdims=True)
        s2 = jnp.sum(acc * acc, axis=0, keepdims=True)
        mean = s1 * inv_n
        var = s2 * inv_n - mean * mean                   # E[x^2]-E[x]^2, f32 (biased)
        scale = gamma * lax.rsqrt(var + BN_EPS)
        shift = beta - mean * scale
        return jnp.maximum(acc * scale + shift, 0.0)     # fused scale+shift+ReLU

    # Stage 1: interior <- channel-padded input (halo already zero).
    pad_ref[:, 1:H + 1, 1:W + 1, :] = x_ref[...]
    y1 = stage(0)

    # Stage 2: intermediate never leaves VMEM; interior fully overwritten with y1's
    # real channels, halo still zero from the one-time fill.
    pad_ref[:, 1:H + 1, 1:W + 1, :] = y1[:, :C8].reshape(B, H, W, C8)
    y2 = stage(1)

    o_ref[...] = y2.astype(o_ref.dtype)                  # lane-dense bf16 store


# ------------------------------ wrapper ------------------------------
def _pack_conv_weight(w_oihw, c8, kpad, cpad):
    """PyTorch (Cout, Cin, 3, 3) -> (kpad, cpad) bf16; rows = (ky, kx, ci), cols = co."""
    cout, cin = w_oihw.shape[0], w_oihw.shape[1]
    w = jnp.transpose(w_oihw, (2, 3, 1, 0)).astype(jnp.float32)      # (3, 3, Cin, Cout)
    w = jnp.pad(w, ((0, 0), (0, 0), (0, c8 - cin), (0, cpad - cout)))
    w = w.reshape(9 * c8, cpad)
    w = jnp.pad(w, ((0, kpad - 9 * c8), (0, 0)))
    return w.astype(MXU_DTYPE)


def _pack_vec(v, cpad):
    return jnp.pad(v.astype(jnp.float32), (0, cpad - v.shape[0]))


def _vmem_limit_bytes(B, H, W, c8, kpad, cpad):
    """Shape-derived VMEM budget (review item): buffers + generous temp headroom."""
    n_px = B * H * W
    buffers = (B * H * W * c8 * 4            # x (f32)
               + 2 * kpad * cpad * 2         # weights (bf16)
               + 4 * cpad * 4                # BN params
               + n_px * cpad * 2             # output slab (bf16)
               + B * (H + 2) * (W + 2) * c8 * 4   # pad scratch (f32)
               + n_px * kpad * 2)            # staging scratch (bf16)
    temporaries = 8 * n_px * cpad * 4        # acc / acc^2 / y / relayout temps
    need = 2 * (buffers + temporaries)
    return int(min(128 * 1024 * 1024, max(16 * 1024 * 1024, need)))


@jax.jit
def conv_block_forward(x_nchw, params):
    """Pallas equivalent of conv_block.forward: (B, Cin, H, W) -> (B, Cout, H, W)."""
    B, Cin, H, W = x_nchw.shape
    Cout = params["w1"].shape[0]
    C8 = max(8, _round_up(max(Cin, Cout), 8))     # channels in the pad buffer / per tap
    KPAD = _round_up(9 * C8, 128)                 # staged im2col K (MXU-native)
    cpad = max(CPAD, _round_up(Cout, 128))

    # NCHW -> NHWC, channels zero-padded to C8 (8 KiB -> 16 KiB, negligible).
    x = jnp.transpose(x_nchw, (0, 2, 3, 1)).astype(jnp.float32)
    x = jnp.pad(x, ((0, 0), (0, 0), (0, 0), (0, C8 - Cin)))

    w = jnp.stack([_pack_conv_weight(params["w1"], C8, KPAD, cpad),
                   _pack_conv_weight(params["w2"], C8, KPAD, cpad)])   # (2, KPAD, cpad)
    bn = jnp.stack([_pack_vec(params["g1"], cpad), _pack_vec(params["be1"], cpad),
                    _pack_vec(params["g2"], cpad), _pack_vec(params["be2"], cpad)])
    # NOTE: params["b1"], params["b2"] (conv biases) are intentionally not passed:
    # training-mode BN mean-subtraction cancels a per-channel bias exactly.

    vmem = pl.BlockSpec(memory_space=pltpu.MemorySpace.VMEM)
    # Gridless single program: right-sized here (total VMEM well under 1 MiB).
    # TODO(synk): for production shapes, tile over batch / H row-bands with a
    # ("parallel", ...) grid, accumulate BN sum/sumsq partials in scratch with a final
    # normalize pass, and re-derive block sizes against v7x's 64 MiB VMEM.
    out = pl.pallas_call(
        _conv_block_kernel,
        out_shape=jax.ShapeDtypeStruct((B * H * W, cpad), OUT_DTYPE),
        in_specs=[vmem, vmem, vmem],
        out_specs=vmem,
        scratch_shapes=[pltpu.VMEM((B, H + 2, W + 2, C8), jnp.float32),
                        pltpu.VMEM((B * H * W, KPAD), MXU_DTYPE)],
        compiler_params=pltpu.CompilerParams(
            vmem_limit_bytes=_vmem_limit_bytes(B, H, W, C8, KPAD, cpad)),
    )(x, w, bn)

    out = out.reshape(B, H, W, cpad)[..., :Cout].astype(jnp.float32)
    return jnp.transpose(out, (0, 3, 1, 2))           # NHWC -> NCHW


# ----------------------------- reference (pure JAX) -----------------------------
def _stage_ref(x_nchw, w_oihw, b, g, be, operand_dtype):
    y = lax.conv_general_dilated(
        x_nchw.astype(operand_dtype), w_oihw.astype(operand_dtype),
        window_strides=(1, 1), padding=((1, 1), (1, 1)),
        dimension_numbers=("NCHW", "OIHW", "NCHW"),
        preferred_element_type=jnp.float32)
    y = y + b[None, :, None, None]
    mean = jnp.mean(y, axis=(0, 2, 3), keepdims=True)
    var = jnp.mean((y - mean) ** 2, axis=(0, 2, 3), keepdims=True)   # biased, training BN
    y = (y - mean) * lax.rsqrt(var + BN_EPS)
    y = y * g[None, :, None, None] + be[None, :, None, None]
    return jnp.maximum(y, 0.0)


def conv_block_reference(x_nchw, p, operand_dtype=jnp.float32):
    y = _stage_ref(x_nchw, p["w1"], p["b1"], p["g1"], p["be1"], operand_dtype)
    y = _stage_ref(y, p["w2"], p["b2"], p["g2"], p["be2"], operand_dtype)
    return y


# ----------------------------------- main -----------------------------------
if __name__ == "__main__":
    B, C_IN, C_OUT, H, W = 2, 4, 8, 16, 16

    key = jax.random.PRNGKey(0)
    k_x, k_w1, k_b1, k_w2, k_b2 = jax.random.split(key, 5)

    x = jax.random.normal(k_x, (B, C_IN, H, W), jnp.float32)

    # Deterministic parameter init (PyTorch shapes: Conv2d weight OIHW, bias (Cout,),
    # BatchNorm2d weight=1, bias=0).
    def conv_init(kw, kb, cin, cout):
        fan_in = cin * 9
        bound = 1.0 / jnp.sqrt(fan_in)
        wgt = jax.random.uniform(kw, (cout, cin, 3, 3), jnp.float32, -bound, bound)
        bias = jax.random.uniform(kb, (cout,), jnp.float32, -bound, bound)
        return wgt, bias

    w1_oihw, b1 = conv_init(k_w1, k_b1, C_IN, C_OUT)
    w2_oihw, b2 = conv_init(k_w2, k_b2, C_OUT, C_OUT)

    params = dict(
        w1=w1_oihw, b1=b1, g1=jnp.ones((C_OUT,), jnp.float32), be1=jnp.zeros((C_OUT,), jnp.float32),
        w2=w2_oihw, b2=b2, g2=jnp.ones((C_OUT,), jnp.float32), be2=jnp.zeros((C_OUT,), jnp.float32),
    )

    out = jax.block_until_ready(conv_block_forward(x, params))
    assert out.shape == (B, C_OUT, H, W), out.shape

    # (1) Tight structural check against a reference run at the same MXU operand
    #     precision (bf16 operands, f32 accumulate); differences are op ordering,
    #     the single-pass variance and the bf16 output store (<~0.4% relative).
    ref_same = conv_block_reference(x, params, operand_dtype=MXU_DTYPE)
    assert jnp.allclose(out, ref_same, atol=5e-3, rtol=5e-3), \
        f"max abs diff vs same-precision ref: {jnp.max(jnp.abs(out - ref_same))}"

    # (2) Looser semantic check against pure-f32 PyTorch math; the envelope accounts
    #     for bf16 MXU operands across two conv+BN stages plus the bf16 writeback.
    ref_f32 = conv_block_reference(x, params, operand_dtype=jnp.float32)
    assert jnp.allclose(out, ref_f32, atol=5e-2, rtol=5e-2), \
        f"max abs diff vs f32 ref: {jnp.max(jnp.abs(out - ref_f32))}"

    print("KERNEL_OK")
</pallas_src>

<mosaic_0001>
module attributes {stable_mosaic.version = 11 : i64} {
  func.func @_conv_block_kernel(%arg0: memref<2x16x16x8xf32, #tpu.memory_space<vmem>>, %arg1: memref<2x128x128xbf16, #tpu.memory_space<vmem>>, %arg2: memref<4x128xf32, #tpu.memory_space<vmem>>, %arg3: memref<512x128xbf16, #tpu.memory_space<vmem>>, %arg4: memref<2x18x18x8xf32, #tpu.memory_space<vmem>>, %arg5: memref<512x128xbf16, #tpu.memory_space<vmem>>) attributes {dimension_semantics = [], scalar_prefetch = 0 : i64, scratch_operands = 2 : i64, tpu.core_type = #tpu.core_type<tc>} {
    %cst = arith.constant 0.000000e+00 : f32
    %0 = vector.broadcast %cst : f32 to vector<2x1x18x8xf32>
    %cst_0 = arith.constant 0.000000e+00 : f32
    %1 = vector.broadcast %cst_0 : f32 to vector<2x16x1x8xf32>
    %c0 = arith.constant 0 : index
    %c0_1 = arith.constant 0 : index
    %c0_2 = arith.constant 0 : index
    %c0_3 = arith.constant 0 : index
    %2 = vector.load %arg4[%c0, %c0_1, %c0_2, %c0_3] : memref<2x18x18x8xf32, #tpu.memory_space<vmem>>, vector<2x1x18x8xf32>
    tpu.vector_store %arg4[%c0, %c0_1, %c0_2, %c0_3], %0 {strides = array<i32>} : memref<2x18x18x8xf32, #tpu.memory_space<vmem>>, vector<2x1x18x8xf32>,
    %c0_4 = arith.constant 0 : index
    %c17 = arith.constant 17 : index
    %c0_5 = arith.constant 0 : index
    %c0_6 = arith.constant 0 : index
    %3 = vector.load %arg4[%c0_4, %c17, %c0_5, %c0_6] : memref<2x18x18x8xf32, #tpu.memory_space<vmem>>, vector<2x1x18x8xf32>
    tpu.vector_store %arg4[%c0_4, %c17, %c0_5, %c0_6], %0 {strides = array<i32>} : memref<2x18x18x8xf32, #tpu.memory_space<vmem>>, vector<2x1x18x8xf32>,
    %c0_7 = arith.constant 0 : index
    %c1 = arith.constant 1 : index
    %c0_8 = arith.constant 0 : index
    %c0_9 = arith.constant 0 : index
    %4 = vector.load %arg4[%c0_7, %c1, %c0_8, %c0_9] : memref<2x18x18x8xf32, #tpu.memory_space<vmem>>, vector<2x16x1x8xf32>
    tpu.vector_store %arg4[%c0_7, %c1, %c0_8, %c0_9], %1 {strides = array<i32>} : memref<2x18x18x8xf32, #tpu.memory_space<vmem>>, vector<2x16x1x8xf32>,
    %c0_10 = arith.constant 0 : index
    %c1_11 = arith.constant 1 : index
    %c17_12 = arith.constant 17 : index
    %c0_13 = arith.constant 0 : index
    %5 = vector.load %arg4[%c0_10, %c1_11, %c17_12, %c0_13] : memref<2x18x18x8xf32, #tpu.memory_space<vmem>>, vector<2x16x1x8xf32>
    tpu.vector_store %arg4[%c0_10, %c1_11, %c17_12, %c0_13], %1 {strides = array<i32>} : memref<2x18x18x8xf32, #tpu.memory_space<vmem>>, vector<2x16x1x8xf32>,
    %cst_14 = arith.constant 0.000000e+00 : bf16
    %6 = vector.broadcast %cst_14 : bf16 to vector<512x56xbf16>
    %c0_15 = arith.constant 0 : index
    %c72 = arith.constant 72 : index
    %7 = vector.load %arg5[%c0_15, %c72] : memref<512x128xbf16, #tpu.memory_space<vmem>>, vector<512x56xbf16>
    tpu.vector_store %arg5[%c0_15, %c72], %6 {strides = array<i32>} : memref<512x128xbf16, #tpu.memory_space<vmem>>, vector<512x56xbf16>,
    %c0_16 = arith.constant 0 : index
    %c0_17 = arith.constant 0 : index
    %c0_18 = arith.constant 0 : index
    %c0_19 = arith.constant 0 : index
    %8 = vector.load %arg0[%c0_16, %c0_17, %c0_18, %c0_19] : memref<2x16x16x8xf32, #tpu.memory_space<vmem>>, vector<2x16x16x8xf32>
    %c0_20 = arith.constant 0 : index
    %c1_21 = arith.constant 1 : index
    %c1_22 = arith.constant 1 : index
    %c0_23 = arith.constant 0 : index
    %9 = vector.load %arg4[%c0_20, %c1_21, %c1_22, %c0_23] : memref<2x18x18x8xf32, #tpu.memory_space<vmem>>, vector<2x16x16x8xf32>
    tpu.vector_store %arg4[%c0_20, %c1_21, %c1_22, %c0_23], %8 {strides = array<i32>} : memref<2x18x18x8xf32, #tpu.memory_space<vmem>>, vector<2x16x16x8xf32>,
    %c0_24 = arith.constant 0 : index
    %c0_25 = arith.constant 0 : index
    %c0_26 = arith.constant 0 : index
    %10 = vector.load %arg1[%c0_24, %c0_25, %c0_26] : memref<2x128x128xbf16, #tpu.memory_space<vmem>>, vector<1x128x128xbf16>
    %11 = vector.shape_cast %10 : vector<1x128x128xbf16> to vector<128x128xbf16>
    %c0_27 = arith.constant 0 : index
    %c0_28 = arith.constant 0 : index
    %12 = vector.load %arg2[%c0_27, %c0_28] : memref<4x128xf32, #tpu.memory_space<vmem>>, vector<1x128xf32>
    %c1_29 = arith.constant 1 : index
    %c0_30 = arith.constant 0 : index
    %13 = vector.load %arg2[%c1_29, %c0_30] : memref<4x128xf32, #tpu.memory_space<vmem>>, vector<1x128xf32>
    %c0_31 = arith.constant 0 : index
    %c0_32 = arith.constant 0 : index
    %c0_33 = arith.constant 0 : index
    %c0_34 = arith.constant 0 : index
    %14 = vector.load %arg4[%c0_31, %c0_32, %c0_33, %c0_34] : memref<2x18x18x8xf32, #tpu.memory_space<vmem>>, vector<2x18x18x8xf32>
    %15 = vector.extract_strided_slice %14 {offsets = [0, 0, 0, 0], sizes = [2, 16, 16, 8], strides = [1, 1, 1, 1]} : vector<2x18x18x8xf32> to vector<2x16x16x8xf32>
    %16 = vector.shape_cast %15 : vector<2x16x16x8xf32> to vector<512x8xf32>
    %17 = arith.truncf %16 : vector<512x8xf32> to vector<512x8xbf16>
    %c0_35 = arith.constant 0 : index
    %c0_36 = arith.constant 0 : index
    %18 = vector.load %arg5[%c0_35, %c0_36] : memref<512x128xbf16, #tpu.memory_space<vmem>>, vector<512x8xbf16>
    tpu.vector_store %arg5[%c0_35, %c0_36], %17 {strides = array<i32>} : memref<512x128xbf16, #tpu.memory_space<vmem>>, vector<512x8xbf16>,
    %19 = vector.extract_strided_slice %14 {offsets = [0, 0, 1, 0], sizes = [2, 16, 16, 8], strides = [1, 1, 1, 1]} : vector<2x18x18x8xf32> to vector<2x16x16x8xf32>
    %20 = vector.shape_cast %19 : vector<2x16x16x8xf32> to vector<512x8xf32>
    %21 = arith.truncf %20 : vector<512x8xf32> to vector<512x8xbf16>
    %c0_37 = arith.constant 0 : index
    %c8 = arith.constant 8 : index
    %22 = vector.load %arg5[%c0_37, %c8] : memref<512x128xbf16, #tpu.memory_space<vmem>>, vector<512x8xbf16>
    tpu.vector_store %arg5[%c0_37, %c8], %21 {strides = array<i32>} : memref<512x128xbf16, #tpu.memory_space<vmem>>, vector<512x8xbf16>,
    %23 = vector.extract_strided_slice %14 {offsets = [0, 0, 2, 0], sizes = [2, 16, 16, 8], strides = [1, 1, 1, 1]} : vector<2x18x18x8xf32> to vector<2x16x16x8xf32>
    %24 = vector.shape_cast %23 : vector<2x16x16x8xf32> to vector<512x8xf32>
    %25 = arith.truncf %24 : vector<512x8xf32> to vector<512x8xbf16>
    %c0_38 = arith.constant 0 : index
    %c16 = arith.constant 16 : index
    %26 = vector.load %arg5[%c0_38, %c16] : memref<512x128xbf16, #tpu.memory_space<vmem>>, vector<512x8xbf16>
    tpu.vector_store %arg5[%c0_38, %c16], %25 {strides = array<i32>} : memref<512x128xbf16, #tpu.memory_space<vmem>>, vector<512x8xbf16>,
    %27 = vector.extract_strided_slice %14 {offsets = [0, 1, 0, 0], sizes = [2, 16, 16, 8], strides = [1, 1, 1, 1]} : vector<2x18x18x8xf32> to vector<2x16x16x8xf32>
    %28 = vector.shape_cast %27 : vector<2x16x16x8xf32> to vector<512x8xf32>
    %29 = arith.truncf %28 : vector<512x8xf32> to vector<512x8xbf16>
    %c0_39 = arith.constant 0 : index
    %c24 = arith.constant 24 : index
    %30 = vector.load %arg5[%c0_39, %c24] : memref<512x128xbf16, #tpu.memory_space<vmem>>, vector<512x8xbf16>
    tpu.vector_store %arg5[%c0_39, %c24], %29 {strides = array<i32>} : memref<512x128xbf16, #tpu.memory_space<vmem>>, vector<512x8xbf16>,
    %31 = vector.extract_strided_slice %14 {offsets = [0, 1, 1, 0], sizes = [2, 16, 16, 8], strides = [1, 1, 1, 1]} : vector<2x18x18x8xf32> to vector<2x16x16x8xf32>
    %32 = vector.shape_cast %31 : vector<2x16x16x8xf32> to vector<512x8xf32>
    %33 = arith.truncf %32 : vector<512x8xf32> to vector<512x8xbf16>
    %c0_40 = arith.constant 0 : index
    %c32 = arith.constant 32 : index
    %34 = vector.load %arg5[%c0_40, %c32] : memref<512x128xbf16, #tpu.memory_space<vmem>>, vector<512x8xbf16>
    tpu.vector_store %arg5[%c0_40, %c32], %33 {strides = array<i32>} : memref<512x128xbf16, #tpu.memory_space<vmem>>, vector<512x8xbf16>,
    %35 = vector.extract_strided_slice %14 {offsets = [0, 1, 2, 0], sizes = [2, 16, 16, 8], strides = [1, 1, 1, 1]} : vector<2x18x18x8xf32> to vector<2x16x16x8xf32>
    %36 = vector.shape_cast %35 : vector<2x16x16x8xf32> to vector<512x8xf32>
    %37 = arith.truncf %36 : vector<512x8xf32> to vector<512x8xbf16>
    %c0_41 = arith.constant 0 : index
    %c40 = arith.constant 40 : index
    %38 = vector.load %arg5[%c0_41, %c40] : memref<512x128xbf16, #tpu.memory_space<vmem>>, vector<512x8xbf16>
    tpu.vector_store %arg5[%c0_41, %c40], %37 {strides = array<i32>} : memref<512x128xbf16, #tpu.memory_space<vmem>>, vector<512x8xbf16>,
    %39 = vector.extract_strided_slice %14 {offsets = [0, 2, 0, 0], sizes = [2, 16, 16, 8], strides = [1, 1, 1, 1]} : vector<2x18x18x8xf32> to vector<2x16x16x8xf32>
    %40 = vector.shape_cast %39 : vector<2x16x16x8xf32> to vector<512x8xf32>
    %41 = arith.truncf %40 : vector<512x8xf32> to vector<512x8xbf16>
    %c0_42 = arith.constant 0 : index
    %c48 = arith.constant 48 : index
    %42 = vector.load %arg5[%c0_42, %c48] : memref<512x128xbf16, #tpu.memory_space<vmem>>, vector<512x8xbf16>
    tpu.vector_store %arg5[%c0_42, %c48], %41 {strides = array<i32>} : memref<512x128xbf16, #tpu.memory_space<vmem>>, vector<512x8xbf16>,
    %43 = vector.extract_strided_slice %14 {offsets = [0, 2, 1, 0], sizes = [2, 16, 16, 8], strides = [1, 1, 1, 1]} : vector<2x18x18x8xf32> to vector<2x16x16x8xf32>
    %44 = vector.shape_cast %43 : vector<2x16x16x8xf32> to vector<512x8xf32>
    %45 = arith.truncf %44 : vector<512x8xf32> to vector<512x8xbf16>
    %c0_43 = arith.constant 0 : index
    %c56 = arith.constant 56 : index
    %46 = vector.load %arg5[%c0_43, %c56] : memref<512x128xbf16, #tpu.memory_space<vmem>>, vector<512x8xbf16>
    tpu.vector_store %arg5[%c0_43, %c56], %45 {strides = array<i32>} : memref<512x128xbf16, #tpu.memory_space<vmem>>, vector<512x8xbf16>,
    %47 = vector.extract_strided_slice %14 {offsets = [0, 2, 2, 0], sizes = [2, 16, 16, 8], strides = [1, 1, 1, 1]} : vector<2x18x18x8xf32> to vector<2x16x16x8xf32>
    %48 = vector.shape_cast %47 : vector<2x16x16x8xf32> to vector<512x8xf32>
    %49 = arith.truncf %48 : vector<512x8xf32> to vector<512x8xbf16>
    %c0_44 = arith.constant 0 : index
    %c64 = arith.constant 64 : index
    %50 = vector.load %arg5[%c0_44, %c64] : memref<512x128xbf16, #tpu.memory_space<vmem>>, vector<512x8xbf16>
    tpu.vector_store %arg5[%c0_44, %c64], %49 {strides = array<i32>} : memref<512x128xbf16, #tpu.memory_space<vmem>>, vector<512x8xbf16>,
    %c0_45 = arith.constant 0 : index
    %c0_46 = arith.constant 0 : index
    %51 = vector.load %arg5[%c0_45, %c0_46] : memref<512x128xbf16, #tpu.memory_space<vmem>>, vector<512x128xbf16>
    %cst_47 = arith.constant dense<0.000000e+00> : vector<512x128xf32>
    %52 = tpu.matmul %51, %11, %cst_47 {dimension_numbers = #tpu.dot_dimension_numbers<[1], [0], [0], [1], [0, 0, 1, 1], [], []>} : vector<512x128xbf16>, vector<128x128xbf16>, vector<512x128xf32> -> vector<512x128xf32>
    %cst_48 = arith.constant dense<0.000000e+00> : vector<128xf32>
    %53 = vector.multi_reduction <add>, %52, %cst_48 [0] : vector<512x128xf32> to vector<128xf32>
    %54 = vector.shape_cast %53 : vector<128xf32> to vector<1x128xf32>
    %55 = arith.mulf %52, %52 : vector<512x128xf32>
    %cst_49 = arith.constant dense<0.000000e+00> : vector<128xf32>
    %56 = vector.multi_reduction <add>, %55, %cst_49 [0] : vector<512x128xf32> to vector<128xf32>
    %57 = vector.shape_cast %56 : vector<128xf32> to vector<1x128xf32>
    %cst_50 = arith.constant 0.001953125 : f32
    %58 = vector.broadcast %cst_50 : f32 to vector<1x128xf32>
    %59 = arith.mulf %54, %58 : vector<1x128xf32>
    %cst_51 = arith.constant 0.001953125 : f32
    %60 = vector.broadcast %cst_51 : f32 to vector<1x128xf32>
    %61 = arith.mulf %57, %60 : vector<1x128xf32>
    %62 = arith.mulf %59, %59 : vector<1x128xf32>
    %63 = arith.subf %61, %62 : vector<1x128xf32>
    %cst_52 = arith.constant 9.99999974E-6 : f32
    %64 = vector.broadcast %cst_52 : f32 to vector<1x128xf32>
    %65 = arith.addf %63, %64 : vector<1x128xf32>
    %66 = math.rsqrt %65 : vector<1x128xf32>
    %67 = arith.mulf %12, %66 : vector<1x128xf32>
    %68 = arith.mulf %59, %67 : vector<1x128xf32>
    %69 = arith.subf %13, %68 : vector<1x128xf32>
    %70 = vector.broadcast %67 : vector<1x128xf32> to vector<512x128xf32>
    %71 = arith.mulf %52, %70 : vector<512x128xf32>
    %72 = vector.broadcast %69 : vector<1x128xf32> to vector<512x128xf32>
    %73 = arith.addf %71, %72 : vector<512x128xf32>
    %cst_53 = arith.constant 0.000000e+00 : f32
    %74 = vector.broadcast %cst_53 : f32 to vector<512x128xf32>
    %75 = arith.maximumf %73, %74 : vector<512x128xf32>
    %76 = vector.extract_strided_slice %75 {offsets = [0, 0], sizes = [512, 8], strides = [1, 1]} : vector<512x128xf32> to vector<512x8xf32>
    %77 = vector.shape_cast %76 : vector<512x8xf32> to vector<2x16x16x8xf32>
    %c0_54 = arith.constant 0 : index
    %c1_55 = arith.constant 1 : index
    %c1_56 = arith.constant 1 : index
    %c0_57 = arith.constant 0 : index
    %78 = vector.load %arg4[%c0_54, %c1_55, %c1_56, %c0_57] : memref<2x18x18x8xf32, #tpu.memory_space<vmem>>, vector<2x16x16x8xf32>
    tpu.vector_store %arg4[%c0_54, %c1_55, %c1_56, %c0_57], %77 {strides = array<i32>} : memref<2x18x18x8xf32, #tpu.memory_space<vmem>>, vector<2x16x16x8xf32>,
    %c1_58 = arith.constant 1 : index
    %c0_59 = arith.constant 0 : index
    %c0_60 = arith.constant 0 : index
    %79 = vector.load %arg1[%c1_58, %c0_59, %c0_60] : memref<2x128x128xbf16, #tpu.memory_space<vmem>>, vector<1x128x128xbf16>
    %80 = vector.shape_cast %79 : vector<1x128x128xbf16> to vector<128x128xbf16>
    %c2 = arith.constant 2 : index
    %c0_61 = arith.constant 0 : index
    %81 = vector.load %arg2[%c2, %c0_61] : memref<4x128xf32, #tpu.memory_space<vmem>>, vector<1x128xf32>
    %c3 = arith.constant 3 : index
    %c0_62 = arith.constant 0 : index
    %82 = vector.load %arg2[%c3, %c0_62] : memref<4x128xf32, #tpu.memory_space<vmem>>, vector<1x128xf32>
    %c0_63 = arith.constant 0 : index
    %c0_64 = arith.constant 0 : index
    %c0_65 = arith.constant 0 : index
    %c0_66 = arith.constant 0 : index
    %83 = vector.load %arg4[%c0_63, %c0_64, %c0_65, %c0_66] : memref<2x18x18x8xf32, #tpu.memory_space<vmem>>, vector<2x18x18x8xf32>
    %84 = vector.extract_strided_slice %83 {offsets = [0, 0, 0, 0], sizes = [2, 16, 16, 8], strides = [1, 1, 1, 1]} : vector<2x18x18x8xf32> to vector<2x16x16x8xf32>
    %85 = vector.shape_cast %84 : vector<2x16x16x8xf32> to vector<512x8xf32>
    %86 = arith.truncf %85 : vector<512x8xf32> to vector<512x8xbf16>
    %c0_67 = arith.constant 0 : index
    %c0_68 = arith.constant 0 : index
    %87 = vector.load %arg5[%c0_67, %c0_68] : memref<512x128xbf16, #tpu.memory_space<vmem>>, vector<512x8xbf16>
    tpu.vector_store %arg5[%c0_67, %c0_68], %86 {strides = array<i32>} : memref<512x128xbf16, #tpu.memory_space<vmem>>, vector<512x8xbf16>,
    %88 = vector.extract_strided_slice %83 {offsets = [0, 0, 1, 0], sizes = [2, 16, 16, 8], strides = [1, 1, 1, 1]} : vector<2x18x18x8xf32> to vector<2x16x16x8xf32>
    %89 = vector.shape_cast %88 : vector<2x16x16x8xf32> to vector<512x8xf32>
    %90 = arith.truncf %89 : vector<512x8xf32> to vector<512x8xbf16>
    %c0_69 = arith.constant 0 : index
    %c8_70 = arith.constant 8 : index
    %91 = vector.load %arg5[%c0_69, %c8_70] : memref<512x128xbf16, #tpu.memory_space<vmem>>, vector<512x8xbf16>
    tpu.vector_store %arg5[%c0_69, %c8_70], %90 {strides = array<i32>} : memref<512x128xbf16, #tpu.memory_space<vmem>>, vector<512x8xbf16>,
    %92 = vector.extract_strided_slice %83 {offsets = [0, 0, 2, 0], sizes = [2, 16, 16, 8], strides = [1, 1, 1, 1]} : vector<2x18x18x8xf32> to vector<2x16x16x8xf32>
    %93 = vector.shape_cast %92 : vector<2x16x16x8xf32> to vector<512x8xf32>
    %94 = arith.truncf %93 : vector<512x8xf32> to vector<512x8xbf16>
    %c0_71 = arith.constant 0 : index
    %c16_72 = arith.constant 16 : index
    %95 = vector.load %arg5[%c0_71, %c16_72] : memref<512x128xbf16, #tpu.memory_space<vmem>>, vector<512x8xbf16>
    tpu.vector_store %arg5[%c0_71, %c16_72], %94 {strides = array<i32>} : memref<512x128xbf16, #tpu.memory_space<vmem>>, vector<512x8xbf16>,
    %96 = vector.extract_strided_slice %83 {offsets = [0, 1, 0, 0], sizes = [2, 16, 16, 8], strides = [1, 1, 1, 1]} : vector<2x18x18x8xf32> to vector<2x16x16x8xf32>
    %97 = vector.shape_cast %96 : vector<2x16x16x8xf32> to vector<512x8xf32>
    %98 = arith.truncf %97 : vector<512x8xf32> to vector<512x8xbf16>
    %c0_73 = arith.constant 0 : index
    %c24_74 = arith.constant 24 : index
    %99 = vector.load %arg5[%c0_73, %c24_74] : memref<512x128xbf16, #tpu.memory_space<vmem>>, vector<512x8xbf16>
    tpu.vector_store %arg5[%c0_73, %c24_74], %98 {strides = array<i32>} : memref<512x128xbf16, #tpu.memory_space<vmem>>, vector<512x8xbf16>,
    %100 = vector.extract_strided_slice %83 {offsets = [0, 1, 1, 0], sizes = [2, 16, 16, 8], strides = [1, 1, 1, 1]} : vector<2x18x18x8xf32> to vector<2x16x16x8xf32>
    %101 = vector.shape_cast %100 : vector<2x16x16x8xf32> to vector<512x8xf32>
    %102 = arith.truncf %101 : vector<512x8xf32> to vector<512x8xbf16>
    %c0_75 = arith.constant 0 : index
    %c32_76 = arith.constant 32 : index
    %103 = vector.load %arg5[%c0_75, %c32_76] : memref<512x128xbf16, #tpu.memory_space<vmem>>, vector<512x8xbf16>
    tpu.vector_store %arg5[%c0_75, %c32_76], %102 {strides = array<i32>} : memref<512x128xbf16, #tpu.memory_space<vmem>>, vector<512x8xbf16>,
    %104 = vector.extract_strided_slice %83 {offsets = [0, 1, 2, 0], sizes = [2, 16, 16, 8], strides = [1, 1, 1, 1]} : vector<2x18x18x8xf32> to vector<2x16x16x8xf32>
    %105 = vector.shape_cast %104 : vector<2x16x16x8xf32> to vector<512x8xf32>
    %106 = arith.truncf %105 : vector<512x8xf32> to vector<512x8xbf16>
    %c0_77 = arith.constant 0 : index
    %c40_78 = arith.constant 40 : index
    %107 = vector.load %arg5[%c0_77, %c40_78] : memref<512x128xbf16, #tpu.memory_space<vmem>>, vector<512x8xbf16>
    tpu.vector_store %arg5[%c0_77, %c40_78], %106 {strides = array<i32>} : memref<512x128xbf16, #tpu.memory_space<vmem>>, vector<512x8xbf16>,
    %108 = vector.extract_strided_slice %83 {offsets = [0, 2, 0, 0], sizes = [2, 16, 16, 8], strides = [1, 1, 1, 1]} : vector<2x18x18x8xf32> to vector<2x16x16x8xf32>
    %109 = vector.shape_cast %108 : vector<2x16x16x8xf32> to vector<512x8xf32>
    %110 = arith.truncf %109 : vector<512x8xf32> to vector<512x8xbf16>
    %c0_79 = arith.constant 0 : index
    %c48_80 = arith.constant 48 : index
    %111 = vector.load %arg5[%c0_79, %c48_80] : memref<512x128xbf16, #tpu.memory_space<vmem>>, vector<512x8xbf16>
    tpu.vector_store %arg5[%c0_79, %c48_80], %110 {strides = array<i32>} : memref<512x128xbf16, #tpu.memory_space<vmem>>, vector<512x8xbf16>,
    %112 = vector.extract_strided_slice %83 {offsets = [0, 2, 1, 0], sizes = [2, 16, 16, 8], strides = [1, 1, 1, 1]} : vector<2x18x18x8xf32> to vector<2x16x16x8xf32>
    %113 = vector.shape_cast %112 : vector<2x16x16x8xf32> to vector<512x8xf32>
    %114 = arith.truncf %113 : vector<512x8xf32> to vector<512x8xbf16>
    %c0_81 = arith.constant 0 : index
    %c56_82 = arith.constant 56 : index
    %115 = vector.load %arg5[%c0_81, %c56_82] : memref<512x128xbf16, #tpu.memory_space<vmem>>, vector<512x8xbf16>
    tpu.vector_store %arg5[%c0_81, %c56_82], %114 {strides = array<i32>} : memref<512x128xbf16, #tpu.memory_space<vmem>>, vector<512x8xbf16>,
    %116 = vector.extract_strided_slice %83 {offsets = [0, 2, 2, 0], sizes = [2, 16, 16, 8], strides = [1, 1, 1, 1]} : vector<2x18x18x8xf32> to vector<2x16x16x8xf32>
    %117 = vector.shape_cast %116 : vector<2x16x16x8xf32> to vector<512x8xf32>
    %118 = arith.truncf %117 : vector<512x8xf32> to vector<512x8xbf16>
    %c0_83 = arith.constant 0 : index
    %c64_84 = arith.constant 64 : index
    %119 = vector.load %arg5[%c0_83, %c64_84] : memref<512x128xbf16, #tpu.memory_space<vmem>>, vector<512x8xbf16>
    tpu.vector_store %arg5[%c0_83, %c64_84], %118 {strides = array<i32>} : memref<512x128xbf16, #tpu.memory_space<vmem>>, vector<512x8xbf16>,
    %c0_85 = arith.constant 0 : index
    %c0_86 = arith.constant 0 : index
    %120 = vector.load %arg5[%c0_85, %c0_86] : memref<512x128xbf16, #tpu.memory_space<vmem>>, vector<512x128xbf16>
    %cst_87 = arith.constant dense<0.000000e+00> : vector<512x128xf32>
    %121 = tpu.matmul %120, %80, %cst_87 {dimension_numbers = #tpu.dot_dimension_numbers<[1], [0], [0], [1], [0, 0, 1, 1], [], []>} : vector<512x128xbf16>, vector<128x128xbf16>, vector<512x128xf32> -> vector<512x128xf32>
    %cst_88 = arith.constant dense<0.000000e+00> : vector<128xf32>
    %122 = vector.multi_reduction <add>, %121, %cst_88 [0] : vector<512x128xf32> to vector<128xf32>
    %123 = vector.shape_cast %122 : vector<128xf32> to vector<1x128xf32>
    %124 = arith.mulf %121, %121 : vector<512x128xf32>
    %cst_89 = arith.constant dense<0.000000e+00> : vector<128xf32>
    %125 = vector.multi_reduction <add>, %124, %cst_89 [0] : vector<512x128xf32> to vector<128xf32>
    %126 = vector.shape_cast %125 : vector<128xf32> to vector<1x128xf32>
    %cst_90 = arith.constant 0.001953125 : f32
    %127 = vector.broadcast %cst_90 : f32 to vector<1x128xf32>
    %128 = arith.mulf %123, %127 : vector<1x128xf32>
    %cst_91 = arith.constant 0.001953125 : f32
    %129 = vector.broadcast %cst_91 : f32 to vector<1x128xf32>
    %130 = arith.mulf %126, %129 : vector<1x128xf32>
    %131 = arith.mulf %128, %128 : vector<1x128xf32>
    %132 = arith.subf %130, %131 : vector<1x128xf32>
    %cst_92 = arith.constant 9.99999974E-6 : f32
    %133 = vector.broadcast %cst_92 : f32 to vector<1x128xf32>
    %134 = arith.addf %132, %133 : vector<1x128xf32>
    %135 = math.rsqrt %134 : vector<1x128xf32>
    %136 = arith.mulf %81, %135 : vector<1x128xf32>
    %137 = arith.mulf %128, %136 : vector<1x128xf32>
    %138 = arith.subf %82, %137 : vector<1x128xf32>
    %139 = vector.broadcast %136 : vector<1x128xf32> to vector<512x128xf32>
    %140 = arith.mulf %121, %139 : vector<512x128xf32>
    %141 = vector.broadcast %138 : vector<1x128xf32> to vector<512x128xf32>
    %142 = arith.addf %140, %141 : vector<512x128xf32>
    %cst_93 = arith.constant 0.000000e+00 : f32
    %143 = vector.broadcast %cst_93 : f32 to vector<512x128xf32>
    %144 = arith.maximumf %142, %143 : vector<512x128xf32>
    %145 = arith.truncf %144 : vector<512x128xf32> to vector<512x128xbf16>
    %c0_94 = arith.constant 0 : index
    %c0_95 = arith.constant 0 : index
    %146 = vector.load %arg3[%c0_94, %c0_95] : memref<512x128xbf16, #tpu.memory_space<vmem>>, vector<512x128xbf16>
    tpu.vector_store %arg3[%c0_94, %c0_95], %145 {strides = array<i32>} : memref<512x128xbf16, #tpu.memory_space<vmem>>, vector<512x128xbf16>,
    return
  }
}

</mosaic_0001>

<bundles_post_ra>
// kernel: conv_block_forward.1
= control target key start
LH: loop header
LB: loop body
LE: loop exit
PB: predicated region body
PF: predicated region fallthrough
CT: control target
= control target key end

     0   :  { %vm15_vm0 = vcmask 64512   ;;  %vm18_vm1 = vcmask 58368   ;;  %v6906_v0 = vmov 0.0   ;;  %vm31_vm2 = vcmask 57344   ;;  %s6908_s27 = smov 8   ;;  %s6909_s28 = smov 16   ;;  %s12390_s0 = inlined_call_operand.vmem [shape: f32[2,16,16,8], index: 0, kind: input, shape index: {}]   ;;  %s12391_s1 = inlined_call_operand.vmem [shape: bf16[2,128,128], index: 1, kind: input, shape index: {}]   ;;  %s12392_s2 = inlined_call_operand.vmem [shape: f32[4,128], index: 2, kind: input, shape index: {}]   ;;  %s12393_s3 = inlined_call_operand.vmem [shape: bf16[512,128], index: 3, kind: output, shape index: {}]  }
   0x1   :  { %16 = vst.msk [vmem:[#allocation2] sm:$0xff] %vm15_vm0, %v6906_v0  ;;  %17 = vst.msk [vmem:[#allocation2 + $0x8] sm:$0xff] %vm15_vm0, %v6906_v0  ;;  %v131_v1 = vld [vmem:[%s12390_s0 + $0x10] sm:$0xff]  ;;  %v132_v2 = vld [vmem:[%s12390_s0 + $0x18] sm:$0xff]  ;;  %vm96_vm3 = vcmask 1048128   ;;  %v6907_v13 = vmov 0  }
   0x2   :  { %19 = vst.msk [vmem:[#allocation2 + $0x10] sm:$0x3] %vm18_vm1, %v6906_v0  ;;  %22 = vst.msk [vmem:[#allocation2 + $0x1c0] sm:$0x3] %vm18_vm1, %v6906_v0  ;;  %v6965_v3 = vld [vmem:[%s12390_s0] sm:$0xff]  ;;  %v130_v4 = vld [vmem:[%s12390_s0 + $0x8] sm:$0xff] }
   0x3   :  { %20 = vst.msk [vmem:[#allocation2 + $0x1b0] sm:$0xff] %vm15_vm0, %v6906_v0  ;;  %21 = vst.msk [vmem:[#allocation2 + $0x1b8] sm:$0xff] %vm15_vm0, %v6906_v0  ;;  %v133_v5 = vld [vmem:[%s12390_s0 + $0x20] sm:$0xff]  ;;  %v134_v6 = vld [vmem:[%s12390_s0 + $0x28] sm:$0xff]  ;;  %vm543_vm4 = vcmask 1046528   ;;  %vm961_vm5 = vcmask 1045504  }
   0x4   :  { %24 = vst.msk [vmem:[#allocation2 + $0x198] sm:$0xff] %vm15_vm0, %v6906_v0  ;;  %25 = vst.msk [vmem:[#allocation2 + $0x1a0] sm:$0xff] %vm15_vm0, %v6906_v0  ;;  %v135_v7 = vld [vmem:[%s12390_s0 + $0x30] sm:$0xff]  ;;  %v136_v8 = vld [vmem:[%s12390_s0 + $0x38] sm:$0xff]  ;;  %s6910_s12 = smov 24   ;;  %s6911_s15 = smov 32  }
   0x5   :  { %26 = vst.msk [vmem:[#allocation2 + $0x1a8] sm:$0x3] %vm18_vm1, %v6906_v0  ;;  %29 = vst.msk [vmem:[#allocation2 + $0x358] sm:$0x3] %vm18_vm1, %v6906_v0  ;;  %v137_v9 = vld [vmem:[%s12390_s0 + $0x40] sm:$0xff]  ;;  %v138_v10 = vld [vmem:[%s12390_s0 + $0x48] sm:$0xff] }
   0x6   :  { %27 = vst.msk [vmem:[#allocation2 + $0x348] sm:$0xff] %vm15_vm0, %v6906_v0  ;;  %28 = vst.msk [vmem:[#allocation2 + $0x350] sm:$0xff] %vm15_vm0, %v6906_v0  ;;  %v139_v11 = vld [vmem:[%s12390_s0 + $0x50] sm:$0xff]  ;;  %v140_v12 = vld [vmem:[%s12390_s0 + $0x58] sm:$0xff]  ;;  %s6912_s18 = smov 40   ;;  %s6913_s21 = smov 48  }
   0x7   :  { %33 = vst.msk [vmem:[#allocation2 + $0x30] sm:$0x1] %vm31_vm2, %v6906_v0  ;;  %65 = vst.msk [vmem:[#allocation2 + $0x41] sm:$0x1] %vm31_vm2, %v6906_v0  ;;  %v141_v14 = vld [vmem:[%s12390_s0 + $0x60] sm:$0xff]  ;;  %v142_v15 = vld [vmem:[%s12390_s0 + $0x68] sm:$0xff] }
   0x8   :  { %195 = vst.msk [vmem:[#allocation2 + $0x31] sm:$0xff] %vm15_vm0, %v131_v1  ;;  %196 = vst.msk [vmem:[#allocation2 + $0x39] sm:$0xff] %vm15_vm0, %v132_v2  ;;  %v143_v16 = vld [vmem:[%s12390_s0 + $0x70] sm:$0xff]  ;;  %v144_v17 = vld [vmem:[%s12390_s0 + $0x78] sm:$0xff]  ;;  %s6914_s22 = smov 56   ;;  %vm928_vm6 = vcmask 130112  }
   0x9   :  { %32 = vst.msk [vmem:[#allocation2 + $0x18] sm:$0x1] %vm31_vm2, %v6906_v0  ;;  %34 = vst.msk [vmem:[#allocation2 + $0x48] sm:$0x1] %vm31_vm2, %v6906_v0  ;;  %v145_v18 = vld [vmem:[%s12390_s0 + $0x80] sm:$0xff]  ;;  %v146_v19 = vld [vmem:[%s12390_s0 + $0x88] sm:$0xff] }
   0xa   :  { %35 = vst.msk [vmem:[#allocation2 + $0x60] sm:$0x1] %vm31_vm2, %v6906_v0  ;;  %36 = vst.msk [vmem:[#allocation2 + $0x78] sm:$0x1] %vm31_vm2, %v6906_v0  ;;  %v147_v20 = vld [vmem:[%s12390_s0 + $0x90] sm:$0xff]  ;;  %v148_v21 = vld [vmem:[%s12390_s0 + $0x98] sm:$0xff] }
   0xb   :  { %37 = vst.msk [vmem:[#allocation2 + $0x90] sm:$0x1] %vm31_vm2, %v6906_v0  ;;  %38 = vst.msk [vmem:[#allocation2 + $0xa8] sm:$0x1] %vm31_vm2, %v6906_v0  ;;  %v149_v22 = vld [vmem:[%s12390_s0 + $0xa0] sm:$0xff]  ;;  %v7202_v24 = vld [vmem:[#allocation2 + $0x8] sm:$0xff] }
   0xc   :  { %39 = vst.msk [vmem:[#allocation2 + $0xc0] sm:$0x1] %vm31_vm2, %v6906_v0  ;;  %40 = vst.msk [vmem:[#allocation2 + $0xd8] sm:$0x1] %vm31_vm2, %v6906_v0  ;;  %v7200_v23 = vld [vmem:[#allocation2] sm:$0xff]  ;;  %v545_v27 = vrot.slane %v7202_v24, 1 }
   0xd   :  { %41 = vst.msk [vmem:[#allocation2 + $0xf0] sm:$0x1] %vm31_vm2, %v6906_v0  ;;  %42 = vst.msk [vmem:[#allocation2 + $0x108] sm:$0x1] %vm31_vm2, %v6906_v0  ;;  %v7204_v25 = vld [vmem:[#allocation2 + $0x10] sm:$0x3]  ;;  %v383_v37 = vpack.c.bf16 %v7202_v24, %v7200_v23 }
   0xe   :  { %43 = vst.msk [vmem:[#allocation2 + $0x120] sm:$0x1] %vm31_vm2, %v6906_v0  ;;  %44 = vst.msk [vmem:[#allocation2 + $0x138] sm:$0x1] %vm31_vm2, %v6906_v0  ;;  %v544_v26 = vrot.slane %v7200_v23, 1  ;;  %v547_v28 = vrot.slane %v7204_v25, 1 }
   0xf   :  { %45 = vst.msk [vmem:[#allocation2 + $0x150] sm:$0x1] %vm31_vm2, %v6906_v0  ;;  %46 = vst.msk [vmem:[#allocation2 + $0x168] sm:$0x1] %vm31_vm2, %v6906_v0  ;;  %v7212_v29 = vld [vmem:[#allocation2 + $0x30] sm:$0xff]  ;;  %v7214_v30 = vld [vmem:[#allocation2 + $0x38] sm:$0xff] }
  0x10   :  { %47 = vst.msk [vmem:[#allocation2 + $0x180] sm:$0x1] %vm31_vm2, %v6906_v0  ;;  %48 = vst.msk [vmem:[#allocation2 + $0x1c8] sm:$0x1] %vm31_vm2, %v6906_v0  ;;  %v7216_v31 = vld [vmem:[#allocation2 + $0x40] sm:$0x3]  ;;  %v7226_v36 = vpack.c.bf16 %v7214_v30, %v7212_v29  ;;  %v546_v38 = vsel %vm543_vm4, %v544_v26, %v545_v27  ;;  %v548_v39 = vsel %vm543_vm4, %v545_v27, %v547_v28 }
  0x11   :  { %49 = vst.msk [vmem:[#allocation2 + $0x1e0] sm:$0x1] %vm31_vm2, %v6906_v0  ;;  %50 = vst.msk [vmem:[#allocation2 + $0x1f8] sm:$0x1] %vm31_vm2, %v6906_v0  ;;  %v554_v32 = vrot.slane %v7212_v29, 1  ;;  %v555_v33 = vrot.slane %v7214_v30, 1  ;;  %v768_v45 = vpack.c.bf16 %v548_v39, %v546_v38 }
  0x12   :  { %51 = vst.msk [vmem:[#allocation2 + $0x210] sm:$0x1] %vm31_vm2, %v6906_v0  ;;  %52 = vst.msk [vmem:[#allocation2 + $0x228] sm:$0x1] %vm31_vm2, %v6906_v0  ;;  %v557_v40 = vrot.slane %v7216_v31, 1  ;;  %s6915_s23 = smov 64  }
  0x13   :  { %53 = vst.msk [vmem:[#allocation2 + $0x240] sm:$0x1] %vm31_vm2, %v6906_v0  ;;  %54 = vst.msk [vmem:[#allocation2 + $0x258] sm:$0x1] %vm31_vm2, %v6906_v0  ;;  %v556_v46 = vsel %vm543_vm4, %v554_v32, %v555_v33  ;;  %832 = vrot.lane.b32.xlu0 %v768_v45, %s6908_s27  ;;  %vm1346_vm7 = vcmask 195712   ;;  %vm1509_vm8 = vcmask 261312  }
  0x14   :  { %55 = vst.msk [vmem:[#allocation2 + $0x270] sm:$0x1] %vm31_vm2, %v6906_v0  ;;  %56 = vst.msk [vmem:[#allocation2 + $0x288] sm:$0x1] %vm31_vm2, %v6906_v0  ;;  %v558_v52 = vsel %vm543_vm4, %v555_v33, %v557_v40  ;;  %vm1662_vm9 = vcmask 326912   ;;  %vm1809_vm10 = vcmask 392512  }
  0x15   :  { %57 = vst.msk [vmem:[#allocation2 + $0x2a0] sm:$0x1] %vm31_vm2, %v6906_v0  ;;  %58 = vst.msk [vmem:[#allocation2 + $0x2b8] sm:$0x1] %vm31_vm2, %v6906_v0  ;;  %v7261_v58 = vpack.c.bf16 %v558_v52, %v556_v46  ;;  %vm1942_vm11 = vcmask 458112   ;;  %vm2095_vm12 = vcmask 523712  }
  0x16   :  { %59 = vst.msk [vmem:[#allocation2 + $0x2d0] sm:$0x1] %vm31_vm2, %v6906_v0  ;;  %60 = vst.msk [vmem:[#allocation2 + $0x2e8] sm:$0x1] %vm31_vm2, %v6906_v0  ;;  %vm2242_vm13 = vcmask 589312  }
  0x17   :  { %61 = vst.msk [vmem:[#allocation2 + $0x300] sm:$0x1] %vm31_vm2, %v6906_v0  ;;  %62 = vst.msk [vmem:[#allocation2 + $0x318] sm:$0x1] %vm31_vm2, %v6906_v0  ;;  %836 = vrot.lane.b32.xlu1 %v7261_v58, %s6908_s27 }
  0x18   :  { %63 = vst.msk [vmem:[#allocation2 + $0x330] sm:$0x1] %vm31_vm2, %v6906_v0  ;;  %64 = vst.msk [vmem:[#allocation2 + $0x29] sm:$0x1] %vm31_vm2, %v6906_v0 }
  0x19   :  { %66 = vst.msk [vmem:[#allocation2 + $0x59] sm:$0x1] %vm31_vm2, %v6906_v0  ;;  %67 = vst.msk [vmem:[#allocation2 + $0x71] sm:$0x1] %vm31_vm2, %v6906_v0 }
  0x1a   :  { %68 = vst.msk [vmem:[#allocation2 + $0x89] sm:$0x1] %vm31_vm2, %v6906_v0  ;;  %69 = vst.msk [vmem:[#allocation2 + $0xa1] sm:$0x1] %vm31_vm2, %v6906_v0 }
  0x1b   :  { %70 = vst.msk [vmem:[#allocation2 + $0xb9] sm:$0x1] %vm31_vm2, %v6906_v0  ;;  %71 = vst.msk [vmem:[#allocation2 + $0xd1] sm:$0x1] %vm31_vm2, %v6906_v0 }
  0x1c   :  { %72 = vst.msk [vmem:[#allocation2 + $0xe9] sm:$0x1] %vm31_vm2, %v6906_v0  ;;  %73 = vst.msk [vmem:[#allocation2 + $0x101] sm:$0x1] %vm31_vm2, %v6906_v0 }
  0x1d   :  { %74 = vst.msk [vmem:[#allocation2 + $0x119] sm:$0x1] %vm31_vm2, %v6906_v0  ;;  %75 = vst.msk [vmem:[#allocation2 + $0x131] sm:$0x1] %vm31_vm2, %v6906_v0 }
  0x1e   :  { %76 = vst.msk [vmem:[#allocation2 + $0x149] sm:$0x1] %vm31_vm2, %v6906_v0  ;;  %77 = vst.msk [vmem:[#allocation2 + $0x161] sm:$0x1] %vm31_vm2, %v6906_v0 }
  0x1f   :  { %78 = vst.msk [vmem:[#allocation2 + $0x179] sm:$0x1] %vm31_vm2, %v6906_v0  ;;  %79 = vst.msk [vmem:[#allocation2 + $0x191] sm:$0x1] %vm31_vm2, %v6906_v0 }
  0x20   :  { %80 = vst.msk [vmem:[#allocation2 + $0x1d9] sm:$0x1] %vm31_vm2, %v6906_v0  ;;  %81 = vst.msk [vmem:[#allocation2 + $0x1f1] sm:$0x1] %vm31_vm2, %v6906_v0 }
  0x21   :  { %82 = vst.msk [vmem:[#allocation2 + $0x209] sm:$0x1] %vm31_vm2, %v6906_v0  ;;  %83 = vst.msk [vmem:[#allocation2 + $0x221] sm:$0x1] %vm31_vm2, %v6906_v0 }
  0x22   :  { %84 = vst.msk [vmem:[#allocation2 + $0x239] sm:$0x1] %vm31_vm2, %v6906_v0  ;;  %85 = vst.msk [vmem:[#allocation2 + $0x251] sm:$0x1] %vm31_vm2, %v6906_v0 }
  0x23   :  { %86 = vst.msk [vmem:[#allocation2 + $0x269] sm:$0x1] %vm31_vm2, %v6906_v0  ;;  %87 = vst.msk [vmem:[#allocation2 + $0x281] sm:$0x1] %vm31_vm2, %v6906_v0 }
  0x24   :  { %88 = vst.msk [vmem:[#allocation2 + $0x299] sm:$0x1] %vm31_vm2, %v6906_v0  ;;  %89 = vst.msk [vmem:[#allocation2 + $0x2b1] sm:$0x1] %vm31_vm2, %v6906_v0 }
  0x25   :  { %90 = vst.msk [vmem:[#allocation2 + $0x2c9] sm:$0x1] %vm31_vm2, %v6906_v0  ;;  %91 = vst.msk [vmem:[#allocation2 + $0x2e1] sm:$0x1] %vm31_vm2, %v6906_v0 }
  0x26   :  { %92 = vst.msk [vmem:[#allocation2 + $0x2f9] sm:$0x1] %vm31_vm2, %v6906_v0  ;;  %93 = vst.msk [vmem:[#allocation2 + $0x311] sm:$0x1] %vm31_vm2, %v6906_v0 }
  0x27   :  { %94 = vst.msk [vmem:[#allocation2 + $0x329] sm:$0x1] %vm31_vm2, %v6906_v0  ;;  %95 = vst.msk [vmem:[#allocation2 + $0x341] sm:$0x1] %vm31_vm2, %v6906_v0 }
  0x28   :  { %193 = vst.msk [vmem:[#allocation2 + $0x19] sm:$0xff] %vm15_vm0, %v6965_v3  ;;  %194 = vst.msk [vmem:[#allocation2 + $0x21] sm:$0xff] %vm15_vm0, %v130_v4 }
  0x29   :  { %197 = vst.msk [vmem:[#allocation2 + $0x49] sm:$0xff] %vm15_vm0, %v133_v5  ;;  %198 = vst.msk [vmem:[#allocation2 + $0x51] sm:$0xff] %vm15_vm0, %v134_v6 }
  0x2a   :  { %199 = vst.msk [vmem:[#allocation2 + $0x61] sm:$0xff] %vm15_vm0, %v135_v7  ;;  %200 = vst.msk [vmem:[#allocation2 + $0x69] sm:$0xff] %vm15_vm0, %v136_v8 }
  0x2b   :  { %201 = vst.msk [vmem:[#allocation2 + $0x79] sm:$0xff] %vm15_vm0, %v137_v9  ;;  %202 = vst.msk [vmem:[#allocation2 + $0x81] sm:$0xff] %vm15_vm0, %v138_v10 }
  0x2c   :  { %97 = vst.msk [vmem:[#allocation3] sm:$0xff] %vm96_vm3, %v6907_v13  ;;  %98 = vst.msk [vmem:[#allocation3 + $0x8] sm:$0xff] %vm96_vm3, %v6907_v13 }
  0x2d   :  { %99 = vst.msk [vmem:[#allocation3 + $0x10] sm:$0xff] %vm96_vm3, %v6907_v13  ;;  %100 = vst.msk [vmem:[#allocation3 + $0x18] sm:$0xff] %vm96_vm3, %v6907_v13 }
  0x2e   :  { %101 = vst.msk [vmem:[#allocation3 + $0x20] sm:$0xff] %vm96_vm3, %v6907_v13  ;;  %102 = vst.msk [vmem:[#allocation3 + $0x28] sm:$0xff] %vm96_vm3, %v6907_v13 }
  0x2f   :  { %103 = vst.msk [vmem:[#allocation3 + $0x30] sm:$0xff] %vm96_vm3, %v6907_v13  ;;  %104 = vst.msk [vmem:[#allocation3 + $0x38] sm:$0xff] %vm96_vm3, %v6907_v13  ;;  %v7220_v34 = vld [vmem:[#allocation2 + $0x18] sm:$0xff]  ;;  %v7222_v35 = vld [vmem:[#allocation2 + $0x20] sm:$0xff] }
  0x30   :  { %105 = vst.msk [vmem:[#allocation3 + $0x40] sm:$0xff] %vm96_vm3, %v6907_v13  ;;  %106 = vst.msk [vmem:[#allocation3 + $0x48] sm:$0xff] %vm96_vm3, %v6907_v13  ;;  %v7233_v41 = vld [vmem:[#allocation2 + $0x28] sm:$0x3]  ;;  %v549_v42 = vrot.slane %v7220_v34, 1  ;;  %v7238_v44 = vld [vmem:[#allocation2 + $0x50] sm:$0xff] }
  0x31   :  { %107 = vst.msk [vmem:[#allocation3 + $0x50] sm:$0xff] %vm96_vm3, %v6907_v13  ;;  %108 = vst.msk [vmem:[#allocation3 + $0x58] sm:$0xff] %vm96_vm3, %v6907_v13  ;;  %v7236_v43 = vld [vmem:[#allocation2 + $0x48] sm:$0xff]  ;;  %v550_v47 = vrot.slane %v7222_v35, 1  ;;  %v552_v48 = vrot.slane %v7233_v41, 1  ;;  %v7245_v50 = vld [vmem:[#allocation2 + $0x60] sm:$0xff] }
  0x32   :  { %109 = vst.msk [vmem:[#allocation3 + $0x60] sm:$0xff] %vm96_vm3, %v6907_v13  ;;  %110 = vst.msk [vmem:[#allocation3 + $0x68] sm:$0xff] %vm96_vm3, %v6907_v13  ;;  %v7243_v49 = vld [vmem:[#allocation2 + $0x58] sm:$0x3]  ;;  %v7247_v51 = vld [vmem:[#allocation2 + $0x68] sm:$0xff]  ;;  %v559_v53 = vrot.slane %v7236_v43, 1 }
  0x33   :  { %111 = vst.msk [vmem:[#allocation3 + $0x70] sm:$0xff] %vm96_vm3, %v6907_v13  ;;  %112 = vst.msk [vmem:[#allocation3 + $0x78] sm:$0xff] %vm96_vm3, %v6907_v13  ;;  %v560_v54 = vrot.slane %v7238_v44, 1  ;;  %v562_v55 = vrot.slane %v7243_v49, 1  ;;  %v7256_v56 = vld [vmem:[#allocation2 + $0x70] sm:$0x3]  ;;  %v551_v59 = vsel %vm543_vm4, %v549_v42, %v550_v47  ;;  %v553_v60 = vsel %vm543_vm4, %v550_v47, %v552_v48 }
  0x34   :  { %113 = vst.msk [vmem:[#allocation3 + $0x80] sm:$0xff] %vm96_vm3, %v6907_v13  ;;  %114 = vst.msk [vmem:[#allocation3 + $0x88] sm:$0xff] %vm96_vm3, %v6907_v13  ;;  %v7258_v57 = vld [vmem:[#allocation2 + $0x78] sm:$0xff]  ;;  %v564_v61 = vrot.slane %v7245_v50, 1  ;;  %v7266_v62 = vld [vmem:[#allocation2 + $0x80] sm:$0xff]  ;;  %v7272_v1 = vpack.c.bf16 %v553_v60, %v551_v59  ;;  %v565_v4 = vrot.slane %v7247_v51, 1 }
  0x35   :  { %115 = vst.msk [vmem:[#allocation3 + $0x90] sm:$0xff] %vm96_vm3, %v6907_v13  ;;  %116 = vst.msk [vmem:[#allocation3 + $0x98] sm:$0xff] %vm96_vm3, %v6907_v13  ;;  %v7268_v63 = vld [vmem:[#allocation2 + $0x88] sm:$0x3]  ;;  %v561_v2 = vsel %vm543_vm4, %v559_v53, %v560_v54  ;;  %v563_v3 = vsel %vm543_vm4, %v560_v54, %v562_v55  ;;  %v567_v9 = vrot.slane %v7256_v56, 1  ;;  %v569_v10 = vrot.slane %v7258_v57, 1 }
  0x36   :  { %117 = vst.msk [vmem:[#allocation3 + $0xa0] sm:$0xff] %vm96_vm3, %v6907_v13  ;;  %118 = vst.msk [vmem:[#allocation3 + $0xa8] sm:$0xff] %vm96_vm3, %v6907_v13  ;;  %v7285_v8 = vpack.c.bf16 %v563_v3, %v561_v2  ;;  %834 = vrot.lane.b32.xlu0 %v7272_v1, %s6908_s27  ;;  %v150_v54 = vld [vmem:[%s12390_s0 + $0xa8] sm:$0xff]  ;;  %v151_v55 = vld [vmem:[%s12390_s0 + $0xb0] sm:$0xff] }
  0x37   :  { %119 = vst.msk [vmem:[#allocation3 + $0xb0] sm:$0xff] %vm96_vm3, %v6907_v13  ;;  %120 = vst.msk [vmem:[#allocation3 + $0xb8] sm:$0xff] %vm96_vm3, %v6907_v13  ;;  %v152_v3 = vld [vmem:[%s12390_s0 + $0xb8] sm:$0xff] }
  0x38   :  { %121 = vst.msk [vmem:[#allocation3 + $0xc0] sm:$0xff] %vm96_vm3, %v6907_v13  ;;  %122 = vst.msk [vmem:[#allocation3 + $0xc8] sm:$0xff] %vm96_vm3, %v6907_v13  ;;  %838 = vrot.lane.b32.xlu1 %v7285_v8, %s6908_s27 }
  0x39   :  { %123 = vst.msk [vmem:[#allocation3 + $0xd0] sm:$0xff] %vm96_vm3, %v6907_v13  ;;  %124 = vst.msk [vmem:[#allocation3 + $0xd8] sm:$0xff] %vm96_vm3, %v6907_v13 }
  0x3a   :  { %125 = vst.msk [vmem:[#allocation3 + $0xe0] sm:$0xff] %vm96_vm3, %v6907_v13  ;;  %126 = vst.msk [vmem:[#allocation3 + $0xe8] sm:$0xff] %vm96_vm3, %v6907_v13 }
  0x3b   :  { %127 = vst.msk [vmem:[#allocation3 + $0xf0] sm:$0xff] %vm96_vm3, %v6907_v13  ;;  %128 = vst.msk [vmem:[#allocation3 + $0xf8] sm:$0xff] %vm96_vm3, %v6907_v13 }
  0x3c   :  { %203 = vst.msk [vmem:[#allocation2 + $0x91] sm:$0xff] %vm15_vm0, %v139_v11  ;;  %204 = vst.msk [vmem:[#allocation2 + $0x99] sm:$0xff] %vm15_vm0, %v140_v12  ;;  %v570_v11 = vrot.slane %v7266_v62, 1 }
  0x3d   :  { %205 = vst.msk [vmem:[#allocation2 + $0xa9] sm:$0xff] %vm15_vm0, %v141_v14  ;;  %206 = vst.msk [vmem:[#allocation2 + $0xb1] sm:$0xff] %vm15_vm0, %v142_v15  ;;  %v566_v14 = vsel %vm543_vm4, %v564_v61, %v565_v4  ;;  %v572_v15 = vrot.slane %v7268_v63, 1 }
  0x3e   :  { %207 = vst.msk [vmem:[#allocation2 + $0xc1] sm:$0xff] %vm15_vm0, %v143_v16  ;;  %208 = vst.msk [vmem:[#allocation2 + $0xc9] sm:$0xff] %vm15_vm0, %v144_v17 }
  0x3f   :  { %209 = vst.msk [vmem:[#allocation2 + $0xd9] sm:$0xff] %vm15_vm0, %v145_v18  ;;  %210 = vst.msk [vmem:[#allocation2 + $0xe1] sm:$0xff] %vm15_vm0, %v146_v19 }
  0x40   :  { %211 = vst.msk [vmem:[#allocation2 + $0xf1] sm:$0xff] %vm15_vm0, %v147_v20  ;;  %212 = vst.msk [vmem:[#allocation2 + $0xf9] sm:$0xff] %vm15_vm0, %v148_v21  ;;  %v568_v20 = vsel %vm543_vm4, %v565_v4, %v567_v9  ;;  %v571_v21 = vsel %vm543_vm4, %v569_v10, %v570_v11  ;;  %v153_v4 = vld [vmem:[%s12390_s0 + $0xc0] sm:$0xff]  ;;  %v154_v9 = vld [vmem:[%s12390_s0 + $0xc8] sm:$0xff] }
  0x41   :  { %213 = vst.msk [vmem:[#allocation2 + $0x109] sm:$0xff] %vm15_vm0, %v149_v22  ;;  %12701 = vst [vmem:[#allocation4_spill] sm:$0xff] %v7226_v36  ;;  %v7314_v33 = vpack.c.bf16 %v568_v20, %v566_v14  ;;  %v157_v20 = vld [vmem:[%s12390_s0 + $0xe0] sm:$0xff] }
  0x42   :  { %415 = vst.msk [vmem:[#allocation3] sm:$0xff] %vm15_vm0, %v383_v37  ;;  %417 = vst.msk [vmem:[#allocation3 + $0x10] sm:$0xff] %vm15_vm0, %v7226_v36  ;;  %v573_v37 = vsel %vm543_vm4, %v570_v11, %v572_v15 }
  0x43   :  { %12702 = vst [vmem:[#allocation5_spill] sm:$0xff] %v7261_v58  ;;  %v7270_v0 = vld [vmem:[#allocation2 + $0x90] sm:$0xff]  ;;  %12703 = vst [vmem:[#allocation6_spill] sm:$0xff] %v7272_v1  ;;  %v7277_v5 = vld [vmem:[#allocation2 + $0x98] sm:$0xff]  ;;  %v7327_v46 = vpack.c.bf16 %v573_v37, %v571_v21  ;;  %840 = vrot.lane.b32.xlu0 %v7314_v33, %s6908_s27 }
  0x44   :  { %v7279_v6 = vld [vmem:[#allocation2 + $0xa0] sm:$0x3]  ;;  %v7281_v7 = vld [vmem:[#allocation2 + $0xa8] sm:$0xff]  ;;  %12704 = vst [vmem:[#allocation7_spill] sm:$0xff] %v7285_v8  ;;  %v7290_v12 = vld [vmem:[#allocation2 + $0xb0] sm:$0xff]  ;;  %v574_v16 = vrot.slane %v7270_v0, 1 }
  0x45   :  { %v7292_v13 = vld [vmem:[#allocation2 + $0xb8] sm:$0x3]  ;;  %v575_v17 = vrot.slane %v7277_v5, 1  ;;  %v7298_v18 = vld [vmem:[#allocation2 + $0xc0] sm:$0xff]  ;;  %v7300_v19 = vld [vmem:[#allocation2 + $0xc8] sm:$0xff]  ;;  %v577_v22 = vrot.slane %v7279_v6, 1  ;;  %842 = vrot.lane.b32.xlu1 %v7327_v46, %s6908_s27 }
  0x46   :  { %v579_v26 = vrot.slane %v7281_v7, 1  ;;  %v7308_v27 = vld [vmem:[#allocation2 + $0xd0] sm:$0x3]  ;;  %v7310_v28 = vld [vmem:[#allocation2 + $0xd8] sm:$0xff]  ;;  %v7312_v32 = vld [vmem:[#allocation2 + $0xe0] sm:$0xff]  ;;  %12705 = vst [vmem:[#allocation8_spill] sm:$0xff] %v7314_v33 }
  0x47   :  { %v576_v38 = vsel %vm543_vm4, %v574_v16, %v575_v17  ;;  %v580_v39 = vrot.slane %v7290_v12, 1  ;;  %v7319_v40 = vld [vmem:[#allocation2 + $0xe8] sm:$0x3]  ;;  %v7321_v42 = vld [vmem:[#allocation2 + $0xf0] sm:$0xff]  ;;  %v7323_v45 = vld [vmem:[#allocation2 + $0xf8] sm:$0xff]  ;;  %12706 = vst [vmem:[#allocation9_spill] sm:$0xff] %v7327_v46  ;;  %v578_v47 = vsel %vm543_vm4, %v575_v17, %v577_v22 }
  0x48   :  { %v582_v48 = vrot.slane %v7292_v13, 1  ;;  %v584_v52 = vrot.slane %v7298_v18, 1  ;;  %v7332_v53 = vld [vmem:[#allocation2 + $0x100] sm:$0x3]  ;;  %v7340_v59 = vpack.c.bf16 %v578_v47, %v576_v38  ;;  %v585_v61 = vrot.slane %v7300_v19, 1  ;;  %214 = vst.msk [vmem:[#allocation2 + $0x111] sm:$0xff] %vm15_vm0, %v150_v54 }
  0x49   :  { %v581_v60 = vsel %vm543_vm4, %v579_v26, %v580_v39  ;;  %v587_v2 = vrot.slane %v7308_v27, 1  ;;  %215 = vst.msk [vmem:[#allocation2 + $0x121] sm:$0xff] %vm15_vm0, %v151_v55  ;;  %v589_v11 = vrot.slane %v7310_v28, 1  ;;  %v590_v14 = vrot.slane %v7312_v32, 1  ;;  %216 = vst.msk [vmem:[#allocation2 + $0x129] sm:$0xff] %vm15_vm0, %v152_v3  ;;  %v155_v16 = vld [vmem:[%s12390_s0 + $0xd0] sm:$0xff] }
  0x4a   :  { %12707 = vst [vmem:[#allocation10_spill] sm:$0xff] %v7340_v59  ;;  %v583_v10 = vsel %vm543_vm4, %v580_v39, %v582_v48  ;;  %v592_v15 = vrot.slane %v7319_v40, 1  ;;  %217 = vst.msk [vmem:[#allocation2 + $0x139] sm:$0xff] %vm15_vm0, %v153_v4  ;;  %v156_v17 = vld [vmem:[%s12390_s0 + $0xd8] sm:$0xff]  ;;  %v586_v21 = vsel %vm543_vm4, %v584_v52, %v585_v61  ;;  %v594_v26 = vrot.slane %v7321_v42, 1  ;;  %v7377_v37 = vld [vmem:[#allocation2 + $0x108] sm:$0xff]  ;;  %844 = vrot.lane.b32.xlu0 %v7340_v59, %s6908_s27 }
  0x4b   :  { %218 = vst.msk [vmem:[#allocation2 + $0x141] sm:$0xff] %vm15_vm0, %v154_v9  ;;  %v588_v22 = vsel %vm543_vm4, %v585_v61, %v587_v2  ;;  %219 = vst.msk [vmem:[#allocation2 + $0x151] sm:$0xff] %vm15_vm0, %v155_v16  ;;  %v158_v38 = vld [vmem:[%s12390_s0 + $0xe8] sm:$0xff]  ;;  %v7385_v39 = vld [vmem:[#allocation2 + $0x1b0] sm:$0xff]  ;;  %v7389_v47 = vpack.c.bf16 %v583_v10, %v581_v60  ;;  %v595_v48 = vrot.slane %v7323_v45, 1  ;;  %v591_v61 = vsel %vm543_vm4, %v589_v11, %v590_v14 }
  0x4c   :  { %220 = vst.msk [vmem:[#allocation2 + $0x159] sm:$0xff] %vm15_vm0, %v156_v17  ;;  %221 = vst.msk [vmem:[#allocation2 + $0x169] sm:$0xff] %vm15_vm0, %v157_v20  ;;  %v7393_v52 = vld [vmem:[#allocation2 + $0x1b8] sm:$0xff]  ;;  %v161_v54 = vld [vmem:[%s12390_s0 + $0x100] sm:$0xff]  ;;  %v593_v2 = vsel %vm543_vm4, %v590_v14, %v592_v15  ;;  %v597_v60 = vrot.slane %v7332_v53, 1  ;;  %v965_v10 = vrot.slane %v7204_v25, 2  ;;  %v7418_v11 = vpack.c.bf16 %v588_v22, %v586_v21 }
  0x4d   :  { %12708 = vst [vmem:[#allocation11_spill] sm:$0xff] %v7389_v47  ;;  %222 = vst.msk [vmem:[#allocation2 + $0x171] sm:$0xff] %vm15_vm0, %v158_v38  ;;  %v162_v55 = vld [vmem:[%s12390_s0 + $0x108] sm:$0xff]  ;;  %v163_v3 = vld [vmem:[%s12390_s0 + $0x110] sm:$0xff]  ;;  %v596_v14 = vsel %vm543_vm4, %v594_v26, %v595_v48  ;;  %v599_v20 = vrot.slane %v7377_v37, 1  ;;  %v962_v38 = vrot.slane %v7200_v23, 2  ;;  %846 = vrot.lane.b32.xlu1 %v7389_v47, %s6908_s27 }
  0x4e   :  { %12709 = vst [vmem:[#allocation12_spill] sm:$0xff] %v7393_v52  ;;  %225 = vst.msk [vmem:[#allocation2 + $0x1c9] sm:$0xff] %vm15_vm0, %v161_v54  ;;  %v164_v4 = vld [vmem:[%s12390_s0 + $0x118] sm:$0xff]  ;;  %v165_v9 = vld [vmem:[%s12390_s0 + $0x120] sm:$0xff]  ;;  %v598_v17 = vsel %vm543_vm4, %v595_v48, %v597_v60  ;;  %v963_v48 = vrot.slane %v7202_v24, 2  ;;  %v7451_v54 = vpack.c.bf16 %v593_v2, %v591_v61  ;;  %848 = vrot.lane.b32.xlu0 %v7418_v11, %s6908_s27 }
  0x4f   :  { %226 = vst.msk [vmem:[#allocation2 + $0x1d1] sm:$0xff] %vm15_vm0, %v162_v55  ;;  %12710 = vst [vmem:[#allocation13_spill] sm:$0xff] %v7418_v11  ;;  %v166_v15 = vld [vmem:[%s12390_s0 + $0x128] sm:$0xff]  ;;  %v167_v25 = vld [vmem:[%s12390_s0 + $0x130] sm:$0xff]  ;;  %v7464_v23 = vpack.c.bf16 %v598_v17, %v596_v14 }
  0x50   :  { %227 = vst.msk [vmem:[#allocation2 + $0x1e1] sm:$0xff] %vm15_vm0, %v163_v3  ;;  %228 = vst.msk [vmem:[#allocation2 + $0x1e9] sm:$0xff] %vm15_vm0, %v164_v4  ;;  %v168_v16 = vld [vmem:[%s12390_s0 + $0x138] sm:$0xff]  ;;  %v169_v21 = vld [vmem:[%s12390_s0 + $0x140] sm:$0xff]  ;;  %v7484_v4 = vsel %vm961_vm5, %v962_v38, %v963_v48 }
  0x51   :  { %229 = vst.msk [vmem:[#allocation2 + $0x1f9] sm:$0xff] %vm15_vm0, %v165_v9  ;;  %230 = vst.msk [vmem:[#allocation2 + $0x201] sm:$0xff] %vm15_vm0, %v166_v15  ;;  %v170_v22 = vld [vmem:[%s12390_s0 + $0x148] sm:$0xff]  ;;  %v171_v26 = vld [vmem:[%s12390_s0 + $0x150] sm:$0xff]  ;;  %v7487_v9 = vsel %vm961_vm5, %v963_v48, %v965_v10  ;;  %850 = vrot.lane.b32.xlu1 %v7451_v54, %s6908_s27 }
  0x52   :  { %231 = vst.msk [vmem:[#allocation2 + $0x211] sm:$0xff] %vm15_vm0, %v167_v25  ;;  %232 = vst.msk [vmem:[#allocation2 + $0x219] sm:$0xff] %vm15_vm0, %v168_v16  ;;  %v7453_v55 = vld [vmem:[#allocation2 + $0x110] sm:$0xff]  ;;  %v7455_v60 = vld [vmem:[#allocation2 + $0x118] sm:$0x3]  ;;  %852 = vrot.lane.b32.xlu0 %v7464_v23, %s6908_s27 }
  0x53   :  { %12711 = vst [vmem:[#allocation14_spill] sm:$0xff] %v7451_v54  ;;  %12712 = vst [vmem:[#allocation15_spill] sm:$0xff] %v7455_v60  ;;  %v7457_v3 = vld [vmem:[#allocation2 + $0x120] sm:$0xff]  ;;  %v600_v24 = vrot.slane %v7453_v55, 1  ;;  %v602_v61 = vrot.slane %v7455_v60, 1  ;;  %v7468_v2 = vld [vmem:[#allocation2 + $0x128] sm:$0xff] }
  0x54   :  { %233 = vst.msk [vmem:[#allocation2 + $0x229] sm:$0xff] %vm15_vm0, %v169_v21  ;;  %234 = vst.msk [vmem:[#allocation2 + $0x231] sm:$0xff] %vm15_vm0, %v170_v22  ;;  %v7470_v15 = vld [vmem:[#allocation2 + $0x130] sm:$0x3]  ;;  %v604_v25 = vrot.slane %v7457_v3, 1  ;;  %v605_v16 = vrot.slane %v7468_v2, 1 }
  0x55   :  { %235 = vst.msk [vmem:[#allocation2 + $0x241] sm:$0xff] %vm15_vm0, %v171_v26  ;;  %12713 = vst [vmem:[#allocation16_spill] sm:$0xff] %v7464_v23  ;;  %v607_v21 = vrot.slane %v7470_v15, 1  ;;  %v7477_v22 = vld [vmem:[#allocation2 + $0x138] sm:$0xff]  ;;  %v7479_v14 = vld [vmem:[#allocation2 + $0x140] sm:$0xff]  ;;  %v601_v47 = vsel %vm543_vm4, %v599_v20, %v600_v24  ;;  %v603_v11 = vsel %vm543_vm4, %v600_v24, %v602_v61 }
  0x56   :  { %12714 = vst [vmem:[#allocation17_spill] sm:$0xff] %v7468_v2  ;;  %12715 = vst [vmem:[#allocation18_spill] sm:$0xff] %v7470_v15  ;;  %v7481_v17 = vld [vmem:[#allocation2 + $0x148] sm:$0x3]  ;;  %v331_v26 = vld [vmem:[#allocation2 + $0x1c0] sm:$0x3]  ;;  %v7501_v38 = vpack.c.bf16 %v603_v11, %v601_v47  ;;  %v606_v10 = vsel %vm543_vm4, %v604_v25, %v605_v16 }
  0x57   :  { %12716 = vst [vmem:[#allocation19_spill] sm:$0xff] %v7477_v22  ;;  %12717 = vst [vmem:[#allocation20_spill] sm:$0xff] %v7479_v14  ;;  %v609_v59 = vrot.slane %v7477_v22, 1  ;;  %v610_v46 = vrot.slane %v7479_v14, 1  ;;  %v7493_v33 = vld [vmem:[#allocation2 + $0x150] sm:$0xff]  ;;  %v7495_v8 = vld [vmem:[#allocation2 + $0x158] sm:$0xff]  ;;  %v608_v20 = vsel %vm543_vm4, %v605_v16, %v607_v21 }
  0x58   :  { %12718 = vst [vmem:[#allocation21_spill] sm:$0xff] %v7481_v17  ;;  %12719 = vst [vmem:[#allocation22_spill] sm:$0xff] %v7493_v33  ;;  %v7497_v58 = vld [vmem:[#allocation2 + $0x160] sm:$0x3]  ;;  %v612_v48 = vrot.slane %v7481_v17, 1  ;;  %v7506_v24 = vld [vmem:[#allocation2 + $0x168] sm:$0xff]  ;;  %v7512_v36 = vpack.c.bf16 %v608_v20, %v606_v10  ;;  %854 = vrot.lane.b32.xlu1 %v7501_v38, %s6908_s27 }
  0x59   :  { %12720 = vst [vmem:[#allocation23_spill] sm:$0xff] %v7495_v8  ;;  %12721 = vst [vmem:[#allocation24_spill] sm:$0xff] %v7497_v58  ;;  %v7508_v61 = vld [vmem:[#allocation2 + $0x170] sm:$0xff]  ;;  %v7510_v1 = vld [vmem:[#allocation2 + $0x178] sm:$0x3]  ;;  %v611_v15 = vsel %vm543_vm4, %v609_v59, %v610_v46  ;;  %v614_v54 = vrot.slane %v7493_v33, 1 }
  0x5a   :  { %12722 = vst [vmem:[#allocation25_spill] sm:$0xff] %v7501_v38  ;;  %12723 = vst [vmem:[#allocation26_spill] sm:$0xff] %v7506_v24  ;;  %v615_v47 = vrot.slane %v7495_v8, 1  ;;  %v7517_v11 = vld [vmem:[#allocation2 + $0x1c8] sm:$0xff]  ;;  %v613_v25 = vsel %vm543_vm4, %v610_v46, %v612_v48  ;;  %v617_v16 = vrot.slane %v7497_v58, 1  ;;  %v619_v21 = vrot.slane %v7506_v24, 1  ;;  %856 = vrot.lane.b32.xlu0 %v7512_v36, %s6908_s27 }
  0x5b   :  { %12724 = vst [vmem:[#allocation27_spill] sm:$0xff] %v7508_v61  ;;  %12725 = vst [vmem:[#allocation28_spill] sm:$0xff] %v7510_v1  ;;  %v620_v10 = vrot.slane %v7508_v61, 1  ;;  %v7525_v20 = vld [vmem:[#allocation2 + $0x1d0] sm:$0xff]  ;;  %v334_v59 = vld [vmem:[#allocation2 + $0x1d8] sm:$0x3]  ;;  %v7535_v46 = vpack.c.bf16 %v613_v25, %v611_v15 }
  0x5c   :  { %12726 = vst [vmem:[#allocation29_spill] sm:$0xff] %v7512_v36  ;;  %12727 = vst [vmem:[#allocation30_spill] sm:$0xff] %v7517_v11  ;;  %v616_v17 = vsel %vm543_vm4, %v614_v54, %v615_v47  ;;  %v622_v60 = vrot.slane %v7510_v1, 1  ;;  %v627_v8 = vrot.slane %v331_v26, 1  ;;  %v7529_v33 = vld [vmem:[#allocation2 + $0x1e0] sm:$0xff]  ;;  %v7531_v14 = vld [vmem:[#allocation2 + $0x1e8] sm:$0xff]  ;;  %v618_v48 = vsel %vm543_vm4, %v615_v47, %v617_v16 }
  0x5d   :  { %12728 = vst [vmem:[#allocation31_spill] sm:$0xff] %v7525_v20  ;;  %12729 = vst [vmem:[#allocation32_spill] sm:$0xff] %v7529_v33  ;;  %v337_v23 = vld [vmem:[#allocation2 + $0x1f0] sm:$0x3]  ;;  %v629_v58 = vrot.slane %v7517_v11, 1  ;;  %v7539_v61 = vld [vmem:[#allocation2 + $0x1f8] sm:$0xff]  ;;  %v621_v54 = vsel %vm543_vm4, %v619_v21, %v620_v10  ;;  %v7553_v47 = vpack.c.bf16 %v618_v48, %v616_v17  ;;  %858 = vrot.lane.b32.xlu1 %v7535_v46, %s6908_s27 }
  0x5e   :  { %12730 = vst [vmem:[#allocation33_spill] sm:$0xff] %v7531_v14  ;;  %12731 = vst [vmem:[#allocation34_spill] sm:$0xff] %v7535_v46  ;;  %v623_v26 = vsel %vm543_vm4, %v620_v10, %v622_v60  ;;  %v630_v1 = vrot.slane %v7525_v20, 1  ;;  %v632_v24 = vrot.slane %v334_v59, 1  ;;  %v7544_v22 = vld [vmem:[#allocation2 + $0x200] sm:$0xff]  ;;  %v172_v15 = vld [vmem:[%s12390_s0 + $0x158] sm:$0xff] }
  0x5f   :  { %12732 = vst [vmem:[#allocation35_spill] sm:$0xff] %v7539_v61  ;;  %12733 = vst [vmem:[#allocation36_spill] sm:$0xff] %v7544_v22  ;;  %v7546_v2 = vld [vmem:[#allocation2 + $0x208] sm:$0x3]  ;;  %v634_v25 = vrot.slane %v7529_v33, 1  ;;  %v635_v60 = vrot.slane %v7531_v14, 1  ;;  %860 = vrot.lane.b32.xlu0 %v7553_v47, %s6908_s27 }
  0x60   :  { %12734 = vst [vmem:[#allocation37_spill] sm:$0xff] %v7553_v47  ;;  %v637_v16 = vrot.slane %v337_v23, 1  ;;  %v7557_v21 = vld [vmem:[#allocation2 + $0x210] sm:$0xff]  ;;  %v7559_v10 = vld [vmem:[#allocation2 + $0x218] sm:$0xff]  ;;  %v7561_v59 = vld [vmem:[#allocation2 + $0x220] sm:$0x3] }
  0x61   :  { %12735 = vst [vmem:[#allocation38_spill] sm:$0xff] %v7557_v21  ;;  %12736 = vst [vmem:[#allocation39_spill] sm:$0xff] %v7559_v10  ;;  %v173_v38 = vld [vmem:[%s12390_s0 + $0x160] sm:$0xff]  ;;  %v12737_v17 = vrot.slane %v7393_v52, 1  ;;  %v12738_v48 = vrot.slane %v7385_v39, 1  ;;  %v175_v33 = vld [vmem:[%s12390_s0 + $0x170] sm:$0xff] }
  0x62   :  { %236 = vst.msk [vmem:[#allocation2 + $0x249] sm:$0xff] %vm15_vm0, %v172_v15  ;;  %v174_v15 = vld [vmem:[%s12390_s0 + $0x168] sm:$0xff]  ;;  %237 = vst.msk [vmem:[#allocation2 + $0x259] sm:$0xff] %vm15_vm0, %v173_v38  ;;  %v7597_v38 = vld [vmem:[#allocation2 + $0x230] sm:$0xff]  ;;  %v970_v52 = vrot.slane %v7233_v41, 2 }
  0x63   :  { %v7572_v36 = vsel %vm543_vm4, %v12738_v48, %v12737_v17  ;;  %v12739_v23 = vmov %v12737_v17  ;;  %v176_v17 = vld [vmem:[%s12390_s0 + $0x178] sm:$0xff]  ;;  %v7591_v48 = vpack.c.bf16 %v623_v26, %v621_v54  ;;  %v7595_v20 = vld [vmem:[#allocation2 + $0x228] sm:$0xff]  ;;  %12742 = vst [vmem:[#allocation42_spill] sm:$0xff] %v7597_v38  ;;  %238 = vst.msk [vmem:[#allocation2 + $0x261] sm:$0xff] %vm15_vm0, %v174_v15  ;;  %v633_v15 = vsel %vm543_vm4, %v630_v1, %v632_v24 }
  0x64   :  { %v7577_v14 = vsel %vm543_vm4, %v12739_v23, %v627_v8  ;;  %v639_v8 = vrot.slane %v7539_v61, 1  ;;  %v640_v23 = vrot.slane %v7544_v22, 1  ;;  %12741 = vst [vmem:[#allocation41_spill] sm:$0xff] %v7595_v20  ;;  %v7599_v11 = vld [vmem:[#allocation2 + $0x238] sm:$0x3]  ;;  %239 = vst.msk [vmem:[#allocation2 + $0x271] sm:$0xff] %vm15_vm0, %v175_v33  ;;  %v631_v22 = vsel %vm543_vm4, %v629_v58, %v630_v1 }
  0x65   :  { %12740 = vst [vmem:[#allocation40_spill] sm:$0xff] %v7591_v48  ;;  %240 = vst.msk [vmem:[#allocation2 + $0x279] sm:$0xff] %vm15_vm0, %v176_v17  ;;  %v177_v54 = vld [vmem:[%s12390_s0 + $0x180] sm:$0xff]  ;;  %v178_v26 = vld [vmem:[%s12390_s0 + $0x188] sm:$0xff]  ;;  %v642_v33 = vrot.slane %v7546_v2, 1  ;;  %v784_v2 = vpack.c.bf16 %v7577_v14, %v7572_v36  ;;  %v636_v24 = vsel %vm543_vm4, %v634_v25, %v635_v60  ;;  %v644_v14 = vrot.slane %v7557_v21, 1  ;;  %862 = vrot.lane.b32.xlu1 %v7591_v48, %s6908_s27 }
  0x66   :  { %v179_v46 = vld [vmem:[%s12390_s0 + $0x190] sm:$0xff]  ;;  %v7616_v61 = vld [vmem:[#allocation2 + $0x240] sm:$0xff]  ;;  %241 = vst.msk [vmem:[#allocation2 + $0x289] sm:$0xff] %vm15_vm0, %v177_v54  ;;  %242 = vst.msk [vmem:[#allocation2 + $0x291] sm:$0xff] %vm15_vm0, %v178_v26  ;;  %v638_v54 = vsel %vm543_vm4, %v635_v60, %v637_v16  ;;  %v645_v25 = vrot.slane %v7559_v10, 1  ;;  %v647_v60 = vrot.slane %v7561_v59, 1 }
  0x67   :  { %12743 = vst [vmem:[#allocation43_spill] sm:$0xff] %v7616_v61  ;;  %v180_v17 = vld [vmem:[%s12390_s0 + $0x198] sm:$0xff]  ;;  %243 = vst.msk [vmem:[#allocation2 + $0x2a1] sm:$0xff] %vm15_vm0, %v179_v46  ;;  %v181_v58 = vld [vmem:[%s12390_s0 + $0x1a0] sm:$0xff]  ;;  %v643_v59 = vsel %vm543_vm4, %v640_v23, %v642_v33  ;;  %864 = vrot.lane.b32.xlu0 %v784_v2, %s6908_s27  ;;  %v654_v48 = vrot.slane %v7616_v61, 1 }
  0x68   :  { %v182_v1 = vld [vmem:[%s12390_s0 + $0x1a8] sm:$0xff]  ;;  %244 = vst.msk [vmem:[#allocation2 + $0x2a9] sm:$0xff] %vm15_vm0, %v180_v17  ;;  %245 = vst.msk [vmem:[#allocation2 + $0x2b9] sm:$0xff] %vm15_vm0, %v181_v58  ;;  %v183_v46 = vld [vmem:[%s12390_s0 + $0x1b0] sm:$0xff]  ;;  %v646_v33 = vsel %vm543_vm4, %v644_v14, %v645_v25  ;;  %v648_v47 = vsel %vm543_vm4, %v645_v25, %v647_v60 }
  0x69   :  { %246 = vst.msk [vmem:[#allocation2 + $0x2c1] sm:$0xff] %vm15_vm0, %v182_v1  ;;  %v184_v26 = vld [vmem:[%s12390_s0 + $0x1b8] sm:$0xff]  ;;  %v185_v36 = vld [vmem:[%s12390_s0 + $0x1c0] sm:$0xff]  ;;  %247 = vst.msk [vmem:[#allocation2 + $0x2d1] sm:$0xff] %vm15_vm0, %v183_v46  ;;  %v7667_v1 = vpack.c.bf16 %v633_v15, %v631_v22  ;;  %v641_v46 = vsel %vm543_vm4, %v639_v8, %v640_v23  ;;  %v649_v22 = vrot.slane %v7595_v20, 1  ;;  %v650_v8 = vrot.slane %v7597_v38, 1 }
  0x6a   :  { %248 = vst.msk [vmem:[#allocation2 + $0x2d9] sm:$0xff] %vm15_vm0, %v184_v26  ;;  %v186_v16 = vld [vmem:[%s12390_s0 + $0x1c8] sm:$0xff]  ;;  %249 = vst.msk [vmem:[#allocation2 + $0x2e9] sm:$0xff] %vm15_vm0, %v185_v36  ;;  %v187_v17 = vld [vmem:[%s12390_s0 + $0x1d0] sm:$0xff]  ;;  %v652_v15 = vrot.slane %v7599_v11, 1  ;;  %v7702_v2 = vpack.c.bf16 %v643_v59, %v641_v46 }
  0x6b   :  { %v188_v58 = vld [vmem:[%s12390_s0 + $0x1d8] sm:$0xff]  ;;  %12744 = vst [vmem:[#allocation44_spill] sm:$0xff] %v7667_v1  ;;  %250 = vst.msk [vmem:[#allocation2 + $0x2f1] sm:$0xff] %vm15_vm0, %v186_v16  ;;  %v189_v26 = vld [vmem:[%s12390_s0 + $0x1e0] sm:$0xff]  ;;  %866 = vrot.lane.b32.xlu1 %v7667_v1, %s6908_s27  ;;  %v651_v60 = vsel %vm543_vm4, %v649_v22, %v650_v8 }
  0x6c   :  { %251 = vst.msk [vmem:[#allocation2 + $0x301] sm:$0xff] %vm15_vm0, %v187_v17  ;;  %252 = vst.msk [vmem:[#allocation2 + $0x309] sm:$0xff] %vm15_vm0, %v188_v58  ;;  %v190_v36 = vld [vmem:[%s12390_s0 + $0x1e8] sm:$0xff]  ;;  %v349_v17 = vld [vmem:[#allocation2 + $0x250] sm:$0x3]  ;;  %v7688_v58 = vpack.c.bf16 %v638_v54, %v636_v24 }
  0x6d   :  { %v7683_v16 = vld [vmem:[#allocation2 + $0x248] sm:$0xff]  ;;  %253 = vst.msk [vmem:[#allocation2 + $0x319] sm:$0xff] %vm15_vm0, %v189_v26  ;;  %254 = vst.msk [vmem:[#allocation2 + $0x321] sm:$0xff] %vm15_vm0, %v190_v36  ;;  %v7691_v23 = vld [vmem:[#allocation2 + $0x258] sm:$0xff]  ;;  %v657_v38 = vrot.slane %v349_v17, 1  ;;  %v653_v36 = vsel %vm543_vm4, %v650_v8, %v652_v15 }
  0x6e   :  { %12745 = vst [vmem:[#allocation45_spill] sm:$0xff] %v7683_v16  ;;  %12746 = vst [vmem:[#allocation46_spill] sm:$0xff] %v7688_v58  ;;  %v655_v11 = vrot.slane %v7683_v16, 1  ;;  %v7696_v20 = vld [vmem:[#allocation2 + $0x260] sm:$0xff]  ;;  %v352_v26 = vld [vmem:[#allocation2 + $0x268] sm:$0x3]  ;;  %868 = vrot.lane.b32.xlu0 %v7688_v58, %s6908_s27  ;;  %v7712_v16 = vpack.c.bf16 %v648_v47, %v646_v33  ;;  %v7724_v15 = vpack.c.bf16 %v653_v36, %v651_v60 }
  0x6f   :  { %12747 = vst [vmem:[#allocation47_spill] sm:$0xff] %v7691_v23  ;;  %12748 = vst [vmem:[#allocation48_spill] sm:$0xff] %v7696_v20  ;;  %v7698_v10 = vld [vmem:[#allocation2 + $0x270] sm:$0xff]  ;;  %v659_v24 = vrot.slane %v7691_v23, 1  ;;  %v660_v54 = vrot.slane %v7696_v20, 1  ;;  %v7706_v14 = vld [vmem:[#allocation2 + $0x278] sm:$0xff]  ;;  %870 = vrot.lane.b32.xlu1 %v7702_v2, %s6908_s27 }
  0x70   :  { %12749 = vst [vmem:[#allocation49_spill] sm:$0xff] %v7698_v10  ;;  %12750 = vst [vmem:[#allocation50_spill] sm:$0xff] %v7702_v2  ;;  %v355_v25 = vld [vmem:[#allocation2 + $0x280] sm:$0x3]  ;;  %v662_v17 = vrot.slane %v352_v26, 1  ;;  %v664_v59 = vrot.slane %v7698_v10, 1  ;;  %v656_v61 = vsel %vm543_vm4, %v654_v48, %v655_v11  ;;  %v658_v22 = vsel %vm543_vm4, %v655_v11, %v657_v38 }
  0x71   :  { %12751 = vst [vmem:[#allocation51_spill] sm:$0xff] %v7706_v14  ;;  %12752 = vst [vmem:[#allocation52_spill] sm:$0xff] %v7712_v16  ;;  %v665_v46 = vrot.slane %v7706_v14, 1  ;;  %v7716_v1 = vld [vmem:[#allocation2 + $0x288] sm:$0xff]  ;;  %v7718_v20 = vld [vmem:[#allocation2 + $0x290] sm:$0xff]  ;;  %v667_v8 = vrot.slane %v355_v25, 1  ;;  %v661_v47 = vsel %vm543_vm4, %v659_v24, %v660_v54  ;;  %v7740_v24 = vpack.c.bf16 %v658_v22, %v656_v61 }
  0x72   :  { %12753 = vst [vmem:[#allocation53_spill] sm:$0xff] %v7716_v1  ;;  %12754 = vst [vmem:[#allocation54_spill] sm:$0xff] %v7718_v20  ;;  %v358_v23 = vld [vmem:[#allocation2 + $0x298] sm:$0x3]  ;;  %v7727_v33 = vld [vmem:[#allocation2 + $0x2a0] sm:$0xff]  ;;  %v663_v14 = vsel %vm543_vm4, %v660_v54, %v662_v17  ;;  %v669_v10 = vrot.slane %v7716_v1, 1  ;;  %872 = vrot.lane.b32.xlu0 %v7712_v16, %s6908_s27 }
  0x73   :  { %12755 = vst [vmem:[#allocation55_spill] sm:$0xff] %v7724_v15  ;;  %12756 = vst [vmem:[#allocation56_spill] sm:$0xff] %v7727_v33  ;;  %v7729_v26 = vld [vmem:[#allocation2 + $0x2a8] sm:$0xff]  ;;  %v361_v58 = vld [vmem:[#allocation2 + $0x2b0] sm:$0x3]  ;;  %v670_v48 = vrot.slane %v7718_v20, 1  ;;  %v666_v60 = vsel %vm543_vm4, %v664_v59, %v665_v46  ;;  %v668_v2 = vsel %vm543_vm4, %v665_v46, %v667_v8  ;;  %874 = vrot.lane.b32.xlu1 %v7724_v15, %s6908_s27 }
  0x74   :  { %12757 = vst [vmem:[#allocation57_spill] sm:$0xff] %v7729_v26  ;;  %v672_v38 = vrot.slane %v358_v23, 1  ;;  %v7734_v11 = vld [vmem:[#allocation2 + $0x2b8] sm:$0xff]  ;;  %v7736_v25 = vld [vmem:[#allocation2 + $0x2c0] sm:$0xff]  ;;  %12760 = vst [vmem:[#allocation60_spill] sm:$0xff] %v7740_v24  ;;  %v674_v54 = vrot.slane %v7727_v33, 1  ;;  %v7752_v16 = vpack.c.bf16 %v663_v14, %v661_v47 }
  0x75   :  { %12758 = vst [vmem:[#allocation58_spill] sm:$0xff] %v7734_v11  ;;  %12759 = vst [vmem:[#allocation59_spill] sm:$0xff] %v7736_v25  ;;  %v364_v36 = vld [vmem:[#allocation2 + $0x2c8] sm:$0x3]  ;;  %v675_v17 = vrot.slane %v7729_v26, 1  ;;  %v677_v20 = vrot.slane %v361_v58, 1  ;;  %v671_v46 = vsel %vm543_vm4, %v669_v10, %v670_v48  ;;  %v7760_v58 = vpack.c.bf16 %v668_v2, %v666_v60 }
  0x76   :  { %v7746_v23 = vld [vmem:[#allocation2 + $0x2d0] sm:$0xff]  ;;  %v7748_v1 = vld [vmem:[#allocation2 + $0x2d8] sm:$0xff]  ;;  %12763 = vst [vmem:[#allocation63_spill] sm:$0xff] %v7752_v16  ;;  %v679_v61 = vrot.slane %v7734_v11, 1  ;;  %v680_v59 = vrot.slane %v7736_v25, 1  ;;  %v673_v8 = vsel %vm543_vm4, %v670_v48, %v672_v38  ;;  %v682_v26 = vrot.slane %v364_v36, 1  ;;  %876 = vrot.lane.b32.xlu0 %v7740_v24, %s6908_s27 }
  0x77   :  { %12761 = vst [vmem:[#allocation61_spill] sm:$0xff] %v7746_v23  ;;  %12762 = vst [vmem:[#allocation62_spill] sm:$0xff] %v7748_v1  ;;  %v367_v22 = vld [vmem:[#allocation2 + $0x2e0] sm:$0x3]  ;;  %v684_v33 = vrot.slane %v7746_v23, 1  ;;  %v685_v14 = vrot.slane %v7748_v1, 1  ;;  %v676_v11 = vsel %vm543_vm4, %v674_v54, %v675_v17  ;;  %v678_v10 = vsel %vm543_vm4, %v675_v17, %v677_v20  ;;  %878 = vrot.lane.b32.xlu1 %v7752_v16, %s6908_s27 }
  0x78   :  { %12764 = vst [vmem:[#allocation64_spill] sm:$0xff] %v7760_v58  ;;  %v7764_v47 = vld [vmem:[#allocation2 + $0x2e8] sm:$0xff]  ;;  %v7766_v15 = vld [vmem:[#allocation2 + $0x2f0] sm:$0xff]  ;;  %v370_v25 = vld [vmem:[#allocation2 + $0x2f8] sm:$0x3]  ;;  %v687_v48 = vrot.slane %v367_v22, 1  ;;  %v7774_v2 = vpack.c.bf16 %v673_v8, %v671_v46  ;;  %v681_v60 = vsel %vm543_vm4, %v679_v61, %v680_v59  ;;  %v683_v54 = vsel %vm543_vm4, %v680_v59, %v682_v26 }
  0x79   :  { %12765 = vst [vmem:[#allocation65_spill] sm:$0xff] %v7764_v47  ;;  %12766 = vst [vmem:[#allocation66_spill] sm:$0xff] %v7766_v15  ;;  %v7770_v38 = vld [vmem:[#allocation2 + $0x300] sm:$0xff]  ;;  %v7777_v36 = vld [vmem:[#allocation2 + $0x308] sm:$0xff]  ;;  %v967_v23 = vrot.slane %v7220_v34, 2  ;;  %v689_v20 = vrot.slane %v7764_v47, 1  ;;  %v7789_v61 = vpack.c.bf16 %v678_v10, %v676_v11  ;;  %v686_v8 = vsel %vm543_vm4, %v684_v33, %v685_v14 }
  0x7a   :  { %12767 = vst [vmem:[#allocation67_spill] sm:$0xff] %v7774_v2  ;;  %v373_v24 = vld [vmem:[#allocation2 + $0x310] sm:$0x3]  ;;  %v7779_v1 = vld [vmem:[#allocation2 + $0x318] sm:$0xff]  ;;  %v690_v17 = vrot.slane %v7766_v15, 1  ;;  %v692_v22 = vrot.slane %v370_v25, 1  ;;  %880 = vrot.lane.b32.xlu0 %v7760_v58, %s6908_s27  ;;  %v688_v26 = vsel %vm543_vm4, %v685_v14, %v687_v48  ;;  %v7799_v47 = vpack.c.bf16 %v683_v54, %v681_v60 }
  0x7b   :  { %v7785_v21 = vld [vmem:[#allocation2 + $0x320] sm:$0xff]  ;;  %v376_v46 = vld [vmem:[#allocation2 + $0x328] sm:$0x3]  ;;  %12768 = vst [vmem:[#allocation68_spill] sm:$0xff] %v7789_v61  ;;  %v968_v16 = vrot.slane %v7222_v35, 2  ;;  %v694_v59 = vrot.slane %v7770_v38, 1  ;;  %882 = vrot.lane.b32.xlu1 %v7774_v2, %s6908_s27 }
  0x7c   :  { %v695_v25 = vrot.slane %v7777_v36, 1  ;;  %v697_v15 = vrot.slane %v373_v24, 1  ;;  %12769 = vst [vmem:[#allocation69_spill] sm:$0xff] %v7799_v47  ;;  %v699_v11 = vrot.slane %v7779_v1, 1  ;;  %v700_v33 = vrot.slane %v7785_v21, 1 }
  0x7d   :  { %v702_v10 = vrot.slane %v376_v46, 1  ;;  %v691_v58 = vsel %vm543_vm4, %v689_v20, %v690_v17  ;;  %v693_v41 = vsel %vm543_vm4, %v690_v17, %v692_v22  ;;  %v972_v14 = vrot.slane %v7212_v29, 2 }
  0x7e   :  { %v973_v48 = vrot.slane %v7214_v30, 2  ;;  %884 = vrot.lane.b32.xlu0 %v7789_v61, %s6908_s27  ;;  %v7809_v24 = vpack.c.bf16 %v688_v26, %v686_v8  ;;  %v696_v60 = vsel %vm543_vm4, %v694_v59, %v695_v25  ;;  %v698_v54 = vsel %vm543_vm4, %v695_v25, %v697_v15 }
  0x7f   :  { %v969_v2 = vsel %vm961_vm5, %v967_v23, %v968_v16  ;;  %886 = vrot.lane.b32.xlu1 %v7799_v47, %s6908_s27  ;;  %v7816_v20 = vpack.c.bf16 %v693_v41, %v691_v58  ;;  %v701_v29 = vsel %vm543_vm4, %v699_v11, %v700_v33  ;;  %v703_v30 = vsel %vm543_vm4, %v700_v33, %v702_v10 }
  0x80   :  { %12770 = vst [vmem:[#allocation70_spill] sm:$0xff] %v7809_v24  ;;  %v975_v17 = vrot.slane %v7216_v31, 2  ;;  %v971_v22 = vsel %vm961_vm5, %v968_v16, %v970_v52  ;;  %v974_v46 = vsel %vm961_vm5, %v972_v14, %v973_v48  ;;  %v977_v8 = vrot.slane %v7236_v43, 2 }
  0x81   :  { %12771 = vst [vmem:[#allocation71_spill] sm:$0xff] %v7816_v20  ;;  %v978_v15 = vrot.slane %v7238_v44, 2  ;;  %v7827_v23 = vpack.c.bf16 %v698_v54, %v696_v60  ;;  %v980_v58 = vrot.slane %v7243_v49, 2  ;;  %v982_v26 = vrot.slane %v7245_v50, 2 }
  0x82   :  { %888 = vrot.lane.b32.xlu0 %v7809_v24, %s6908_s27  ;;  %v983_v59 = vrot.slane %v7247_v51, 2  ;;  %v7832_v31 = vpack.c.bf16 %v703_v30, %v701_v29  ;;  %v985_v52 = vrot.slane %v7256_v56, 2  ;;  %v987_v16 = vrot.slane %v7258_v57, 2 }
  0x83   :  { %12772 = vst [vmem:[#allocation72_spill] sm:$0xff] %v7827_v23  ;;  %v988_v25 = vrot.slane %v7266_v62, 2  ;;  %890 = vrot.lane.b32.xlu1 %v7816_v20, %s6908_s27  ;;  %v990_v11 = vrot.slane %v7268_v63, 2  ;;  %v992_v33 = vrot.slane %v7270_v0, 2  ;;  %v993_v49 = vrot.slane %v7277_v5, 2 }
  0x84   :  { %12773 = vst [vmem:[#allocation73_spill] sm:$0xff] %v7832_v31  ;;  %v995_v10 = vrot.slane %v7279_v6, 2  ;;  %v7843_v41 = vpack.c.bf16 %v971_v22, %v969_v2  ;;  %v997_v14 = vrot.slane %v7281_v7, 2  ;;  %v998_v56 = vrot.slane %v7290_v12, 2 }
  0x85   :  { %v1000_v60 = vrot.slane %v7292_v13, 2  ;;  %v976_v54 = vsel %vm961_vm5, %v973_v48, %v975_v17  ;;  %v979_v63 = vsel %vm961_vm5, %v977_v8, %v978_v15  ;;  %v981_v29 = vsel %vm961_vm5, %v978_v15, %v980_v58 }
  0x86   :  { %892 = vrot.lane.b32.xlu0 %v7827_v23, %s6908_s27  ;;  %v984_v30 = vsel %vm961_vm5, %v982_v26, %v983_v59  ;;  %v986_v6 = vsel %vm961_vm5, %v983_v59, %v985_v52  ;;  %v989_v2 = vsel %vm961_vm5, %v987_v16, %v988_v25  ;;  %v1002_v22 = vrot.slane %v7298_v18, 2 }
  0x87   :  { %v1003_v20 = vrot.slane %v7300_v19, 2  ;;  %894 = vrot.lane.b32.xlu1 %v7832_v31, %s6908_s27  ;;  %v991_v13 = vsel %vm961_vm5, %v988_v25, %v990_v11  ;;  %v994_v48 = vsel %vm961_vm5, %v992_v33, %v993_v49  ;;  %v996_v17 = vsel %vm961_vm5, %v993_v49, %v995_v10 }
  0x88   :  { %v1005_v8 = vrot.slane %v7308_v27, 2  ;;  %v999_v15 = vsel %vm961_vm5, %v997_v14, %v998_v56  ;;  %v1001_v58 = vsel %vm961_vm5, %v998_v56, %v1000_v60  ;;  %v1007_v26 = vrot.slane %v7310_v28, 2  ;;  %v12803_v60 = vld [vmem:[#allocation56_spill] sm:$0xff] }
  0x89   :  { %v1008_v59 = vrot.slane %v7312_v32, 2  ;;  %v12774_v52 = vpack.c.bf16 %v7487_v9, %v7484_v4  ;;  %v7872_v16 = vpack.c.bf16 %v976_v54, %v974_v46  ;;  %v7874_v25 = vpack.c.bf16 %v981_v29, %v979_v63  ;;  %v12780_v63 = vld [vmem:[#allocation26_spill] sm:$0xff]  ;;  %v12781_v29 = vld [vmem:[#allocation27_spill] sm:$0xff] }
  0x8a   :  { %v7876_v11 = vpack.c.bf16 %v986_v6, %v984_v30  ;;  %v7878_v27 = vpack.c.bf16 %v991_v13, %v989_v2  ;;  %v7880_v33 = vpack.c.bf16 %v996_v17, %v994_v48  ;;  %v7883_v49 = vsel %vm961_vm5, %v1002_v22, %v1003_v20  ;;  %v12782_v6 = vld [vmem:[#allocation12_spill] sm:$0xff]  ;;  %v12783_v22 = vld [vmem:[#allocation30_spill] sm:$0xff]  ;;  %v12784_v13 = vld [vmem:[#allocation31_spill] sm:$0xff] }
  0x8b   :  { %1250 = vrot.lane.b32.xlu0 %v12774_v52, %s6909_s28  ;;  %v1010_v10 = vrot.slane %v7319_v40, 2  ;;  %1252 = vrot.lane.b32.xlu1 %v7843_v41, %s6909_s28  ;;  %v7888_v4 = vpack.c.bf16 %v1001_v58, %v999_v15  ;;  %v7891_v9 = vsel %vm961_vm5, %v1003_v20, %v1005_v8  ;;  %v7896_v14 = vpack.c.bf16 %v7222_v35, %v7220_v34  ;;  %v12785_v17 = vld [vmem:[#allocation32_spill] sm:$0xff]  ;;  %v12786_v8 = vld [vmem:[#allocation33_spill] sm:$0xff]  ;;  %v12790_v52 = vld [vmem:[#allocation39_spill] sm:$0xff] }
  0x8c   :  { %v7899_v56 = vsel %vm961_vm5, %v1007_v26, %v1008_v59  ;;  %v7904_v40 = vpack.c.bf16 %v7238_v44, %v7236_v43  ;;  %v7908_v54 = vpack.c.bf16 %v7247_v51, %v7245_v50  ;;  %v7917_v34 = vpack.c.bf16 %v7266_v62, %v7258_v57  ;;  %v12788_v58 = vld [vmem:[#allocation36_spill] sm:$0xff] }
  0x8d   :  { %416 = vst.msk [vmem:[#allocation3 + $0x8] sm:$0xff] %vm15_vm0, %v7896_v14  ;;  %v7921_v35 = vpack.c.bf16 %v7277_v5, %v7270_v0  ;;  %v7925_v43 = vpack.c.bf16 %v7290_v12, %v7281_v7  ;;  %v1011_v44 = vsel %vm961_vm5, %v1008_v59, %v1010_v10  ;;  %v7934_v50 = vpack.c.bf16 %v7300_v19, %v7298_v18  ;;  %v12775_v0 = vld [vmem:[#allocation17_spill] sm:$0xff]  ;;  %v12776_v7 = vld [vmem:[#allocation19_spill] sm:$0xff]  ;;  %v12777_v12 = vld [vmem:[#allocation20_spill] sm:$0xff] }
  0x8e   :  { %418 = vst.msk [vmem:[#allocation3 + $0x18] sm:$0xff] %vm15_vm0, %v7904_v40  ;;  %419 = vst.msk [vmem:[#allocation3 + $0x20] sm:$0xff] %vm15_vm0, %v7908_v54  ;;  %v7938_v51 = vpack.c.bf16 %v7312_v32, %v7310_v28  ;;  %v7942_v57 = vpack.c.bf16 %v7323_v45, %v7321_v42  ;;  %v7954_v62 = vpack.c.bf16 %v7453_v55, %v7377_v37  ;;  %v12778_v19 = vld [vmem:[#allocation22_spill] sm:$0xff]  ;;  %v12779_v28 = vld [vmem:[#allocation23_spill] sm:$0xff]  ;;  %v1017_v47 = vrot.slane %v7377_v37, 2 }
  0x8f   :  { %1254 = vrot.lane.b32.xlu0 %v7872_v16, %s6909_s28  ;;  %1256 = vrot.lane.b32.xlu1 %v7874_v25, %s6909_s28  ;;  %420 = vst.msk [vmem:[#allocation3 + $0x28] sm:$0xff] %vm15_vm0, %v7917_v34  ;;  %421 = vst.msk [vmem:[#allocation3 + $0x30] sm:$0xff] %vm15_vm0, %v7921_v35  ;;  %v7958_v5 = vpack.c.bf16 %v12775_v0, %v7457_v3  ;;  %v7962_v18 = vpack.c.bf16 %v12777_v12, %v12776_v7  ;;  %v12789_v59 = vld [vmem:[#allocation38_spill] sm:$0xff]  ;;  %v1018_v61 = vrot.slane %v7453_v55, 2 }
  0x90   :  { %422 = vst.msk [vmem:[#allocation3 + $0x38] sm:$0xff] %vm15_vm0, %v7925_v43  ;;  %v7966_v32 = vpack.c.bf16 %v12779_v28, %v12778_v19  ;;  %423 = vst.msk [vmem:[#allocation3 + $0x40] sm:$0xff] %vm15_vm0, %v7934_v50  ;;  %v7976_v30 = vpack.c.bf16 %v12781_v29, %v12780_v63  ;;  %v399_v2 = vpack.c.bf16 %v12782_v6, %v7385_v39  ;;  %v12787_v39 = vld [vmem:[#allocation35_spill] sm:$0xff]  ;;  %v12791_v6 = vld [vmem:[#allocation41_spill] sm:$0xff] }
  0x91   :  { %424 = vst.msk [vmem:[#allocation3 + $0x48] sm:$0xff] %vm15_vm0, %v7938_v51  ;;  %425 = vst.msk [vmem:[#allocation3 + $0x50] sm:$0xff] %vm15_vm0, %v7942_v57  ;;  %v7982_v48 = vpack.c.bf16 %v12784_v13, %v12783_v22  ;;  %v7986_v15 = vpack.c.bf16 %v12786_v8, %v12785_v17  ;;  %v8000_v26 = vpack.c.bf16 %v12788_v58, %v12787_v39  ;;  %v12792_v22 = vld [vmem:[#allocation42_spill] sm:$0xff]  ;;  %v12794_v17 = vld [vmem:[#allocation43_spill] sm:$0xff] }
  0x92   :  { %426 = vst.msk [vmem:[#allocation3 + $0x58] sm:$0xff] %vm15_vm0, %v7954_v62  ;;  %427 = vst.msk [vmem:[#allocation3 + $0x60] sm:$0xff] %vm15_vm0, %v7958_v5  ;;  %v8004_v10 = vpack.c.bf16 %v12790_v52, %v12789_v59  ;;  %v8008_v13 = vpack.c.bf16 %v12792_v22, %v12791_v6  ;;  %v12795_v8 = vld [vmem:[#allocation45_spill] sm:$0xff]  ;;  %v12797_v39 = vld [vmem:[#allocation47_spill] sm:$0xff]  ;;  %v8061_v24 = vpack.c.bf16 %v7777_v36, %v7770_v38  ;;  %v12812_v36 = vrot.slane %v7323_v45, 2 }
  0x93   :  { %1258 = vrot.lane.b32.xlu0 %v7876_v11, %s6909_s28  ;;  %428 = vst.msk [vmem:[#allocation3 + $0x68] sm:$0xff] %vm15_vm0, %v7962_v18  ;;  %429 = vst.msk [vmem:[#allocation3 + $0x70] sm:$0xff] %vm15_vm0, %v7966_v32  ;;  %v8012_v20 = vpack.c.bf16 %v12795_v8, %v12794_v17  ;;  %v12798_v58 = vld [vmem:[#allocation48_spill] sm:$0xff]  ;;  %v12799_v52 = vld [vmem:[#allocation49_spill] sm:$0xff]  ;;  %1260 = vrot.lane.b32.xlu1 %v7878_v27, %s6909_s28  ;;  %v8076_v38 = vpack.c.bf16 %v7785_v21, %v7779_v1 }
  0x94   :  { %12793 = vst [vmem:[#allocation17_spill] sm:$0xff] %v8008_v13  ;;  %430 = vst.msk [vmem:[#allocation3 + $0x78] sm:$0xff] %vm15_vm0, %v7976_v30  ;;  %v8023_v59 = vpack.c.bf16 %v12798_v58, %v12797_v39  ;;  %v12800_v6 = vld [vmem:[#allocation51_spill] sm:$0xff]  ;;  %v12801_v17 = vld [vmem:[#allocation53_spill] sm:$0xff]  ;;  %v8082_v37 = vpack.c.bf16 %v7891_v9, %v7883_v49  ;;  %v8085_v55 = vpack.c.bf16 %v1011_v44, %v7899_v56  ;;  %v12815_v21 = vmov %v12812_v36 }
  0x95   :  { %12796 = vst [vmem:[#allocation19_spill] sm:$0xff] %v8012_v20  ;;  %431 = vst.msk [vmem:[#allocation3 + $0x80] sm:$0xff] %vm15_vm0, %v399_v2  ;;  %v8027_v22 = vpack.c.bf16 %v12800_v6, %v12799_v52  ;;  %v12802_v8 = vld [vmem:[#allocation54_spill] sm:$0xff]  ;;  %v12804_v2 = vld [vmem:[#allocation57_spill] sm:$0xff]  ;;  %v1027_v9 = vrot.slane %v12776_v7, 2  ;;  %v1028_v56 = vrot.slane %v12777_v12, 2 }
  0x96   :  { %432 = vst.msk [vmem:[#allocation3 + $0x88] sm:$0xff] %vm15_vm0, %v7982_v48  ;;  %433 = vst.msk [vmem:[#allocation3 + $0x90] sm:$0xff] %vm15_vm0, %v7986_v15  ;;  %v8031_v46 = vpack.c.bf16 %v12802_v8, %v12801_v17  ;;  %v8035_v31 = vpack.c.bf16 %v12804_v2, %v12803_v60  ;;  %v12805_v39 = vld [vmem:[#allocation58_spill] sm:$0xff]  ;;  %v12806_v58 = vld [vmem:[#allocation59_spill] sm:$0xff] }
  0x97   :  { %434 = vst.msk [vmem:[#allocation3 + $0x98] sm:$0xff] %vm15_vm0, %v8000_v26  ;;  %435 = vst.msk [vmem:[#allocation3 + $0xa0] sm:$0xff] %vm15_vm0, %v8004_v10  ;;  %v8049_v52 = vpack.c.bf16 %v12806_v58, %v12805_v39  ;;  %v12807_v60 = vld [vmem:[#allocation61_spill] sm:$0xff]  ;;  %v12808_v6 = vld [vmem:[#allocation62_spill] sm:$0xff]  ;;  %1262 = vrot.lane.b32.xlu0 %v7880_v33, %s6909_s28  ;;  %v12814_v58 = vrot.slane %v7332_v53, 2  ;;  %v1023_v53 = vrot.slane %v12775_v0, 2  ;;  %1264 = vrot.lane.b32.xlu1 %v7888_v4, %s6909_s28 }
  0x98   :  { %436 = vst.msk [vmem:[#allocation3 + $0xa8] sm:$0xff] %vm15_vm0, %v8008_v13  ;;  %437 = vst.msk [vmem:[#allocation3 + $0xb0] sm:$0xff] %vm15_vm0, %v8012_v20  ;;  %v8053_v17 = vpack.c.bf16 %v12808_v6, %v12807_v60  ;;  %v12809_v8 = vld [vmem:[#allocation65_spill] sm:$0xff]  ;;  %v12810_v2 = vld [vmem:[#allocation66_spill] sm:$0xff]  ;;  %v1032_v6 = vrot.slane %v12778_v19, 2  ;;  %v1019_v0 = vsel %vm961_vm5, %v1017_v47, %v1018_v61 }
  0x99   :  { %v8057_v23 = vpack.c.bf16 %v12810_v2, %v12809_v8  ;;  %v12811_v20 = vld [vmem:[#allocation15_spill] sm:$0xff]  ;;  %438 = vst.msk [vmem:[#allocation3 + $0xb8] sm:$0xff] %vm15_vm0, %v8023_v59  ;;  %439 = vst.msk [vmem:[#allocation3 + $0xc0] sm:$0xff] %vm15_vm0, %v8027_v22  ;;  %v1016_v1 = vsel %vm961_vm5, %v12815_v21, %v12814_v58  ;;  %v12816_v49 = vld [vmem:[#allocation18_spill] sm:$0xff] }
  0x9a   :  { %v1020_v13 = vrot.slane %v12811_v20, 2  ;;  %440 = vst.msk [vmem:[#allocation3 + $0xc8] sm:$0xff] %vm15_vm0, %v8031_v46  ;;  %441 = vst.msk [vmem:[#allocation3 + $0xd0] sm:$0xff] %vm15_vm0, %v8035_v31  ;;  %v12813_v20 = vrot.slane %v7321_v42, 2  ;;  %v1022_v42 = vrot.slane %v7457_v3, 2  ;;  %v1025_v45 = vrot.slane %v12816_v49, 2 }
  0x9b   :  { %442 = vst.msk [vmem:[#allocation3 + $0xd8] sm:$0xff] %vm15_vm0, %v8049_v52  ;;  %443 = vst.msk [vmem:[#allocation3 + $0xe0] sm:$0xff] %vm15_vm0, %v8053_v17  ;;  %v12817_v44 = vld [vmem:[#allocation21_spill] sm:$0xff]  ;;  %v1033_v3 = vrot.slane %v12779_v28, 2  ;;  %v12818_v2 = vld [vmem:[#allocation24_spill] sm:$0xff]  ;;  %1266 = vrot.lane.b32.xlu0 %v8082_v37, %s6909_s28  ;;  %1268 = vrot.lane.b32.xlu1 %v8085_v55, %s6909_s28  ;;  %v1038_v28 = vrot.slane %v12781_v29, 2 }
  0x9c   :  { %v1014_v39 = vsel %vm961_vm5, %v12813_v20, %v12812_v36  ;;  %444 = vst.msk [vmem:[#allocation3 + $0xe8] sm:$0xff] %vm15_vm0, %v8057_v23  ;;  %445 = vst.msk [vmem:[#allocation3 + $0xf0] sm:$0xff] %vm15_vm0, %v8061_v24  ;;  %v1030_v60 = vrot.slane %v12817_v44, 2  ;;  %v1021_v8 = vsel %vm961_vm5, %v1018_v61, %v1020_v13  ;;  %v1035_v7 = vrot.slane %v12818_v2, 2  ;;  %v6833_v36 = vld [vmem:[%s12391_s1] sm:$0xff]   ;;  %v12822_v2 = vld [vmem:[#allocation5_spill] sm:$0xff] }
  0x9d   :  { %446 = vst.msk [vmem:[#allocation3 + $0xf8] sm:$0xff] %vm15_vm0, %v8076_v38  ;;  %v8125_v12 = vpack.c.bf16 %v1016_v1, %v1014_v39  ;;  %v1024_v20 = vsel %vm961_vm5, %v1022_v42, %v1023_v53  ;;  %v1026_v19 = vsel %vm961_vm5, %v1023_v53, %v1025_v45  ;;  %6663 = vmatprep.subr.bf16.mxu0 %v6833_v36  ;;  %v1037_v61 = vrot.slane %v12780_v63, 2  ;;  %v12819_v58 = vld [vmem:[#allocation28_spill] sm:$0xff]  ;;  %v6834_v1 = vld [vmem:[%s12391_s1 + $0x8] sm:$0xff]  }
  0x9e   :  { %v8131_v47 = vpack.c.bf16 %v1021_v8, %v1019_v0  ;;  %6664 = vmatpush3.bf16.msra.mxu0 %v6833_v36  ;;  %v1029_v13 = vsel %vm961_vm5, %v1027_v9, %v1028_v56  ;;  %v1031_v39 = vsel %vm961_vm5, %v1028_v56, %v1030_v60  ;;  %v1040_v21 = vrot.slane %v12819_v58, 2  ;;  %v6835_v9 = vld [vmem:[%s12391_s1 + $0x10] sm:$0xff]   ;;  %v6836_v60 = vld [vmem:[%s12391_s1 + $0x18] sm:$0xff]   ;;  %v6838_v0 = vld [vmem:[%s12391_s1 + $0x28] sm:$0xff]   ;;  %v833_v36 = vpop.permute.xlu0 %832 }
  0x9f   :  { %1270 = vrot.lane.b32.xlu0 %v8125_v12, %s6909_s28  ;;  %v8143_v42 = vpack.c.bf16 %v1026_v19, %v1024_v20  ;;  %v1034_v63 = vsel %vm961_vm5, %v1032_v6, %v1033_v3  ;;  %v1036_v29 = vsel %vm961_vm5, %v1033_v3, %v1035_v7  ;;  %6665 = vmatprep.subr.bf16.mxu0 %v6834_v1  ;;  %v6837_v6 = vld [vmem:[%s12391_s1 + $0x20] sm:$0xff]   ;;  %v12821_v8 = vld [vmem:[#allocation6_spill] sm:$0xff]  ;;  %v6840_v7 = vld [vmem:[%s12391_s1 + $0x38] sm:$0xff]   ;;  %v837_v20 = vpop.permute.xlu1 %836 }
  0xa0   :  { %1272 = vrot.lane.b32.xlu1 %v8131_v47, %s6909_s28  ;;  %v8149_v53 = vpack.c.bf16 %v1031_v39, %v1029_v13  ;;  %v1039_v49 = vsel %vm961_vm5, %v1037_v61, %v1038_v28  ;;  %v1041_v45 = vsel %vm961_vm5, %v1038_v28, %v1040_v21  ;;  %v8158_v56 = vpack.c.bf16 %v1036_v29, %v1034_v63  ;;  %v12820_v3 = vld [vmem:[#allocation4_spill] sm:$0xff]  ;;  %v160_v58 = vld [vmem:[%s12390_s0 + $0xf8] sm:$0xff] }
  0xa1   :  { %v8162_v44 = vpack.c.bf16 %v1041_v45, %v1039_v49  ;;  %929 = vst.msk [vmem:[#allocation3] sm:$0xff] %vm928_vm6, %v833_v36  ;;  %931 = vst.msk [vmem:[#allocation3 + $0x10] sm:$0xff] %vm928_vm6, %v837_v20  ;;  %v12824_v13 = vld [vmem:[#allocation8_spill] sm:$0xff]  ;;  %v12825_v49 = vld [vmem:[#allocation9_spill] sm:$0xff] }
  0xa2   :  { %6666 = vmatpush3.bf16.msra.mxu0 %v6834_v1  ;;  %224 = vst.msk [vmem:[#allocation2 + $0x189] sm:$0xff] %vm15_vm0, %v160_v58 }
  0xa3   :  { %1274 = vrot.lane.b32.xlu0 %v8143_v42, %s6909_s28  ;;  %6667 = vmatprep.subr.bf16.mxu0 %v6835_v9 }
  0xa4   :  { %1276 = vrot.lane.b32.xlu1 %v8149_v53, %s6909_s28 }
  0xa6   :  { %6668 = vmatpush3.bf16.msra.mxu0 %v6835_v9 }
  0xa7   :  { %1278 = vrot.lane.b32.xlu0 %v8158_v56, %s6909_s28  ;;  %6669 = vmatprep.subr.bf16.mxu0 %v6836_v60 }
  0xa8   :  { %1280 = vrot.lane.b32.xlu1 %v8162_v44, %s6909_s28  ;;  %v835_v19 = vpop.permute.xlu0 %834 }
  0xa9   :  { %930 = vst.msk [vmem:[#allocation3 + $0x8] sm:$0xff] %vm928_vm6, %v835_v19 }
  0xaa   :  { %6670 = vmatpush3.bf16.msra.mxu0 %v6836_v60  ;;  %v839_v61 = vpop.permute.xlu1 %838 }
  0xab   :  { %1413 = vrot.lane.b32.xlu0 %v7896_v14, %s6910_s12  ;;  %6671 = vmatprep.subr.bf16.mxu0 %v6837_v6  ;;  %v6839_v14 = vld [vmem:[%s12391_s1 + $0x30] sm:$0xff]   ;;  %932 = vst.msk [vmem:[#allocation3 + $0x18] sm:$0xff] %vm928_vm6, %v839_v61  ;;  %v12828_v61 = vld [vmem:[#allocation13_spill] sm:$0xff] }
  0xac   :  { %1415 = vrot.lane.b32.xlu1 %v12820_v3, %s6910_s12 }
  0xae   :  { %6672 = vmatpush3.bf16.msra.mxu0 %v6837_v6 }
  0xaf   :  { %1566 = vrot.lane.b32.xlu0 %v12821_v8, %s6911_s15  ;;  %6673 = vmatprep.subr.bf16.mxu0 %v6838_v0 }
  0xb0   :  { %1568 = vrot.lane.b32.xlu1 %v12822_v2, %s6911_s15 }
  0xb2   :  { %6674 = vmatpush3.bf16.msra.mxu0 %v6838_v0 }
  0xb3   :  { %1713 = vrot.lane.b32.xlu0 %v7843_v41, %s6912_s18  ;;  %6675 = vmatprep.subr.bf16.mxu0 %v6839_v14  ;;  %v12823_v41 = vld [vmem:[#allocation7_spill] sm:$0xff] }
  0xb4   :  { %1715 = vrot.lane.b32.xlu1 %v7872_v16, %s6912_s18 }
  0xb5   :  { %v841_v28 = vpop.permute.xlu0 %840 }
  0xb6   :  { %6676 = vmatpush3.bf16.msra.mxu0 %v6839_v14  ;;  %933 = vst.msk [vmem:[#allocation3 + $0x20] sm:$0xff] %vm928_vm6, %v841_v28 }
  0xb7   :  { %1846 = vrot.lane.b32.xlu0 %v12820_v3, %s6913_s21  ;;  %6677 = vmatprep.subr.bf16.mxu0 %v6840_v7  ;;  %v12826_v3 = vld [vmem:[#allocation10_spill] sm:$0xff] }
  0xb8   :  { %1848 = vrot.lane.b32.xlu1 %v7904_v40, %s6913_s21 }
  0xba   :  { %6678 = vmatpush3.bf16.msra.mxu0 %v6840_v7  ;;  %v12827_v7 = vld [vmem:[#allocation11_spill] sm:$0xff] }
  0xbb   :  { %1999 = vrot.lane.b32.xlu0 %v12822_v2, %s6914_s22 }
  0xbc   :  { %2001 = vrot.lane.b32.xlu1 %v12823_v41, %s6914_s22  ;;  %v845_v39 = vpop.permute.xlu0 %844 }
  0xbd   :  { %935 = vst.msk [vmem:[#allocation3 + $0x30] sm:$0xff] %vm928_vm6, %v845_v39 }
  0xbf   :  { %2146 = vrot.lane.b32.xlu0 %v7872_v16, %s6915_s23  ;;  %v843_v16 = vpop.permute.xlu1 %842 }
  0xc0   :  { %2148 = vrot.lane.b32.xlu1 %v7874_v25, %s6915_s23  ;;  %934 = vst.msk [vmem:[#allocation3 + $0x28] sm:$0xff] %vm928_vm6, %v843_v16  ;;  %v849_v1 = vpop.permute.xlu0 %848 }
  0xc1   :  { %937 = vst.msk [vmem:[#allocation3 + $0x40] sm:$0xff] %vm928_vm6, %v849_v1 }
  0xc3   :  { %1417 = vrot.lane.b32.xlu0 %v7904_v40, %s6910_s12  ;;  %v159_v40 = vld [vmem:[%s12390_s0 + $0xf0] sm:$0xff]  ;;  %v847_v21 = vpop.permute.xlu1 %846 }
  0xc4   :  { %1419 = vrot.lane.b32.xlu1 %v7908_v54, %s6910_s12  ;;  %223 = vst.msk [vmem:[#allocation2 + $0x181] sm:$0xff] %vm15_vm0, %v159_v40  ;;  %v12829_v40 = vld [vmem:[#allocation14_spill] sm:$0xff] }
  0xc5   :  { %936 = vst.msk [vmem:[#allocation3 + $0x38] sm:$0xff] %vm928_vm6, %v847_v21 }
  0xc7   :  { %1570 = vrot.lane.b32.xlu0 %v12823_v41, %s6911_s15  ;;  %v851_v63 = vpop.permute.xlu1 %850 }
  0xc8   :  { %1572 = vrot.lane.b32.xlu1 %v12824_v13, %s6911_s15  ;;  %938 = vst.msk [vmem:[#allocation3 + $0x48] sm:$0xff] %vm928_vm6, %v851_v63 }
  0xcb   :  { %1717 = vrot.lane.b32.xlu0 %v7874_v25, %s6912_s18  ;;  %v853_v25 = vpop.permute.xlu0 %852  ;;  %v855_v29 = vpop.permute.xlu1 %854 }
  0xcc   :  { %1719 = vrot.lane.b32.xlu1 %v7876_v11, %s6912_s18  ;;  %939 = vst.msk [vmem:[#allocation3 + $0x50] sm:$0xff] %vm928_vm6, %v853_v25  ;;  %940 = vst.msk [vmem:[#allocation3 + $0x58] sm:$0xff] %vm928_vm6, %v855_v29  ;;  %v12830_v25 = vld [vmem:[#allocation16_spill] sm:$0xff] }
  0xcf   :  { %1850 = vrot.lane.b32.xlu0 %v7908_v54, %s6913_s21  ;;  %v857_v45 = vpop.permute.xlu0 %856  ;;  %v859_v54 = vpop.permute.xlu1 %858 }
  0xd0   :  { %1852 = vrot.lane.b32.xlu1 %v7917_v34, %s6913_s21  ;;  %941 = vst.msk [vmem:[#allocation3 + $0x60] sm:$0xff] %vm928_vm6, %v857_v45  ;;  %942 = vst.msk [vmem:[#allocation3 + $0x68] sm:$0xff] %vm928_vm6, %v859_v54 }
  0xd3   :  { %2003 = vrot.lane.b32.xlu0 %v12824_v13, %s6914_s22  ;;  %v861_v9 = vpop.permute.xlu0 %860 }
  0xd4   :  { %2005 = vrot.lane.b32.xlu1 %v12825_v49, %s6914_s22  ;;  %943 = vst.msk [vmem:[#allocation3 + $0x70] sm:$0xff] %vm928_vm6, %v861_v9  ;;  %v12831_v9 = vld [vmem:[#allocation25_spill] sm:$0xff] }
  0xd7   :  { %2150 = vrot.lane.b32.xlu0 %v7876_v11, %s6915_s23  ;;  %v863_v60 = vpop.permute.xlu1 %862 }
  0xd8   :  { %2152 = vrot.lane.b32.xlu1 %v7878_v27, %s6915_s23  ;;  %944 = vst.msk [vmem:[#allocation3 + $0x78] sm:$0xff] %vm928_vm6, %v863_v60 }
  0xd9   :  { %v865_v6 = vpop.permute.xlu0 %864 }
  0xda   :  { %945 = vst.msk [vmem:[#allocation3 + $0x80] sm:$0xff] %vm928_vm6, %v865_v6 }
  0xdb   :  { %1421 = vrot.lane.b32.xlu0 %v7917_v34, %s6910_s12 }
  0xdc   :  { %1423 = vrot.lane.b32.xlu1 %v7921_v35, %s6910_s12 }
  0xdd   :  { %v867_v11 = vpop.permute.xlu1 %866 }
  0xde   :  { %946 = vst.msk [vmem:[#allocation3 + $0x88] sm:$0xff] %vm928_vm6, %v867_v11 }
  0xdf   :  { %1574 = vrot.lane.b32.xlu0 %v12825_v49, %s6911_s15 }
  0xe0   :  { %1576 = vrot.lane.b32.xlu1 %v12826_v3, %s6911_s15  ;;  %v869_v0 = vpop.permute.xlu0 %868 }
  0xe1   :  { %947 = vst.msk [vmem:[#allocation3 + $0x90] sm:$0xff] %vm928_vm6, %v869_v0  ;;  %v871_v34 = vpop.permute.xlu1 %870  ;;  %v12832_v0 = vld [vmem:[#allocation29_spill] sm:$0xff] }
  0xe2   :  { %948 = vst.msk [vmem:[#allocation3 + $0x98] sm:$0xff] %vm928_vm6, %v871_v34 }
  0xe3   :  { %1721 = vrot.lane.b32.xlu0 %v7878_v27, %s6912_s18 }
  0xe4   :  { %1723 = vrot.lane.b32.xlu1 %v7880_v33, %s6912_s18  ;;  %v873_v8 = vpop.permute.xlu0 %872 }
  0xe5   :  { %949 = vst.msk [vmem:[#allocation3 + $0xa0] sm:$0xff] %vm928_vm6, %v873_v8  ;;  %v875_v2 = vpop.permute.xlu1 %874 }
  0xe6   :  { %950 = vst.msk [vmem:[#allocation3 + $0xa8] sm:$0xff] %vm928_vm6, %v875_v2 }
  0xe7   :  { %1854 = vrot.lane.b32.xlu0 %v7921_v35, %s6913_s21 }
  0xe8   :  { %1856 = vrot.lane.b32.xlu1 %v7925_v43, %s6913_s21  ;;  %v877_v14 = vpop.permute.xlu0 %876 }
  0xe9   :  { %951 = vst.msk [vmem:[#allocation3 + $0xb0] sm:$0xff] %vm928_vm6, %v877_v14  ;;  %v879_v27 = vpop.permute.xlu1 %878 }
  0xea   :  { %952 = vst.msk [vmem:[#allocation3 + $0xb8] sm:$0xff] %vm928_vm6, %v879_v27  ;;  %v12833_v27 = vld [vmem:[#allocation34_spill] sm:$0xff] }
  0xeb   :  { %2007 = vrot.lane.b32.xlu0 %v12826_v3, %s6914_s22 }
  0xec   :  { %2009 = vrot.lane.b32.xlu1 %v12827_v7, %s6914_s22  ;;  %v881_v41 = vpop.permute.xlu0 %880 }
  0xed   :  { %953 = vst.msk [vmem:[#allocation3 + $0xc0] sm:$0xff] %vm928_vm6, %v881_v41  ;;  %v883_v35 = vpop.permute.xlu1 %882 }
  0xee   :  { %954 = vst.msk [vmem:[#allocation3 + $0xc8] sm:$0xff] %vm928_vm6, %v883_v35 }
  0xef   :  { %2154 = vrot.lane.b32.xlu0 %v7880_v33, %s6915_s23 }
  0xf0   :  { %2156 = vrot.lane.b32.xlu1 %v7888_v4, %s6915_s23  ;;  %v885_v36 = vpop.permute.xlu0 %884 }
  0xf1   :  { %955 = vst.msk [vmem:[#allocation3 + $0xd0] sm:$0xff] %vm928_vm6, %v885_v36  ;;  %v887_v20 = vpop.permute.xlu1 %886 }
  0xf2   :  { %956 = vst.msk [vmem:[#allocation3 + $0xd8] sm:$0xff] %vm928_vm6, %v887_v20 }
  0xf3   :  { %1425 = vrot.lane.b32.xlu0 %v7925_v43, %s6910_s12 }
  0xf4   :  { %1427 = vrot.lane.b32.xlu1 %v7934_v50, %s6910_s12  ;;  %v889_v19 = vpop.permute.xlu0 %888 }
  0xf5   :  { %957 = vst.msk [vmem:[#allocation3 + $0xe0] sm:$0xff] %vm928_vm6, %v889_v19  ;;  %v891_v33 = vpop.permute.xlu1 %890 }
  0xf6   :  { %958 = vst.msk [vmem:[#allocation3 + $0xe8] sm:$0xff] %vm928_vm6, %v891_v33  ;;  %v12834_v33 = vld [vmem:[#allocation37_spill] sm:$0xff] }
  0xf7   :  { %1578 = vrot.lane.b32.xlu0 %v12827_v7, %s6911_s15 }
  0xf8   :  { %1580 = vrot.lane.b32.xlu1 %v12828_v61, %s6911_s15  ;;  %v893_v28 = vpop.permute.xlu0 %892 }
  0xf9   :  { %959 = vst.msk [vmem:[#allocation3 + $0xf0] sm:$0xff] %vm928_vm6, %v893_v28  ;;  %v895_v43 = vpop.permute.xlu1 %894 }
  0xfa   :  { %960 = vst.msk [vmem:[#allocation3 + $0xf8] sm:$0xff] %vm928_vm6, %v895_v43 }
  0xfb   :  { %1725 = vrot.lane.b32.xlu0 %v7888_v4, %s6912_s18 }
  0xfc   :  { %1727 = vrot.lane.b32.xlu1 %v8082_v37, %s6912_s18 }
  0xfd   :  { %v1251_v16 = vpop.permute.xlu0 %1250  ;;  %v1253_v13 = vpop.permute.xlu1 %1252 }
  0xfe   :  { %1347 = vst.msk [vmem:[#allocation3] sm:$0xff] %vm1346_vm7, %v1251_v16  ;;  %1348 = vst.msk [vmem:[#allocation3 + $0x8] sm:$0xff] %vm1346_vm7, %v1253_v13  ;;  %v324_v13 = vld [vmem:[#allocation2 + $0x188] sm:$0xff] }
  0xff   :  { %1858 = vrot.lane.b32.xlu0 %v7934_v50, %s6913_s21 }
 0x100   :  { %1860 = vrot.lane.b32.xlu1 %v7938_v51, %s6913_s21 }
 0x101   :  { %v1255_v39 = vpop.permute.xlu0 %1254  ;;  %v1257_v4 = vpop.permute.xlu1 %1256 }
 0x102   :  { %1349 = vst.msk [vmem:[#allocation3 + $0x10] sm:$0xff] %vm1346_vm7, %v1255_v39  ;;  %1350 = vst.msk [vmem:[#allocation3 + $0x18] sm:$0xff] %vm1346_vm7, %v1257_v4  ;;  %v325_v4 = vld [vmem:[#allocation2 + $0x190] sm:$0x3] }
 0x103   :  { %2011 = vrot.lane.b32.xlu0 %v12828_v61, %s6914_s22 }
 0x104   :  { %2013 = vrot.lane.b32.xlu1 %v12829_v40, %s6914_s22 }
 0x105   :  { %v1259_v58 = vpop.permute.xlu0 %1258  ;;  %v1261_v50 = vpop.permute.xlu1 %1260 }
 0x106   :  { %1351 = vst.msk [vmem:[#allocation3 + $0x20] sm:$0xff] %vm1346_vm7, %v1259_v58  ;;  %1352 = vst.msk [vmem:[#allocation3 + $0x28] sm:$0xff] %vm1346_vm7, %v1261_v50  ;;  %v1549_v50 = vrot.slane %v324_v13, 1 }
 0x107   :  { %2158 = vrot.lane.b32.xlu0 %v8082_v37, %s6915_s23 }
 0x108   :  { %2160 = vrot.lane.b32.xlu1 %v8085_v55, %s6915_s23 }
 0x109   :  { %v1263_v21 = vpop.permute.xlu0 %1262  ;;  %v1265_v1 = vpop.permute.xlu1 %1264 }
 0x10a   :  { %1353 = vst.msk [vmem:[#allocation3 + $0x30] sm:$0xff] %vm1346_vm7, %v1263_v21  ;;  %1354 = vst.msk [vmem:[#allocation3 + $0x38] sm:$0xff] %vm1346_vm7, %v1265_v1  ;;  %v1551_v21 = vrot.slane %v325_v4, 1 }
 0x10b   :  { %1429 = vrot.lane.b32.xlu0 %v7938_v51, %s6910_s12 }
 0x10c   :  { %1431 = vrot.lane.b32.xlu1 %v7942_v57, %s6910_s12 }
 0x10d   :  { %v1267_v63 = vpop.permute.xlu0 %1266  ;;  %v1269_v37 = vpop.permute.xlu1 %1268 }
 0x10e   :  { %1355 = vst.msk [vmem:[#allocation3 + $0x40] sm:$0xff] %vm1346_vm7, %v1267_v63  ;;  %1356 = vst.msk [vmem:[#allocation3 + $0x48] sm:$0xff] %vm1346_vm7, %v1269_v37 }
 0x10f   :  { %1582 = vrot.lane.b32.xlu0 %v12829_v40, %s6911_s15  ;;  %v12835_v40 = vld [vmem:[#allocation40_spill] sm:$0xff] }
 0x110   :  { %1584 = vrot.lane.b32.xlu1 %v12830_v25, %s6911_s15 }
 0x111   :  { %v1271_v29 = vpop.permute.xlu0 %1270 }
 0x112   :  { %1357 = vst.msk [vmem:[#allocation3 + $0x50] sm:$0xff] %vm1346_vm7, %v1271_v29  ;;  %v1273_v51 = vpop.permute.xlu1 %1272 }
 0x113   :  { %1729 = vrot.lane.b32.xlu0 %v8085_v55, %s6912_s18  ;;  %1358 = vst.msk [vmem:[#allocation3 + $0x58] sm:$0xff] %vm1346_vm7, %v1273_v51  ;;  %v1552_v51 = vsel %vm543_vm4, %v1549_v50, %v1551_v21 }
 0x114   :  { %1731 = vrot.lane.b32.xlu1 %v8125_v12, %s6912_s18 }
 0x115   :  { %v1275_v49 = vpop.permute.xlu0 %1274 }
 0x116   :  { %1359 = vst.msk [vmem:[#allocation3 + $0x60] sm:$0xff] %vm1346_vm7, %v1275_v49  ;;  %v1277_v45 = vpop.permute.xlu1 %1276 }
 0x117   :  { %1862 = vrot.lane.b32.xlu0 %v7942_v57, %s6913_s21  ;;  %1360 = vst.msk [vmem:[#allocation3 + $0x68] sm:$0xff] %vm1346_vm7, %v1277_v45  ;;  %v1696_v45 = vrot.slane %v324_v13, 2 }
 0x118   :  { %1864 = vrot.lane.b32.xlu1 %v7954_v62, %s6913_s21 }
 0x119   :  { %v1279_v54 = vpop.permute.xlu0 %1278 }
 0x11a   :  { %1361 = vst.msk [vmem:[#allocation3 + $0x70] sm:$0xff] %vm1346_vm7, %v1279_v54  ;;  %v1281_v55 = vpop.permute.xlu1 %1280  ;;  %v1698_v54 = vrot.slane %v325_v4, 2  ;;  %v6857_v4 = vld [vmem:[#allocation2 + $0x1d0] sm:$0xff] }
 0x11b   :  { %2015 = vrot.lane.b32.xlu0 %v12830_v25, %s6914_s22  ;;  %1362 = vst.msk [vmem:[#allocation3 + $0x78] sm:$0xff] %vm1346_vm7, %v1281_v55 }
 0x11c   :  { %2017 = vrot.lane.b32.xlu1 %v12831_v9, %s6914_s22 }
 0x11d   :  { %v1414_v60 = vpop.permute.xlu0 %1413 }
 0x11e   :  { %1510 = vst.msk [vmem:[#allocation3] sm:$0xff] %vm1509_vm8, %v1414_v60  ;;  %v1416_v57 = vpop.permute.xlu1 %1415 }
 0x11f   :  { %2162 = vrot.lane.b32.xlu0 %v8125_v12, %s6915_s23  ;;  %1511 = vst.msk [vmem:[#allocation3 + $0x8] sm:$0xff] %vm1509_vm8, %v1416_v57 }
 0x120   :  { %2164 = vrot.lane.b32.xlu1 %v8131_v47, %s6915_s23 }
 0x121   :  { %v1567_v6 = vpop.permute.xlu0 %1566 }
 0x122   :  { %1663 = vst.msk [vmem:[#allocation3] sm:$0xff] %vm1662_vm9, %v1567_v6  ;;  %v1569_v11 = vpop.permute.xlu1 %1568  ;;  %v1699_v6 = vsel %vm961_vm5, %v1696_v45, %v1698_v54 }
 0x123   :  { %1433 = vrot.lane.b32.xlu0 %v7954_v62, %s6910_s12  ;;  %1664 = vst.msk [vmem:[#allocation3 + $0x8] sm:$0xff] %vm1662_vm9, %v1569_v11 }
 0x124   :  { %1435 = vrot.lane.b32.xlu1 %v7958_v5, %s6910_s12 }
 0x125   :  { %v1714_v12 = vpop.permute.xlu0 %1713 }
 0x126   :  { %1810 = vst.msk [vmem:[#allocation3] sm:$0xff] %vm1809_vm10, %v1714_v12  ;;  %v1716_v3 = vpop.permute.xlu1 %1715  ;;  %v326_v12 = vld [vmem:[#allocation2 + $0x198] sm:$0xff] }
 0x127   :  { %1586 = vrot.lane.b32.xlu0 %v12831_v9, %s6911_s15  ;;  %1811 = vst.msk [vmem:[#allocation3 + $0x8] sm:$0xff] %vm1809_vm10, %v1716_v3  ;;  %v328_v3 = vld [vmem:[#allocation2 + $0x1a8] sm:$0x3] }
 0x128   :  { %1588 = vrot.lane.b32.xlu1 %v12832_v0, %s6911_s15 }
 0x129   :  { %v1847_v62 = vpop.permute.xlu0 %1846 }
 0x12a   :  { %1943 = vst.msk [vmem:[#allocation3] sm:$0xff] %vm1942_vm11, %v1847_v62  ;;  %v1849_v34 = vpop.permute.xlu1 %1848 }
 0x12b   :  { %1733 = vrot.lane.b32.xlu0 %v8131_v47, %s6912_s18  ;;  %1944 = vst.msk [vmem:[#allocation3 + $0x8] sm:$0xff] %vm1942_vm11, %v1849_v34  ;;  %v1981_v34 = vrot.slane %v326_v12, 1 }
 0x12c   :  { %1735 = vrot.lane.b32.xlu1 %v8143_v42, %s6912_s18 }
 0x12d   :  { %v2000_v8 = vpop.permute.xlu0 %1999 }
 0x12e   :  { %2096 = vst.msk [vmem:[#allocation3] sm:$0xff] %vm2095_vm12, %v2000_v8  ;;  %v2002_v2 = vpop.permute.xlu1 %2001 }
 0x12f   :  { %1866 = vrot.lane.b32.xlu0 %v7958_v5, %s6913_s21  ;;  %2097 = vst.msk [vmem:[#allocation3 + $0x8] sm:$0xff] %vm2095_vm12, %v2002_v2  ;;  %v1984_v2 = vrot.slane %v328_v3, 1 }
 0x130   :  { %1868 = vrot.lane.b32.xlu1 %v7962_v18, %s6913_s21 }
 0x131   :  { %v2147_v47 = vpop.permute.xlu0 %2146 }
 0x132   :  { %2243 = vst.msk [vmem:[#allocation3] sm:$0xff] %vm2242_vm13, %v2147_v47  ;;  %v2149_v14 = vpop.permute.xlu1 %2148 }
 0x133   :  { %2019 = vrot.lane.b32.xlu0 %v12832_v0, %s6914_s22  ;;  %2244 = vst.msk [vmem:[#allocation3 + $0x8] sm:$0xff] %vm2242_vm13, %v2149_v14 }
 0x134   :  { %2021 = vrot.lane.b32.xlu1 %v12833_v27, %s6914_s22 }
 0x135   :  { %v1418_v7 = vpop.permute.xlu0 %1417 }
 0x136   :  { %1512 = vst.msk [vmem:[#allocation3 + $0x10] sm:$0xff] %vm1509_vm8, %v1418_v7  ;;  %v1420_v5 = vpop.permute.xlu1 %1419  ;;  %v2128_v7 = vrot.slane %v326_v12, 2 }
 0x137   :  { %2166 = vrot.lane.b32.xlu0 %v8143_v42, %s6915_s23  ;;  %1513 = vst.msk [vmem:[#allocation3 + $0x18] sm:$0xff] %vm1509_vm8, %v1420_v5 }
 0x138   :  { %2168 = vrot.lane.b32.xlu1 %v8149_v53, %s6915_s23 }
 0x139   :  { %v1571_v41 = vpop.permute.xlu0 %1570  ;;  %v2275_v35 = vld [vmem:[#allocation3] sm:$0xff] }
 0x13a   :  { %1665 = vst.msk [vmem:[#allocation3 + $0x10] sm:$0xff] %vm1662_vm9, %v1571_v41  ;;  %6679 = vmatprep.mubr.bf16.mxu0 %v2275_v35  ;;  %v1573_v36 = vpop.permute.xlu1 %1572  ;;  %v2276_v20 = vld [vmem:[#allocation3 + $0x8] sm:$0xff] }
 0x13b   :  { %1437 = vrot.lane.b32.xlu0 %v7962_v18, %s6910_s12  ;;  %1666 = vst.msk [vmem:[#allocation3 + $0x18] sm:$0xff] %vm1662_vm9, %v1573_v36  ;;  %6680 = vmatmul.mubr.bf16.vlgmr.msra.gmra.mrb[0].mxu0 %v2276_v20  ;;  %v2131_v36 = vrot.slane %v328_v3, 2 }
 0x13c   :  { %1439 = vrot.lane.b32.xlu1 %v7966_v32, %s6910_s12 }
 0x13d   :  { %v1718_v42 = vpop.permute.xlu0 %1717 }
 0x13e   :  { %1812 = vst.msk [vmem:[#allocation3 + $0x10] sm:$0xff] %vm1809_vm10, %v1718_v42  ;;  %v1720_v19 = vpop.permute.xlu1 %1719  ;;  %v6853_v42 = vld [vmem:[#allocation2 + $0x1c0] sm:$0x3] }
 0x13f   :  { %1590 = vrot.lane.b32.xlu0 %v12833_v27, %s6911_s15  ;;  %1813 = vst.msk [vmem:[#allocation3 + $0x18] sm:$0xff] %vm1809_vm10, %v1720_v19  ;;  %v6854_v19 = vld [vmem:[#allocation2 + $0x1b0] sm:$0xff] }
 0x140   :  { %1592 = vrot.lane.b32.xlu1 %v12834_v33, %s6911_s15 }
 0x141   :  { %v1851_v18 = vpop.permute.xlu0 %1850 }
 0x142   :  { %1945 = vst.msk [vmem:[#allocation3 + $0x10] sm:$0xff] %vm1942_vm11, %v1851_v18  ;;  %v1853_v61 = vpop.permute.xlu1 %1852  ;;  %v6855_v18 = vld [vmem:[#allocation2 + $0x1b8] sm:$0xff] }
 0x143   :  { %1737 = vrot.lane.b32.xlu0 %v8149_v53, %s6912_s18  ;;  %1946 = vst.msk [vmem:[#allocation3 + $0x18] sm:$0xff] %vm1942_vm11, %v1853_v61  ;;  %v323_v53 = vld [vmem:[#allocation2 + $0x180] sm:$0xff]  ;;  %v1043_v61 = vrot.slane %v6855_v18, 2 }
 0x144   :  { %1739 = vrot.lane.b32.xlu1 %v8158_v56, %s6912_s18  ;;  %v1548_v58 = vrot.slane %v323_v53, 1  ;;  %v1379_v25 = vpack.c.bf16 %v324_v13, %v323_v53  ;;  %v1695_v49 = vrot.slane %v323_v53, 2  ;;  %v6856_v13 = vld [vmem:[#allocation2 + $0x1c8] sm:$0xff] }
 0x145   :  { %v2004_v28 = vpop.permute.xlu0 %2003 }
 0x146   :  { %2098 = vst.msk [vmem:[#allocation3 + $0x10] sm:$0xff] %vm2095_vm12, %v2004_v28  ;;  %v2006_v43 = vpop.permute.xlu1 %2005  ;;  %v1550_v29 = vsel %vm543_vm4, %v1548_v58, %v1549_v50  ;;  %v1697_v57 = vsel %vm961_vm5, %v1695_v49, %v1696_v45 }
 0x147   :  { %1870 = vrot.lane.b32.xlu0 %v7966_v32, %s6913_s21  ;;  %2099 = vst.msk [vmem:[#allocation3 + $0x18] sm:$0xff] %vm2095_vm12, %v2006_v43  ;;  %v1562_v60 = vpack.c.bf16 %v1552_v51, %v1550_v29  ;;  %v1709_v62 = vpack.c.bf16 %v1699_v6, %v1697_v57  ;;  %v6859_v57 = vld [vmem:[#allocation2 + $0x1e0] sm:$0xff] }
 0x148   :  { %1872 = vrot.lane.b32.xlu1 %v7976_v30, %s6913_s21  ;;  %v1052_v6 = vrot.slane %v6859_v57, 2 }
 0x149   :  { %v2151_v16 = vpop.permute.xlu0 %2150 }
 0x14a   :  { %2245 = vst.msk [vmem:[#allocation3 + $0x10] sm:$0xff] %vm2242_vm13, %v2151_v16  ;;  %v2153_v39 = vpop.permute.xlu1 %2152 }
 0x14b   :  { %2023 = vrot.lane.b32.xlu0 %v12834_v33, %s6914_s22  ;;  %2246 = vst.msk [vmem:[#allocation3 + $0x18] sm:$0xff] %vm2242_vm13, %v2153_v39  ;;  %v1042_v33 = vrot.slane %v6854_v19, 2  ;;  %v1047_v39 = vrot.slane %v6856_v13, 2 }
 0x14c   :  { %2025 = vrot.lane.b32.xlu1 %v12835_v40, %s6914_s22 }
 0x14d   :  { %v1422_v32 = vpop.permute.xlu0 %1421  ;;  %v1044_v21 = vsel %vm961_vm5, %v1042_v33, %v1043_v61 }
 0x14e   :  { %1514 = vst.msk [vmem:[#allocation3 + $0x20] sm:$0xff] %vm1509_vm8, %v1422_v32  ;;  %v1424_v1 = vpop.permute.xlu1 %1423  ;;  %v6858_v32 = vld [vmem:[#allocation2 + $0x1d8] sm:$0x3] }
 0x14f   :  { %2170 = vrot.lane.b32.xlu0 %v8158_v56, %s6915_s23  ;;  %1515 = vst.msk [vmem:[#allocation3 + $0x28] sm:$0xff] %vm1509_vm8, %v1424_v1  ;;  %v1050_v58 = vrot.slane %v6858_v32, 2 }
 0x150   :  { %2172 = vrot.lane.b32.xlu1 %v8162_v44, %s6915_s23 }
 0x151   :  { %v1575_v63 = vpop.permute.xlu0 %1574  ;;  %v2277_v37 = vld [vmem:[#allocation3 + $0x10] sm:$0xff] }
 0x152   :  { %1667 = vst.msk [vmem:[#allocation3 + $0x20] sm:$0xff] %vm1662_vm9, %v1575_v63  ;;  %6683 = vmatprep.mubr.bf16.mxu0 %v2277_v37  ;;  %v1577_v55 = vpop.permute.xlu1 %1576  ;;  %v2278_v56 = vld [vmem:[#allocation3 + $0x18] sm:$0xff] }
 0x153   :  { %1441 = vrot.lane.b32.xlu0 %v7976_v30, %s6910_s12  ;;  %1668 = vst.msk [vmem:[#allocation3 + $0x28] sm:$0xff] %vm1662_vm9, %v1577_v55  ;;  %6684 = vmatmul.mubr.bf16.gmra.mrb[4].mxu0 %v2278_v56  ;;  %v327_v30 = vld [vmem:[#allocation2 + $0x1a0] sm:$0xff] }
 0x154   :  { %1443 = vrot.lane.b32.xlu1 %v1379_v25, %s6910_s12  ;;  %v1982_v8 = vrot.slane %v327_v30, 1  ;;  %v1842_v27 = vpack.c.bf16 %v327_v30, %v326_v12  ;;  %v2129_v5 = vrot.slane %v327_v30, 2  ;;  %v6861_v30 = vld [vmem:[#allocation2 + $0x1f0] sm:$0x3] }
 0x155   :  { %v1722_v9 = vpop.permute.xlu0 %1721  ;;  %v1055_v3 = vrot.slane %v6861_v30, 2 }
 0x156   :  { %1814 = vst.msk [vmem:[#allocation3 + $0x20] sm:$0xff] %vm1809_vm10, %v1722_v9  ;;  %v1724_v11 = vpop.permute.xlu1 %1723  ;;  %v1983_v41 = vsel %vm543_vm4, %v1981_v34, %v1982_v8  ;;  %v1985_v35 = vsel %vm543_vm4, %v1982_v8, %v1984_v2  ;;  %v2130_v16 = vsel %vm961_vm5, %v2128_v7, %v2129_v5  ;;  %v2132_v53 = vsel %vm961_vm5, %v2129_v5, %v2131_v36  ;;  %v6863_v36 = vld [vmem:[#allocation2 + $0x200] sm:$0xff] }
 0x157   :  { %1594 = vrot.lane.b32.xlu0 %v12835_v40, %s6911_s15  ;;  %1815 = vst.msk [vmem:[#allocation3 + $0x28] sm:$0xff] %vm1809_vm10, %v1724_v11  ;;  %v1995_v43 = vpack.c.bf16 %v1985_v35, %v1983_v41  ;;  %v1048_v40 = vrot.slane %v6857_v4, 2  ;;  %v2142_v37 = vpack.c.bf16 %v2132_v53, %v2130_v16  ;;  %v6860_v11 = vld [vmem:[#allocation2 + $0x1e8] sm:$0xff]  ;;  %v6862_v41 = vld [vmem:[#allocation2 + $0x1f8] sm:$0xff] }
 0x158   :  { %1596 = vrot.lane.b32.xlu1 %v1562_v60, %s6911_s15  ;;  %v1053_v12 = vrot.slane %v6860_v11, 2  ;;  %v1057_v35 = vrot.slane %v6862_v41, 2 }
 0x159   :  { %v1855_v0 = vpop.permute.xlu0 %1854  ;;  %v1051_v29 = vsel %vm961_vm5, %v1048_v40, %v1050_v58  ;;  %v6865_v58 = vld [vmem:[#allocation2 + $0x210] sm:$0xff] }
 0x15a   :  { %1947 = vst.msk [vmem:[#allocation3 + $0x20] sm:$0xff] %vm1942_vm11, %v1855_v0  ;;  %v1857_v47 = vpop.permute.xlu1 %1856  ;;  %v1054_v34 = vsel %vm961_vm5, %v1052_v6, %v1053_v12  ;;  %v1056_v8 = vsel %vm961_vm5, %v1053_v12, %v1055_v3  ;;  %v6869_v6 = vld [vmem:[#allocation2 + $0x230] sm:$0xff]  ;;  %v6870_v12 = vld [vmem:[#allocation2 + $0x238] sm:$0x3] }
 0x15b   :  { %1741 = vrot.lane.b32.xlu0 %v8162_v44, %s6912_s18  ;;  %1948 = vst.msk [vmem:[#allocation3 + $0x28] sm:$0xff] %vm1942_vm11, %v1857_v47  ;;  %v1045_v44 = vrot.slane %v6853_v42, 2  ;;  %v12836_v47 = vld [vmem:[#allocation44_spill] sm:$0xff]  ;;  %v6864_v42 = vld [vmem:[#allocation2 + $0x208] sm:$0x3]  ;;  %v1068_v11 = vrot.slane %v6869_v6, 2 }
 0x15c   :  { %1743 = vrot.lane.b32.xlu1 %v1709_v62, %s6912_s18  ;;  %v1070_v30 = vrot.slane %v6870_v12, 2 }
 0x15d   :  { %v2008_v14 = vpop.permute.xlu0 %2007  ;;  %v1046_v1 = vsel %vm961_vm5, %v1043_v61, %v1045_v44  ;;  %v1060_v44 = vrot.slane %v6864_v42, 2  ;;  %v6872_v42 = vld [vmem:[#allocation2 + $0x248] sm:$0xff] }
 0x15e   :  { %2100 = vst.msk [vmem:[#allocation3 + $0x20] sm:$0xff] %vm2095_vm12, %v2008_v14  ;;  %v2010_v20 = vpop.permute.xlu1 %2009  ;;  %v1202_v49 = vpack.c.bf16 %v1046_v1, %v1044_v21  ;;  %v6866_v21 = vld [vmem:[#allocation2 + $0x218] sm:$0xff] }
 0x15f   :  { %1874 = vrot.lane.b32.xlu0 %v1379_v25, %s6913_s21  ;;  %2101 = vst.msk [vmem:[#allocation3 + $0x28] sm:$0xff] %vm2095_vm12, %v2010_v20  ;;  %v1049_v25 = vsel %vm961_vm5, %v1047_v39, %v1048_v40  ;;  %v1058_v20 = vrot.slane %v6863_v36, 2  ;;  %v1063_v1 = vrot.slane %v6866_v21, 2  ;;  %v6871_v36 = vld [vmem:[#allocation2 + $0x240] sm:$0xff]  ;;  %v6874_v21 = vld [vmem:[#allocation2 + $0x258] sm:$0xff] }
 0x160   :  { %1876 = vrot.lane.b32.xlu1 %v1842_v27, %s6913_s21  ;;  %v1203_v55 = vpack.c.bf16 %v1051_v29, %v1049_v25  ;;  %v1204_v27 = vpack.c.bf16 %v1056_v8, %v1054_v34 }
 0x161   :  { %v2155_v28 = vpop.permute.xlu0 %2154  ;;  %v1059_v18 = vsel %vm961_vm5, %v1057_v35, %v1058_v20  ;;  %v1061_v61 = vsel %vm961_vm5, %v1058_v20, %v1060_v44  ;;  %v1072_v20 = vrot.slane %v6871_v36, 2  ;;  %v1073_v44 = vrot.slane %v6872_v42, 2 }
 0x162   :  { %2247 = vst.msk [vmem:[#allocation3 + $0x20] sm:$0xff] %vm2242_vm13, %v2155_v28  ;;  %v2157_v50 = vpop.permute.xlu1 %2156  ;;  %v1205_v53 = vpack.c.bf16 %v1061_v61, %v1059_v18  ;;  %v12842_v61 = vld [vmem:[#allocation19_spill] sm:$0xff] }
 0x163   :  { %2027 = vrot.lane.b32.xlu0 %v1562_v60, %s6914_s22  ;;  %2248 = vst.msk [vmem:[#allocation3 + $0x28] sm:$0xff] %vm2242_vm13, %v2157_v50  ;;  %v1062_v50 = vrot.slane %v6865_v58, 2 }
 0x164   :  { %2029 = vrot.lane.b32.xlu1 %v1995_v43, %s6914_s22 }
 0x165   :  { %v1426_v63 = vpop.permute.xlu0 %1425 }
 0x166   :  { %1516 = vst.msk [vmem:[#allocation3 + $0x30] sm:$0xff] %vm1509_vm8, %v1426_v63  ;;  %v1428_v51 = vpop.permute.xlu1 %1427  ;;  %v6867_v63 = vld [vmem:[#allocation2 + $0x220] sm:$0x3] }
 0x167   :  { %2174 = vrot.lane.b32.xlu0 %v1709_v62, %s6915_s23  ;;  %1517 = vst.msk [vmem:[#allocation3 + $0x38] sm:$0xff] %vm1509_vm8, %v1428_v51  ;;  %v1064_v51 = vsel %vm961_vm5, %v1062_v50, %v1063_v1 }
 0x168   :  { %2176 = vrot.lane.b32.xlu1 %v2142_v37, %s6915_s23  ;;  %v1065_v37 = vrot.slane %v6867_v63, 2  ;;  %v6875_v63 = vld [vmem:[#allocation2 + $0x260] sm:$0xff] }
 0x169   :  { %v1579_v45 = vpop.permute.xlu0 %1578  ;;  %v2279_v54 = vld [vmem:[#allocation3 + $0x20] sm:$0xff] }
 0x16a   :  { %1669 = vst.msk [vmem:[#allocation3 + $0x30] sm:$0xff] %vm1662_vm9, %v1579_v45  ;;  %6687 = vmatprep.mubr.bf16.mxu0 %v2279_v54  ;;  %v1581_v56 = vpop.permute.xlu1 %1580  ;;  %v2280_v9 = vld [vmem:[#allocation3 + $0x28] sm:$0xff] }
 0x16b   :  { %1282 = vrot.lane.b32.xlu0 %v1202_v49, %s6909_s28  ;;  %1670 = vst.msk [vmem:[#allocation3 + $0x38] sm:$0xff] %vm1662_vm9, %v1581_v56  ;;  %6688 = vmatmul.mubr.bf16.gmra.mrb[8].mxu0 %v2280_v9  ;;  %v1066_v49 = vsel %vm961_vm5, %v1063_v1, %v1065_v37  ;;  %v1077_v1 = vrot.slane %v6874_v21, 2  ;;  %v1078_v37 = vrot.slane %v6875_v63, 2  ;;  %v6884_v21 = vld [vmem:[#allocation2 + $0x2a8] sm:$0xff]  ;;  %v6885_v63 = vld [vmem:[#allocation2 + $0x2b0] sm:$0x3] }
 0x16c   :  { %1284 = vrot.lane.b32.xlu1 %v1203_v55, %s6909_s28 }
 0x16d   :  { %v1726_v60 = vpop.permute.xlu0 %1725 }
 0x16e   :  { %1816 = vst.msk [vmem:[#allocation3 + $0x30] sm:$0xff] %vm1809_vm10, %v1726_v60  ;;  %v1728_v0 = vpop.permute.xlu1 %1727  ;;  %v6868_v60 = vld [vmem:[#allocation2 + $0x228] sm:$0xff] }
 0x16f   :  { %1445 = vrot.lane.b32.xlu0 %v7982_v48, %s6910_s12  ;;  %1817 = vst.msk [vmem:[#allocation3 + $0x38] sm:$0xff] %vm1809_vm10, %v1728_v0  ;;  %v12837_v48 = vld [vmem:[#allocation46_spill] sm:$0xff]  ;;  %v1067_v57 = vrot.slane %v6868_v60, 2  ;;  %v12840_v0 = vld [vmem:[#allocation17_spill] sm:$0xff] }
 0x170   :  { %1447 = vrot.lane.b32.xlu1 %v7986_v15, %s6910_s12 }
 0x171   :  { %v1859_v62 = vpop.permute.xlu0 %1858  ;;  %v1069_v8 = vsel %vm961_vm5, %v1067_v57, %v1068_v11 }
 0x172   :  { %1949 = vst.msk [vmem:[#allocation3 + $0x30] sm:$0xff] %vm1942_vm11, %v1859_v62  ;;  %v1861_v2 = vpop.permute.xlu1 %1860 }
 0x173   :  { %1598 = vrot.lane.b32.xlu0 %v12836_v47, %s6911_s15  ;;  %1950 = vst.msk [vmem:[#allocation3 + $0x38] sm:$0xff] %vm1942_vm11, %v1861_v2  ;;  %v1071_v2 = vsel %vm961_vm5, %v1068_v11, %v1070_v30  ;;  %v6877_v30 = vld [vmem:[#allocation2 + $0x270] sm:$0xff] }
 0x174   :  { %1600 = vrot.lane.b32.xlu1 %v12837_v48, %s6911_s15 }
 0x175   :  { %v2012_v14 = vpop.permute.xlu0 %2011 }
 0x176   :  { %2102 = vst.msk [vmem:[#allocation3 + $0x30] sm:$0xff] %vm2095_vm12, %v2012_v14  ;;  %v2014_v7 = vpop.permute.xlu1 %2013 }
 0x177   :  { %1745 = vrot.lane.b32.xlu0 %v1203_v55, %s6912_s18  ;;  %2103 = vst.msk [vmem:[#allocation3 + $0x38] sm:$0xff] %vm2095_vm12, %v2014_v7  ;;  %v1206_v55 = vpack.c.bf16 %v1066_v49, %v1064_v51 }
 0x178   :  { %1747 = vrot.lane.b32.xlu1 %v1204_v27, %s6912_s18 }
 0x179   :  { %v2159_v5 = vpop.permute.xlu0 %2158 }
 0x17a   :  { %2249 = vst.msk [vmem:[#allocation3 + $0x30] sm:$0xff] %vm2242_vm13, %v2159_v5  ;;  %v2161_v19 = vpop.permute.xlu1 %2160 }
 0x17b   :  { %1878 = vrot.lane.b32.xlu0 %v7986_v15, %s6913_s21  ;;  %2250 = vst.msk [vmem:[#allocation3 + $0x38] sm:$0xff] %vm2242_vm13, %v2161_v19  ;;  %v12838_v15 = vld [vmem:[#allocation50_spill] sm:$0xff] }
 0x17c   :  { %1880 = vrot.lane.b32.xlu1 %v8000_v26, %s6913_s21  ;;  %v6873_v19 = vld [vmem:[#allocation2 + $0x250] sm:$0x3] }
 0x17d   :  { %v1430_v33 = vpop.permute.xlu0 %1429 }
 0x17e   :  { %1518 = vst.msk [vmem:[#allocation3 + $0x40] sm:$0xff] %vm1509_vm8, %v1430_v33  ;;  %v1432_v28 = vpop.permute.xlu1 %1431  ;;  %v1075_v33 = vrot.slane %v6873_v19, 2 }
 0x17f   :  { %2031 = vrot.lane.b32.xlu0 %v12837_v48, %s6914_s22  ;;  %1519 = vst.msk [vmem:[#allocation3 + $0x48] sm:$0xff] %vm1509_vm8, %v1432_v28 }
 0x180   :  { %2033 = vrot.lane.b32.xlu1 %v12838_v15, %s6914_s22 }
 0x181   :  { %v1583_v43 = vpop.permute.xlu0 %1582  ;;  %v2281_v16 = vld [vmem:[#allocation3 + $0x30] sm:$0xff] }
 0x182   :  { %1671 = vst.msk [vmem:[#allocation3 + $0x40] sm:$0xff] %vm1662_vm9, %v1583_v43  ;;  %6691 = vmatprep.mubr.bf16.mxu0 %v2281_v16  ;;  %v1585_v13 = vpop.permute.xlu1 %1584  ;;  %v2282_v39 = vld [vmem:[#allocation3 + $0x38] sm:$0xff]  ;;  %v1076_v43 = vsel %vm961_vm5, %v1073_v44, %v1075_v33  ;;  %v191_v16 = vld [vmem:[%s12390_s0 + $0x1f0] sm:$0xff] }
 0x183   :  { %2178 = vrot.lane.b32.xlu0 %v1204_v27, %s6915_s23  ;;  %1672 = vst.msk [vmem:[#allocation3 + $0x48] sm:$0xff] %vm1662_vm9, %v1585_v13  ;;  %6692 = vmatmul.mubr.bf16.gmra.mrb[12].mxu0 %v2282_v39  ;;  %v12843_v39 = vld [vmem:[#allocation60_spill] sm:$0xff]  ;;  %v6882_v33 = vld [vmem:[#allocation2 + $0x298] sm:$0x3] }
 0x184   :  { %2180 = vrot.lane.b32.xlu1 %v1205_v53, %s6915_s23  ;;  %255 = vst.msk [vmem:[#allocation2 + $0x331] sm:$0xff] %vm15_vm0, %v191_v16 }
 0x185   :  { %v1730_v4 = vpop.permute.xlu0 %1729 }
 0x186   :  { %1818 = vst.msk [vmem:[#allocation3 + $0x40] sm:$0xff] %vm1809_vm10, %v1730_v4  ;;  %v1732_v40 = vpop.permute.xlu1 %1731 }
 0x187   :  { %1286 = vrot.lane.b32.xlu0 %v1204_v27, %s6909_s28  ;;  %1819 = vst.msk [vmem:[#allocation3 + $0x48] sm:$0xff] %vm1809_vm10, %v1732_v40  ;;  %v1207_v27 = vpack.c.bf16 %v1071_v2, %v1069_v8 }
 0x188   :  { %1288 = vrot.lane.b32.xlu1 %v1205_v53, %s6909_s28 }
 0x189   :  { %v1863_v32 = vpop.permute.xlu0 %1862 }
 0x18a   :  { %1951 = vst.msk [vmem:[#allocation3 + $0x40] sm:$0xff] %vm1942_vm11, %v1863_v32  ;;  %v1865_v25 = vpop.permute.xlu1 %1864 }
 0x18b   :  { %1449 = vrot.lane.b32.xlu0 %v8000_v26, %s6910_s12  ;;  %1952 = vst.msk [vmem:[#allocation3 + $0x48] sm:$0xff] %vm1942_vm11, %v1865_v25  ;;  %v12839_v26 = vld [vmem:[#allocation52_spill] sm:$0xff]  ;;  %v6876_v25 = vld [vmem:[#allocation2 + $0x268] sm:$0x3] }
 0x18c   :  { %1451 = vrot.lane.b32.xlu1 %v8004_v10, %s6910_s12 }
 0x18d   :  { %v2016_v29 = vpop.permute.xlu0 %2015 }
 0x18e   :  { %2104 = vst.msk [vmem:[#allocation3 + $0x40] sm:$0xff] %vm2095_vm12, %v2016_v29  ;;  %v2018_v45 = vpop.permute.xlu1 %2017  ;;  %v1080_v29 = vrot.slane %v6876_v25, 2 }
 0x18f   :  { %1602 = vrot.lane.b32.xlu0 %v12838_v15, %s6911_s15  ;;  %2105 = vst.msk [vmem:[#allocation3 + $0x48] sm:$0xff] %vm2095_vm12, %v2018_v45  ;;  %v1074_v15 = vsel %vm961_vm5, %v1072_v20, %v1073_v44  ;;  %v6880_v20 = vld [vmem:[#allocation2 + $0x288] sm:$0xff]  ;;  %v6881_v44 = vld [vmem:[#allocation2 + $0x290] sm:$0xff] }
 0x190   :  { %1604 = vrot.lane.b32.xlu1 %v12839_v26, %s6911_s15  ;;  %v1208_v40 = vpack.c.bf16 %v1076_v43, %v1074_v15  ;;  %v1087_v42 = vrot.slane %v6880_v20, 2  ;;  %v1088_v19 = vrot.slane %v6881_v44, 2 }
 0x191   :  { %v2163_v54 = vpop.permute.xlu0 %2162 }
 0x192   :  { %2251 = vst.msk [vmem:[#allocation3 + $0x40] sm:$0xff] %vm2242_vm13, %v2163_v54  ;;  %v2165_v56 = vpop.permute.xlu1 %2164  ;;  %v1081_v54 = vsel %vm961_vm5, %v1078_v37, %v1080_v29  ;;  %v1089_v15 = vsel %vm961_vm5, %v1087_v42, %v1088_v19 }
 0x193   :  { %1749 = vrot.lane.b32.xlu0 %v1205_v53, %s6912_s18  ;;  %2252 = vst.msk [vmem:[#allocation3 + $0x48] sm:$0xff] %vm2242_vm13, %v2165_v56  ;;  %v192_v53 = vld [vmem:[%s12390_s0 + $0x1f8] sm:$0xff] }
 0x194   :  { %1751 = vrot.lane.b32.xlu1 %v1206_v55, %s6912_s18  ;;  %256 = vst.msk [vmem:[#allocation2 + $0x339] sm:$0xff] %vm15_vm0, %v192_v53  ;;  %v12844_v56 = vld [vmem:[#allocation63_spill] sm:$0xff] }
 0x195   :  { %v1434_v9 = vpop.permute.xlu0 %1433 }
 0x196   :  { %1520 = vst.msk [vmem:[#allocation3 + $0x50] sm:$0xff] %vm1509_vm8, %v1434_v9  ;;  %v1436_v3 = vpop.permute.xlu1 %1435 }
 0x197   :  { %1882 = vrot.lane.b32.xlu0 %v8004_v10, %s6913_s21  ;;  %1521 = vst.msk [vmem:[#allocation3 + $0x58] sm:$0xff] %vm1509_vm8, %v1436_v3  ;;  %v12841_v10 = vld [vmem:[#allocation55_spill] sm:$0xff]  ;;  %v1082_v3 = vrot.slane %v6877_v30, 2  ;;  %v6888_v30 = vld [vmem:[#allocation2 + $0x2c8] sm:$0x3] }
 0x198   :  { %1884 = vrot.lane.b32.xlu1 %v12840_v0, %s6913_s21 }
 0x199   :  { %v1587_v62 = vpop.permute.xlu0 %1586  ;;  %v2283_v34 = vld [vmem:[#allocation3 + $0x40] sm:$0xff] }
 0x19a   :  { %1673 = vst.msk [vmem:[#allocation3 + $0x50] sm:$0xff] %vm1662_vm9, %v1587_v62  ;;  %6695 = vmatprep.mubr.bf16.mxu0 %v2283_v34  ;;  %v1589_v47 = vpop.permute.xlu1 %1588  ;;  %v2284_v48 = vld [vmem:[#allocation3 + $0x48] sm:$0xff]  ;;  %v6879_v34 = vld [vmem:[#allocation2 + $0x280] sm:$0x3] }
 0x19b   :  { %2035 = vrot.lane.b32.xlu0 %v12839_v26, %s6914_s22  ;;  %1674 = vst.msk [vmem:[#allocation3 + $0x58] sm:$0xff] %vm1662_vm9, %v1589_v47  ;;  %6696 = vmatmul.mubr.bf16.gmra.mrb[16].mxu0 %v2284_v48  ;;  %v1079_v26 = vsel %vm961_vm5, %v1077_v1, %v1078_v37  ;;  %v1085_v8 = vrot.slane %v6879_v34, 2  ;;  %v1093_v1 = vrot.slane %v6884_v21, 2  ;;  %v1095_v37 = vrot.slane %v6885_v63, 2 }
 0x19c   :  { %2037 = vrot.lane.b32.xlu1 %v12841_v10, %s6914_s22  ;;  %v1209_v60 = vpack.c.bf16 %v1081_v54, %v1079_v26 }
 0x19d   :  { %v1734_v14 = vpop.permute.xlu0 %1733 }
 0x19e   :  { %1820 = vst.msk [vmem:[#allocation3 + $0x50] sm:$0xff] %vm1809_vm10, %v1734_v14  ;;  %v1736_v7 = vpop.permute.xlu1 %1735 }
 0x19f   :  { %2182 = vrot.lane.b32.xlu0 %v1206_v55, %s6915_s23  ;;  %1821 = vst.msk [vmem:[#allocation3 + $0x58] sm:$0xff] %vm1809_vm10, %v1736_v7 }
 0x1a0   :  { %2184 = vrot.lane.b32.xlu1 %v1207_v27, %s6915_s23 }
 0x1a1   :  { %v1867_v5 = vpop.permute.xlu0 %1866 }
 0x1a2   :  { %1953 = vst.msk [vmem:[#allocation3 + $0x50] sm:$0xff] %vm1942_vm11, %v1867_v5  ;;  %v1869_v41 = vpop.permute.xlu1 %1868 }
 0x1a3   :  { %1290 = vrot.lane.b32.xlu0 %v1206_v55, %s6909_s28  ;;  %1954 = vst.msk [vmem:[#allocation3 + $0x58] sm:$0xff] %vm1942_vm11, %v1869_v41 }
 0x1a4   :  { %1292 = vrot.lane.b32.xlu1 %v1207_v27, %s6909_s28 }
 0x1a5   :  { %v2020_v35 = vpop.permute.xlu0 %2019 }
 0x1a6   :  { %2106 = vst.msk [vmem:[#allocation3 + $0x50] sm:$0xff] %vm2095_vm12, %v2020_v35  ;;  %v2022_v18 = vpop.permute.xlu1 %2021 }
 0x1a7   :  { %1453 = vrot.lane.b32.xlu0 %v12840_v0, %s6910_s12  ;;  %2107 = vst.msk [vmem:[#allocation3 + $0x58] sm:$0xff] %vm2095_vm12, %v2022_v18  ;;  %v6878_v0 = vld [vmem:[#allocation2 + $0x278] sm:$0xff]  ;;  %v1090_v18 = vrot.slane %v6882_v33, 2 }
 0x1a8   :  { %1455 = vrot.lane.b32.xlu1 %v12842_v61, %s6910_s12  ;;  %v1083_v62 = vrot.slane %v6878_v0, 2 }
 0x1a9   :  { %v2167_v28 = vpop.permute.xlu0 %2166  ;;  %v1091_v43 = vsel %vm961_vm5, %v1088_v19, %v1090_v18 }
 0x1aa   :  { %2253 = vst.msk [vmem:[#allocation3 + $0x50] sm:$0xff] %vm2242_vm13, %v2167_v28  ;;  %v2169_v13 = vpop.permute.xlu1 %2168  ;;  %v1084_v48 = vsel %vm961_vm5, %v1082_v3, %v1083_v62  ;;  %v1100_v3 = vrot.slane %v6888_v30, 2 }
 0x1ab   :  { %1606 = vrot.lane.b32.xlu0 %v12841_v10, %s6911_s15  ;;  %2254 = vst.msk [vmem:[#allocation3 + $0x58] sm:$0xff] %vm2242_vm13, %v2169_v13  ;;  %v1086_v10 = vsel %vm961_vm5, %v1083_v62, %v1085_v8  ;;  %v1211_v13 = vpack.c.bf16 %v1091_v43, %v1089_v15 }
 0x1ac   :  { %1608 = vrot.lane.b32.xlu1 %v12843_v39, %s6911_s15  ;;  %v1210_v5 = vpack.c.bf16 %v1086_v10, %v1084_v48 }
 0x1ad   :  { %v1438_v4 = vpop.permute.xlu0 %1437 }
 0x1ae   :  { %1522 = vst.msk [vmem:[#allocation3 + $0x60] sm:$0xff] %vm1509_vm8, %v1438_v4  ;;  %v1440_v32 = vpop.permute.xlu1 %1439 }
 0x1af   :  { %1753 = vrot.lane.b32.xlu0 %v1207_v27, %s6912_s18  ;;  %1523 = vst.msk [vmem:[#allocation3 + $0x68] sm:$0xff] %vm1509_vm8, %v1440_v32 }
 0x1b0   :  { %1755 = vrot.lane.b32.xlu1 %v1208_v40, %s6912_s18 }
 0x1b1   :  { %v1591_v58 = vpop.permute.xlu0 %1590  ;;  %v2285_v50 = vld [vmem:[#allocation3 + $0x50] sm:$0xff] }
 0x1b2   :  { %1675 = vst.msk [vmem:[#allocation3 + $0x60] sm:$0xff] %vm1662_vm9, %v1591_v58  ;;  %6699 = vmatprep.mubr.bf16.mxu0 %v2285_v50  ;;  %v1593_v51 = vpop.permute.xlu1 %1592  ;;  %v2286_v49 = vld [vmem:[#allocation3 + $0x58] sm:$0xff]  ;;  %v6883_v58 = vld [vmem:[#allocation2 + $0x2a0] sm:$0xff] }
 0x1b3   :  { %1886 = vrot.lane.b32.xlu0 %v12842_v61, %s6913_s21  ;;  %1676 = vst.msk [vmem:[#allocation3 + $0x68] sm:$0xff] %vm1662_vm9, %v1593_v51  ;;  %6700 = vmatmul.mubr.bf16.gmra.mrb[20].mxu0 %v2286_v49  ;;  %v1092_v50 = vrot.slane %v6883_v58, 2 }
 0x1b4   :  { %1888 = vrot.lane.b32.xlu1 %v8023_v59, %s6913_s21 }
 0x1b5   :  { %v1738_v45 = vpop.permute.xlu0 %1737  ;;  %v1094_v49 = vsel %vm961_vm5, %v1092_v50, %v1093_v1 }
 0x1b6   :  { %1822 = vst.msk [vmem:[#allocation3 + $0x60] sm:$0xff] %vm1809_vm10, %v1738_v45  ;;  %v1740_v55 = vpop.permute.xlu1 %1739  ;;  %v1096_v45 = vsel %vm961_vm5, %v1093_v1, %v1095_v37 }
 0x1b7   :  { %2039 = vrot.lane.b32.xlu0 %v12843_v39, %s6914_s22  ;;  %1823 = vst.msk [vmem:[#allocation3 + $0x68] sm:$0xff] %vm1809_vm10, %v1740_v55 }
 0x1b8   :  { %2041 = vrot.lane.b32.xlu1 %v12844_v56, %s6914_s22 }
 0x1b9   :  { %v1871_v9 = vpop.permute.xlu0 %1870 }
 0x1ba   :  { %1955 = vst.msk [vmem:[#allocation3 + $0x60] sm:$0xff] %vm1942_vm11, %v1871_v9  ;;  %v1873_v57 = vpop.permute.xlu1 %1872 }
 0x1bb   :  { %2186 = vrot.lane.b32.xlu0 %v1208_v40, %s6915_s23  ;;  %1956 = vst.msk [vmem:[#allocation3 + $0x68] sm:$0xff] %vm1942_vm11, %v1873_v57  ;;  %v6886_v57 = vld [vmem:[#allocation2 + $0x2b8] sm:$0xff] }
 0x1bc   :  { %2188 = vrot.lane.b32.xlu1 %v1209_v60, %s6915_s23 }
 0x1bd   :  { %v2024_v6 = vpop.permute.xlu0 %2023 }
 0x1be   :  { %2108 = vst.msk [vmem:[#allocation3 + $0x60] sm:$0xff] %vm2095_vm12, %v2024_v6  ;;  %v2026_v11 = vpop.permute.xlu1 %2025  ;;  %v1097_v6 = vrot.slane %v6886_v57, 2 }
 0x1bf   :  { %1294 = vrot.lane.b32.xlu0 %v1208_v40, %s6909_s28  ;;  %2109 = vst.msk [vmem:[#allocation3 + $0x68] sm:$0xff] %vm2095_vm12, %v2026_v11  ;;  %v6887_v11 = vld [vmem:[#allocation2 + $0x2c0] sm:$0xff] }
 0x1c0   :  { %1296 = vrot.lane.b32.xlu1 %v1209_v60, %s6909_s28 }
 0x1c1   :  { %v2171_v12 = vpop.permute.xlu0 %2170 }
 0x1c2   :  { %2255 = vst.msk [vmem:[#allocation3 + $0x60] sm:$0xff] %vm2242_vm13, %v2171_v12  ;;  %v2173_v2 = vpop.permute.xlu1 %2172  ;;  %v1098_v12 = vrot.slane %v6887_v11, 2 }
 0x1c3   :  { %1457 = vrot.lane.b32.xlu0 %v8023_v59, %s6910_s12  ;;  %2256 = vst.msk [vmem:[#allocation3 + $0x68] sm:$0xff] %vm2242_vm13, %v2173_v2  ;;  %v12845_v59 = vld [vmem:[#allocation64_spill] sm:$0xff] }
 0x1c4   :  { %1459 = vrot.lane.b32.xlu1 %v8027_v22, %s6910_s12  ;;  %v1099_v34 = vsel %vm961_vm5, %v1097_v6, %v1098_v12  ;;  %v1101_v8 = vsel %vm961_vm5, %v1098_v12, %v1100_v3  ;;  %v6895_v12 = vld [vmem:[#allocation2 + $0x300] sm:$0xff]  ;;  %v6896_v3 = vld [vmem:[#allocation2 + $0x308] sm:$0xff] }
 0x1c5   :  { %v1442_v47 = vpop.permute.xlu0 %1441  ;;  %v1213_v48 = vpack.c.bf16 %v1101_v8, %v1099_v34  ;;  %v1112_v30 = vrot.slane %v6895_v12, 2 }
 0x1c6   :  { %1524 = vst.msk [vmem:[#allocation3 + $0x70] sm:$0xff] %vm1509_vm8, %v1442_v47  ;;  %v1444_v14 = vpop.permute.xlu1 %1443 }
 0x1c7   :  { %1610 = vrot.lane.b32.xlu0 %v12844_v56, %s6911_s15  ;;  %1525 = vst.msk [vmem:[#allocation3 + $0x78] sm:$0xff] %vm1509_vm8, %v1444_v14  ;;  %v1212_v56 = vpack.c.bf16 %v1096_v45, %v1094_v49 }
 0x1c8   :  { %1612 = vrot.lane.b32.xlu1 %v12845_v59, %s6911_s15 }
 0x1c9   :  { %v1595_v27 = vpop.permute.xlu0 %1594  ;;  %v2287_v7 = vld [vmem:[#allocation3 + $0x60] sm:$0xff] }
 0x1ca   :  { %1677 = vst.msk [vmem:[#allocation3 + $0x70] sm:$0xff] %vm1662_vm9, %v1595_v27  ;;  %6703 = vmatprep.mubr.bf16.mxu0 %v2287_v7  ;;  %v1597_v41 = vpop.permute.xlu1 %1596  ;;  %v2288_v35 = vld [vmem:[#allocation3 + $0x68] sm:$0xff]  ;;  %v6889_v7 = vld [vmem:[#allocation2 + $0x2d0] sm:$0xff] }
 0x1cb   :  { %1757 = vrot.lane.b32.xlu0 %v1209_v60, %s6912_s18  ;;  %1678 = vst.msk [vmem:[#allocation3 + $0x78] sm:$0xff] %vm1662_vm9, %v1597_v41  ;;  %6704 = vmatmul.mubr.bf16.gmra.mrb[24].mxu0 %v2288_v35  ;;  %v6890_v41 = vld [vmem:[#allocation2 + $0x2d8] sm:$0xff] }
 0x1cc   :  { %1759 = vrot.lane.b32.xlu1 %v1210_v5, %s6912_s18  ;;  %v1103_v35 = vrot.slane %v6890_v41, 2 }
 0x1cd   :  { %v1742_v36 = vpop.permute.xlu0 %1741 }
 0x1ce   :  { %1824 = vst.msk [vmem:[#allocation3 + $0x70] sm:$0xff] %vm1809_vm10, %v1742_v36  ;;  %v1744_v61 = vpop.permute.xlu1 %1743  ;;  %v6891_v36 = vld [vmem:[#allocation2 + $0x2e0] sm:$0x3] }
 0x1cf   :  { %1890 = vrot.lane.b32.xlu0 %v8027_v22, %s6913_s21  ;;  %1825 = vst.msk [vmem:[#allocation3 + $0x78] sm:$0xff] %vm1809_vm10, %v1744_v61  ;;  %v12846_v22 = vld [vmem:[#allocation67_spill] sm:$0xff]  ;;  %v1105_v20 = vrot.slane %v6891_v36, 2 }
 0x1d0   :  { %1892 = vrot.lane.b32.xlu1 %v8031_v46, %s6913_s21 }
 0x1d1   :  { %v1875_v28 = vpop.permute.xlu0 %1874  ;;  %v1106_v18 = vsel %vm961_vm5, %v1103_v35, %v1105_v20 }
 0x1d2   :  { %1957 = vst.msk [vmem:[#allocation3 + $0x70] sm:$0xff] %vm1942_vm11, %v1875_v28  ;;  %v1877_v16 = vpop.permute.xlu1 %1876 }
 0x1d3   :  { %2043 = vrot.lane.b32.xlu0 %v12845_v59, %s6914_s22  ;;  %1958 = vst.msk [vmem:[#allocation3 + $0x78] sm:$0xff] %vm1942_vm11, %v1877_v16 }
 0x1d4   :  { %2045 = vrot.lane.b32.xlu1 %v12846_v22, %s6914_s22 }
 0x1d5   :  { %v2028_v53 = vpop.permute.xlu0 %2027 }
 0x1d6   :  { %2110 = vst.msk [vmem:[#allocation3 + $0x70] sm:$0xff] %vm2095_vm12, %v2028_v53  ;;  %v2030_v39 = vpop.permute.xlu1 %2029  ;;  %v6892_v53 = vld [vmem:[#allocation2 + $0x2e8] sm:$0xff] }
 0x1d7   :  { %2190 = vrot.lane.b32.xlu0 %v1210_v5, %s6915_s23  ;;  %2111 = vst.msk [vmem:[#allocation3 + $0x78] sm:$0xff] %vm2095_vm12, %v2030_v39  ;;  %v6893_v39 = vld [vmem:[#allocation2 + $0x2f0] sm:$0xff] }
 0x1d8   :  { %2192 = vrot.lane.b32.xlu1 %v1211_v13, %s6915_s23 }
 0x1d9   :  { %v2175_v4 = vpop.permute.xlu0 %2174 }
 0x1da   :  { %2257 = vst.msk [vmem:[#allocation3 + $0x70] sm:$0xff] %vm2242_vm13, %v2175_v4  ;;  %v2177_v40 = vpop.permute.xlu1 %2176  ;;  %v1108_v4 = vrot.slane %v6893_v39, 2  ;;  %v12852_v39 = vld [vmem:[#allocation73_spill] sm:$0xff] }
 0x1db   :  { %1298 = vrot.lane.b32.xlu0 %v1210_v5, %s6909_s28  ;;  %2258 = vst.msk [vmem:[#allocation3 + $0x78] sm:$0xff] %vm2242_vm13, %v2177_v40  ;;  %v1102_v5 = vrot.slane %v6889_v7, 2  ;;  %v6894_v40 = vld [vmem:[#allocation2 + $0x2f8] sm:$0x3] }
 0x1dc   :  { %1300 = vrot.lane.b32.xlu1 %v1211_v13, %s6909_s28 }
 0x1dd   :  { %v1283_v32 = vpop.permute.xlu0 %1282  ;;  %v1104_v33 = vsel %vm961_vm5, %v1102_v5, %v1103_v35  ;;  %v12851_v5 = vld [vmem:[#allocation72_spill] sm:$0xff] }
 0x1de   :  { %1363 = vst.msk [vmem:[#allocation3 + $0x80] sm:$0xff] %vm1346_vm7, %v1283_v32  ;;  %v1285_v25 = vpop.permute.xlu1 %1284  ;;  %v1214_v43 = vpack.c.bf16 %v1106_v18, %v1104_v33  ;;  %v1110_v32 = vrot.slane %v6894_v40, 2  ;;  %v6900_v18 = vld [vmem:[#allocation2 + $0x328] sm:$0x3] }
 0x1df   :  { %1461 = vrot.lane.b32.xlu0 %v8031_v46, %s6910_s12  ;;  %1364 = vst.msk [vmem:[#allocation3 + $0x88] sm:$0xff] %vm1346_vm7, %v1285_v25  ;;  %v12847_v46 = vld [vmem:[#allocation68_spill] sm:$0xff] }
 0x1e0   :  { %1463 = vrot.lane.b32.xlu1 %v8035_v31, %s6910_s12  ;;  %v1111_v1 = vsel %vm961_vm5, %v1108_v4, %v1110_v32 }
 0x1e1   :  { %v1446_v29 = vpop.permute.xlu0 %1445  ;;  %v2289_v51 = vld [vmem:[#allocation3 + $0x70] sm:$0xff] }
 0x1e2   :  { %1526 = vst.msk [vmem:[#allocation3 + $0x80] sm:$0xff] %vm1509_vm8, %v1446_v29  ;;  %6707 = vmatprep.mubr.bf16.mxu0 %v2289_v51  ;;  %v1448_v26 = vpop.permute.xlu1 %1447  ;;  %v2290_v54 = vld [vmem:[#allocation3 + $0x78] sm:$0xff] }
 0x1e3   :  { %1614 = vrot.lane.b32.xlu0 %v12846_v22, %s6911_s15  ;;  %1527 = vst.msk [vmem:[#allocation3 + $0x88] sm:$0xff] %vm1509_vm8, %v1448_v26  ;;  %6708 = vmatmul.mubr.bf16.gmra.mrb[28].mxu0 %v2290_v54 }
 0x1e4   :  { %1616 = vrot.lane.b32.xlu1 %v12847_v46, %s6911_s15 }
 0x1e5   :  { %v1599_v55 = vpop.permute.xlu0 %1598 }
 0x1e6   :  { %1679 = vst.msk [vmem:[#allocation3 + $0x80] sm:$0xff] %vm1662_vm9, %v1599_v55  ;;  %v1601_v9 = vpop.permute.xlu1 %1600 }
 0x1e7   :  { %1761 = vrot.lane.b32.xlu0 %v1211_v13, %s6912_s18  ;;  %1680 = vst.msk [vmem:[#allocation3 + $0x88] sm:$0xff] %vm1662_vm9, %v1601_v9  ;;  %v1107_v13 = vrot.slane %v6892_v53, 2 }
 0x1e8   :  { %1763 = vrot.lane.b32.xlu1 %v1212_v56, %s6912_s18 }
 0x1e9   :  { %v1746_v60 = vpop.permute.xlu0 %1745  ;;  %v1109_v21 = vsel %vm961_vm5, %v1107_v13, %v1108_v4 }
 0x1ea   :  { %1826 = vst.msk [vmem:[#allocation3 + $0x80] sm:$0xff] %vm1809_vm10, %v1746_v60  ;;  %v1748_v0 = vpop.permute.xlu1 %1747  ;;  %v1215_v25 = vpack.c.bf16 %v1111_v1, %v1109_v21  ;;  %v378_v21 = vld [vmem:[#allocation2 + $0x338] sm:$0xff] }
 0x1eb   :  { %1894 = vrot.lane.b32.xlu0 %v8035_v31, %s6913_s21  ;;  %1827 = vst.msk [vmem:[#allocation3 + $0x88] sm:$0xff] %vm1809_vm10, %v1748_v0  ;;  %v12848_v31 = vld [vmem:[#allocation69_spill] sm:$0xff]  ;;  %v1113_v0 = vrot.slane %v6896_v3, 2 }
 0x1ec   :  { %1896 = vrot.lane.b32.xlu1 %v8049_v52, %s6913_s21 }
 0x1ed   :  { %v1879_v62 = vpop.permute.xlu0 %1878 }
 0x1ee   :  { %1959 = vst.msk [vmem:[#allocation3 + $0x80] sm:$0xff] %vm1942_vm11, %v1879_v62  ;;  %v1881_v2 = vpop.permute.xlu1 %1880  ;;  %v6897_v62 = vld [vmem:[#allocation2 + $0x310] sm:$0x3] }
 0x1ef   :  { %2047 = vrot.lane.b32.xlu0 %v12847_v46, %s6914_s22  ;;  %1960 = vst.msk [vmem:[#allocation3 + $0x88] sm:$0xff] %vm1942_vm11, %v1881_v2  ;;  %v1115_v34 = vrot.slane %v6897_v62, 2 }
 0x1f0   :  { %2049 = vrot.lane.b32.xlu1 %v12848_v31, %s6914_s22 }
 0x1f1   :  { %v2032_v47 = vpop.permute.xlu0 %2031 }
 0x1f2   :  { %2112 = vst.msk [vmem:[#allocation3 + $0x80] sm:$0xff] %vm2095_vm12, %v2032_v47  ;;  %v2034_v10 = vpop.permute.xlu1 %2033 }
 0x1f3   :  { %2194 = vrot.lane.b32.xlu0 %v1212_v56, %s6915_s23  ;;  %2113 = vst.msk [vmem:[#allocation3 + $0x88] sm:$0xff] %vm2095_vm12, %v2034_v10 }
 0x1f4   :  { %2196 = vrot.lane.b32.xlu1 %v1213_v48, %s6915_s23 }
 0x1f5   :  { %v2179_v14 = vpop.permute.xlu0 %2178 }
 0x1f6   :  { %2259 = vst.msk [vmem:[#allocation3 + $0x80] sm:$0xff] %vm2242_vm13, %v2179_v14  ;;  %v2181_v59 = vpop.permute.xlu1 %2180 }
 0x1f7   :  { %1302 = vrot.lane.b32.xlu0 %v1212_v56, %s6909_s28  ;;  %2260 = vst.msk [vmem:[#allocation3 + $0x88] sm:$0xff] %vm2242_vm13, %v2181_v59  ;;  %v1114_v59 = vsel %vm961_vm5, %v1112_v30, %v1113_v0 }
 0x1f8   :  { %1304 = vrot.lane.b32.xlu1 %v1213_v48, %s6909_s28 }
 0x1f9   :  { %v1287_v27 = vpop.permute.xlu0 %1286 }
 0x1fa   :  { %1365 = vst.msk [vmem:[#allocation3 + $0x90] sm:$0xff] %vm1346_vm7, %v1287_v27  ;;  %v1289_v42 = vpop.permute.xlu1 %1288  ;;  %v1116_v27 = vsel %vm961_vm5, %v1113_v0, %v1115_v34 }
 0x1fb   :  { %1465 = vrot.lane.b32.xlu0 %v8049_v52, %s6910_s12  ;;  %1366 = vst.msk [vmem:[#allocation3 + $0x98] sm:$0xff] %vm1346_vm7, %v1289_v42  ;;  %v12849_v52 = vld [vmem:[#allocation70_spill] sm:$0xff]  ;;  %v1216_v35 = vpack.c.bf16 %v1116_v27, %v1114_v59  ;;  %v6898_v42 = vld [vmem:[#allocation2 + $0x318] sm:$0xff] }
 0x1fc   :  { %1467 = vrot.lane.b32.xlu1 %v8053_v17, %s6910_s12 }
 0x1fd   :  { %v1450_v44 = vpop.permute.xlu0 %1449  ;;  %v2291_v19 = vld [vmem:[#allocation3 + $0x80] sm:$0xff] }
 0x1fe   :  { %1528 = vst.msk [vmem:[#allocation3 + $0x90] sm:$0xff] %vm1509_vm8, %v1450_v44  ;;  %6711 = vmatprep.mubr.bf16.mxu0 %v2291_v19  ;;  %v1452_v61 = vpop.permute.xlu1 %1451  ;;  %v2292_v28 = vld [vmem:[#allocation3 + $0x88] sm:$0xff]  ;;  %v1117_v44 = vrot.slane %v6898_v42, 2  ;;  %v6899_v19 = vld [vmem:[#allocation2 + $0x320] sm:$0xff] }
 0x1ff   :  { %1618 = vrot.lane.b32.xlu0 %v12848_v31, %s6911_s15  ;;  %1529 = vst.msk [vmem:[#allocation3 + $0x98] sm:$0xff] %vm1509_vm8, %v1452_v61  ;;  %6712 = vmatmul.mubr.bf16.gmra.mrb[32].mxu0 %v2292_v28  ;;  %v1118_v33 = vrot.slane %v6899_v19, 2  ;;  %v1120_v61 = vrot.slane %v6900_v18, 2 }
 0x200   :  { %1620 = vrot.lane.b32.xlu1 %v12849_v52, %s6911_s15 }
 0x201   :  { %v1603_v15 = vpop.permute.xlu0 %1602 }
 0x202   :  { %1681 = vst.msk [vmem:[#allocation3 + $0x90] sm:$0xff] %vm1662_vm9, %v1603_v15  ;;  %v1605_v16 = vpop.permute.xlu1 %1604  ;;  %v1119_v15 = vsel %vm961_vm5, %v1117_v44, %v1118_v33 }
 0x203   :  { %1765 = vrot.lane.b32.xlu0 %v1213_v48, %s6912_s18  ;;  %1682 = vst.msk [vmem:[#allocation3 + $0x98] sm:$0xff] %vm1662_vm9, %v1605_v16 }
 0x204   :  { %1767 = vrot.lane.b32.xlu1 %v1214_v43, %s6912_s18 }
 0x205   :  { %v1750_v22 = vpop.permute.xlu0 %1749 }
 0x206   :  { %1828 = vst.msk [vmem:[#allocation3 + $0x90] sm:$0xff] %vm1809_vm10, %v1750_v22  ;;  %v1752_v58 = vpop.permute.xlu1 %1751 }
 0x207   :  { %1898 = vrot.lane.b32.xlu0 %v8053_v17, %s6913_s21  ;;  %1829 = vst.msk [vmem:[#allocation3 + $0x98] sm:$0xff] %vm1809_vm10, %v1752_v58  ;;  %v12850_v17 = vld [vmem:[#allocation71_spill] sm:$0xff]  ;;  %v377_v58 = vld [vmem:[#allocation2 + $0x330] sm:$0xff] }
 0x208   :  { %1900 = vrot.lane.b32.xlu1 %v8057_v23, %s6913_s21  ;;  %v1380_v3 = vpack.c.bf16 %v378_v21, %v377_v58 }
 0x209   :  { %v1883_v50 = vpop.permute.xlu0 %1882 }
 0x20a   :  { %1961 = vst.msk [vmem:[#allocation3 + $0x90] sm:$0xff] %vm1942_vm11, %v1883_v50  ;;  %v1885_v63 = vpop.permute.xlu1 %1884 }
 0x20b   :  { %2051 = vrot.lane.b32.xlu0 %v12849_v52, %s6914_s22  ;;  %1962 = vst.msk [vmem:[#allocation3 + $0x98] sm:$0xff] %vm1942_vm11, %v1885_v63 }
 0x20c   :  { %2053 = vrot.lane.b32.xlu1 %v12850_v17, %s6914_s22 }
 0x20d   :  { %v2036_v37 = vpop.permute.xlu0 %2035 }
 0x20e   :  { %2114 = vst.msk [vmem:[#allocation3 + $0x90] sm:$0xff] %vm2095_vm12, %v2036_v37  ;;  %v2038_v29 = vpop.permute.xlu1 %2037  ;;  %v8717_v51 = vpop.f32.mrb[0].mxu0 }
 0x20f   :  { %2198 = vrot.lane.b32.xlu0 %v1214_v43, %s6915_s23  ;;  %2115 = vst.msk [vmem:[#allocation3 + $0x98] sm:$0xff] %vm2095_vm12, %v2038_v29  ;;  %v8721_v49 = vpop.f32.mrb[1].mxu0  ;;  %v2715_v60 = vmul.f32 %v8717_v51, %v8717_v51  ;;  %v1553_v29 = vrot.slane %v377_v58, 1 }
 0x210   :  { %2200 = vrot.lane.b32.xlu1 %v1215_v25, %s6915_s23  ;;  %v8724_v45 = vpop.f32.mrb[2].mxu0  ;;  %v2713_v46 = vmul.f32 %v8721_v49, %v8721_v49 }
 0x211   :  { %v2183_v26 = vpop.permute.xlu0 %2182  ;;  %v8727_v54 = vpop.f32.mrb[3].mxu0  ;;  %v2716_v8 = vmul.f32 %v8724_v45, %v8724_v45 }
 0x212   :  { %2261 = vst.msk [vmem:[#allocation3 + $0x90] sm:$0xff] %vm2242_vm13, %v2183_v26  ;;  %v2644_v55 = vadd.f32 %v8727_v54, %v8721_v49  ;;  %v2714_v56 = vmul.f32 %v8727_v54, %v8727_v54  ;;  %v2185_v9 = vpop.permute.xlu1 %2184 }
 0x213   :  { %1306 = vrot.lane.b32.xlu0 %v1214_v43, %s6909_s28  ;;  %2262 = vst.msk [vmem:[#allocation3 + $0x98] sm:$0xff] %vm2242_vm13, %v2185_v9  ;;  %v1121_v43 = vsel %vm961_vm5, %v1118_v33, %v1120_v61  ;;  %v1554_v9 = vrot.slane %v378_v21, 1 }
 0x214   :  { %v2645_v57 = vadd.f32 %v8717_v51, %v2644_v55  ;;  %v2777_v6 = vadd.f32 %v2714_v56, %v2713_v46  ;;  %1308 = vrot.lane.b32.xlu1 %v1215_v25, %s6909_s28  ;;  %v8785_v32 = vpack.c.bf16 %v1121_v43, %v1119_v15 }
 0x215   :  { %v1291_v11 = vpop.permute.xlu0 %1290  ;;  %v1555_v0 = vsel %vm543_vm4, %v1553_v29, %v1554_v9 }
 0x216   :  { %1367 = vst.msk [vmem:[#allocation3 + $0xa0] sm:$0xff] %vm1346_vm7, %v1291_v11  ;;  %v2778_v2 = vadd.f32 %v2777_v6, %v2715_v60  ;;  %v1293_v31 = vpop.permute.xlu1 %1292  ;;  %v2646_v47 = vadd.f32 %v8724_v45, %v2645_v57 }
 0x217   :  { %1469 = vrot.lane.b32.xlu0 %v8057_v23, %s6910_s12  ;;  %1368 = vst.msk [vmem:[#allocation3 + $0xa8] sm:$0xff] %vm1346_vm7, %v1293_v31 }
 0x218   :  { %1471 = vrot.lane.b32.xlu1 %v8061_v24, %s6910_s12  ;;  %v2779_v14 = vadd.f32 %v2778_v2, %v2716_v8  ;;  %v1700_v8 = vrot.slane %v377_v58, 2  ;;  %v1701_v2 = vrot.slane %v378_v21, 2 }
 0x219   :  { %v1454_v48 = vpop.permute.xlu0 %1453  ;;  %v2293_v10 = vld [vmem:[#allocation3 + $0x90] sm:$0xff] }
 0x21a   :  { %1530 = vst.msk [vmem:[#allocation3 + $0xa0] sm:$0xff] %vm1509_vm8, %v1454_v48  ;;  %6715 = vmatprep.mubr.bf16.mxu0 %v2293_v10  ;;  %v1456_v7 = vpop.permute.xlu1 %1455  ;;  %v2294_v23 = vld [vmem:[#allocation3 + $0x98] sm:$0xff]  ;;  %v1702_v59 = vsel %vm961_vm5, %v1700_v8, %v1701_v2 }
 0x21b   :  { %1622 = vrot.lane.b32.xlu0 %v12850_v17, %s6911_s15  ;;  %1531 = vst.msk [vmem:[#allocation3 + $0xa8] sm:$0xff] %vm1509_vm8, %v1456_v7  ;;  %6716 = vmatmul.mubr.bf16.gmra.mrb[36].mxu0 %v2294_v23  ;;  %v380_v7 = vld [vmem:[#allocation2 + $0x348] sm:$0xff]  ;;  %v381_v23 = vld [vmem:[#allocation2 + $0x350] sm:$0xff] }
 0x21c   :  { %1624 = vrot.lane.b32.xlu1 %v12851_v5, %s6911_s15  ;;  %v1987_v42 = vrot.slane %v381_v23, 1  ;;  %v1843_v18 = vpack.c.bf16 %v381_v23, %v380_v7 }
 0x21d   :  { %v1607_v41 = vpop.permute.xlu0 %1606 }
 0x21e   :  { %1683 = vst.msk [vmem:[#allocation3 + $0xa0] sm:$0xff] %vm1662_vm9, %v1607_v41  ;;  %v1609_v36 = vpop.permute.xlu1 %1608  ;;  %v382_v41 = vld [vmem:[#allocation2 + $0x358] sm:$0x3] }
 0x21f   :  { %1769 = vrot.lane.b32.xlu0 %v1215_v25, %s6912_s18  ;;  %1684 = vst.msk [vmem:[#allocation3 + $0xa8] sm:$0xff] %vm1662_vm9, %v1609_v36  ;;  %v379_v25 = vld [vmem:[#allocation2 + $0x340] sm:$0x3]  ;;  %v1989_v44 = vrot.slane %v382_v41, 1  ;;  %v2136_v43 = vrot.slane %v382_v41, 2 }
 0x220   :  { %1771 = vrot.lane.b32.xlu1 %v1216_v35, %s6912_s18  ;;  %v1556_v60 = vrot.slane %v379_v25, 1  ;;  %v1703_v31 = vrot.slane %v379_v25, 2 }
 0x221   :  { %v1754_v20 = vpop.permute.xlu0 %1753  ;;  %v1990_v15 = vsel %vm543_vm4, %v1987_v42, %v1989_v44 }
 0x222   :  { %1830 = vst.msk [vmem:[#allocation3 + $0xa0] sm:$0xff] %vm1809_vm10, %v1754_v20  ;;  %v1756_v28 = vpop.permute.xlu1 %1755  ;;  %v1557_v34 = vsel %vm543_vm4, %v1554_v9, %v1556_v60  ;;  %v1704_v27 = vsel %vm961_vm5, %v1701_v2, %v1703_v31  ;;  %v1986_v20 = vrot.slane %v380_v7, 1 }
 0x223   :  { %1902 = vrot.lane.b32.xlu0 %v8061_v24, %s6913_s21  ;;  %1831 = vst.msk [vmem:[#allocation3 + $0xa8] sm:$0xff] %vm1809_vm10, %v1756_v28  ;;  %v1710_v36 = vpack.c.bf16 %v1704_v27, %v1702_v59  ;;  %v2133_v28 = vrot.slane %v380_v7, 2 }
 0x224   :  { %1904 = vrot.lane.b32.xlu1 %v8076_v38, %s6913_s21  ;;  %v1988_v61 = vsel %vm543_vm4, %v1986_v20, %v1987_v42 }
 0x225   :  { %v1887_v52 = vpop.permute.xlu0 %1886  ;;  %v1996_v21 = vpack.c.bf16 %v1990_v15, %v1988_v61 }
 0x226   :  { %1963 = vst.msk [vmem:[#allocation3 + $0xa0] sm:$0xff] %vm1942_vm11, %v1887_v52  ;;  %v1889_v16 = vpop.permute.xlu1 %1888  ;;  %v8771_v22 = vpop.f32.mrb[4].mxu0  ;;  %v2134_v52 = vrot.slane %v381_v23, 2 }
 0x227   :  { %2055 = vrot.lane.b32.xlu0 %v12851_v5, %s6914_s22  ;;  %1964 = vst.msk [vmem:[#allocation3 + $0xa8] sm:$0xff] %vm1942_vm11, %v1889_v16  ;;  %v8776_v24 = vpop.f32.mrb[5].mxu0  ;;  %v2719_v26 = vmul.f32 %v8771_v22, %v8771_v22 }
 0x228   :  { %v2647_v53 = vadd.f32 %v2646_v47, %v8776_v24  ;;  %v2717_v13 = vmul.f32 %v8776_v24, %v8776_v24  ;;  %2057 = vrot.lane.b32.xlu1 %v12852_v39, %s6914_s22  ;;  %v8783_v4 = vpop.f32.mrb[6].mxu0 }
 0x229   :  { %v2040_v40 = vpop.permute.xlu0 %2039  ;;  %v8788_v50 = vpop.f32.mrb[7].mxu0  ;;  %v2720_v57 = vmul.f32 %v8783_v4, %v8783_v4 }
 0x22a   :  { %2116 = vst.msk [vmem:[#allocation3 + $0xa0] sm:$0xff] %vm2095_vm12, %v2040_v40  ;;  %v2780_v1 = vadd.f32 %v2779_v14, %v2717_v13  ;;  %v2648_v63 = vadd.f32 %v2647_v53, %v8788_v50  ;;  %v2718_v17 = vmul.f32 %v8788_v50, %v8788_v50  ;;  %v2042_v37 = vpop.permute.xlu1 %2041  ;;  %v1563_v14 = vpack.c.bf16 %v1557_v34, %v1555_v0 }
 0x22b   :  { %2202 = vrot.lane.b32.xlu0 %v1216_v35, %s6915_s23  ;;  %2117 = vst.msk [vmem:[#allocation3 + $0xa8] sm:$0xff] %vm2095_vm12, %v2042_v37 }
 0x22c   :  { %v2649_v46 = vadd.f32 %v8771_v22, %v2648_v63  ;;  %v2781_v55 = vadd.f32 %v2780_v1, %v2718_v17  ;;  %2204 = vrot.lane.b32.xlu1 %v8785_v32, %s6915_s23  ;;  %v2135_v63 = vsel %vm961_vm5, %v2133_v28, %v2134_v52  ;;  %v2137_v17 = vsel %vm961_vm5, %v2134_v52, %v2136_v43 }
 0x22d   :  { %v2187_v56 = vpop.permute.xlu0 %2186  ;;  %v2143_v60 = vpack.c.bf16 %v2137_v17, %v2135_v63 }
 0x22e   :  { %2263 = vst.msk [vmem:[#allocation3 + $0xa0] sm:$0xff] %vm2242_vm13, %v2187_v56  ;;  %v2782_v6 = vadd.f32 %v2781_v55, %v2719_v26  ;;  %v2189_v11 = vpop.permute.xlu1 %2188  ;;  %v2650_v12 = vadd.f32 %v8783_v4, %v2649_v46 }
 0x22f   :  { %1310 = vrot.lane.b32.xlu0 %v1216_v35, %s6909_s28  ;;  %2264 = vst.msk [vmem:[#allocation3 + $0xa8] sm:$0xff] %vm2242_vm13, %v2189_v11 }
 0x230   :  { %1312 = vrot.lane.b32.xlu1 %v8785_v32, %s6909_s28  ;;  %v2783_v62 = vadd.f32 %v2782_v6, %v2720_v57 }
 0x231   :  { %v1295_v30 = vpop.permute.xlu0 %1294 }
 0x232   :  { %1369 = vst.msk [vmem:[#allocation3 + $0xb0] sm:$0xff] %vm1346_vm7, %v1295_v30  ;;  %v1297_v47 = vpop.permute.xlu1 %1296 }
 0x233   :  { %1473 = vrot.lane.b32.xlu0 %v8076_v38, %s6910_s12  ;;  %1370 = vst.msk [vmem:[#allocation3 + $0xb8] sm:$0xff] %vm1346_vm7, %v1297_v47 }
 0x234   :  { %1475 = vrot.lane.b32.xlu1 %v1380_v3, %s6910_s12 }
 0x235   :  { %v1458_v48 = vpop.permute.xlu0 %1457  ;;  %v2295_v10 = vld [vmem:[#allocation3 + $0xa0] sm:$0xff] }
 0x236   :  { %1532 = vst.msk [vmem:[#allocation3 + $0xb0] sm:$0xff] %vm1509_vm8, %v1458_v48  ;;  %6719 = vmatprep.mubr.bf16.mxu0 %v2295_v10  ;;  %v1460_v5 = vpop.permute.xlu1 %1459  ;;  %v2296_v38 = vld [vmem:[#allocation3 + $0xa8] sm:$0xff] }
 0x237   :  { %1626 = vrot.lane.b32.xlu0 %v12852_v39, %s6911_s15  ;;  %1533 = vst.msk [vmem:[#allocation3 + $0xb8] sm:$0xff] %vm1509_vm8, %v1460_v5  ;;  %6720 = vmatmul.mubr.bf16.gmra.mrb[40].mxu0 %v2296_v38 }
 0x238   :  { %1628 = vrot.lane.b32.xlu1 %v1563_v14, %s6911_s15 }
 0x239   :  { %v1611_v35 = vpop.permute.xlu0 %1610 }
 0x23a   :  { %1685 = vst.msk [vmem:[#allocation3 + $0xb0] sm:$0xff] %vm1662_vm9, %v1611_v35  ;;  %v1613_v19 = vpop.permute.xlu1 %1612 }
 0x23b   :  { %1773 = vrot.lane.b32.xlu0 %v8785_v32, %s6912_s18  ;;  %1686 = vst.msk [vmem:[#allocation3 + $0xb8] sm:$0xff] %vm1662_vm9, %v1613_v19 }
 0x23c   :  { %1775 = vrot.lane.b32.xlu1 %v1710_v36, %s6912_s18 }
 0x23d   :  { %v1758_v33 = vpop.permute.xlu0 %1757 }
 0x23e   :  { %1832 = vst.msk [vmem:[#allocation3 + $0xb0] sm:$0xff] %vm1809_vm10, %v1758_v33  ;;  %v1760_v16 = vpop.permute.xlu1 %1759  ;;  %v8830_v53 = vpop.f32.mrb[8].mxu0 }
 0x23f   :  { %1906 = vrot.lane.b32.xlu0 %v1380_v3, %s6913_s21  ;;  %1833 = vst.msk [vmem:[#allocation3 + $0xb8] sm:$0xff] %vm1809_vm10, %v1760_v16  ;;  %v8834_v13 = vpop.f32.mrb[9].mxu0  ;;  %v2723_v46 = vmul.f32 %v8830_v53, %v8830_v53 }
 0x240   :  { %v2651_v39 = vadd.f32 %v2650_v12, %v8834_v13  ;;  %v2721_v40 = vmul.f32 %v8834_v13, %v8834_v13  ;;  %1908 = vrot.lane.b32.xlu1 %v1843_v18, %s6913_s21  ;;  %v8840_v32 = vpop.f32.mrb[10].mxu0 }
 0x241   :  { %v1891_v58 = vpop.permute.xlu0 %1890  ;;  %v8843_v1 = vpop.f32.mrb[11].mxu0  ;;  %v2724_v57 = vmul.f32 %v8840_v32, %v8840_v32 }
 0x242   :  { %1965 = vst.msk [vmem:[#allocation3 + $0xb0] sm:$0xff] %vm1942_vm11, %v1891_v58  ;;  %v2784_v37 = vadd.f32 %v2783_v62, %v2721_v40  ;;  %v2652_v25 = vadd.f32 %v2651_v39, %v8843_v1  ;;  %v2722_v29 = vmul.f32 %v8843_v1, %v8843_v1  ;;  %v1893_v26 = vpop.permute.xlu1 %1892 }
 0x243   :  { %2059 = vrot.lane.b32.xlu0 %v1563_v14, %s6914_s22  ;;  %1966 = vst.msk [vmem:[#allocation3 + $0xb8] sm:$0xff] %vm1942_vm11, %v1893_v26 }
 0x244   :  { %v2653_v55 = vadd.f32 %v8830_v53, %v2652_v25  ;;  %v2785_v56 = vadd.f32 %v2784_v37, %v2722_v29  ;;  %2061 = vrot.lane.b32.xlu1 %v1996_v21, %s6914_s22 }
 0x245   :  { %v2044_v9 = vpop.permute.xlu0 %2043 }
 0x246   :  { %2118 = vst.msk [vmem:[#allocation3 + $0xb0] sm:$0xff] %vm2095_vm12, %v2044_v9  ;;  %v2786_v6 = vadd.f32 %v2785_v56, %v2723_v46  ;;  %v2046_v11 = vpop.permute.xlu1 %2045  ;;  %v2654_v12 = vadd.f32 %v8840_v32, %v2653_v55 }
 0x247   :  { %2206 = vrot.lane.b32.xlu0 %v1710_v36, %s6915_s23  ;;  %2119 = vst.msk [vmem:[#allocation3 + $0xb8] sm:$0xff] %vm2095_vm12, %v2046_v11 }
 0x248   :  { %2208 = vrot.lane.b32.xlu1 %v2143_v60, %s6915_s23  ;;  %v2787_v3 = vadd.f32 %v2786_v6, %v2724_v57 }
 0x249   :  { %v2191_v30 = vpop.permute.xlu0 %2190 }
 0x24a   :  { %2265 = vst.msk [vmem:[#allocation3 + $0xb0] sm:$0xff] %vm2242_vm13, %v2191_v30  ;;  %v2193_v0 = vpop.permute.xlu1 %2192 }
 0x24b   :  { %2266 = vst.msk [vmem:[#allocation3 + $0xb8] sm:$0xff] %vm2242_vm13, %v2193_v0 }
 0x24d   :  { %v1299_v62 = vpop.permute.xlu0 %1298 }
 0x24e   :  { %1371 = vst.msk [vmem:[#allocation3 + $0xc0] sm:$0xff] %vm1346_vm7, %v1299_v62  ;;  %v1301_v34 = vpop.permute.xlu1 %1300 }
 0x24f   :  { %1372 = vst.msk [vmem:[#allocation3 + $0xc8] sm:$0xff] %vm1346_vm7, %v1301_v34 }
 0x251   :  { %v1462_v8 = vpop.permute.xlu0 %1461  ;;  %v2297_v2 = vld [vmem:[#allocation3 + $0xb0] sm:$0xff] }
 0x252   :  { %1534 = vst.msk [vmem:[#allocation3 + $0xc0] sm:$0xff] %vm1509_vm8, %v1462_v8  ;;  %6723 = vmatprep.mubr.bf16.mxu0 %v2297_v2  ;;  %v1464_v31 = vpop.permute.xlu1 %1463  ;;  %v2298_v47 = vld [vmem:[#allocation3 + $0xb8] sm:$0xff] }
 0x253   :  { %1535 = vst.msk [vmem:[#allocation3 + $0xc8] sm:$0xff] %vm1509_vm8, %v1464_v31  ;;  %6724 = vmatmul.mubr.bf16.gmra.mrb[44].mxu0 %v2298_v47 }
 0x255   :  { %v1615_v48 = vpop.permute.xlu0 %1614 }
 0x256   :  { %1687 = vst.msk [vmem:[#allocation3 + $0xc0] sm:$0xff] %vm1662_vm9, %v1615_v48  ;;  %v1617_v10 = vpop.permute.xlu1 %1616  ;;  %v8870_v14 = vpop.f32.mrb[12].mxu0 }
 0x257   :  { %1688 = vst.msk [vmem:[#allocation3 + $0xc8] sm:$0xff] %vm1662_vm9, %v1617_v10  ;;  %v8873_v59 = vpop.f32.mrb[13].mxu0  ;;  %v2727_v42 = vmul.f32 %v8870_v14, %v8870_v14 }
 0x258   :  { %v2655_v27 = vadd.f32 %v2654_v12, %v8873_v59  ;;  %v2725_v7 = vmul.f32 %v8873_v59, %v8873_v59  ;;  %v8878_v23 = vpop.f32.mrb[14].mxu0 }
 0x259   :  { %v1762_v5 = vpop.permute.xlu0 %1761  ;;  %v8881_v38 = vpop.f32.mrb[15].mxu0  ;;  %v2728_v18 = vmul.f32 %v8878_v23, %v8878_v23 }
 0x25a   :  { %1834 = vst.msk [vmem:[#allocation3 + $0xc0] sm:$0xff] %vm1809_vm10, %v1762_v5  ;;  %v2788_v41 = vadd.f32 %v2787_v3, %v2725_v7  ;;  %v2656_v35 = vadd.f32 %v2655_v27, %v8881_v38  ;;  %v2726_v36 = vmul.f32 %v8881_v38, %v8881_v38  ;;  %v1764_v20 = vpop.permute.xlu1 %1763 }
 0x25b   :  { %1835 = vst.msk [vmem:[#allocation3 + $0xc8] sm:$0xff] %vm1809_vm10, %v1764_v20 }
 0x25c   :  { %v2657_v44 = vadd.f32 %v8870_v14, %v2656_v35  ;;  %v2789_v19 = vadd.f32 %v2788_v41, %v2726_v36 }
 0x25d   :  { %v1895_v33 = vpop.permute.xlu0 %1894 }
 0x25e   :  { %1967 = vst.msk [vmem:[#allocation3 + $0xc0] sm:$0xff] %vm1942_vm11, %v1895_v33  ;;  %v2790_v61 = vadd.f32 %v2789_v19, %v2727_v42  ;;  %v1897_v28 = vpop.permute.xlu1 %1896  ;;  %v2658_v52 = vadd.f32 %v8878_v23, %v2657_v44 }
 0x25f   :  { %1968 = vst.msk [vmem:[#allocation3 + $0xc8] sm:$0xff] %vm1942_vm11, %v1897_v28 }
 0x260   :  { %v2791_v43 = vadd.f32 %v2790_v61, %v2728_v18 }
 0x261   :  { %v2048_v15 = vpop.permute.xlu0 %2047 }
 0x262   :  { %2120 = vst.msk [vmem:[#allocation3 + $0xc0] sm:$0xff] %vm2095_vm12, %v2048_v15  ;;  %v2050_v16 = vpop.permute.xlu1 %2049 }
 0x263   :  { %2121 = vst.msk [vmem:[#allocation3 + $0xc8] sm:$0xff] %vm2095_vm12, %v2050_v16 }
 0x265   :  { %v2195_v39 = vpop.permute.xlu0 %2194 }
 0x266   :  { %2267 = vst.msk [vmem:[#allocation3 + $0xc0] sm:$0xff] %vm2242_vm13, %v2195_v39  ;;  %v2197_v40 = vpop.permute.xlu1 %2196 }
 0x267   :  { %2268 = vst.msk [vmem:[#allocation3 + $0xc8] sm:$0xff] %vm2242_vm13, %v2197_v40 }
 0x269   :  { %v1303_v58 = vpop.permute.xlu0 %1302 }
 0x26a   :  { %1373 = vst.msk [vmem:[#allocation3 + $0xd0] sm:$0xff] %vm1346_vm7, %v1303_v58  ;;  %v1305_v21 = vpop.permute.xlu1 %1304 }
 0x26b   :  { %1374 = vst.msk [vmem:[#allocation3 + $0xd8] sm:$0xff] %vm1346_vm7, %v1305_v21 }
 0x26d   :  { %v1466_v63 = vpop.permute.xlu0 %1465  ;;  %v2299_v17 = vld [vmem:[#allocation3 + $0xc0] sm:$0xff] }
 0x26e   :  { %1536 = vst.msk [vmem:[#allocation3 + $0xd0] sm:$0xff] %vm1509_vm8, %v1466_v63  ;;  %6727 = vmatprep.mubr.bf16.mxu0 %v2299_v17  ;;  %v1468_v37 = vpop.permute.xlu1 %1467  ;;  %v8902_v25 = vpop.f32.mrb[16].mxu0  ;;  %v2300_v29 = vld [vmem:[#allocation3 + $0xc8] sm:$0xff] }
 0x26f   :  { %1537 = vst.msk [vmem:[#allocation3 + $0xd8] sm:$0xff] %vm1509_vm8, %v1468_v37  ;;  %v8905_v26 = vpop.f32.mrb[17].mxu0  ;;  %6728 = vmatmul.mubr.bf16.gmra.mrb[48].mxu0 %v2300_v29  ;;  %v2731_v30 = vmul.f32 %v8902_v25, %v8902_v25 }
 0x270   :  { %v2659_v46 = vadd.f32 %v2658_v52, %v8905_v26  ;;  %v2729_v55 = vmul.f32 %v8905_v26, %v8905_v26  ;;  %v8910_v56 = vpop.f32.mrb[18].mxu0 }
 0x271   :  { %v1619_v9 = vpop.permute.xlu0 %1618  ;;  %v8913_v60 = vpop.f32.mrb[19].mxu0  ;;  %v2732_v34 = vmul.f32 %v8910_v56, %v8910_v56 }
 0x272   :  { %1689 = vst.msk [vmem:[#allocation3 + $0xd0] sm:$0xff] %vm1662_vm9, %v1619_v9  ;;  %v2792_v57 = vadd.f32 %v2791_v43, %v2729_v55  ;;  %v2660_v6 = vadd.f32 %v2659_v46, %v8913_v60  ;;  %v2730_v11 = vmul.f32 %v8913_v60, %v8913_v60  ;;  %v1621_v12 = vpop.permute.xlu1 %1620 }
 0x273   :  { %1690 = vst.msk [vmem:[#allocation3 + $0xd8] sm:$0xff] %vm1662_vm9, %v1621_v12 }
 0x274   :  { %v2661_v3 = vadd.f32 %v8902_v25, %v2660_v6  ;;  %v2793_v0 = vadd.f32 %v2792_v57, %v2730_v11 }
 0x275   :  { %v1766_v62 = vpop.permute.xlu0 %1765 }
 0x276   :  { %1836 = vst.msk [vmem:[#allocation3 + $0xd0] sm:$0xff] %vm1809_vm10, %v1766_v62  ;;  %v2794_v8 = vadd.f32 %v2793_v0, %v2731_v30  ;;  %v1768_v2 = vpop.permute.xlu1 %1767  ;;  %v2662_v31 = vadd.f32 %v8910_v56, %v2661_v3 }
 0x277   :  { %1837 = vst.msk [vmem:[#allocation3 + $0xd8] sm:$0xff] %vm1809_vm10, %v1768_v2 }
 0x278   :  { %v2795_v48 = vadd.f32 %v2794_v8, %v2732_v34 }
 0x279   :  { %v1899_v47 = vpop.permute.xlu0 %1898 }
 0x27a   :  { %1969 = vst.msk [vmem:[#allocation3 + $0xd0] sm:$0xff] %vm1942_vm11, %v1899_v47  ;;  %v1901_v10 = vpop.permute.xlu1 %1900 }
 0x27b   :  { %1970 = vst.msk [vmem:[#allocation3 + $0xd8] sm:$0xff] %vm1942_vm11, %v1901_v10 }
 0x27d   :  { %v2052_v27 = vpop.permute.xlu0 %2051 }
 0x27e   :  { %2122 = vst.msk [vmem:[#allocation3 + $0xd0] sm:$0xff] %vm2095_vm12, %v2052_v27  ;;  %v2054_v7 = vpop.permute.xlu1 %2053 }
 0x27f   :  { %2123 = vst.msk [vmem:[#allocation3 + $0xd8] sm:$0xff] %vm2095_vm12, %v2054_v7 }
 0x281   :  { %v2199_v5 = vpop.permute.xlu0 %2198 }
 0x282   :  { %2269 = vst.msk [vmem:[#allocation3 + $0xd0] sm:$0xff] %vm2242_vm13, %v2199_v5  ;;  %v2201_v41 = vpop.permute.xlu1 %2200 }
 0x283   :  { %2270 = vst.msk [vmem:[#allocation3 + $0xd8] sm:$0xff] %vm2242_vm13, %v2201_v41 }
 0x285   :  { %v1307_v35 = vpop.permute.xlu0 %1306 }
 0x286   :  { %1375 = vst.msk [vmem:[#allocation3 + $0xe0] sm:$0xff] %vm1346_vm7, %v1307_v35  ;;  %v1309_v36 = vpop.permute.xlu1 %1308  ;;  %v8934_v20 = vpop.f32.mrb[20].mxu0 }
 0x287   :  { %1376 = vst.msk [vmem:[#allocation3 + $0xe8] sm:$0xff] %vm1346_vm7, %v1309_v36  ;;  %v8937_v42 = vpop.f32.mrb[21].mxu0  ;;  %v2735_v40 = vmul.f32 %v8934_v20, %v8934_v20 }
 0x288   :  { %v2663_v44 = vadd.f32 %v2662_v31, %v8937_v42  ;;  %v2733_v19 = vmul.f32 %v8937_v42, %v8937_v42  ;;  %v8942_v33 = vpop.f32.mrb[22].mxu0 }
 0x289   :  { %v1470_v18 = vpop.permute.xlu0 %1469  ;;  %v2301_v61 = vld [vmem:[#allocation3 + $0xd0] sm:$0xff]  ;;  %v8945_v28 = vpop.f32.mrb[23].mxu0  ;;  %v2736_v17 = vmul.f32 %v8942_v33, %v8942_v33 }
 0x28a   :  { %1538 = vst.msk [vmem:[#allocation3 + $0xe0] sm:$0xff] %vm1509_vm8, %v1470_v18  ;;  %6731 = vmatprep.mubr.bf16.mxu0 %v2301_v61  ;;  %v2796_v52 = vadd.f32 %v2795_v48, %v2733_v19  ;;  %v2664_v15 = vadd.f32 %v2663_v44, %v8945_v28  ;;  %v2734_v43 = vmul.f32 %v8945_v28, %v8945_v28  ;;  %v1472_v16 = vpop.permute.xlu1 %1471  ;;  %v2302_v39 = vld [vmem:[#allocation3 + $0xd8] sm:$0xff] }
 0x28b   :  { %1539 = vst.msk [vmem:[#allocation3 + $0xe8] sm:$0xff] %vm1509_vm8, %v1472_v16  ;;  %6732 = vmatmul.mubr.bf16.gmra.mrb[52].mxu0 %v2302_v39 }
 0x28c   :  { %v2665_v58 = vadd.f32 %v8934_v20, %v2664_v15  ;;  %v2797_v21 = vadd.f32 %v2796_v52, %v2734_v43 }
 0x28d   :  { %v1623_v63 = vpop.permute.xlu0 %1622 }
 0x28e   :  { %1691 = vst.msk [vmem:[#allocation3 + $0xe0] sm:$0xff] %vm1662_vm9, %v1623_v63  ;;  %v2798_v37 = vadd.f32 %v2797_v21, %v2735_v40  ;;  %v1625_v29 = vpop.permute.xlu1 %1624  ;;  %v2666_v46 = vadd.f32 %v8942_v33, %v2665_v58 }
 0x28f   :  { %1692 = vst.msk [vmem:[#allocation3 + $0xe8] sm:$0xff] %vm1662_vm9, %v1625_v29 }
 0x290   :  { %v2799_v9 = vadd.f32 %v2798_v37, %v2736_v17 }
 0x291   :  { %v1770_v55 = vpop.permute.xlu0 %1769 }
 0x292   :  { %1838 = vst.msk [vmem:[#allocation3 + $0xe0] sm:$0xff] %vm1809_vm10, %v1770_v55  ;;  %v1772_v57 = vpop.permute.xlu1 %1771 }
 0x293   :  { %1839 = vst.msk [vmem:[#allocation3 + $0xe8] sm:$0xff] %vm1809_vm10, %v1772_v57 }
 0x295   :  { %v1903_v6 = vpop.permute.xlu0 %1902 }
 0x296   :  { %1971 = vst.msk [vmem:[#allocation3 + $0xe0] sm:$0xff] %vm1942_vm11, %v1903_v6  ;;  %v1905_v11 = vpop.permute.xlu1 %1904 }
 0x297   :  { %1972 = vst.msk [vmem:[#allocation3 + $0xe8] sm:$0xff] %vm1942_vm11, %v1905_v11 }
 0x299   :  { %v2056_v12 = vpop.permute.xlu0 %2055 }
 0x29a   :  { %2124 = vst.msk [vmem:[#allocation3 + $0xe0] sm:$0xff] %vm2095_vm12, %v2056_v12  ;;  %v2058_v30 = vpop.permute.xlu1 %2057 }
 0x29b   :  { %2125 = vst.msk [vmem:[#allocation3 + $0xe8] sm:$0xff] %vm2095_vm12, %v2058_v30 }
 0x29d   :  { %v2203_v3 = vpop.permute.xlu0 %2202 }
 0x29e   :  { %2271 = vst.msk [vmem:[#allocation3 + $0xe0] sm:$0xff] %vm2242_vm13, %v2203_v3  ;;  %v2205_v0 = vpop.permute.xlu1 %2204  ;;  %v8966_v62 = vpop.f32.mrb[24].mxu0 }
 0x29f   :  { %2272 = vst.msk [vmem:[#allocation3 + $0xe8] sm:$0xff] %vm2242_vm13, %v2205_v0  ;;  %v8969_v34 = vpop.f32.mrb[25].mxu0  ;;  %v2739_v41 = vmul.f32 %v8966_v62, %v8966_v62 }
 0x2a0   :  { %v2667_v8 = vadd.f32 %v2666_v46, %v8969_v34  ;;  %v2737_v2 = vmul.f32 %v8969_v34, %v8969_v34  ;;  %v8974_v31 = vpop.f32.mrb[26].mxu0 }
 0x2a1   :  { %v1311_v47 = vpop.permute.xlu0 %1310  ;;  %v8977_v48 = vpop.f32.mrb[27].mxu0  ;;  %v2740_v18 = vmul.f32 %v8974_v31, %v8974_v31 }
 0x2a2   :  { %1377 = vst.msk [vmem:[#allocation3 + $0xf0] sm:$0xff] %vm1346_vm7, %v1311_v47  ;;  %v2800_v10 = vadd.f32 %v2799_v9, %v2737_v2  ;;  %v2668_v27 = vadd.f32 %v2667_v8, %v8977_v48  ;;  %v2738_v7 = vmul.f32 %v8977_v48, %v8977_v48  ;;  %v1313_v5 = vpop.permute.xlu1 %1312 }
 0x2a3   :  { %1378 = vst.msk [vmem:[#allocation3 + $0xf8] sm:$0xff] %vm1346_vm7, %v1313_v5 }
 0x2a4   :  { %v2669_v35 = vadd.f32 %v8966_v62, %v2668_v27  ;;  %v2801_v36 = vadd.f32 %v2800_v10, %v2738_v7 }
 0x2a5   :  { %v1474_v44 = vpop.permute.xlu0 %1473  ;;  %v2303_v19 = vld [vmem:[#allocation3 + $0xe0] sm:$0xff] }
 0x2a6   :  { %1540 = vst.msk [vmem:[#allocation3 + $0xf0] sm:$0xff] %vm1509_vm8, %v1474_v44  ;;  %6735 = vmatprep.mubr.bf16.mxu0 %v2303_v19  ;;  %v2802_v61 = vadd.f32 %v2801_v36, %v2739_v41  ;;  %v1476_v52 = vpop.permute.xlu1 %1475  ;;  %v2304_v15 = vld [vmem:[#allocation3 + $0xe8] sm:$0xff]  ;;  %v2670_v43 = vadd.f32 %v8974_v31, %v2669_v35 }
 0x2a7   :  { %1541 = vst.msk [vmem:[#allocation3 + $0xf8] sm:$0xff] %vm1509_vm8, %v1476_v52  ;;  %6736 = vmatmul.mubr.bf16.gmra.mrb[56].mxu0 %v2304_v15 }
 0x2a8   :  { %v2803_v39 = vadd.f32 %v2802_v61, %v2740_v18 }
 0x2a9   :  { %v1627_v16 = vpop.permute.xlu0 %1626 }
 0x2aa   :  { %1693 = vst.msk [vmem:[#allocation3 + $0xf0] sm:$0xff] %vm1662_vm9, %v1627_v16  ;;  %v1629_v40 = vpop.permute.xlu1 %1628 }
 0x2ab   :  { %1694 = vst.msk [vmem:[#allocation3 + $0xf8] sm:$0xff] %vm1662_vm9, %v1629_v40 }
 0x2ad   :  { %v1774_v58 = vpop.permute.xlu0 %1773 }
 0x2ae   :  { %1840 = vst.msk [vmem:[#allocation3 + $0xf0] sm:$0xff] %vm1809_vm10, %v1774_v58  ;;  %v1776_v21 = vpop.permute.xlu1 %1775 }
 0x2af   :  { %1841 = vst.msk [vmem:[#allocation3 + $0xf8] sm:$0xff] %vm1809_vm10, %v1776_v21 }
 0x2b1   :  { %v1907_v63 = vpop.permute.xlu0 %1906 }
 0x2b2   :  { %1973 = vst.msk [vmem:[#allocation3 + $0xf0] sm:$0xff] %vm1942_vm11, %v1907_v63  ;;  %v1909_v17 = vpop.permute.xlu1 %1908 }
 0x2b3   :  { %1974 = vst.msk [vmem:[#allocation3 + $0xf8] sm:$0xff] %vm1942_vm11, %v1909_v17 }
 0x2b5   :  { %v2060_v37 = vpop.permute.xlu0 %2059 }
 0x2b6   :  { %2126 = vst.msk [vmem:[#allocation3 + $0xf0] sm:$0xff] %vm2095_vm12, %v2060_v37  ;;  %v2062_v29 = vpop.permute.xlu1 %2061  ;;  %v8998_v46 = vpop.f32.mrb[28].mxu0 }
 0x2b7   :  { %2127 = vst.msk [vmem:[#allocation3 + $0xf8] sm:$0xff] %vm2095_vm12, %v2062_v29  ;;  %v9001_v55 = vpop.f32.mrb[29].mxu0  ;;  %v2743_v2 = vmul.f32 %v8998_v46, %v8998_v46 }
 0x2b8   :  { %v2671_v9 = vadd.f32 %v2670_v43, %v9001_v55  ;;  %v2741_v57 = vmul.f32 %v9001_v55, %v9001_v55  ;;  %v9006_v6 = vpop.f32.mrb[30].mxu0 }
 0x2b9   :  { %v2207_v11 = vpop.permute.xlu0 %2206  ;;  %v9009_v12 = vpop.f32.mrb[31].mxu0  ;;  %v2744_v27 = vmul.f32 %v9006_v6, %v9006_v6 }
 0x2ba   :  { %2273 = vst.msk [vmem:[#allocation3 + $0xf0] sm:$0xff] %vm2242_vm13, %v2207_v11  ;;  %v2804_v30 = vadd.f32 %v2803_v39, %v2741_v57  ;;  %v2672_v3 = vadd.f32 %v2671_v9, %v9009_v12  ;;  %v2742_v0 = vmul.f32 %v9009_v12, %v9009_v12  ;;  %v2209_v8 = vpop.permute.xlu1 %2208 }
 0x2bb   :  { %2274 = vst.msk [vmem:[#allocation3 + $0xf8] sm:$0xff] %vm2242_vm13, %v2209_v8 }
 0x2bc   :  { %v2673_v47 = vadd.f32 %v8998_v46, %v2672_v3  ;;  %v2805_v10 = vadd.f32 %v2804_v30, %v2742_v0 }
 0x2be   :  { %v2806_v7 = vadd.f32 %v2805_v10, %v2743_v2  ;;  %v2674_v5 = vadd.f32 %v9006_v6, %v2673_v47 }
 0x2c0   :  { %v2807_v35 = vadd.f32 %v2806_v7, %v2744_v27 }
 0x2c1   :  { %v2305_v41 = vld [vmem:[#allocation3 + $0xf0] sm:$0xff] }
 0x2c2   :  { %6739 = vmatprep.mubr.bf16.mxu0 %v2305_v41  ;;  %v2306_v36 = vld [vmem:[#allocation3 + $0xf8] sm:$0xff] }
 0x2c3   :  { %6740 = vmatmul.mubr.bf16.gmra.mrb[60].mxu0 %v2306_v36 }
 0x2d2   :  { %v9021_v44 = vpop.f32.mrb[32].mxu0 }
 0x2d3   :  { %v9023_v19 = vpop.f32.mrb[33].mxu0  ;;  %v2747_v40 = vmul.f32 %v9021_v44, %v9021_v44 }
 0x2d4   :  { %v2675_v18 = vadd.f32 %v2674_v5, %v9023_v19  ;;  %v2745_v61 = vmul.f32 %v9023_v19, %v9023_v19  ;;  %v9028_v52 = vpop.f32.mrb[34].mxu0 }
 0x2d5   :  { %12853 = vst [vmem:[#allocation20_spill] sm:$0xff] %v9028_v52  ;;  %v9030_v15 = vpop.f32.mrb[35].mxu0  ;;  %v2748_v63 = vmul.f32 %v9028_v52, %v9028_v52 }
 0x2d6   :  { %v2808_v43 = vadd.f32 %v2807_v35, %v2745_v61  ;;  %v2676_v16 = vadd.f32 %v2675_v18, %v9030_v15  ;;  %v2746_v39 = vmul.f32 %v9030_v15, %v9030_v15 }
 0x2d8   :  { %v2677_v58 = vadd.f32 %v9021_v44, %v2676_v16  ;;  %v2809_v21 = vadd.f32 %v2808_v43, %v2746_v39 }
 0x2da   :  { %v2810_v17 = vadd.f32 %v2809_v21, %v2747_v40  ;;  %v2678_v37 = vadd.f32 %v9028_v52, %v2677_v58 }
 0x2dc   :  { %v2811_v29 = vadd.f32 %v2810_v17, %v2748_v63 }
 0x2ee   :  { %v9041_v9 = vpop.f32.mrb[36].mxu0 }
 0x2ef   :  { %12854 = vst [vmem:[#allocation22_spill] sm:$0xff] %v9041_v9  ;;  %v9043_v57 = vpop.f32.mrb[37].mxu0  ;;  %v2751_v10 = vmul.f32 %v9041_v9, %v9041_v9 }
 0x2f0   :  { %12855 = vst [vmem:[#allocation23_spill] sm:$0xff] %v9043_v57  ;;  %v2679_v11 = vadd.f32 %v2678_v37, %v9043_v57  ;;  %v2749_v30 = vmul.f32 %v9043_v57, %v9043_v57  ;;  %v9048_v3 = vpop.f32.mrb[38].mxu0 }
 0x2f1   :  { %12856 = vst [vmem:[#allocation26_spill] sm:$0xff] %v9048_v3  ;;  %v9050_v0 = vpop.f32.mrb[39].mxu0  ;;  %v2752_v5 = vmul.f32 %v9048_v3, %v9048_v3 }
 0x2f2   :  { %12857 = vst [vmem:[#allocation27_spill] sm:$0xff] %v9050_v0  ;;  %v2812_v8 = vadd.f32 %v2811_v29, %v2749_v30  ;;  %v2680_v2 = vadd.f32 %v2679_v11, %v9050_v0  ;;  %v2750_v47 = vmul.f32 %v9050_v0, %v9050_v0 }
 0x2f4   :  { %v2681_v27 = vadd.f32 %v9041_v9, %v2680_v2  ;;  %v2813_v7 = vadd.f32 %v2812_v8, %v2750_v47 }
 0x2f6   :  { %v2814_v41 = vadd.f32 %v2813_v7, %v2751_v10  ;;  %v2682_v35 = vadd.f32 %v9048_v3, %v2681_v27 }
 0x2f8   :  { %v2815_v36 = vadd.f32 %v2814_v41, %v2752_v5 }
 0x30a   :  { %v9061_v18 = vpop.f32.mrb[40].mxu0 }
 0x30b   :  { %12858 = vst [vmem:[#allocation12_spill] sm:$0xff] %v9061_v18  ;;  %v9063_v61 = vpop.f32.mrb[41].mxu0  ;;  %v2755_v17 = vmul.f32 %v9061_v18, %v9061_v18 }
 0x30c   :  { %12859 = vst [vmem:[#allocation30_spill] sm:$0xff] %v9063_v61  ;;  %v2683_v43 = vadd.f32 %v2682_v35, %v9063_v61  ;;  %v2753_v16 = vmul.f32 %v9063_v61, %v9063_v61  ;;  %v9068_v39 = vpop.f32.mrb[42].mxu0 }
 0x30d   :  { %12860 = vst [vmem:[#allocation31_spill] sm:$0xff] %v9068_v39  ;;  %v9070_v40 = vpop.f32.mrb[43].mxu0  ;;  %v2756_v11 = vmul.f32 %v9068_v39, %v9068_v39 }
 0x30e   :  { %12861 = vst [vmem:[#allocation32_spill] sm:$0xff] %v9070_v40  ;;  %v2816_v58 = vadd.f32 %v2815_v36, %v2753_v16  ;;  %v2684_v21 = vadd.f32 %v2683_v43, %v9070_v40  ;;  %v2754_v63 = vmul.f32 %v9070_v40, %v9070_v40 }
 0x310   :  { %v2685_v37 = vadd.f32 %v9061_v18, %v2684_v21  ;;  %v2817_v29 = vadd.f32 %v2816_v58, %v2754_v63 }
 0x312   :  { %v2818_v30 = vadd.f32 %v2817_v29, %v2755_v17  ;;  %v2686_v8 = vadd.f32 %v9068_v39, %v2685_v37 }
 0x314   :  { %v2819_v2 = vadd.f32 %v2818_v30, %v2756_v11 }
 0x326   :  { %v9081_v47 = vpop.f32.mrb[44].mxu0 }
 0x327   :  { %12862 = vst [vmem:[#allocation33_spill] sm:$0xff] %v9081_v47  ;;  %v9083_v10 = vpop.f32.mrb[45].mxu0  ;;  %v2759_v16 = vmul.f32 %v9081_v47, %v9081_v47 }
 0x328   :  { %12863 = vst [vmem:[#allocation35_spill] sm:$0xff] %v9083_v10  ;;  %v2687_v27 = vadd.f32 %v2686_v8, %v9083_v10  ;;  %v2757_v7 = vmul.f32 %v9083_v10, %v9083_v10  ;;  %v9088_v5 = vpop.f32.mrb[46].mxu0 }
 0x329   :  { %12864 = vst [vmem:[#allocation36_spill] sm:$0xff] %v9088_v5  ;;  %v9090_v41 = vpop.f32.mrb[47].mxu0  ;;  %v2760_v63 = vmul.f32 %v9088_v5, %v9088_v5 }
 0x32a   :  { %12865 = vst [vmem:[#allocation38_spill] sm:$0xff] %v9090_v41  ;;  %v2820_v35 = vadd.f32 %v2819_v2, %v2757_v7  ;;  %v2688_v36 = vadd.f32 %v2687_v27, %v9090_v41  ;;  %v2758_v43 = vmul.f32 %v9090_v41, %v9090_v41 }
 0x32c   :  { %v2689_v58 = vadd.f32 %v9081_v47, %v2688_v36  ;;  %v2821_v21 = vadd.f32 %v2820_v35, %v2758_v43 }
 0x32e   :  { %v2822_v17 = vadd.f32 %v2821_v21, %v2759_v16  ;;  %v2690_v37 = vadd.f32 %v9088_v5, %v2689_v58  ;;  %v9121_v5 = vld [vmem:[#allocation2] sm:$0xff] }
 0x32f   :  { %12870 = vst [vmem:[#allocation45_spill] sm:$0xff] %v9121_v5 }
 0x330   :  { %v2823_v29 = vadd.f32 %v2822_v17, %v2760_v63 }
 0x342   :  { %v9101_v11 = vpop.f32.mrb[48].mxu0 }
 0x343   :  { %12866 = vst [vmem:[#allocation39_spill] sm:$0xff] %v9101_v11  ;;  %v9103_v30 = vpop.f32.mrb[49].mxu0  ;;  %v2763_v16 = vmul.f32 %v9101_v11, %v9101_v11 }
 0x344   :  { %12867 = vst [vmem:[#allocation41_spill] sm:$0xff] %v9103_v30  ;;  %v2691_v8 = vadd.f32 %v2690_v37, %v9103_v30  ;;  %v2761_v2 = vmul.f32 %v9103_v30, %v9103_v30  ;;  %v9108_v27 = vpop.f32.mrb[50].mxu0 }
 0x345   :  { %12868 = vst [vmem:[#allocation42_spill] sm:$0xff] %v9108_v27  ;;  %v9110_v7 = vpop.f32.mrb[51].mxu0  ;;  %v2764_v63 = vmul.f32 %v9108_v27, %v9108_v27 }
 0x346   :  { %12869 = vst [vmem:[#allocation43_spill] sm:$0xff] %v9110_v7  ;;  %v2824_v35 = vadd.f32 %v2823_v29, %v2761_v2  ;;  %v2692_v36 = vadd.f32 %v2691_v8, %v9110_v7  ;;  %v2762_v43 = vmul.f32 %v9110_v7, %v9110_v7  ;;  %v9123_v29 = vld [vmem:[#allocation2 + $0x8] sm:$0xff]  ;;  %v9125_v8 = vld [vmem:[#allocation2 + $0x10] sm:$0x3]  ;;  %v3406_v2 = vrot.slane %v9121_v5, 1 }
 0x347   :  { %12871 = vst [vmem:[#allocation47_spill] sm:$0xff] %v9123_v29  ;;  %v3407_v7 = vrot.slane %v9123_v29, 1 }
 0x348   :  { %v2693_v58 = vadd.f32 %v9101_v11, %v2692_v36  ;;  %v2825_v21 = vadd.f32 %v2824_v35, %v2762_v43  ;;  %v3409_v36 = vrot.slane %v9125_v8, 1 }
 0x349   :  { %v3408_v35 = vsel %vm543_vm4, %v3406_v2, %v3407_v7 }
 0x34a   :  { %v2826_v17 = vadd.f32 %v2825_v21, %v2763_v16  ;;  %v2694_v37 = vadd.f32 %v9108_v27, %v2693_v58  ;;  %v3410_v43 = vsel %vm543_vm4, %v3407_v7, %v3409_v36 }
 0x34b   :  { %v3630_v16 = vpack.c.bf16 %v3410_v43, %v3408_v35 }
 0x34c   :  { %v2827_v30 = vadd.f32 %v2826_v17, %v2764_v63 }
 0x34d   :  { %3694 = vrot.lane.b32.xlu0 %v3630_v16, %s6908_s27 }
 0x35e   :  { %v9133_v58 = vpop.f32.mrb[52].mxu0 }
 0x35f   :  { %12872 = vst [vmem:[#allocation48_spill] sm:$0xff] %v9133_v58  ;;  %v9135_v21 = vpop.f32.mrb[53].mxu0  ;;  %v2767_v36 = vmul.f32 %v9133_v58, %v9133_v58 }
 0x360   :  { %12873 = vst [vmem:[#allocation49_spill] sm:$0xff] %v9135_v21  ;;  %v2695_v63 = vadd.f32 %v2694_v37, %v9135_v21  ;;  %v2765_v17 = vmul.f32 %v9135_v21, %v9135_v21  ;;  %v9140_v27 = vpop.f32.mrb[54].mxu0 }
 0x361   :  { %12874 = vst [vmem:[#allocation51_spill] sm:$0xff] %v9140_v27  ;;  %v9142_v11 = vpop.f32.mrb[55].mxu0  ;;  %v2768_v37 = vmul.f32 %v9140_v27, %v9140_v27 }
 0x362   :  { %12875 = vst [vmem:[#allocation53_spill] sm:$0xff] %v9142_v11  ;;  %v2828_v47 = vadd.f32 %v2827_v30, %v2765_v17  ;;  %v2696_v2 = vadd.f32 %v2695_v63, %v9142_v11  ;;  %v2766_v7 = vmul.f32 %v9142_v11, %v9142_v11 }
 0x364   :  { %v2697_v35 = vadd.f32 %v9133_v58, %v2696_v2  ;;  %v2829_v43 = vadd.f32 %v2828_v47, %v2766_v7 }
 0x366   :  { %v2830_v16 = vadd.f32 %v2829_v43, %v2767_v36  ;;  %v2698_v21 = vadd.f32 %v9140_v27, %v2697_v35 }
 0x368   :  { %v2831_v41 = vadd.f32 %v2830_v16, %v2768_v37 }
 0x37a   :  { %v9153_v10 = vpop.f32.mrb[56].mxu0 }
 0x37b   :  { %12876 = vst [vmem:[#allocation54_spill] sm:$0xff] %v9153_v10  ;;  %v9155_v30 = vpop.f32.mrb[57].mxu0  ;;  %v2771_v35 = vmul.f32 %v9153_v10, %v9153_v10 }
 0x37c   :  { %12877 = vst [vmem:[#allocation56_spill] sm:$0xff] %v9155_v30  ;;  %v2699_v63 = vadd.f32 %v2698_v21, %v9155_v30  ;;  %v2769_v17 = vmul.f32 %v9155_v30, %v9155_v30  ;;  %v9160_v11 = vpop.f32.mrb[58].mxu0 }
 0x37d   :  { %12878 = vst [vmem:[#allocation57_spill] sm:$0xff] %v9160_v11  ;;  %v9162_v2 = vpop.f32.mrb[59].mxu0  ;;  %v2772_v21 = vmul.f32 %v9160_v11, %v9160_v11 }
 0x37e   :  { %12879 = vst [vmem:[#allocation58_spill] sm:$0xff] %v9162_v2  ;;  %v2832_v47 = vadd.f32 %v2831_v41, %v2769_v17  ;;  %v2700_v7 = vadd.f32 %v2699_v63, %v9162_v2  ;;  %v2770_v36 = vmul.f32 %v9162_v2, %v9162_v2 }
 0x380   :  { %v2701_v43 = vadd.f32 %v9153_v10, %v2700_v7  ;;  %v2833_v37 = vadd.f32 %v2832_v47, %v2770_v36 }
 0x382   :  { %v2834_v16 = vadd.f32 %v2833_v37, %v2771_v35  ;;  %v2702_v30 = vadd.f32 %v9160_v11, %v2701_v43 }
 0x384   :  { %v2835_v27 = vadd.f32 %v2834_v16, %v2772_v21 }
 0x396   :  { %v9173_v58 = vpop.f32.mrb[60].mxu0 }
 0x397   :  { %12880 = vst [vmem:[#allocation59_spill] sm:$0xff] %v9173_v58  ;;  %v9175_v41 = vpop.f32.mrb[61].mxu0  ;;  %v2775_v35 = vmul.f32 %v9173_v58, %v9173_v58 }
 0x398   :  { %12881 = vst [vmem:[#allocation61_spill] sm:$0xff] %v9175_v41  ;;  %v2703_v63 = vadd.f32 %v2702_v30, %v9175_v41  ;;  %v2773_v17 = vmul.f32 %v9175_v41, %v9175_v41  ;;  %v9180_v2 = vpop.f32.mrb[62].mxu0 }
 0x399   :  { %v2632_v7 = vpop.f32.mrb[63].mxu0  ;;  %v2776_v21 = vmul.f32 %v9180_v2, %v9180_v2 }
 0x39a   :  { %v2836_v47 = vadd.f32 %v2835_v27, %v2773_v17  ;;  %v2704_v36 = vadd.f32 %v2703_v63, %v2632_v7  ;;  %v2774_v10 = vmul.f32 %v2632_v7, %v2632_v7 }
 0x39c   :  { %v2705_v43 = vadd.f32 %v9173_v58, %v2704_v36  ;;  %v2837_v37 = vadd.f32 %v2836_v47, %v2774_v10 }
 0x39e   :  { %v2706_v30 = vadd.f32 %v9180_v2, %v2705_v43  ;;  %v2838_v16 = vadd.f32 %v2837_v37, %v2775_v35  ;;  %v2855_v35 = vlaneseq  ;;  %v3192_v43 = vld [vmem:[#allocation2 + $0x1b0] sm:$0xff]  ;;  %v3193_v37 = vld [vmem:[#allocation2 + $0x1b8] sm:$0xff] }
 0x3a0   :  { %v2707_v11 = vrot.slane %v2706_v30, 4  ;;  %v2839_v41 = vadd.f32 %v2838_v16, %v2776_v21  ;;  %v2856_v21 = vshrl.u32 %v2855_v35, 7 }
 0x3a2   :  { %v2708_v39 = vadd.f32 %v2707_v11, %v2706_v30  ;;  %v2840_v18 = vrot.slane %v2839_v41, 4  ;;  %v3194_v11 = vld [vmem:[#allocation2 + $0x1c0] sm:$0x3]  ;;  %v3486_v30 = vrot.slane %v3192_v43, 1 }
 0x3a4   :  { %v2709_v40 = vrot.slane %v2708_v39, 2  ;;  %v2841_v27 = vadd.f32 %v2840_v18, %v2839_v41  ;;  %v3487_v18 = vrot.slane %v3193_v37, 1 }
 0x3a6   :  { %v2710_v63 = vadd.f32 %v2709_v40, %v2708_v39  ;;  %v2842_v17 = vrot.slane %v2841_v27, 2  ;;  %v3489_v39 = vrot.slane %v3194_v11, 1  ;;  %v3822_v40 = vrot.slane %v9121_v5, 2  ;;  %v12912_v5 = vld [vmem:[#allocation51_spill] sm:$0xff] }
 0x3a8   :  { %v2711_v61 = vrot.slane %v2710_v63, 1  ;;  %v2843_v3 = vadd.f32 %v2842_v17, %v2841_v27  ;;  %v9200_v41 = vsel %vm543_vm4, %v3487_v18, %v3489_v39 }
 0x3a9   :  { %12884 = vst [vmem:[#allocation66_spill] sm:$0xff] %v9200_v41  ;;  %v12908_v41 = vld [vmem:[#allocation53_spill] sm:$0xff] }
 0x3aa   :  { %v2712_v9 = vadd.f32 %v2711_v61, %v2710_v63  ;;  %v2844_v0 = vrot.slane %v2843_v3, 1  ;;  %v3823_v61 = vrot.slane %v9123_v29, 2  ;;  %v12910_v29 = vld [vmem:[#allocation48_spill] sm:$0xff] }
 0x3ac   :  { %v2845_v36 = vadd.f32 %v2844_v0, %v2843_v3  ;;  %v2846_v10 = vmul.f32 0.001953125, %v2712_v9  ;;  %v3825_v3 = vrot.slane %v9125_v8, 2  ;;  %v273_v9 = vld [vmem:[%s12392_s2] sm:$0x1]  ;;  %v9197_v0 = vsel %vm543_vm4, %v3486_v30, %v3487_v18  ;;  %v274_v8 = vld [vmem:[%s12392_s2 + $0x1] sm:$0x1] }
 0x3ad   :  { %12883 = vst [vmem:[#allocation65_spill] sm:$0xff] %v9197_v0  ;;  %v9203_v16 = vsel %vm961_vm5, %v3822_v40, %v3823_v61  ;;  %v12887_v40 = vld [vmem:[#allocation20_spill] sm:$0xff]  ;;  %v12906_v0 = vld [vmem:[#allocation49_spill] sm:$0xff] }
 0x3ae   :  { %v2847_v47 = vmul.f32 0.001953125, %v2845_v36  ;;  %v2848_v58 = vmul.f32 %v2846_v10, %v2846_v10  ;;  %12885 = vst [vmem:[#allocation15_spill] sm:$0xff] %v9203_v16  ;;  %v9206_v27 = vsel %vm961_vm5, %v3823_v61, %v3825_v3  ;;  %v12888_v61 = vld [vmem:[#allocation23_spill] sm:$0xff]  ;;  %v12900_v36 = vld [vmem:[#allocation41_spill] sm:$0xff] }
 0x3af   :  { %12886 = vst [vmem:[#allocation18_spill] sm:$0xff] %v9206_v27  ;;  %v12889_v3 = vld [vmem:[#allocation27_spill] sm:$0xff]  ;;  %v12904_v27 = vld [vmem:[#allocation42_spill] sm:$0xff] }
 0x3b0   :  { %v2849_v57 = vsub.f32 %v2847_v47, %v2848_v58  ;;  %v12899_v47 = vld [vmem:[#allocation36_spill] sm:$0xff]  ;;  %v12902_v16 = vld [vmem:[#allocation39_spill] sm:$0xff] }
 0x3b2   :  { %v2850_v52 = vadd.f32 1e-05, %v2849_v57  ;;  %v9194_v57 = vsub.s32 0, %v2856_v21 }
 0x3b4   :  { %6849 = vrsqrt.f32 %v2850_v52  ;;  %12882 = vst [vmem:[#allocation62_spill] sm:$0xff] %v9194_v57 }
 0x3be   :  { %v6850_v52 = vpop.eup %6849 }
 0x3bf   :  { %v2852_v58 = vmul.f32 %v6850_v52, %v273_v9  ;;  %v12890_v9 = vld [vmem:[#allocation22_spill] sm:$0xff] }
 0x3c0   :  { %v12891_v52 = vld [vmem:[#allocation26_spill] sm:$0xff] }
 0x3c1   :  { %v2853_v63 = vmul.f32 %v2852_v58, %v2846_v10  ;;  %v9212_v17 = vrot.slane %v2852_v58, %v9194_v57  ;;  %v12892_v58 = vld [vmem:[#allocation30_spill] sm:$0xff] }
 0x3c3   :  { %v2854_v35 = vsub.f32 %v274_v8, %v2853_v63  ;;  %v2920_v43 = vmul.f32 %v9212_v17, %v2632_v7  ;;  %v9221_v37 = vmul.f32 %v9212_v17, %v8721_v49  ;;  %v9225_v11 = vmul.f32 %v9212_v17, %v8727_v54  ;;  %v12893_v63 = vld [vmem:[#allocation32_spill] sm:$0xff] }
 0x3c4   :  { %v9229_v10 = vmul.f32 %v8717_v51, %v9212_v17  ;;  %v9233_v21 = vmul.f32 %v8724_v45, %v9212_v17  ;;  %v9237_v30 = vmul.f32 %v9212_v17, %v8776_v24  ;;  %v9241_v49 = vmul.f32 %v9212_v17, %v8788_v50 }
 0x3c5   :  { %v9244_v7 = vrot.slane %v2854_v35, %v9194_v57  ;;  %v9248_v54 = vmul.f32 %v8771_v22, %v9212_v17  ;;  %v9252_v51 = vmul.f32 %v8783_v4, %v9212_v17  ;;  %v9256_v45 = vmul.f32 %v9212_v17, %v8834_v13  ;;  %v12901_v57 = vld [vmem:[#allocation43_spill] sm:$0xff] }
 0x3c6   :  { %v9260_v24 = vmul.f32 %v9212_v17, %v8843_v1  ;;  %v9264_v50 = vmul.f32 %v8830_v53, %v9212_v17  ;;  %v9268_v22 = vmul.f32 %v8840_v32, %v9212_v17  ;;  %v9272_v4 = vmul.f32 %v9212_v17, %v8873_v59 }
 0x3c7   :  { %v2988_v18 = vadd.f32 %v9244_v7, %v2920_v43  ;;  %v9277_v13 = vmul.f32 %v9212_v17, %v8881_v38  ;;  %v9281_v1 = vmul.f32 %v8870_v14, %v9212_v17  ;;  %v9285_v53 = vmul.f32 %v8878_v23, %v9212_v17  ;;  %v12894_v43 = vld [vmem:[#allocation12_spill] sm:$0xff] }
 0x3c8   :  { %v9289_v32 = vmul.f32 %v9212_v17, %v8905_v26  ;;  %v9293_v59 = vmul.f32 %v9212_v17, %v8913_v60  ;;  %v9297_v38 = vmul.f32 %v8902_v25, %v9212_v17  ;;  %v9301_v14 = vmul.f32 %v8910_v56, %v9212_v17 }
 0x3c9   :  { %v3052_v39 = vmax.f32 %v2988_v18, 0.0  ;;  %v9305_v23 = vmul.f32 %v9212_v17, %v8937_v42  ;;  %v9309_v26 = vmul.f32 %v9212_v17, %v8945_v28  ;;  %v9313_v60 = vmul.f32 %v8934_v20, %v9212_v17 }
 0x3ca   :  { %v9317_v25 = vmul.f32 %v8942_v33, %v9212_v17  ;;  %v9321_v56 = vmul.f32 %v9212_v17, %v8969_v34  ;;  %v9325_v42 = vmul.f32 %v9212_v17, %v8977_v48  ;;  %v9329_v28 = vmul.f32 %v8966_v62, %v9212_v17 }
 0x3cb   :  { %3116 = vst.msk [vmem:[#allocation2 + $0x321] sm:$0xff] %vm15_vm0, %v3052_v39  ;;  %v9334_v20 = vmul.f32 %v8974_v31, %v9212_v17  ;;  %v9338_v33 = vmul.f32 %v9212_v17, %v9001_v55  ;;  %v9342_v34 = vmul.f32 %v9212_v17, %v9009_v12  ;;  %v9346_v48 = vmul.f32 %v8998_v46, %v9212_v17  ;;  %v12895_v39 = vld [vmem:[#allocation31_spill] sm:$0xff] }
 0x3cc   :  { %v9350_v62 = vmul.f32 %v9006_v6, %v9212_v17  ;;  %v9354_v31 = vmul.f32 %v9212_v17, %v9023_v19  ;;  %v9358_v55 = vmul.f32 %v9212_v17, %v9030_v15  ;;  %v9362_v12 = vmul.f32 %v9021_v44, %v9212_v17 }
 0x3cd   :  { %v9366_v46 = vmul.f32 %v12887_v40, %v9212_v17  ;;  %v9370_v6 = vmul.f32 %v9212_v17, %v12888_v61  ;;  %v9374_v19 = vmul.f32 %v9212_v17, %v12889_v3  ;;  %v9378_v15 = vmul.f32 %v12890_v9, %v9212_v17  ;;  %v12896_v61 = vld [vmem:[#allocation35_spill] sm:$0xff]  ;;  %v12897_v9 = vld [vmem:[#allocation38_spill] sm:$0xff] }
 0x3ce   :  { %v9382_v44 = vmul.f32 %v12891_v52, %v9212_v17  ;;  %v9386_v8 = vmul.f32 %v9212_v17, %v12892_v58  ;;  %v9390_v35 = vmul.f32 %v9212_v17, %v12893_v63  ;;  %v9394_v18 = vmul.f32 %v12894_v43, %v9212_v17  ;;  %v12898_v58 = vld [vmem:[#allocation33_spill] sm:$0xff] }
 0x3cf   :  { %v9398_v40 = vmul.f32 %v12895_v39, %v9212_v17  ;;  %v9402_v3 = vmul.f32 %v9212_v17, %v12896_v61  ;;  %v9406_v52 = vmul.f32 %v9212_v17, %v12897_v9  ;;  %v9410_v63 = vmul.f32 %v12898_v58, %v9212_v17 }
 0x3d0   :  { %v9414_v43 = vmul.f32 %v12899_v47, %v9212_v17  ;;  %v9418_v39 = vmul.f32 %v9212_v17, %v12900_v36  ;;  %v9422_v61 = vmul.f32 %v9212_v17, %v12901_v57  ;;  %v9426_v9 = vmul.f32 %v12902_v16, %v9212_v17 }
 0x3d1   :  { %v9430_v58 = vmul.f32 %v12904_v27, %v9212_v17  ;;  %v9434_v47 = vmul.f32 %v9212_v17, %v12906_v0  ;;  %v9438_v36 = vmul.f32 %v9212_v17, %v12908_v41  ;;  %v9442_v57 = vmul.f32 %v12910_v29, %v9212_v17 }
 0x3d2   :  { %12903 = vst [vmem:[#allocation21_spill] sm:$0xff] %v9426_v9  ;;  %v9446_v16 = vmul.f32 %v12912_v5, %v9212_v17  ;;  %v12914_v9 = vld [vmem:[#allocation56_spill] sm:$0xff] }
 0x3d3   :  { %12905 = vst [vmem:[#allocation24_spill] sm:$0xff] %v9430_v58  ;;  %12907 = vst [vmem:[#allocation28_spill] sm:$0xff] %v9434_v47  ;;  %v9450_v27 = vmul.f32 %v9212_v17, %v12914_v9  ;;  %v12915_v58 = vld [vmem:[#allocation58_spill] sm:$0xff] }
 0x3d4   :  { %12909 = vst [vmem:[#allocation4_spill] sm:$0xff] %v9438_v36  ;;  %12911 = vst [vmem:[#allocation6_spill] sm:$0xff] %v9442_v57  ;;  %v9454_v0 = vmul.f32 %v9212_v17, %v12915_v58  ;;  %v12916_v47 = vld [vmem:[#allocation54_spill] sm:$0xff]  ;;  %v12917_v36 = vld [vmem:[#allocation57_spill] sm:$0xff]  ;;  %v9474_v58 = vmul.f32 %v9180_v2, %v9212_v17  ;;  %v9494_v2 = vadd.f32 %v9244_v7, %v9237_v30 }
 0x3d5   :  { %12913 = vst [vmem:[#allocation5_spill] sm:$0xff] %v9446_v16  ;;  %v9458_v41 = vmul.f32 %v12916_v47, %v9212_v17  ;;  %v9462_v29 = vmul.f32 %v12917_v36, %v9212_v17  ;;  %v12918_v57 = vld [vmem:[#allocation61_spill] sm:$0xff]  ;;  %v12919_v16 = vld [vmem:[#allocation59_spill] sm:$0xff]  ;;  %v9478_v47 = vadd.f32 %v9244_v7, %v9221_v37  ;;  %v9482_v36 = vadd.f32 %v9244_v7, %v9225_v11 }
 0x3d6   :  { %v9466_v5 = vmul.f32 %v9212_v17, %v12918_v57  ;;  %v9470_v9 = vmul.f32 %v12919_v16, %v9212_v17  ;;  %v9486_v57 = vadd.f32 %v9244_v7, %v9229_v10  ;;  %v9490_v16 = vadd.f32 %v9244_v7, %v9233_v21 }
 0x3d7   :  { %v9498_v17 = vadd.f32 %v9244_v7, %v9241_v49  ;;  %v9502_v37 = vadd.f32 %v9244_v7, %v9248_v54  ;;  %v9506_v11 = vadd.f32 %v9244_v7, %v9252_v51  ;;  %v9510_v10 = vadd.f32 %v9244_v7, %v9256_v45 }
 0x3d8   :  { %v9514_v21 = vadd.f32 %v9244_v7, %v9260_v24  ;;  %v9518_v30 = vadd.f32 %v9244_v7, %v9264_v50  ;;  %v9522_v49 = vadd.f32 %v9244_v7, %v9268_v22  ;;  %v9526_v54 = vadd.f32 %v9244_v7, %v9272_v4 }
 0x3d9   :  { %v9530_v51 = vadd.f32 %v9244_v7, %v9277_v13  ;;  %v9534_v45 = vadd.f32 %v9244_v7, %v9281_v1  ;;  %v9538_v24 = vadd.f32 %v9244_v7, %v9285_v53  ;;  %v9542_v50 = vadd.f32 %v9244_v7, %v9289_v32 }
 0x3da   :  { %v9546_v22 = vadd.f32 %v9244_v7, %v9293_v59  ;;  %v9550_v4 = vadd.f32 %v9244_v7, %v9297_v38  ;;  %v9554_v13 = vadd.f32 %v9244_v7, %v9301_v14  ;;  %v9558_v1 = vadd.f32 %v9244_v7, %v9305_v23 }
 0x3db   :  { %v9562_v53 = vadd.f32 %v9244_v7, %v9309_v26  ;;  %v9566_v32 = vadd.f32 %v9244_v7, %v9313_v60  ;;  %v9570_v59 = vadd.f32 %v9244_v7, %v9317_v25  ;;  %v9574_v38 = vadd.f32 %v9244_v7, %v9321_v56 }
 0x3dc   :  { %v9578_v14 = vadd.f32 %v9244_v7, %v9325_v42  ;;  %v9582_v23 = vadd.f32 %v9244_v7, %v9329_v28  ;;  %v9586_v26 = vadd.f32 %v9244_v7, %v9334_v20  ;;  %v9590_v60 = vadd.f32 %v9244_v7, %v9338_v33 }
 0x3dd   :  { %v9594_v25 = vadd.f32 %v9244_v7, %v9342_v34  ;;  %v9598_v56 = vadd.f32 %v9244_v7, %v9346_v48  ;;  %v9602_v42 = vadd.f32 %v9244_v7, %v9350_v62  ;;  %v9606_v28 = vadd.f32 %v9244_v7, %v9354_v31 }
 0x3de   :  { %v9610_v20 = vadd.f32 %v9244_v7, %v9358_v55  ;;  %v9614_v33 = vadd.f32 %v9244_v7, %v9362_v12  ;;  %v9618_v34 = vadd.f32 %v9244_v7, %v9366_v46  ;;  %v9622_v48 = vadd.f32 %v9244_v7, %v9370_v6 }
 0x3df   :  { %v9626_v62 = vadd.f32 %v9244_v7, %v9374_v19  ;;  %v9630_v31 = vadd.f32 %v9244_v7, %v9378_v15  ;;  %v9634_v55 = vadd.f32 %v9244_v7, %v9382_v44  ;;  %v9638_v12 = vadd.f32 %v9244_v7, %v9386_v8 }
 0x3e0   :  { %v9642_v46 = vadd.f32 %v9244_v7, %v9390_v35  ;;  %v9646_v6 = vadd.f32 %v9244_v7, %v9394_v18  ;;  %v9650_v19 = vadd.f32 %v9244_v7, %v9398_v40  ;;  %v9654_v15 = vadd.f32 %v9244_v7, %v9402_v3  ;;  %v12925_v3 = vld [vmem:[#allocation21_spill] sm:$0xff] }
 0x3e1   :  { %v9658_v44 = vadd.f32 %v9244_v7, %v9406_v52  ;;  %v9662_v8 = vadd.f32 %v9244_v7, %v9410_v63  ;;  %v9666_v35 = vadd.f32 %v9244_v7, %v9414_v43  ;;  %v9670_v18 = vadd.f32 %v9244_v7, %v9418_v39 }
 0x3e2   :  { %v9674_v40 = vadd.f32 %v9244_v7, %v9422_v61  ;;  %v9678_v52 = vadd.f32 %v9244_v7, %v12925_v3 }
 0x3e3   :  { %12920 = vst [vmem:[#allocation7_spill] sm:$0xff] %v9658_v44  ;;  %12921 = vst [vmem:[#allocation8_spill] sm:$0xff] %v9662_v8  ;;  %v12926_v44 = vld [vmem:[#allocation24_spill] sm:$0xff] }
 0x3e4   :  { %12922 = vst [vmem:[#allocation9_spill] sm:$0xff] %v9666_v35  ;;  %12923 = vst [vmem:[#allocation10_spill] sm:$0xff] %v9670_v18  ;;  %v9682_v63 = vadd.f32 %v9244_v7, %v12926_v44  ;;  %v12927_v8 = vld [vmem:[#allocation28_spill] sm:$0xff]  ;;  %v12929_v18 = vld [vmem:[#allocation6_spill] sm:$0xff]  ;;  %v9702_v44 = vadd.f32 %v9244_v7, %v9450_v27  ;;  %v9722_v27 = vadd.f32 %v9244_v7, %v9470_v9  ;;  %v2997_v9 = vmax.f32 %v9502_v37, 0.0 }
 0x3e5   :  { %12924 = vst [vmem:[#allocation11_spill] sm:$0xff] %v9674_v40  ;;  %v9686_v43 = vadd.f32 %v9244_v7, %v12927_v8  ;;  %v12928_v35 = vld [vmem:[#allocation4_spill] sm:$0xff]  ;;  %v9694_v61 = vadd.f32 %v9244_v7, %v12929_v18  ;;  %v12930_v40 = vld [vmem:[#allocation5_spill] sm:$0xff]  ;;  %v9706_v8 = vadd.f32 %v9244_v7, %v9454_v0  ;;  %v9714_v18 = vadd.f32 %v9244_v7, %v9462_v29 }
 0x3e6   :  { %v9690_v39 = vadd.f32 %v9244_v7, %v12928_v35  ;;  %v9698_v3 = vadd.f32 %v9244_v7, %v12930_v40  ;;  %v9710_v35 = vadd.f32 %v9244_v7, %v9458_v41  ;;  %v9718_v40 = vadd.f32 %v9244_v7, %v9466_v5  ;;  %12934 = vst [vmem:[#allocation25_spill] sm:$0xff] %v9722_v27 }
 0x3e7   :  { %12931 = vst [vmem:[#allocation13_spill] sm:$0xff] %v9706_v8  ;;  %12933 = vst [vmem:[#allocation16_spill] sm:$0xff] %v9714_v18  ;;  %v9726_v0 = vadd.f32 %v9244_v7, %v9474_v58  ;;  %v2993_v8 = vmax.f32 %v9486_v57, 0.0  ;;  %v2994_v41 = vmax.f32 %v9490_v16, 0.0  ;;  %v2992_v29 = vmax.f32 %v9482_v36, 0.0 }
 0x3e8   :  { %12932 = vst [vmem:[#allocation14_spill] sm:$0xff] %v9710_v35  ;;  %v2991_v35 = vmax.f32 %v9478_v47, 0.0  ;;  %v2995_v18 = vmax.f32 %v9494_v2, 0.0  ;;  %v2996_v5 = vmax.f32 %v9498_v17, 0.0  ;;  %v2998_v27 = vmax.f32 %v9506_v11, 0.0  ;;  %3061 = vst.msk [vmem:[#allocation2 + $0x61] sm:$0xff] %vm15_vm0, %v2997_v9 }
 0x3e9   :  { %3057 = vst.msk [vmem:[#allocation2 + $0x31] sm:$0xff] %vm15_vm0, %v2993_v8  ;;  %v2999_v7 = vmax.f32 %v9510_v10, 0.0  ;;  %3058 = vst.msk [vmem:[#allocation2 + $0x39] sm:$0xff] %vm15_vm0, %v2994_v41  ;;  %v3000_v58 = vmax.f32 %v9514_v21, 0.0  ;;  %v3001_v47 = vmax.f32 %v9518_v30, 0.0  ;;  %v3002_v36 = vmax.f32 %v9522_v49, 0.0 }
 0x3ea   :  { %v3003_v57 = vmax.f32 %v9526_v54, 0.0  ;;  %3055 = vst.msk [vmem:[#allocation2 + $0x19] sm:$0xff] %vm15_vm0, %v2991_v35  ;;  %3056 = vst.msk [vmem:[#allocation2 + $0x21] sm:$0xff] %vm15_vm0, %v2992_v29  ;;  %v3004_v16 = vmax.f32 %v9530_v51, 0.0  ;;  %v3005_v2 = vmax.f32 %v9534_v45, 0.0  ;;  %v3006_v17 = vmax.f32 %v9538_v24, 0.0 }
 0x3eb   :  { %3059 = vst.msk [vmem:[#allocation2 + $0x49] sm:$0xff] %vm15_vm0, %v2995_v18  ;;  %v3007_v37 = vmax.f32 %v9542_v50, 0.0  ;;  %3060 = vst.msk [vmem:[#allocation2 + $0x51] sm:$0xff] %vm15_vm0, %v2996_v5  ;;  %v3008_v11 = vmax.f32 %v9546_v22, 0.0  ;;  %v3009_v10 = vmax.f32 %v9550_v4, 0.0  ;;  %v3010_v21 = vmax.f32 %v9554_v13, 0.0 }
 0x3ec   :  { %3062 = vst.msk [vmem:[#allocation2 + $0x69] sm:$0xff] %vm15_vm0, %v2998_v27  ;;  %3063 = vst.msk [vmem:[#allocation2 + $0x79] sm:$0xff] %vm15_vm0, %v2999_v7  ;;  %v3011_v30 = vmax.f32 %v9558_v1, 0.0  ;;  %v3012_v49 = vmax.f32 %v9562_v53, 0.0  ;;  %v3013_v54 = vmax.f32 %v9566_v32, 0.0  ;;  %v3014_v51 = vmax.f32 %v9570_v59, 0.0 }
 0x3ed   :  { %3064 = vst.msk [vmem:[#allocation2 + $0x81] sm:$0xff] %vm15_vm0, %v3000_v58  ;;  %3065 = vst.msk [vmem:[#allocation2 + $0x91] sm:$0xff] %vm15_vm0, %v3001_v47  ;;  %v3015_v45 = vmax.f32 %v9574_v38, 0.0  ;;  %v3016_v24 = vmax.f32 %v9578_v14, 0.0  ;;  %v3017_v50 = vmax.f32 %v9582_v23, 0.0  ;;  %v3018_v22 = vmax.f32 %v9586_v26, 0.0 }
 0x3ee   :  { %3066 = vst.msk [vmem:[#allocation2 + $0x99] sm:$0xff] %vm15_vm0, %v3002_v36  ;;  %3067 = vst.msk [vmem:[#allocation2 + $0xa9] sm:$0xff] %vm15_vm0, %v3003_v57  ;;  %v3019_v4 = vmax.f32 %v9590_v60, 0.0  ;;  %v3020_v13 = vmax.f32 %v9594_v25, 0.0  ;;  %v3021_v1 = vmax.f32 %v9598_v56, 0.0  ;;  %v3022_v53 = vmax.f32 %v9602_v42, 0.0 }
 0x3ef   :  { %3068 = vst.msk [vmem:[#allocation2 + $0xb1] sm:$0xff] %vm15_vm0, %v3004_v16  ;;  %3069 = vst.msk [vmem:[#allocation2 + $0xc1] sm:$0xff] %vm15_vm0, %v3005_v2  ;;  %v3023_v32 = vmax.f32 %v9606_v28, 0.0  ;;  %v3024_v38 = vmax.f32 %v9610_v20, 0.0  ;;  %v3025_v14 = vmax.f32 %v9614_v33, 0.0  ;;  %v3026_v23 = vmax.f32 %v9618_v34, 0.0 }
 0x3f0   :  { %3070 = vst.msk [vmem:[#allocation2 + $0xc9] sm:$0xff] %vm15_vm0, %v3006_v17  ;;  %3071 = vst.msk [vmem:[#allocation2 + $0xd9] sm:$0xff] %vm15_vm0, %v3007_v37  ;;  %v9786_v59 = vld [vmem:[#allocation2 + $0x30] sm:$0xff]  ;;  %v3027_v26 = vmax.f32 %v9622_v48, 0.0  ;;  %v9796_v60 = vld [vmem:[#allocation2 + $0x38] sm:$0xff]  ;;  %v3028_v42 = vmax.f32 %v9626_v62, 0.0 }
 0x3f1   :  { %3072 = vst.msk [vmem:[#allocation2 + $0xe1] sm:$0xff] %vm15_vm0, %v3008_v11  ;;  %3073 = vst.msk [vmem:[#allocation2 + $0xf1] sm:$0xff] %vm15_vm0, %v3009_v10  ;;  %v9798_v25 = vld [vmem:[#allocation2 + $0x40] sm:$0x3]  ;;  %v3416_v56 = vrot.slane %v9786_v59, 1  ;;  %v3029_v28 = vmax.f32 %v9630_v31, 0.0 }
 0x3f2   :  { %3074 = vst.msk [vmem:[#allocation2 + $0xf9] sm:$0xff] %vm15_vm0, %v3010_v21  ;;  %3075 = vst.msk [vmem:[#allocation2 + $0x109] sm:$0xff] %vm15_vm0, %v3011_v30  ;;  %v12935_v20 = vld [vmem:[#allocation45_spill] sm:$0xff]  ;;  %v12936_v33 = vld [vmem:[#allocation47_spill] sm:$0xff]  ;;  %v3417_v48 = vrot.slane %v9796_v60, 1  ;;  %v3419_v8 = vrot.slane %v9798_v25, 1 }
 0x3f3   :  { %3076 = vst.msk [vmem:[#allocation2 + $0x111] sm:$0xff] %vm15_vm0, %v3012_v49  ;;  %3077 = vst.msk [vmem:[#allocation2 + $0x121] sm:$0xff] %vm15_vm0, %v3013_v54  ;;  %v3246_v34 = vpack.c.bf16 %v12936_v33, %v12935_v20  ;;  %v3030_v35 = vmax.f32 %v9634_v55, 0.0  ;;  %v3031_v62 = vmax.f32 %v9638_v12, 0.0  ;;  %v3032_v31 = vmax.f32 %v9642_v46, 0.0  ;;  %v3695_v55 = vpop.permute.xlu0 %3694  ;;  %v12937_v5 = vld [vmem:[#allocation7_spill] sm:$0xff] }
 0x3f4   :  { %3078 = vst.msk [vmem:[#allocation2 + $0x129] sm:$0xff] %vm15_vm0, %v3014_v51  ;;  %3079 = vst.msk [vmem:[#allocation2 + $0x139] sm:$0xff] %vm15_vm0, %v3015_v45  ;;  %v3033_v18 = vmax.f32 %v9646_v6, 0.0  ;;  %v3034_v27 = vmax.f32 %v9650_v19, 0.0  ;;  %v3035_v41 = vmax.f32 %v9654_v15, 0.0  ;;  %v3418_v12 = vsel %vm543_vm4, %v3416_v56, %v3417_v48  ;;  %v12938_v46 = vld [vmem:[#allocation8_spill] sm:$0xff] }
 0x3f5   :  { %3080 = vst.msk [vmem:[#allocation2 + $0x141] sm:$0xff] %vm15_vm0, %v3016_v24  ;;  %3081 = vst.msk [vmem:[#allocation2 + $0x151] sm:$0xff] %vm15_vm0, %v3017_v50  ;;  %v3420_v29 = vsel %vm543_vm4, %v3417_v48, %v3419_v8  ;;  %v3036_v9 = vmax.f32 %v12937_v5, 0.0  ;;  %v3037_v7 = vmax.f32 %v12938_v46, 0.0  ;;  %v9828_v6 = vld [vmem:[#allocation2 + $0x18] sm:$0xff]  ;;  %v12940_v58 = vld [vmem:[#allocation9_spill] sm:$0xff] }
 0x3f6   :  { %3082 = vst.msk [vmem:[#allocation2 + $0x159] sm:$0xff] %vm15_vm0, %v3018_v22  ;;  %3083 = vst.msk [vmem:[#allocation2 + $0x169] sm:$0xff] %vm15_vm0, %v3019_v4  ;;  %v9830_v19 = vld [vmem:[#allocation2 + $0x28] sm:$0x3]  ;;  %v9835_v15 = vpack.c.bf16 %v3420_v29, %v3418_v12  ;;  %v3038_v47 = vmax.f32 %v12940_v58, 0.0  ;;  %v12941_v36 = vld [vmem:[#allocation10_spill] sm:$0xff] }
 0x3f7   :  { %3084 = vst.msk [vmem:[#allocation2 + $0x171] sm:$0xff] %vm15_vm0, %v3020_v13  ;;  %3085 = vst.msk [vmem:[#allocation2 + $0x181] sm:$0xff] %vm15_vm0, %v3021_v1  ;;  %v3039_v57 = vmax.f32 %v12941_v36, 0.0  ;;  %v12942_v16 = vld [vmem:[#allocation11_spill] sm:$0xff]  ;;  %v9840_v17 = vld [vmem:[#allocation2 + $0x20] sm:$0xff]  ;;  %v3041_v10 = vmax.f32 %v9678_v52, 0.0 }
 0x3f8   :  { %3086 = vst.msk [vmem:[#allocation2 + $0x189] sm:$0xff] %vm15_vm0, %v3022_v53  ;;  %3087 = vst.msk [vmem:[#allocation2 + $0x1c9] sm:$0xff] %vm15_vm0, %v3023_v32  ;;  %v3040_v2 = vmax.f32 %v12942_v16, 0.0  ;;  %v9846_v37 = vld [vmem:[#allocation2 + $0x60] sm:$0xff]  ;;  %v9848_v11 = vld [vmem:[#allocation2 + $0x68] sm:$0xff]  ;;  %v3042_v21 = vmax.f32 %v9682_v63, 0.0  ;;  %3698 = vrot.lane.b32.xlu0 %v9835_v15, %s6908_s27 }
 0x3f9   :  { %3088 = vst.msk [vmem:[#allocation2 + $0x1d1] sm:$0xff] %vm15_vm0, %v3024_v38  ;;  %3089 = vst.msk [vmem:[#allocation2 + $0x1e1] sm:$0xff] %vm15_vm0, %v3025_v14  ;;  %v3043_v30 = vmax.f32 %v9686_v43, 0.0  ;;  %v3044_v49 = vmax.f32 %v9690_v39, 0.0  ;;  %v9856_v54 = vld [vmem:[#allocation2 + $0x70] sm:$0x3] }
 0x3fa   :  { %3090 = vst.msk [vmem:[#allocation2 + $0x1e9] sm:$0xff] %vm15_vm0, %v3026_v23  ;;  %3091 = vst.msk [vmem:[#allocation2 + $0x1f9] sm:$0xff] %vm15_vm0, %v3027_v26  ;;  %v3045_v51 = vmax.f32 %v9694_v61, 0.0  ;;  %v3046_v45 = vmax.f32 %v9698_v3, 0.0  ;;  %v3047_v52 = vmax.f32 %v9702_v44, 0.0  ;;  %v12943_v63 = vld [vmem:[#allocation13_spill] sm:$0xff] }
 0x3fb   :  { %3092 = vst.msk [vmem:[#allocation2 + $0x201] sm:$0xff] %vm15_vm0, %v3028_v42  ;;  %3093 = vst.msk [vmem:[#allocation2 + $0x211] sm:$0xff] %vm15_vm0, %v3029_v28  ;;  %v3048_v24 = vmax.f32 %v12943_v63, 0.0  ;;  %v9867_v43 = vld [vmem:[#allocation2 + $0x48] sm:$0xff]  ;;  %v9869_v39 = vld [vmem:[#allocation2 + $0x50] sm:$0xff]  ;;  %v3051_v3 = vmax.f32 %v9718_v40, 0.0 }
 0x3fc   :  { %3278 = vst.msk [vmem:[#allocation3] sm:$0xff] %vm15_vm0, %v3246_v34  ;;  %3094 = vst.msk [vmem:[#allocation2 + $0x219] sm:$0xff] %vm15_vm0, %v3030_v35  ;;  %v12944_v50 = vld [vmem:[#allocation14_spill] sm:$0xff]  ;;  %v12945_v4 = vld [vmem:[#allocation16_spill] sm:$0xff]  ;;  %v3054_v53 = vmax.f32 %v9726_v0, 0.0  ;;  %v3411_v32 = vrot.slane %v9828_v6, 1 }
 0x3fd   :  { %3095 = vst.msk [vmem:[#allocation2 + $0x229] sm:$0xff] %vm15_vm0, %v3031_v62  ;;  %12939 = vst [vmem:[#allocation29_spill] sm:$0xff] %v9835_v15  ;;  %v3049_v22 = vmax.f32 %v12944_v50, 0.0  ;;  %v3050_v61 = vmax.f32 %v12945_v4, 0.0  ;;  %v12946_v13 = vld [vmem:[#allocation25_spill] sm:$0xff]  ;;  %v3412_v38 = vrot.slane %v9840_v17, 1 }
 0x3fe   :  { %3790 = vst.msk [vmem:[#allocation3] sm:$0xff] %vm928_vm6, %v3695_v55  ;;  %v3053_v44 = vmax.f32 %v12946_v13, 0.0  ;;  %v9879_v1 = vld [vmem:[#allocation2 + $0x58] sm:$0x3]  ;;  %v3414_v40 = vrot.slane %v9830_v19, 1  ;;  %v9889_v14 = vld [vmem:[#allocation2 + $0x90] sm:$0xff] }
 0x3ff   :  { %3096 = vst.msk [vmem:[#allocation2 + $0x231] sm:$0xff] %vm15_vm0, %v3032_v31  ;;  %3097 = vst.msk [vmem:[#allocation2 + $0x241] sm:$0xff] %vm15_vm0, %v3033_v18  ;;  %v3426_v0 = vrot.slane %v9846_v37, 1  ;;  %v3427_v23 = vrot.slane %v9848_v11, 1  ;;  %v3429_v26 = vrot.slane %v9856_v54, 1  ;;  %v3421_v56 = vrot.slane %v9867_v43, 1 }
 0x400   :  { %3098 = vst.msk [vmem:[#allocation2 + $0x249] sm:$0xff] %vm15_vm0, %v3034_v27  ;;  %3099 = vst.msk [vmem:[#allocation2 + $0x259] sm:$0xff] %vm15_vm0, %v3035_v41  ;;  %v9899_v42 = vld [vmem:[#allocation2 + $0x98] sm:$0xff]  ;;  %v3413_v28 = vsel %vm543_vm4, %v3411_v32, %v3412_v38  ;;  %v3415_v20 = vsel %vm543_vm4, %v3412_v38, %v3414_v40  ;;  %v3422_v33 = vrot.slane %v9869_v39, 1  ;;  %v3424_v34 = vrot.slane %v9879_v1, 1  ;;  %v9910_v35 = vld [vmem:[#allocation2 + $0x80] sm:$0xff] }
 0x401   :  { %3100 = vst.msk [vmem:[#allocation2 + $0x261] sm:$0xff] %vm15_vm0, %v3036_v9  ;;  %3101 = vst.msk [vmem:[#allocation2 + $0x271] sm:$0xff] %vm15_vm0, %v3037_v7  ;;  %v9906_v48 = vld [vmem:[#allocation2 + $0xa0] sm:$0x3]  ;;  %v9908_v8 = vld [vmem:[#allocation2 + $0x78] sm:$0xff]  ;;  %v9912_v62 = vpack.c.bf16 %v3415_v20, %v3413_v28  ;;  %v3428_v31 = vsel %vm543_vm4, %v3426_v0, %v3427_v23  ;;  %v3430_v18 = vsel %vm543_vm4, %v3427_v23, %v3429_v26  ;;  %v3436_v27 = vrot.slane %v9889_v14, 1 }
 0x402   :  { %3102 = vst.msk [vmem:[#allocation2 + $0x279] sm:$0xff] %vm15_vm0, %v3038_v47  ;;  %3103 = vst.msk [vmem:[#allocation2 + $0x289] sm:$0xff] %vm15_vm0, %v3039_v57  ;;  %v9917_v41 = vld [vmem:[#allocation2 + $0x88] sm:$0x3]  ;;  %v9919_v55 = vld [vmem:[#allocation2 + $0xc0] sm:$0xff]  ;;  %v9923_v29 = vpack.c.bf16 %v3430_v18, %v3428_v31  ;;  %v3423_v5 = vsel %vm543_vm4, %v3421_v56, %v3422_v33  ;;  %v3425_v9 = vsel %vm543_vm4, %v3422_v33, %v3424_v34  ;;  %v3437_v46 = vrot.slane %v9899_v42, 1 }
 0x403   :  { %3104 = vst.msk [vmem:[#allocation2 + $0x291] sm:$0xff] %vm15_vm0, %v3040_v2  ;;  %3105 = vst.msk [vmem:[#allocation2 + $0x2a1] sm:$0xff] %vm15_vm0, %v3041_v10  ;;  %v9921_v12 = vld [vmem:[#allocation2 + $0xc8] sm:$0xff]  ;;  %v9928_v7 = vld [vmem:[#allocation2 + $0xd0] sm:$0x3]  ;;  %3696 = vrot.lane.b32.xlu1 %v9912_v62, %s6908_s27  ;;  %v9934_v47 = vpack.c.bf16 %v3425_v9, %v3423_v5  ;;  %v3439_v36 = vrot.slane %v9906_v48, 1 }
 0x404   :  { %3106 = vst.msk [vmem:[#allocation2 + $0x2a9] sm:$0xff] %vm15_vm0, %v3042_v21  ;;  %3107 = vst.msk [vmem:[#allocation2 + $0x2b9] sm:$0xff] %vm15_vm0, %v3043_v30  ;;  %v9930_v58 = vld [vmem:[#allocation2 + $0xa8] sm:$0xff]  ;;  %v3431_v57 = vrot.slane %v9908_v8, 1  ;;  %v3432_v16 = vrot.slane %v9910_v35, 1  ;;  %v9939_v2 = vld [vmem:[#allocation2 + $0xb0] sm:$0xff]  ;;  %3702 = vrot.lane.b32.xlu0 %v9923_v29, %s6908_s27  ;;  %v3438_v10 = vsel %vm543_vm4, %v3436_v27, %v3437_v46 }
 0x405   :  { %3108 = vst.msk [vmem:[#allocation2 + $0x2c1] sm:$0xff] %vm15_vm0, %v3044_v49  ;;  %3109 = vst.msk [vmem:[#allocation2 + $0x2d1] sm:$0xff] %vm15_vm0, %v3045_v51  ;;  %v3434_v21 = vrot.slane %v9917_v41, 1  ;;  %v3446_v30 = vrot.slane %v9919_v55, 1  ;;  %v3447_v49 = vrot.slane %v9921_v12, 1  ;;  %v3441_v50 = vrot.slane %v9930_v58, 1 }
 0x406   :  { %3110 = vst.msk [vmem:[#allocation2 + $0x2d9] sm:$0xff] %vm15_vm0, %v3046_v45  ;;  %3111 = vst.msk [vmem:[#allocation2 + $0x2e9] sm:$0xff] %vm15_vm0, %v3047_v52  ;;  %v9947_v51 = vld [vmem:[#allocation2 + $0xb8] sm:$0x3]  ;;  %v9949_v45 = vld [vmem:[#allocation2 + $0xf0] sm:$0xff]  ;;  %v3440_v52 = vsel %vm543_vm4, %v3437_v46, %v3439_v36  ;;  %v3433_v63 = vsel %vm543_vm4, %v3431_v57, %v3432_v16 }
 0x407   :  { %3112 = vst.msk [vmem:[#allocation2 + $0x2f1] sm:$0xff] %vm15_vm0, %v3048_v24  ;;  %3113 = vst.msk [vmem:[#allocation2 + $0x301] sm:$0xff] %vm15_vm0, %v3049_v22  ;;  %v3449_v24 = vrot.slane %v9928_v7, 1  ;;  %v9955_v22 = vld [vmem:[#allocation2 + $0xf8] sm:$0xff]  ;;  %v9957_v4 = vld [vmem:[#allocation2 + $0x100] sm:$0x3]  ;;  %v3448_v13 = vsel %vm543_vm4, %v3446_v30, %v3447_v49  ;;  %3700 = vrot.lane.b32.xlu1 %v9934_v47, %s6908_s27 }
 0x408   :  { %3114 = vst.msk [vmem:[#allocation2 + $0x309] sm:$0xff] %vm15_vm0, %v3050_v61  ;;  %3115 = vst.msk [vmem:[#allocation2 + $0x319] sm:$0xff] %vm15_vm0, %v3051_v3  ;;  %v9959_v61 = vpack.c.bf16 %v3440_v52, %v3438_v10  ;;  %v3435_v3 = vsel %vm543_vm4, %v3432_v16, %v3434_v21  ;;  %v9966_v32 = vld [vmem:[#allocation2 + $0xe0] sm:$0xff]  ;;  %v9968_v38 = vld [vmem:[#allocation2 + $0xe8] sm:$0x3]  ;;  %v3444_v23 = vrot.slane %v9947_v51, 1 }
 0x409   :  { %3117 = vst.msk [vmem:[#allocation2 + $0x331] sm:$0xff] %vm15_vm0, %v3053_v44  ;;  %3118 = vst.msk [vmem:[#allocation2 + $0x339] sm:$0xff] %vm15_vm0, %v3054_v53  ;;  %v3442_v44 = vrot.slane %v9939_v2, 1  ;;  %v9964_v53 = vld [vmem:[#allocation2 + $0xd8] sm:$0xff]  ;;  %v9972_v40 = vpack.c.bf16 %v3435_v3, %v3433_v63  ;;  %v3450_v0 = vsel %vm543_vm4, %v3447_v49, %v3449_v24  ;;  %v3456_v26 = vrot.slane %v9949_v45, 1  ;;  %v9977_v56 = vld [vmem:[#allocation2 + $0x120] sm:$0xff] }
 0x40a   :  { %12947 = vst [vmem:[#allocation34_spill] sm:$0xff] %v9912_v62  ;;  %12948 = vst [vmem:[#allocation37_spill] sm:$0xff] %v9923_v29  ;;  %3706 = vrot.lane.b32.xlu0 %v9959_v61, %s6908_s27  ;;  %v9981_v28 = vpack.c.bf16 %v3450_v0, %v3448_v13  ;;  %v3457_v33 = vrot.slane %v9955_v22, 1  ;;  %v3459_v34 = vrot.slane %v9957_v4, 1  ;;  %v9986_v31 = vld [vmem:[#allocation2 + $0x128] sm:$0xff]  ;;  %v3451_v5 = vrot.slane %v9964_v53, 1 }
 0x40b   :  { %12949 = vst [vmem:[#allocation40_spill] sm:$0xff] %v9928_v7  ;;  %12950 = vst [vmem:[#allocation44_spill] sm:$0xff] %v9934_v47  ;;  %v3443_v20 = vsel %vm543_vm4, %v3441_v50, %v3442_v44  ;;  %v9988_v18 = vld [vmem:[#allocation2 + $0x108] sm:$0xff]  ;;  %v3445_v27 = vsel %vm543_vm4, %v3442_v44, %v3444_v23  ;;  %v3452_v9 = vrot.slane %v9966_v32, 1  ;;  %v3454_v46 = vrot.slane %v9968_v38, 1  ;;  %v9996_v57 = vld [vmem:[#allocation2 + $0x110] sm:$0xff]  ;;  %3704 = vrot.lane.b32.xlu1 %v9972_v40, %s6908_s27 }
 0x40c   :  { %12951 = vst [vmem:[#allocation46_spill] sm:$0xff] %v9957_v4  ;;  %12952 = vst [vmem:[#allocation50_spill] sm:$0xff] %v9959_v61  ;;  %v9994_v36 = vld [vmem:[#allocation2 + $0x130] sm:$0x3]  ;;  %v9998_v16 = vpack.c.bf16 %v3445_v27, %v3443_v20  ;;  %v3458_v10 = vsel %vm543_vm4, %v3456_v26, %v3457_v33  ;;  %v3460_v21 = vsel %vm543_vm4, %v3457_v33, %v3459_v34  ;;  %v3466_v30 = vrot.slane %v9977_v56, 1  ;;  %v10007_v63 = vld [vmem:[#allocation2 + $0x158] sm:$0xff] }
 0x40d   :  { %12953 = vst [vmem:[#allocation52_spill] sm:$0xff] %v9968_v38  ;;  %12954 = vst [vmem:[#allocation17_spill] sm:$0xff] %v9972_v40  ;;  %v10003_v49 = vld [vmem:[#allocation2 + $0x118] sm:$0x3]  ;;  %v10005_v52 = vld [vmem:[#allocation2 + $0x150] sm:$0xff]  ;;  %v10011_v24 = vpack.c.bf16 %v3460_v21, %v3458_v10  ;;  %v3453_v50 = vsel %vm543_vm4, %v3451_v5, %v3452_v9  ;;  %v3455_v3 = vsel %vm543_vm4, %v3452_v9, %v3454_v46  ;;  %v3467_v13 = vrot.slane %v9986_v31, 1 }
 0x40e   :  { %12955 = vst [vmem:[#allocation55_spill] sm:$0xff] %v9981_v28  ;;  %12956 = vst [vmem:[#allocation19_spill] sm:$0xff] %v9994_v36  ;;  %v10016_v44 = vld [vmem:[#allocation2 + $0x160] sm:$0x3]  ;;  %v10018_v0 = vld [vmem:[#allocation2 + $0x138] sm:$0xff]  ;;  %3710 = vrot.lane.b32.xlu0 %v9981_v28, %s6908_s27  ;;  %v10022_v23 = vpack.c.bf16 %v3455_v3, %v3453_v50  ;;  %v3469_v26 = vrot.slane %v9994_v36, 1 }
 0x40f   :  { %12957 = vst [vmem:[#allocation60_spill] sm:$0xff] %v9998_v16  ;;  %12958 = vst [vmem:[#allocation63_spill] sm:$0xff] %v10003_v49  ;;  %v3461_v20 = vrot.slane %v9988_v18, 1  ;;  %v3462_v33 = vrot.slane %v9996_v57, 1  ;;  %v10027_v34 = vld [vmem:[#allocation2 + $0x140] sm:$0xff]  ;;  %v3468_v27 = vsel %vm543_vm4, %v3466_v30, %v3467_v13  ;;  %v3464_v5 = vrot.slane %v10003_v49, 1  ;;  %3708 = vrot.lane.b32.xlu1 %v9998_v16, %s6908_s27 }
 0x410   :  { %12959 = vst [vmem:[#allocation64_spill] sm:$0xff] %v10011_v24  ;;  %12960 = vst [vmem:[#allocation67_spill] sm:$0xff] %v10016_v44  ;;  %v3476_v9 = vrot.slane %v10005_v52, 1  ;;  %v3477_v46 = vrot.slane %v10007_v63, 1  ;;  %v10033_v10 = vld [vmem:[#allocation2 + $0x148] sm:$0x3]  ;;  %v3470_v50 = vsel %vm543_vm4, %v3467_v13, %v3469_v26 }
 0x411   :  { %12961 = vst [vmem:[#allocation68_spill] sm:$0xff] %v10022_v23  ;;  %12962 = vst [vmem:[#allocation69_spill] sm:$0xff] %v10027_v34  ;;  %v10035_v21 = vld [vmem:[#allocation2 + $0x168] sm:$0xff]  ;;  %v3463_v3 = vsel %vm543_vm4, %v3461_v20, %v3462_v33  ;;  %v3479_v28 = vrot.slane %v10016_v44, 1  ;;  %v3471_v61 = vrot.slane %v10018_v0, 1  ;;  %v10041_v40 = vld [vmem:[#allocation2 + $0x170] sm:$0xff]  ;;  %v10047_v29 = vpack.c.bf16 %v3470_v50, %v3468_v27 }
 0x412   :  { %12963 = vst [vmem:[#allocation70_spill] sm:$0xff] %v10033_v10  ;;  %12964 = vst [vmem:[#allocation71_spill] sm:$0xff] %v10035_v21  ;;  %v10043_v30 = vld [vmem:[#allocation2 + $0x178] sm:$0x3]  ;;  %v3465_v47 = vsel %vm543_vm4, %v3462_v33, %v3464_v5  ;;  %v3478_v62 = vsel %vm543_vm4, %v3476_v9, %v3477_v46  ;;  %v3472_v13 = vrot.slane %v10027_v34, 1  ;;  %v10052_v26 = vld [vmem:[#allocation2 + $0x1e0] sm:$0xff]  ;;  %3714 = vrot.lane.b32.xlu0 %v10011_v24, %s6908_s27 }
 0x413   :  { %12965 = vst [vmem:[#allocation72_spill] sm:$0xff] %v10041_v40  ;;  %12966 = vst [vmem:[#allocation73_spill] sm:$0xff] %v10043_v30  ;;  %v10054_v20 = vld [vmem:[#allocation2 + $0x1e8] sm:$0xff]  ;;  %v10056_v44 = vld [vmem:[#allocation2 + $0x1f0] sm:$0x3]  ;;  %v10060_v15 = vpack.c.bf16 %v3465_v47, %v3463_v3  ;;  %v3480_v27 = vsel %vm543_vm4, %v3477_v46, %v3479_v28  ;;  %v3474_v50 = vrot.slane %v10033_v10, 1  ;;  %3712 = vrot.lane.b32.xlu1 %v10022_v23, %s6908_s27 }
 0x414   :  { %12967 = vst [vmem:[#allocation20_spill] sm:$0xff] %v10047_v29  ;;  %12968 = vst [vmem:[#allocation23_spill] sm:$0xff] %v10052_v26  ;;  %v3481_v33 = vrot.slane %v10035_v21, 1  ;;  %v10065_v5 = vld [vmem:[#allocation2 + $0x1c8] sm:$0xff]  ;;  %v10067_v9 = vpack.c.bf16 %v3480_v27, %v3478_v62  ;;  %v3473_v16 = vsel %vm543_vm4, %v3471_v61, %v3472_v13  ;;  %v3482_v36 = vrot.slane %v10041_v40, 1  ;;  %v10072_v4 = vld [vmem:[#allocation2 + $0x1d0] sm:$0xff] }
 0x415   :  { %12969 = vst [vmem:[#allocation27_spill] sm:$0xff] %v10054_v20  ;;  %12970 = vst [vmem:[#allocation22_spill] sm:$0xff] %v10056_v44  ;;  %v3484_v49 = vrot.slane %v10043_v30, 1  ;;  %v10074_v47 = vld [vmem:[#allocation2 + $0x1d8] sm:$0x3]  ;;  %v3475_v28 = vsel %vm543_vm4, %v3472_v13, %v3474_v50  ;;  %v3496_v46 = vrot.slane %v10052_v26, 1 }
 0x416   :  { %12971 = vst [vmem:[#allocation26_spill] sm:$0xff] %v10060_v15  ;;  %12972 = vst [vmem:[#allocation30_spill] sm:$0xff] %v10065_v5  ;;  %v3497_v3 = vrot.slane %v10054_v20, 1  ;;  %v3499_v24 = vrot.slane %v10056_v44, 1  ;;  %v10080_v62 = vld [vmem:[#allocation2 + $0x210] sm:$0xff]  ;;  %v10082_v27 = vld [vmem:[#allocation2 + $0x218] sm:$0xff]  ;;  %v10086_v61 = vpack.c.bf16 %v3475_v28, %v3473_v16  ;;  %v3483_v30 = vsel %vm543_vm4, %v3481_v33, %v3482_v36  ;;  %3718 = vrot.lane.b32.xlu0 %v10047_v29, %s6908_s27 }
 0x417   :  { %12973 = vst [vmem:[#allocation32_spill] sm:$0xff] %v10067_v9  ;;  %12974 = vst [vmem:[#allocation12_spill] sm:$0xff] %v10072_v4  ;;  %v3485_v10 = vsel %vm543_vm4, %v3482_v36, %v3484_v49  ;;  %v3491_v13 = vrot.slane %v10065_v5, 1  ;;  %v10091_v50 = vld [vmem:[#allocation2 + $0x220] sm:$0x3]  ;;  %v10093_v38 = vld [vmem:[#allocation2 + $0x1f8] sm:$0xff]  ;;  %3716 = vrot.lane.b32.xlu1 %v10060_v15, %s6908_s27 }
 0x418   :  { %12975 = vst [vmem:[#allocation31_spill] sm:$0xff] %v10074_v47  ;;  %12976 = vst [vmem:[#allocation35_spill] sm:$0xff] %v10080_v62  ;;  %v10095_v44 = vld [vmem:[#allocation2 + $0x200] sm:$0xff]  ;;  %v10099_v7 = vpack.c.bf16 %v3485_v10, %v3483_v30  ;;  %v3498_v16 = vsel %vm543_vm4, %v3496_v46, %v3497_v3  ;;  %v3500_v28 = vsel %vm543_vm4, %v3497_v3, %v3499_v24  ;;  %v3492_v33 = vrot.slane %v10072_v4, 1  ;;  %v10104_v36 = vld [vmem:[#allocation2 + $0x208] sm:$0x3] }
 0x419   :  { %12977 = vst [vmem:[#allocation38_spill] sm:$0xff] %v10082_v27  ;;  %12978 = vst [vmem:[#allocation33_spill] sm:$0xff] %v10086_v61  ;;  %v10106_v49 = vld [vmem:[#allocation2 + $0x240] sm:$0xff]  ;;  %v10108_v23 = vpack.c.bf16 %v3500_v28, %v3498_v16  ;;  %v3494_v5 = vrot.slane %v10074_v47, 1  ;;  %v3506_v20 = vrot.slane %v10080_v62, 1  ;;  %v3507_v29 = vrot.slane %v10082_v27, 1 }
 0x41a   :  { %12979 = vst [vmem:[#allocation36_spill] sm:$0xff] %v10091_v50  ;;  %12980 = vst [vmem:[#allocation41_spill] sm:$0xff] %v10093_v38  ;;  %v10113_v10 = vld [vmem:[#allocation2 + $0x248] sm:$0xff]  ;;  %v3493_v30 = vsel %vm543_vm4, %v3491_v13, %v3492_v33  ;;  %v3509_v24 = vrot.slane %v10091_v50, 1  ;;  %v3501_v46 = vrot.slane %v10093_v38, 1  ;;  %v3502_v3 = vrot.slane %v10095_v44, 1  ;;  %3722 = vrot.lane.b32.xlu0 %v10067_v9, %s6908_s27 }
 0x41b   :  { %12981 = vst [vmem:[#allocation43_spill] sm:$0xff] %v10095_v44  ;;  %12982 = vst [vmem:[#allocation39_spill] sm:$0xff] %v10099_v7  ;;  %v10119_v4 = vld [vmem:[#allocation2 + $0x250] sm:$0x3]  ;;  %v10121_v16 = vld [vmem:[#allocation2 + $0x228] sm:$0xff]  ;;  %v3495_v28 = vsel %vm543_vm4, %v3492_v33, %v3494_v5  ;;  %v3508_v47 = vsel %vm543_vm4, %v3506_v20, %v3507_v29  ;;  %v3504_v27 = vrot.slane %v10104_v36, 1  ;;  %3720 = vrot.lane.b32.xlu1 %v10086_v61, %s6908_s27 }
 0x41c   :  { %12983 = vst [vmem:[#allocation42_spill] sm:$0xff] %v10104_v36  ;;  %12984 = vst [vmem:[#allocation49_spill] sm:$0xff] %v10106_v49  ;;  %v3516_v13 = vrot.slane %v10106_v49, 1  ;;  %v10129_v50 = vld [vmem:[#allocation2 + $0x230] sm:$0xff]  ;;  %v10131_v38 = vld [vmem:[#allocation2 + $0x238] sm:$0x3]  ;;  %v10135_v44 = vpack.c.bf16 %v3495_v28, %v3493_v30  ;;  %v3510_v62 = vsel %vm543_vm4, %v3507_v29, %v3509_v24  ;;  %v3503_v15 = vsel %vm543_vm4, %v3501_v46, %v3502_v3 }
 0x41d   :  { %12985 = vst [vmem:[#allocation53_spill] sm:$0xff] %v10108_v23  ;;  %12986 = vst [vmem:[#allocation48_spill] sm:$0xff] %v10113_v10  ;;  %v3517_v5 = vrot.slane %v10113_v10, 1  ;;  %v10140_v20 = vld [vmem:[#allocation2 + $0x270] sm:$0xff]  ;;  %v10142_v33 = vld [vmem:[#allocation2 + $0x278] sm:$0xff]  ;;  %v10146_v49 = vpack.c.bf16 %v3510_v62, %v3508_v47  ;;  %v3505_v26 = vsel %vm543_vm4, %v3502_v3, %v3504_v27  ;;  %v3519_v9 = vrot.slane %v10119_v4, 1 }
 0x41e   :  { %12987 = vst [vmem:[#allocation51_spill] sm:$0xff] %v10119_v4  ;;  %12988 = vst [vmem:[#allocation56_spill] sm:$0xff] %v10121_v16  ;;  %v10144_v36 = vld [vmem:[#allocation2 + $0x280] sm:$0x3]  ;;  %v3511_v30 = vrot.slane %v10121_v16, 1  ;;  %v10151_v28 = vld [vmem:[#allocation2 + $0x258] sm:$0xff]  ;;  %v10153_v29 = vpack.c.bf16 %v3505_v26, %v3503_v15 }
 0x41f   :  { %12989 = vst [vmem:[#allocation58_spill] sm:$0xff] %v10129_v50  ;;  %12990 = vst [vmem:[#allocation54_spill] sm:$0xff] %v10131_v38  ;;  %v3518_v24 = vsel %vm543_vm4, %v3516_v13, %v3517_v5  ;;  %v3512_v46 = vrot.slane %v10129_v50, 1  ;;  %v3514_v10 = vrot.slane %v10131_v38, 1  ;;  %v10158_v40 = vld [vmem:[#allocation2 + $0x260] sm:$0xff]  ;;  %v3520_v62 = vsel %vm543_vm4, %v3517_v5, %v3519_v9  ;;  %v10170_v13 = vld [vmem:[#allocation2 + $0x2a8] sm:$0xff]  ;;  %3724 = vrot.lane.b32.xlu1 %v10099_v7, %s6908_s27 }
 0x420   :  { %12991 = vst [vmem:[#allocation57_spill] sm:$0xff] %v10135_v44  ;;  %12992 = vst [vmem:[#allocation61_spill] sm:$0xff] %v10140_v20  ;;  %v10160_v47 = vld [vmem:[#allocation2 + $0x268] sm:$0x3]  ;;  %v3526_v27 = vrot.slane %v10140_v20, 1  ;;  %v3527_v15 = vrot.slane %v10142_v33, 1  ;;  %v10176_v16 = vpack.c.bf16 %v3520_v62, %v3518_v24 }
 0x421   :  { %12993 = vst [vmem:[#allocation59_spill] sm:$0xff] %v10142_v33  ;;  %12994 = vst [vmem:[#allocation21_spill] sm:$0xff] %v10144_v36  ;;  %v3529_v26 = vrot.slane %v10144_v36, 1  ;;  %v10168_v3 = vld [vmem:[#allocation2 + $0x2a0] sm:$0xff]  ;;  %v12998_v4 = vld [vmem:[#allocation66_spill] sm:$0xff]  ;;  %v3513_v61 = vsel %vm543_vm4, %v3511_v30, %v3512_v46  ;;  %v3515_v9 = vsel %vm543_vm4, %v3512_v46, %v3514_v10  ;;  %v3521_v5 = vrot.slane %v10151_v28, 1 }
 0x422   :  { %12995 = vst [vmem:[#allocation24_spill] sm:$0xff] %v10146_v49  ;;  %12996 = vst [vmem:[#allocation28_spill] sm:$0xff] %v10153_v29  ;;  %v12999_v38 = vld [vmem:[#allocation65_spill] sm:$0xff]  ;;  %v10181_v33 = vld [vmem:[#allocation2 + $0x2b0] sm:$0x3]  ;;  %v10187_v21 = vpack.c.bf16 %v3515_v9, %v3513_v61  ;;  %v3528_v34 = vsel %vm543_vm4, %v3526_v27, %v3527_v15  ;;  %v3524_v10 = vrot.slane %v10160_v47, 1 }
 0x423   :  { %12997 = vst [vmem:[#allocation4_spill] sm:$0xff] %v10160_v47  ;;  %v13000_v50 = vpack.c.bf16 %v12998_v4, %v12999_v38  ;;  %13001 = vst [vmem:[#allocation6_spill] sm:$0xff] %v10176_v16  ;;  %v10183_v36 = vld [vmem:[#allocation2 + $0x288] sm:$0xff]  ;;  %v10185_v20 = vld [vmem:[#allocation2 + $0x290] sm:$0xff]  ;;  %v3530_v4 = vsel %vm543_vm4, %v3527_v15, %v3529_v26  ;;  %v3522_v38 = vrot.slane %v10158_v40, 1  ;;  %v3536_v24 = vrot.slane %v10168_v3, 1  ;;  %3728 = vrot.lane.b32.xlu1 %v10135_v44, %s6908_s27 }
 0x424   :  { %13002 = vst [vmem:[#allocation5_spill] sm:$0xff] %v10181_v33  ;;  %13003 = vst [vmem:[#allocation45_spill] sm:$0xff] %v10185_v20  ;;  %v10194_v30 = vpack.c.bf16 %v3530_v4, %v3528_v34  ;;  %v3537_v46 = vrot.slane %v10170_v13, 1  ;;  %v3539_v62 = vrot.slane %v10181_v33, 1  ;;  %v3531_v27 = vrot.slane %v10183_v36, 1 }
 0x425   :  { %3726 = vrot.lane.b32.xlu0 %v13000_v50, %s6908_s27  ;;  %13004 = vst [vmem:[#allocation47_spill] sm:$0xff] %v10187_v21  ;;  %v10192_v50 = vld [vmem:[#allocation2 + $0x298] sm:$0x3]  ;;  %v3523_v61 = vsel %vm543_vm4, %v3521_v5, %v3522_v38  ;;  %v3532_v15 = vrot.slane %v10185_v20, 1  ;;  %v3525_v34 = vsel %vm543_vm4, %v3522_v38, %v3524_v10  ;;  %v3827_v4 = vrot.slane %v9828_v6, 2 }
 0x426   :  { %13005 = vst [vmem:[#allocation7_spill] sm:$0xff] %v10194_v30  ;;  %v3538_v26 = vsel %vm543_vm4, %v3536_v24, %v3537_v46  ;;  %v3534_v9 = vrot.slane %v10192_v50, 1  ;;  %v10211_v7 = vpack.c.bf16 %v3525_v34, %v3523_v61  ;;  %v3540_v5 = vsel %vm543_vm4, %v3537_v46, %v3539_v62  ;;  %v13037_v44 = vld [vmem:[#allocation58_spill] sm:$0xff] }
 0x427   :  { %v3533_v33 = vsel %vm543_vm4, %v3531_v27, %v3532_v15  ;;  %v3828_v47 = vrot.slane %v9840_v17, 2  ;;  %v10216_v20 = vpack.c.bf16 %v3540_v5, %v3538_v26  ;;  %v3830_v38 = vrot.slane %v9830_v19, 2  ;;  %3732 = vrot.lane.b32.xlu1 %v10153_v29, %s6908_s27  ;;  %v13034_v29 = vld [vmem:[#allocation48_spill] sm:$0xff] }
 0x428   :  { %13006 = vst [vmem:[#allocation8_spill] sm:$0xff] %v10211_v7  ;;  %v10222_v10 = vpack.c.bf16 %v9796_v60, %v9786_v59  ;;  %v10231_v61 = vpack.c.bf16 %v9840_v17, %v9828_v6  ;;  %v3832_v62 = vrot.slane %v9786_v59, 2  ;;  %v3833_v27 = vrot.slane %v9796_v60, 2 }
 0x429   :  { %3730 = vrot.lane.b32.xlu0 %v10108_v23, %s6908_s27  ;;  %13007 = vst [vmem:[#allocation9_spill] sm:$0xff] %v10216_v20  ;;  %v3535_v23 = vsel %vm543_vm4, %v3532_v15, %v3534_v9  ;;  %v3829_v46 = vsel %vm961_vm5, %v3827_v4, %v3828_v47  ;;  %v3831_v19 = vsel %vm961_vm5, %v3828_v47, %v3830_v38  ;;  %v3837_v59 = vrot.slane %v9867_v43, 2 }
 0x42a   :  { %v10226_v24 = vpack.c.bf16 %v3535_v23, %v3533_v33  ;;  %3280 = vst.msk [vmem:[#allocation3 + $0x10] sm:$0xff] %vm15_vm0, %v10222_v10  ;;  %v3835_v23 = vrot.slane %v9798_v25, 2  ;;  %v10243_v33 = vpack.c.bf16 %v9869_v39, %v9867_v43  ;;  %v10245_v6 = vpack.c.bf16 %v3831_v19, %v3829_v46  ;;  %3279 = vst.msk [vmem:[#allocation3 + $0x8] sm:$0xff] %vm15_vm0, %v10231_v61 }
 0x42b   :  { %v3838_v17 = vrot.slane %v9869_v39, 2  ;;  %v3840_v47 = vrot.slane %v9879_v1, 2  ;;  %v3834_v15 = vsel %vm961_vm5, %v3832_v62, %v3833_v27  ;;  %v10258_v25 = vpack.c.bf16 %v9848_v11, %v9846_v37  ;;  %3736 = vrot.lane.b32.xlu1 %v10187_v21, %s6908_s27  ;;  %v13031_v21 = vld [vmem:[#allocation43_spill] sm:$0xff] }
 0x42c   :  { %13008 = vst [vmem:[#allocation10_spill] sm:$0xff] %v10226_v24  ;;  %v3836_v60 = vsel %vm961_vm5, %v3833_v27, %v3835_v23  ;;  %3281 = vst.msk [vmem:[#allocation3 + $0x18] sm:$0xff] %vm15_vm0, %v10243_v33  ;;  %v3842_v34 = vrot.slane %v9846_v37, 2  ;;  %v3843_v26 = vrot.slane %v9848_v11, 2  ;;  %v3845_v37 = vrot.slane %v9856_v54, 2 }
 0x42d   :  { %3734 = vrot.lane.b32.xlu0 %v10146_v49, %s6908_s27  ;;  %v10263_v43 = vpack.c.bf16 %v3836_v60, %v3834_v15  ;;  %v3839_v39 = vsel %vm961_vm5, %v3837_v59, %v3838_v17  ;;  %v3841_v1 = vsel %vm961_vm5, %v3838_v17, %v3840_v47  ;;  %3282 = vst.msk [vmem:[#allocation3 + $0x20] sm:$0xff] %vm15_vm0, %v10258_v25  ;;  %v3847_v5 = vrot.slane %v9908_v8, 2 }
 0x42e   :  { %v10270_v9 = vpack.c.bf16 %v3841_v1, %v3839_v39  ;;  %v10277_v4 = vpack.c.bf16 %v9910_v35, %v9908_v8  ;;  %v3844_v38 = vsel %vm961_vm5, %v3842_v34, %v3843_v26  ;;  %v3848_v11 = vrot.slane %v9910_v35, 2  ;;  %v6841_v35 = vld [vmem:[%s12391_s1 + $0x40] sm:$0xff]  }
 0x42f   :  { %v3850_v46 = vrot.slane %v9917_v41, 2  ;;  %v10285_v62 = vpack.c.bf16 %v9899_v42, %v9889_v14  ;;  %v3846_v19 = vsel %vm961_vm5, %v3843_v26, %v3845_v37  ;;  %v3852_v54 = vrot.slane %v9889_v14, 2  ;;  %6743 = vmatprep.subr.bf16.mxu1 %v6841_v35  ;;  %3740 = vrot.lane.b32.xlu1 %v10211_v7, %s6908_s27 }
 0x430   :  { %3283 = vst.msk [vmem:[#allocation3 + $0x28] sm:$0xff] %vm15_vm0, %v10277_v4  ;;  %v3853_v27 = vrot.slane %v9899_v42, 2  ;;  %v3855_v8 = vrot.slane %v9906_v48, 2  ;;  %v10298_v41 = vpack.c.bf16 %v3846_v19, %v3844_v38  ;;  %v3849_v23 = vsel %vm961_vm5, %v3847_v5, %v3848_v11  ;;  %6744 = vmatpush3.bf16.msra.mxu1 %v6841_v35 }
 0x431   :  { %3738 = vrot.lane.b32.xlu0 %v10176_v16, %s6908_s27  ;;  %v3851_v59 = vsel %vm961_vm5, %v3848_v11, %v3850_v46  ;;  %3284 = vst.msk [vmem:[#allocation3 + $0x30] sm:$0xff] %vm15_vm0, %v10285_v62  ;;  %v10306_v14 = vpack.c.bf16 %v9939_v2, %v9930_v58  ;;  %v10316_v47 = vpack.c.bf16 %v9921_v12, %v9919_v55  ;;  %v3857_v39 = vrot.slane %v9930_v58, 2  ;;  %v6842_v58 = vld [vmem:[%s12391_s1 + $0x48] sm:$0xff]   ;;  %v6901_v11 = vld [vmem:[#allocation2 + $0x1b0] sm:$0xff]  ;;  %v6902_v46 = vld [vmem:[#allocation2 + $0x1b8] sm:$0xff] }
 0x432   :  { %v10310_v42 = vpack.c.bf16 %v3851_v59, %v3849_v23  ;;  %v3854_v48 = vsel %vm961_vm5, %v3852_v54, %v3853_v27  ;;  %v3856_v17 = vsel %vm961_vm5, %v3853_v27, %v3855_v8  ;;  %v10324_v60 = vpack.c.bf16 %v9955_v22, %v9949_v45  ;;  %v13017_v54 = vld [vmem:[#allocation71_spill] sm:$0xff]  ;;  %v13018_v27 = vld [vmem:[#allocation72_spill] sm:$0xff]  ;;  %6745 = vmatprep.subr.bf16.mxu1 %v6842_v58 }
 0x433   :  { %13009 = vst [vmem:[#allocation11_spill] sm:$0xff] %v10316_v47  ;;  %v10318_v15 = vpack.c.bf16 %v3856_v17, %v3854_v48  ;;  %3285 = vst.msk [vmem:[#allocation3 + $0x38] sm:$0xff] %vm15_vm0, %v10306_v14  ;;  %v10328_v34 = vpack.c.bf16 %v9966_v32, %v9964_v53  ;;  %v3858_v1 = vrot.slane %v9939_v2, 2  ;;  %v3860_v26 = vrot.slane %v9947_v51, 2  ;;  %v13015_v51 = vld [vmem:[#allocation69_spill] sm:$0xff]  ;;  %v13020_v59 = vld [vmem:[#allocation23_spill] sm:$0xff]  ;;  %3744 = vrot.lane.b32.xlu1 %v10226_v24, %s6908_s27 }
 0x434   :  { %13010 = vst [vmem:[#allocation13_spill] sm:$0xff] %v10324_v60  ;;  %3286 = vst.msk [vmem:[#allocation3 + $0x40] sm:$0xff] %vm15_vm0, %v10316_v47  ;;  %v10337_v37 = vpack.c.bf16 %v9986_v31, %v9977_v56  ;;  %v10341_v5 = vpack.c.bf16 %v9996_v57, %v9988_v18  ;;  %v10354_v2 = vpack.c.bf16 %v10007_v63, %v10005_v52  ;;  %v13021_v48 = vld [vmem:[#allocation27_spill] sm:$0xff]  ;;  %6746 = vmatpush3.bf16.msra.mxu1 %v6842_v58 }
 0x435   :  { %3742 = vrot.lane.b32.xlu0 %v10194_v30, %s6908_s27  ;;  %13011 = vst [vmem:[#allocation14_spill] sm:$0xff] %v10328_v34  ;;  %3288 = vst.msk [vmem:[#allocation3 + $0x50] sm:$0xff] %vm15_vm0, %v10324_v60  ;;  %v10358_v38 = vpack.c.bf16 %v13015_v51, %v10018_v0  ;;  %v3262_v19 = vpack.c.bf16 %v6902_v46, %v6901_v11  ;;  %v10362_v8 = vpack.c.bf16 %v13018_v27, %v13017_v54  ;;  %v13023_v11 = vld [vmem:[#allocation30_spill] sm:$0xff]  ;;  %v13024_v46 = vld [vmem:[#allocation12_spill] sm:$0xff] }
 0x436   :  { %13012 = vst [vmem:[#allocation16_spill] sm:$0xff] %v10337_v37  ;;  %13013 = vst [vmem:[#allocation25_spill] sm:$0xff] %v10341_v5  ;;  %v3859_v35 = vsel %vm961_vm5, %v3857_v39, %v3858_v1  ;;  %v3861_v23 = vsel %vm961_vm5, %v3858_v1, %v3860_v26  ;;  %v10374_v17 = vpack.c.bf16 %v13021_v48, %v13020_v59  ;;  %v3862_v39 = vrot.slane %v9919_v55, 2  ;;  %v13026_v26 = vld [vmem:[#allocation40_spill] sm:$0xff]  ;;  %v13033_v55 = vld [vmem:[#allocation49_spill] sm:$0xff] }
 0x437   :  { %3287 = vst.msk [vmem:[#allocation3 + $0x48] sm:$0xff] %vm15_vm0, %v10328_v34  ;;  %13014 = vst [vmem:[#allocation66_spill] sm:$0xff] %v10354_v2  ;;  %v10378_v30 = vpack.c.bf16 %v13024_v46, %v13023_v11  ;;  %v10380_v7 = vpack.c.bf16 %v3861_v23, %v3859_v35  ;;  %v3863_v1 = vrot.slane %v9921_v12, 2  ;;  %v13027_v35 = vld [vmem:[#allocation35_spill] sm:$0xff]  ;;  %v13028_v23 = vld [vmem:[#allocation38_spill] sm:$0xff]  ;;  %v10406_v12 = vpack.c.bf16 %v13034_v29, %v13033_v55 }
 0x438   :  { %13016 = vst [vmem:[#allocation65_spill] sm:$0xff] %v10358_v38  ;;  %13019 = vst [vmem:[#allocation69_spill] sm:$0xff] %v10362_v8  ;;  %v10398_v16 = vpack.c.bf16 %v13028_v23, %v13027_v35  ;;  %v10425_v60 = vpack.c.bf16 %v10158_v40, %v10151_v28  ;;  %v13047_v34 = vld [vmem:[#allocation18_spill] sm:$0xff] }
 0x439   :  { %3746 = vrot.lane.b32.xlu0 %v10216_v20, %s6908_s27  ;;  %3290 = vst.msk [vmem:[#allocation3 + $0x60] sm:$0xff] %vm15_vm0, %v10337_v37  ;;  %3289 = vst.msk [vmem:[#allocation3 + $0x58] sm:$0xff] %vm15_vm0, %v10341_v5  ;;  %v3865_v20 = vrot.slane %v13026_v26, 2  ;;  %v13036_v26 = vld [vmem:[#allocation56_spill] sm:$0xff]  ;;  %v13040_v37 = vld [vmem:[#allocation59_spill] sm:$0xff] }
 0x43a   :  { %13022 = vst [vmem:[#allocation71_spill] sm:$0xff] %v10374_v17  ;;  %13025 = vst [vmem:[#allocation72_spill] sm:$0xff] %v10378_v30 }
 0x43b   :  { %3292 = vst.msk [vmem:[#allocation3 + $0x70] sm:$0xff] %vm15_vm0, %v10354_v2  ;;  %3291 = vst.msk [vmem:[#allocation3 + $0x68] sm:$0xff] %vm15_vm0, %v10358_v38  ;;  %v3866_v2 = vsel %vm961_vm5, %v3863_v1, %v3865_v20  ;;  %v13039_v38 = vld [vmem:[#allocation61_spill] sm:$0xff]  ;;  %v3867_v20 = vrot.slane %v9964_v53, 2  ;;  %v3872_v53 = vrot.slane %v9949_v45, 2 }
 0x43c   :  { %3294 = vst.msk [vmem:[#allocation3 + $0x80] sm:$0xff] %vm15_vm0, %v3262_v19  ;;  %3293 = vst.msk [vmem:[#allocation3 + $0x78] sm:$0xff] %vm15_vm0, %v10362_v8  ;;  %v13030_v19 = vld [vmem:[#allocation41_spill] sm:$0xff]  ;;  %v10410_v8 = vpack.c.bf16 %v13037_v44, %v13036_v26  ;;  %v10421_v5 = vpack.c.bf16 %v13040_v37, %v13039_v38 }
 0x43d   :  { %3296 = vst.msk [vmem:[#allocation3 + $0x90] sm:$0xff] %vm15_vm0, %v10374_v17  ;;  %3295 = vst.msk [vmem:[#allocation3 + $0x88] sm:$0xff] %vm15_vm0, %v10378_v30  ;;  %v10402_v49 = vpack.c.bf16 %v13031_v21, %v13030_v19  ;;  %v6843_v30 = vld [vmem:[%s12391_s1 + $0x50] sm:$0xff]   ;;  %v3864_v17 = vsel %vm961_vm5, %v3862_v39, %v3863_v1  ;;  %4112 = vrot.lane.b32.xlu0 %v10245_v6, %s6909_s28  ;;  %v3868_v39 = vrot.slane %v9966_v32, 2  ;;  %v13044_v1 = vld [vmem:[#allocation52_spill] sm:$0xff]  ;;  %v3873_v32 = vrot.slane %v9955_v22, 2 }
 0x43e   :  { %13029 = vst [vmem:[#allocation23_spill] sm:$0xff] %v10398_v16  ;;  %13035 = vst [vmem:[#allocation30_spill] sm:$0xff] %v10406_v12  ;;  %v10429_v58 = vpack.c.bf16 %v3866_v2, %v3864_v17  ;;  %v3870_v24 = vrot.slane %v13044_v1, 2  ;;  %6747 = vmatprep.subr.bf16.mxu1 %v6843_v30  ;;  %v10448_v2 = vpack.c.bf16 %v10170_v13, %v10168_v3  ;;  %v13045_v17 = vld [vmem:[#allocation45_spill] sm:$0xff] }
 0x43f   :  { %13032 = vst [vmem:[#allocation27_spill] sm:$0xff] %v10402_v49  ;;  %13038 = vst [vmem:[#allocation12_spill] sm:$0xff] %v10410_v8  ;;  %v3869_v1 = vsel %vm961_vm5, %v3867_v20, %v3868_v39  ;;  %6748 = vmatpush3.bf16.msra.mxu1 %v6843_v30  ;;  %v3874_v22 = vsel %vm961_vm5, %v3872_v53, %v3873_v32  ;;  %v3878_v30 = vrot.slane %v9996_v57, 2  ;;  %v3887_v53 = vrot.slane %v10018_v0, 2 }
 0x440   :  { %13041 = vst [vmem:[#allocation40_spill] sm:$0xff] %v10421_v5  ;;  %13042 = vst [vmem:[#allocation35_spill] sm:$0xff] %v10425_v60 }
 0x441   :  { %13043 = vst [vmem:[#allocation38_spill] sm:$0xff] %v10429_v58  ;;  %3298 = vst.msk [vmem:[#allocation3 + $0xa0] sm:$0xff] %vm15_vm0, %v10398_v16  ;;  %v13048_v58 = vld [vmem:[#allocation15_spill] sm:$0xff]  ;;  %4274 = vrot.lane.b32.xlu0 %v10222_v10, %s6910_s12 }
 0x442   :  { %3297 = vst.msk [vmem:[#allocation3 + $0x98] sm:$0xff] %vm15_vm0, %v10402_v49  ;;  %3300 = vst.msk [vmem:[#allocation3 + $0xb0] sm:$0xff] %vm15_vm0, %v10406_v12  ;;  %v10452_v12 = vpack.c.bf16 %v13045_v17, %v10183_v36  ;;  %v3877_v49 = vrot.slane %v9988_v18, 2  ;;  %v13049_v47 = vpack.c.bf16 %v13047_v34, %v13048_v58  ;;  %v3883_v34 = vrot.slane %v9986_v31, 2 }
 0x443   :  { %3299 = vst.msk [vmem:[#allocation3 + $0xa8] sm:$0xff] %vm15_vm0, %v10410_v8  ;;  %3302 = vst.msk [vmem:[#allocation3 + $0xc0] sm:$0xff] %vm15_vm0, %v10421_v5  ;;  %v3871_v8 = vsel %vm961_vm5, %v3868_v39, %v3870_v24  ;;  %v13046_v5 = vld [vmem:[#allocation46_spill] sm:$0xff]  ;;  %v13050_v24 = vld [vmem:[#allocation63_spill] sm:$0xff] }
 0x444   :  { %3301 = vst.msk [vmem:[#allocation3 + $0xb8] sm:$0xff] %vm15_vm0, %v10425_v60  ;;  %v3875_v16 = vrot.slane %v13046_v5, 2  ;;  %v6844_v60 = vld [vmem:[%s12391_s1 + $0x58] sm:$0xff]   ;;  %4110 = vrot.lane.b32.xlu1 %v13049_v47, %s6909_s28  ;;  %v10467_v45 = vpack.c.bf16 %v3871_v8, %v3869_v1  ;;  %3304 = vst.msk [vmem:[#allocation3 + $0xd0] sm:$0xff] %vm15_vm0, %v10448_v2  ;;  %v3880_v5 = vrot.slane %v13050_v24, 2  ;;  %v3882_v47 = vrot.slane %v9977_v56, 2 }
 0x445   :  { %3303 = vst.msk [vmem:[#allocation3 + $0xc8] sm:$0xff] %vm15_vm0, %v10452_v12  ;;  %6749 = vmatprep.subr.bf16.mxu1 %v6844_v60  ;;  %v13051_v8 = vld [vmem:[#allocation19_spill] sm:$0xff]  ;;  %v3879_v39 = vsel %vm961_vm5, %v3877_v49, %v3878_v30  ;;  %v3888_v1 = vrot.slane %v13015_v51, 2  ;;  %v13053_v24 = vld [vmem:[#allocation29_spill] sm:$0xff]  ;;  %v3897_v51 = vrot.slane %v13017_v54, 2  ;;  %v13056_v54 = vld [vmem:[#allocation34_spill] sm:$0xff] }
 0x446   :  { %v3876_v18 = vsel %vm961_vm5, %v3873_v32, %v3875_v16  ;;  %v3885_v58 = vrot.slane %v13051_v8, 2  ;;  %v3881_v57 = vsel %vm961_vm5, %v3878_v30, %v3880_v5  ;;  %6750 = vmatpush3.bf16.msra.mxu1 %v6844_v60  ;;  %v6845_v16 = vld [vmem:[%s12391_s1 + $0x60] sm:$0xff]   ;;  %v3884_v56 = vsel %vm961_vm5, %v3882_v47, %v3883_v34  ;;  %4426 = vrot.lane.b32.xlu0 %v13053_v24, %s6911_s15 }
 0x447   :  { %v10482_v20 = vpack.c.bf16 %v3876_v18, %v3874_v22  ;;  %v10490_v32 = vpack.c.bf16 %v3881_v57, %v3879_v39  ;;  %v13052_v22 = vld [vmem:[#allocation70_spill] sm:$0xff]  ;;  %v3892_v60 = vrot.slane %v10005_v52, 2  ;;  %v3893_v30 = vrot.slane %v10007_v63, 2  ;;  %6751 = vmatprep.subr.bf16.mxu1 %v6845_v16  ;;  %v13054_v18 = vld [vmem:[#allocation67_spill] sm:$0xff]  ;;  %v6846_v63 = vld [vmem:[%s12391_s1 + $0x68] sm:$0xff]  }
 0x448   :  { %v3886_v31 = vsel %vm961_vm5, %v3883_v34, %v3885_v58  ;;  %4272 = vrot.lane.b32.xlu1 %v10231_v61, %s6910_s12  ;;  %v3890_v0 = vrot.slane %v13052_v22, 2  ;;  %v3889_v5 = vsel %vm961_vm5, %v3887_v53, %v3888_v1  ;;  %v3895_v47 = vrot.slane %v13054_v18, 2  ;;  %v13055_v58 = vld [vmem:[#allocation73_spill] sm:$0xff]  ;;  %v13057_v22 = vld [vmem:[#allocation31_spill] sm:$0xff] }
 0x449   :  { %v10497_v49 = vpack.c.bf16 %v3886_v31, %v3884_v56  ;;  %v3898_v61 = vrot.slane %v13018_v27, 2  ;;  %v3894_v8 = vsel %vm961_vm5, %v3892_v60, %v3893_v30  ;;  %v3900_v52 = vrot.slane %v13055_v58, 2  ;;  %v6847_v60 = vld [vmem:[%s12391_s1 + $0x70] sm:$0xff]  }
 0x44a   :  { %v3891_v34 = vsel %vm961_vm5, %v3888_v1, %v3890_v0  ;;  %6752 = vmatpush3.bf16.msra.mxu1 %v6845_v16  ;;  %v3896_v57 = vsel %vm961_vm5, %v3893_v30, %v3895_v47  ;;  %4572 = vrot.lane.b32.xlu0 %v10263_v43, %s6912_s18  ;;  %v3907_v31 = vrot.slane %v13023_v11, 2  ;;  %v3908_v1 = vrot.slane %v13024_v46, 2  ;;  %v13058_v47 = vld [vmem:[#allocation22_spill] sm:$0xff] }
 0x44b   :  { %v10514_v39 = vpack.c.bf16 %v3891_v34, %v3889_v5  ;;  %v3899_v53 = vsel %vm961_vm5, %v3897_v51, %v3898_v61  ;;  %v10520_v27 = vpack.c.bf16 %v3896_v57, %v3894_v8  ;;  %v3901_v56 = vsel %vm961_vm5, %v3898_v61, %v3900_v52  ;;  %6753 = vmatprep.subr.bf16.mxu1 %v6846_v63  ;;  %v13059_v34 = vld [vmem:[#allocation42_spill] sm:$0xff]  ;;  %v6848_v52 = vld [vmem:[%s12391_s1 + $0x78] sm:$0xff]   ;;  %v13060_v57 = vld [vmem:[#allocation36_spill] sm:$0xff] }
 0x44c   :  { %4424 = vrot.lane.b32.xlu1 %v13056_v54, %s6911_s15  ;;  %v10525_v16 = vpack.c.bf16 %v3901_v56, %v3899_v53  ;;  %v3910_v0 = vrot.slane %v13057_v22, 2  ;;  %v3912_v30 = vrot.slane %v13020_v59, 2  ;;  %v3909_v5 = vsel %vm961_vm5, %v3907_v31, %v3908_v1  ;;  %v13061_v56 = vld [vmem:[#allocation44_spill] sm:$0xff]  ;;  %v13062_v22 = vld [vmem:[#allocation54_spill] sm:$0xff] }
 0x44d   :  { %v3913_v46 = vrot.slane %v13021_v48, 2  ;;  %v3915_v51 = vrot.slane %v13058_v47, 2  ;;  %v3917_v61 = vrot.slane %v13030_v19, 2  ;;  %v3918_v59 = vrot.slane %v13031_v21, 2 }
 0x44e   :  { %6754 = vmatpush3.bf16.msra.mxu1 %v6846_v63  ;;  %v3911_v18 = vsel %vm961_vm5, %v3908_v1, %v3910_v0  ;;  %4704 = vrot.lane.b32.xlu0 %v10243_v33, %s6913_s21  ;;  %v3922_v8 = vrot.slane %v13027_v35, 2  ;;  %v3923_v58 = vrot.slane %v13028_v23, 2  ;;  %v3925_v53 = vrot.slane %v13060_v57, 2  ;;  %v3225_v57 = vld [vmem:[#allocation2 + $0x2b8] sm:$0xff] }
 0x44f   :  { %6755 = vmatprep.subr.bf16.mxu1 %v6847_v60  ;;  %v10540_v11 = vpack.c.bf16 %v3911_v18, %v3909_v5  ;;  %v3914_v63 = vsel %vm961_vm5, %v3912_v30, %v3913_v46  ;;  %v3916_v48 = vsel %vm961_vm5, %v3913_v46, %v3915_v51  ;;  %v3927_v19 = vrot.slane %v13036_v26, 2  ;;  %v13063_v5 = vld [vmem:[#allocation51_spill] sm:$0xff] }
 0x450   :  { %4570 = vrot.lane.b32.xlu1 %v10245_v6, %s6912_s18  ;;  %v3920_v6 = vrot.slane %v13059_v34, 2  ;;  %v10558_v21 = vpack.c.bf16 %v3916_v48, %v3914_v63  ;;  %v3919_v35 = vsel %vm961_vm5, %v3917_v61, %v3918_v59  ;;  %v3924_v54 = vsel %vm961_vm5, %v3922_v8, %v3923_v58 }
 0x451   :  { %v3926_v1 = vsel %vm961_vm5, %v3923_v58, %v3925_v53  ;;  %v3928_v26 = vrot.slane %v13037_v44, 2  ;;  %v3933_v30 = vrot.slane %v13034_v29, 2  ;;  %v3935_v18 = vrot.slane %v13063_v5, 2  ;;  %v13065_v58 = vld [vmem:[#allocation21_spill] sm:$0xff]  ;;  %v3226_v53 = vld [vmem:[#allocation2 + $0x2c0] sm:$0xff] }
 0x452   :  { %6756 = vmatpush3.bf16.msra.mxu1 %v6847_v60  ;;  %v3921_v23 = vsel %vm961_vm5, %v3918_v59, %v3920_v6  ;;  %4856 = vrot.lane.b32.xlu0 %v13061_v56, %s6914_s22  ;;  %v10570_v0 = vpack.c.bf16 %v3926_v1, %v3924_v54  ;;  %v3932_v60 = vrot.slane %v13033_v55, 2  ;;  %v3937_v51 = vrot.slane %v10151_v28, 2  ;;  %v13064_v59 = vld [vmem:[#allocation4_spill] sm:$0xff] }
 0x453   :  { %6757 = vmatprep.subr.bf16.mxu1 %v6848_v52  ;;  %v10565_v31 = vpack.c.bf16 %v3921_v23, %v3919_v35  ;;  %v3929_v46 = vsel %vm961_vm5, %v3927_v19, %v3928_v26  ;;  %v3938_v61 = vrot.slane %v10158_v40, 2  ;;  %v3936_v29 = vsel %vm961_vm5, %v3933_v30, %v3935_v18 }
 0x454   :  { %4702 = vrot.lane.b32.xlu1 %v10222_v10, %s6913_s21  ;;  %v3930_v10 = vrot.slane %v13062_v22, 2  ;;  %v3934_v55 = vsel %vm961_vm5, %v3932_v60, %v3933_v30  ;;  %v3940_v34 = vrot.slane %v13064_v59, 2  ;;  %v3942_v40 = vrot.slane %v13039_v38, 2  ;;  %v3228_v60 = vld [vmem:[#allocation2 + $0x2d0] sm:$0xff]  ;;  %v3229_v30 = vld [vmem:[#allocation2 + $0x2d8] sm:$0xff] }
 0x455   :  { %v10588_v6 = vpack.c.bf16 %v3936_v29, %v3934_v55  ;;  %v3939_v28 = vsel %vm961_vm5, %v3937_v51, %v3938_v61  ;;  %v3943_v8 = vrot.slane %v13040_v37, 2  ;;  %v3947_v63 = vrot.slane %v10183_v36, 2  ;;  %v3230_v29 = vld [vmem:[#allocation2 + $0x2e0] sm:$0x3] }
 0x456   :  { %6758 = vmatpush3.bf16.msra.mxu1 %v6848_v52  ;;  %v3931_v47 = vsel %vm961_vm5, %v3928_v26, %v3930_v10  ;;  %5002 = vrot.lane.b32.xlu0 %v10270_v9, %s6915_s23  ;;  %v3945_v52 = vrot.slane %v13065_v58, 2  ;;  %v3948_v48 = vrot.slane %v13045_v17, 2  ;;  %v3950_v23 = vrot.slane %v10192_v50, 2  ;;  %v13066_v17 = vld [vmem:[#allocation5_spill] sm:$0xff] }
 0x457   :  { %v10581_v44 = vpack.c.bf16 %v3931_v47, %v3929_v46  ;;  %v3944_v35 = vsel %vm961_vm5, %v3942_v40, %v3943_v8  ;;  %v3952_v38 = vrot.slane %v10168_v3, 2  ;;  %v3953_v36 = vrot.slane %v10170_v13, 2  ;;  %v3227_v26 = vld [vmem:[#allocation2 + $0x2c8] sm:$0x3] }
 0x458   :  { %4854 = vrot.lane.b32.xlu1 %v13053_v24, %s6914_s22  ;;  %v3941_v24 = vsel %vm961_vm5, %v3938_v61, %v3940_v34  ;;  %v3946_v37 = vsel %vm961_vm5, %v3943_v8, %v3945_v52  ;;  %v3949_v54 = vsel %vm961_vm5, %v3947_v63, %v3948_v48  ;;  %v3955_v1 = vrot.slane %v13066_v17, 2  ;;  %v3231_v8 = vld [vmem:[#allocation2 + $0x2e8] sm:$0xff] }
 0x459   :  { %v10597_v19 = vpack.c.bf16 %v3941_v24, %v3939_v28  ;;  %v10610_v22 = vpack.c.bf16 %v3946_v37, %v3944_v35  ;;  %v3951_v50 = vsel %vm961_vm5, %v3948_v48, %v3950_v23  ;;  %v10613_v3 = vpack.c.bf16 %v3226_v53, %v3225_v57  ;;  %v3232_v24 = vld [vmem:[#allocation2 + $0x2f0] sm:$0xff] }
 0x45a   :  { %4116 = vrot.lane.b32.xlu0 %v10270_v9, %s6909_s28  ;;  %v3541_v10 = vrot.slane %v3225_v57, 1  ;;  %v10615_v5 = vpack.c.bf16 %v3951_v50, %v3949_v54  ;;  %v3954_v18 = vsel %vm961_vm5, %v3952_v38, %v3953_v36  ;;  %v3956_v13 = vsel %vm961_vm5, %v3953_v36, %v3955_v1  ;;  %v3233_v36 = vld [vmem:[#allocation2 + $0x2f8] sm:$0x3] }
 0x45b   :  { %v3542_v46 = vrot.slane %v3226_v53, 1  ;;  %v10619_v47 = vpack.c.bf16 %v3956_v13, %v3954_v18  ;;  %v3957_v51 = vrot.slane %v3225_v57, 2  ;;  %v3958_v61 = vrot.slane %v3226_v53, 2  ;;  %3305 = vst.msk [vmem:[#allocation3 + $0xd8] sm:$0xff] %vm15_vm0, %v10613_v3 }
 0x45c   :  { %5000 = vrot.lane.b32.xlu1 %v10263_v43, %s6915_s23  ;;  %v3544_v55 = vrot.slane %v3227_v26, 1  ;;  %v3960_v34 = vrot.slane %v3227_v26, 2  ;;  %v10626_v28 = vpack.c.bf16 %v3229_v30, %v3228_v60  ;;  %v3546_v40 = vrot.slane %v3228_v60, 1 }
 0x45d   :  { %v3543_v59 = vsel %vm543_vm4, %v3541_v10, %v3542_v46  ;;  %v3959_v52 = vsel %vm961_vm5, %v3957_v51, %v3958_v61  ;;  %v3547_v63 = vrot.slane %v3229_v30, 1  ;;  %v3962_v48 = vrot.slane %v3228_v60, 2  ;;  %v3234_v10 = vld [vmem:[#allocation2 + $0x300] sm:$0xff]  ;;  %v3235_v60 = vld [vmem:[#allocation2 + $0x308] sm:$0xff] }
 0x45e   :  { %4278 = vrot.lane.b32.xlu0 %v10258_v25, %s6910_s12  ;;  %v3545_v58 = vsel %vm543_vm4, %v3542_v46, %v3544_v55  ;;  %v3963_v53 = vrot.slane %v3229_v30, 2  ;;  %3306 = vst.msk [vmem:[#allocation3 + $0xe0] sm:$0xff] %vm15_vm0, %v10626_v28  ;;  %v3549_v35 = vrot.slane %v3230_v29, 1  ;;  %v3965_v37 = vrot.slane %v3230_v29, 2  ;;  %v13067_v30 = vld [vmem:[#allocation37_spill] sm:$0xff] }
 0x45f   :  { %v10632_v57 = vpack.c.bf16 %v3545_v58, %v3543_v59  ;;  %v3548_v38 = vsel %vm543_vm4, %v3546_v40, %v3547_v63  ;;  %v10640_v54 = vpack.c.bf16 %v3232_v24, %v3231_v8  ;;  %v3551_v26 = vrot.slane %v3231_v8, 1  ;;  %v3236_v59 = vld [vmem:[#allocation2 + $0x310] sm:$0x3] }
 0x460   :  { %4114 = vrot.lane.b32.xlu1 %v10263_v43, %s6909_s28  ;;  %v3961_v43 = vsel %vm961_vm5, %v3958_v61, %v3960_v34  ;;  %v3550_v17 = vsel %vm543_vm4, %v3547_v63, %v3549_v35  ;;  %v3964_v1 = vsel %vm961_vm5, %v3962_v48, %v3963_v53  ;;  %v3552_v50 = vrot.slane %v3232_v24, 1  ;;  %v3237_v63 = vld [vmem:[#allocation2 + $0x318] sm:$0xff]  ;;  %v3238_v48 = vld [vmem:[#allocation2 + $0x320] sm:$0xff] }
 0x461   :  { %v10637_v23 = vpack.c.bf16 %v3961_v43, %v3959_v52  ;;  %v10648_v18 = vpack.c.bf16 %v3550_v17, %v3548_v38  ;;  %v3966_v13 = vsel %vm961_vm5, %v3963_v53, %v3965_v37  ;;  %v3967_v46 = vrot.slane %v3231_v8, 2  ;;  %3307 = vst.msk [vmem:[#allocation3 + $0xe8] sm:$0xff] %vm15_vm0, %v10640_v54 }
 0x462   :  { %4430 = vrot.lane.b32.xlu0 %v13067_v30, %s6911_s15  ;;  %v3968_v51 = vrot.slane %v3232_v24, 2  ;;  %v3553_v61 = vsel %vm543_vm4, %v3551_v26, %v3552_v50  ;;  %v3554_v55 = vrot.slane %v3233_v36, 1  ;;  %v3970_v29 = vrot.slane %v3233_v36, 2 }
 0x463   :  { %v10657_v40 = vpack.c.bf16 %v3235_v60, %v3234_v10  ;;  %v3556_v58 = vrot.slane %v3234_v10, 1  ;;  %v3557_v52 = vrot.slane %v3235_v60, 1  ;;  %v3972_v43 = vrot.slane %v3234_v10, 2 }
 0x464   :  { %4276 = vrot.lane.b32.xlu1 %v10243_v33, %s6910_s12  ;;  %v10653_v33 = vpack.c.bf16 %v3966_v13, %v3964_v1  ;;  %v3969_v34 = vsel %vm961_vm5, %v3967_v46, %v3968_v51  ;;  %v3555_v8 = vsel %vm543_vm4, %v3552_v50, %v3554_v55  ;;  %v3971_v24 = vsel %vm961_vm5, %v3968_v51, %v3970_v29 }
 0x465   :  { %v3973_v53 = vrot.slane %v3235_v60, 2  ;;  %v10665_v35 = vpack.c.bf16 %v3555_v8, %v3553_v61  ;;  %v10667_v38 = vpack.c.bf16 %v3971_v24, %v3969_v34  ;;  %3308 = vst.msk [vmem:[#allocation3 + $0xf0] sm:$0xff] %vm15_vm0, %v10657_v40  ;;  %v3558_v37 = vsel %vm543_vm4, %v3556_v58, %v3557_v52  ;;  %v13068_v8 = vld [vmem:[#allocation17_spill] sm:$0xff] }
 0x466   :  { %4576 = vrot.lane.b32.xlu0 %v10298_v41, %s6912_s18  ;;  %v3559_v36 = vrot.slane %v3236_v59, 1  ;;  %v3975_v1 = vrot.slane %v3236_v59, 2  ;;  %v10673_v26 = vpack.c.bf16 %v3238_v48, %v3237_v63  ;;  %v3561_v50 = vrot.slane %v3237_v63, 1 }
 0x467   :  { %v3974_v17 = vsel %vm961_vm5, %v3972_v43, %v3973_v53  ;;  %v3562_v60 = vrot.slane %v3238_v48, 1  ;;  %v3977_v13 = vrot.slane %v3237_v63, 2  ;;  %v3978_v46 = vrot.slane %v3238_v48, 2 }
 0x468   :  { %4428 = vrot.lane.b32.xlu1 %v13061_v56, %s6911_s15  ;;  %v3239_v56 = vld [vmem:[#allocation2 + $0x328] sm:$0x3]  ;;  %v3560_v10 = vsel %vm543_vm4, %v3557_v52, %v3559_v36  ;;  %v3976_v61 = vsel %vm961_vm5, %v3973_v53, %v3975_v1  ;;  %3309 = vst.msk [vmem:[#allocation3 + $0xf8] sm:$0xff] %vm15_vm0, %v10673_v26  ;;  %v13070_v36 = vld [vmem:[#allocation60_spill] sm:$0xff] }
 0x469   :  { %v10678_v51 = vpack.c.bf16 %v3560_v10, %v3558_v37  ;;  %v3564_v55 = vrot.slane %v3239_v56, 1  ;;  %v3980_v29 = vrot.slane %v3239_v56, 2  ;;  %v10685_v59 = vpack.c.bf16 %v3976_v61, %v3974_v17  ;;  %v13071_v10 = vld [vmem:[#allocation11_spill] sm:$0xff] }
 0x46a   :  { %4708 = vrot.lane.b32.xlu0 %v10277_v4, %s6913_s21  ;;  %v3563_v34 = vsel %vm543_vm4, %v3561_v50, %v3562_v60  ;;  %v3979_v58 = vsel %vm961_vm5, %v3977_v13, %v3978_v46  ;;  %v3699_v24 = vpop.permute.xlu0 %3698 }
 0x46b   :  { %v3981_v52 = vsel %vm961_vm5, %v3978_v46, %v3980_v29  ;;  %3792 = vst.msk [vmem:[#allocation3 + $0x10] sm:$0xff] %vm928_vm6, %v3699_v24  ;;  %v13072_v46 = vld [vmem:[#allocation55_spill] sm:$0xff] }
 0x46c   :  { %4574 = vrot.lane.b32.xlu1 %v10270_v9, %s6912_s18  ;;  %v3565_v9 = vsel %vm543_vm4, %v3562_v60, %v3564_v55  ;;  %v10693_v48 = vpack.c.bf16 %v3981_v52, %v3979_v58  ;;  %v13073_v55 = vld [vmem:[#allocation38_spill] sm:$0xff]  ;;  %v13075_v52 = vld [vmem:[#allocation68_spill] sm:$0xff] }
 0x46d   :  { %v10691_v63 = vpack.c.bf16 %v3565_v9, %v3563_v34  ;;  %v13074_v34 = vld [vmem:[#allocation14_spill] sm:$0xff] }
 0x46e   :  { %4860 = vrot.lane.b32.xlu0 %v13068_v8, %s6914_s22 }
 0x470   :  { %4706 = vrot.lane.b32.xlu1 %v10258_v25, %s6913_s21  ;;  %v13069_v25 = vld [vmem:[#allocation50_spill] sm:$0xff] }
 0x472   :  { %5006 = vrot.lane.b32.xlu0 %v10310_v42, %s6915_s23 }
 0x474   :  { %4858 = vrot.lane.b32.xlu1 %v13067_v30, %s6914_s22 }
 0x475   :  { %v3697_v30 = vpop.permute.xlu1 %3696 }
 0x476   :  { %4120 = vrot.lane.b32.xlu0 %v10310_v42, %s6909_s28  ;;  %3791 = vst.msk [vmem:[#allocation3 + $0x8] sm:$0xff] %vm928_vm6, %v3697_v30  ;;  %v3703_v43 = vpop.permute.xlu0 %3702 }
 0x477   :  { %3794 = vst.msk [vmem:[#allocation3 + $0x20] sm:$0xff] %vm928_vm6, %v3703_v43 }
 0x478   :  { %5004 = vrot.lane.b32.xlu1 %v10298_v41, %s6915_s23 }
 0x47a   :  { %4282 = vrot.lane.b32.xlu0 %v10285_v62, %s6910_s12 }
 0x47c   :  { %4118 = vrot.lane.b32.xlu1 %v10298_v41, %s6909_s28  ;;  %v3701_v41 = vpop.permute.xlu1 %3700  ;;  %v3707_v53 = vpop.permute.xlu0 %3706 }
 0x47d   :  { %3793 = vst.msk [vmem:[#allocation3 + $0x18] sm:$0xff] %vm928_vm6, %v3701_v41  ;;  %3796 = vst.msk [vmem:[#allocation3 + $0x30] sm:$0xff] %vm928_vm6, %v3707_v53  ;;  %v13076_v41 = vld [vmem:[#allocation13_spill] sm:$0xff] }
 0x47e   :  { %4434 = vrot.lane.b32.xlu0 %v13069_v25, %s6911_s15 }
 0x480   :  { %4280 = vrot.lane.b32.xlu1 %v10277_v4, %s6910_s12  ;;  %v3705_v4 = vpop.permute.xlu1 %3704  ;;  %v3711_v37 = vpop.permute.xlu0 %3710 }
 0x481   :  { %3795 = vst.msk [vmem:[#allocation3 + $0x28] sm:$0xff] %vm928_vm6, %v3705_v4  ;;  %3798 = vst.msk [vmem:[#allocation3 + $0x40] sm:$0xff] %vm928_vm6, %v3711_v37  ;;  %v13077_v37 = vld [vmem:[#allocation64_spill] sm:$0xff] }
 0x482   :  { %4580 = vrot.lane.b32.xlu0 %v10318_v15, %s6912_s18 }
 0x484   :  { %4432 = vrot.lane.b32.xlu1 %v13068_v8, %s6911_s15  ;;  %v3709_v56 = vpop.permute.xlu1 %3708 }
 0x485   :  { %3797 = vst.msk [vmem:[#allocation3 + $0x38] sm:$0xff] %vm928_vm6, %v3709_v56 }
 0x486   :  { %4712 = vrot.lane.b32.xlu0 %v10306_v14, %s6913_s21 }
 0x488   :  { %4578 = vrot.lane.b32.xlu1 %v10310_v42, %s6912_s18  ;;  %v3715_v42 = vpop.permute.xlu0 %3714  ;;  %v3713_v17 = vpop.permute.xlu1 %3712 }
 0x489   :  { %3800 = vst.msk [vmem:[#allocation3 + $0x50] sm:$0xff] %vm928_vm6, %v3715_v42  ;;  %3799 = vst.msk [vmem:[#allocation3 + $0x48] sm:$0xff] %vm928_vm6, %v3713_v17 }
 0x48a   :  { %4864 = vrot.lane.b32.xlu0 %v13070_v36, %s6914_s22 }
 0x48c   :  { %4710 = vrot.lane.b32.xlu1 %v10285_v62, %s6913_s21  ;;  %v3719_v62 = vpop.permute.xlu0 %3718  ;;  %v3717_v1 = vpop.permute.xlu1 %3716 }
 0x48d   :  { %3802 = vst.msk [vmem:[#allocation3 + $0x60] sm:$0xff] %vm928_vm6, %v3719_v62  ;;  %3801 = vst.msk [vmem:[#allocation3 + $0x58] sm:$0xff] %vm928_vm6, %v3717_v1  ;;  %v13078_v62 = vld [vmem:[#allocation25_spill] sm:$0xff] }
 0x48e   :  { %5010 = vrot.lane.b32.xlu0 %v10380_v7, %s6915_s23 }
 0x490   :  { %4862 = vrot.lane.b32.xlu1 %v13069_v25, %s6914_s22  ;;  %v3723_v50 = vpop.permute.xlu0 %3722  ;;  %v3721_v60 = vpop.permute.xlu1 %3720 }
 0x491   :  { %3804 = vst.msk [vmem:[#allocation3 + $0x70] sm:$0xff] %vm928_vm6, %v3723_v50  ;;  %3803 = vst.msk [vmem:[#allocation3 + $0x68] sm:$0xff] %vm928_vm6, %v3721_v60 }
 0x492   :  { %4124 = vrot.lane.b32.xlu0 %v10380_v7, %s6909_s28 }
 0x494   :  { %5008 = vrot.lane.b32.xlu1 %v10318_v15, %s6915_s23  ;;  %v3725_v61 = vpop.permute.xlu1 %3724 }
 0x495   :  { %3805 = vst.msk [vmem:[#allocation3 + $0x78] sm:$0xff] %vm928_vm6, %v3725_v61 }
 0x496   :  { %4286 = vrot.lane.b32.xlu0 %v13071_v10, %s6910_s12 }
 0x497   :  { %v3727_v13 = vpop.permute.xlu0 %3726 }
 0x498   :  { %4122 = vrot.lane.b32.xlu1 %v10318_v15, %s6909_s28  ;;  %3806 = vst.msk [vmem:[#allocation3 + $0x80] sm:$0xff] %vm928_vm6, %v3727_v13  ;;  %v3729_v29 = vpop.permute.xlu1 %3728 }
 0x499   :  { %3807 = vst.msk [vmem:[#allocation3 + $0x88] sm:$0xff] %vm928_vm6, %v3729_v29 }
 0x49a   :  { %4438 = vrot.lane.b32.xlu0 %v13072_v46, %s6911_s15 }
 0x49b   :  { %v3731_v15 = vpop.permute.xlu0 %3730 }
 0x49c   :  { %4284 = vrot.lane.b32.xlu1 %v10306_v14, %s6910_s12  ;;  %3808 = vst.msk [vmem:[#allocation3 + $0x90] sm:$0xff] %vm928_vm6, %v3731_v15  ;;  %v3733_v58 = vpop.permute.xlu1 %3732 }
 0x49d   :  { %3809 = vst.msk [vmem:[#allocation3 + $0x98] sm:$0xff] %vm928_vm6, %v3733_v58 }
 0x49e   :  { %4584 = vrot.lane.b32.xlu0 %v13073_v55, %s6912_s18 }
 0x49f   :  { %v3735_v14 = vpop.permute.xlu0 %3734 }
 0x4a0   :  { %4436 = vrot.lane.b32.xlu1 %v13070_v36, %s6911_s15  ;;  %3810 = vst.msk [vmem:[#allocation3 + $0xa0] sm:$0xff] %vm928_vm6, %v3735_v14  ;;  %v3737_v8 = vpop.permute.xlu1 %3736 }
 0x4a1   :  { %3811 = vst.msk [vmem:[#allocation3 + $0xa8] sm:$0xff] %vm928_vm6, %v3737_v8 }
 0x4a2   :  { %4716 = vrot.lane.b32.xlu0 %v13074_v34, %s6913_s21 }
 0x4a3   :  { %v3739_v9 = vpop.permute.xlu0 %3738 }
 0x4a4   :  { %4582 = vrot.lane.b32.xlu1 %v10380_v7, %s6912_s18  ;;  %3812 = vst.msk [vmem:[#allocation3 + $0xb0] sm:$0xff] %vm928_vm6, %v3739_v9  ;;  %v3741_v24 = vpop.permute.xlu1 %3740 }
 0x4a5   :  { %3813 = vst.msk [vmem:[#allocation3 + $0xb8] sm:$0xff] %vm928_vm6, %v3741_v24  ;;  %v13082_v24 = vld [vmem:[#allocation65_spill] sm:$0xff] }
 0x4a6   :  { %4868 = vrot.lane.b32.xlu0 %v13075_v52, %s6914_s22 }
 0x4a7   :  { %v3743_v7 = vpop.permute.xlu0 %3742 }
 0x4a8   :  { %4714 = vrot.lane.b32.xlu1 %v13071_v10, %s6913_s21  ;;  %3814 = vst.msk [vmem:[#allocation3 + $0xc0] sm:$0xff] %vm928_vm6, %v3743_v7  ;;  %v3745_v30 = vpop.permute.xlu1 %3744  ;;  %v13079_v10 = vld [vmem:[#allocation26_spill] sm:$0xff] }
 0x4a9   :  { %3815 = vst.msk [vmem:[#allocation3 + $0xc8] sm:$0xff] %vm928_vm6, %v3745_v30 }
 0x4aa   :  { %5014 = vrot.lane.b32.xlu0 %v10467_v45, %s6915_s23 }
 0x4ab   :  { %v3747_v25 = vpop.permute.xlu0 %3746 }
 0x4ac   :  { %4866 = vrot.lane.b32.xlu1 %v13072_v46, %s6914_s22  ;;  %3816 = vst.msk [vmem:[#allocation3 + $0xd0] sm:$0xff] %vm928_vm6, %v3747_v25 }
 0x4ae   :  { %4128 = vrot.lane.b32.xlu0 %v10467_v45, %s6909_s28 }
 0x4af   :  { %v4113_v43 = vpop.permute.xlu0 %4112 }
 0x4b0   :  { %5012 = vrot.lane.b32.xlu1 %v13073_v55, %s6915_s23  ;;  %4207 = vst.msk [vmem:[#allocation3 + $0x8] sm:$0xff] %vm1346_vm7, %v4113_v43  ;;  %v13083_v43 = vld [vmem:[#allocation33_spill] sm:$0xff] }
 0x4b2   :  { %4290 = vrot.lane.b32.xlu0 %v13076_v41, %s6910_s12 }
 0x4b3   :  { %v4275_v4 = vpop.permute.xlu0 %4274 }
 0x4b4   :  { %4126 = vrot.lane.b32.xlu1 %v13073_v55, %s6909_s28  ;;  %4369 = vst.msk [vmem:[#allocation3 + $0x8] sm:$0xff] %vm1509_vm8, %v4275_v4  ;;  %v13080_v55 = vld [vmem:[#allocation16_spill] sm:$0xff] }
 0x4b6   :  { %v4111_v53 = vpop.permute.xlu1 %4110  ;;  %4442 = vrot.lane.b32.xlu0 %v13077_v37, %s6911_s15 }
 0x4b7   :  { %4206 = vst.msk [vmem:[#allocation3] sm:$0xff] %vm1346_vm7, %v4111_v53 }
 0x4b8   :  { %4288 = vrot.lane.b32.xlu1 %v13074_v34, %s6910_s12  ;;  %v4427_v56 = vpop.permute.xlu0 %4426  ;;  %v13081_v34 = vld [vmem:[#allocation20_spill] sm:$0xff] }
 0x4b9   :  { %4521 = vst.msk [vmem:[#allocation3 + $0x8] sm:$0xff] %vm1662_vm9, %v4427_v56  ;;  %v13084_v56 = vld [vmem:[#allocation66_spill] sm:$0xff] }
 0x4ba   :  { %v4273_v36 = vpop.permute.xlu1 %4272  ;;  %4588 = vrot.lane.b32.xlu0 %v10482_v20, %s6912_s18 }
 0x4bb   :  { %4368 = vst.msk [vmem:[#allocation3] sm:$0xff] %vm1509_vm8, %v4273_v36 }
 0x4bc   :  { %4440 = vrot.lane.b32.xlu1 %v13075_v52, %s6911_s15  ;;  %v4573_v17 = vpop.permute.xlu0 %4572 }
 0x4bd   :  { %4667 = vst.msk [vmem:[#allocation3 + $0x8] sm:$0xff] %vm1809_vm10, %v4573_v17 }
 0x4be   :  { %v4425_v42 = vpop.permute.xlu1 %4424  ;;  %4720 = vrot.lane.b32.xlu0 %v13078_v62, %s6913_s21 }
 0x4bf   :  { %4520 = vst.msk [vmem:[#allocation3] sm:$0xff] %vm1662_vm9, %v4425_v42 }
 0x4c0   :  { %4586 = vrot.lane.b32.xlu1 %v10467_v45, %s6912_s18  ;;  %v4705_v50 = vpop.permute.xlu0 %4704 }
 0x4c1   :  { %4799 = vst.msk [vmem:[#allocation3 + $0x8] sm:$0xff] %vm1942_vm11, %v4705_v50 }
 0x4c2   :  { %v4571_v1 = vpop.permute.xlu1 %4570  ;;  %4872 = vrot.lane.b32.xlu0 %v13079_v10, %s6914_s22 }
 0x4c3   :  { %4666 = vst.msk [vmem:[#allocation3] sm:$0xff] %vm1809_vm10, %v4571_v1 }
 0x4c4   :  { %4718 = vrot.lane.b32.xlu1 %v13076_v41, %s6913_s21  ;;  %v4857_v45 = vpop.permute.xlu0 %4856 }
 0x4c5   :  { %4951 = vst.msk [vmem:[#allocation3 + $0x8] sm:$0xff] %vm2095_vm12, %v4857_v45 }
 0x4c6   :  { %v4703_v60 = vpop.permute.xlu1 %4702  ;;  %5018 = vrot.lane.b32.xlu0 %v10490_v32, %s6915_s23 }
 0x4c7   :  { %4798 = vst.msk [vmem:[#allocation3] sm:$0xff] %vm1942_vm11, %v4703_v60 }
 0x4c8   :  { %4870 = vrot.lane.b32.xlu1 %v13077_v37, %s6914_s22  ;;  %v5003_v46 = vpop.permute.xlu0 %5002 }
 0x4c9   :  { %5097 = vst.msk [vmem:[#allocation3 + $0x8] sm:$0xff] %vm2242_vm13, %v5003_v46 }
 0x4ca   :  { %v4855_v13 = vpop.permute.xlu1 %4854  ;;  %4132 = vrot.lane.b32.xlu0 %v10490_v32, %s6909_s28 }
 0x4cb   :  { %4950 = vst.msk [vmem:[#allocation3] sm:$0xff] %vm2095_vm12, %v4855_v13  ;;  %v13086_v13 = vld [vmem:[#allocation69_spill] sm:$0xff] }
 0x4cc   :  { %5016 = vrot.lane.b32.xlu1 %v10482_v20, %s6915_s23  ;;  %v4117_v15 = vpop.permute.xlu0 %4116 }
 0x4cd   :  { %4209 = vst.msk [vmem:[#allocation3 + $0x18] sm:$0xff] %vm1346_vm7, %v4117_v15  ;;  %v13087_v15 = vld [vmem:[#allocation39_spill] sm:$0xff] }
 0x4ce   :  { %v5001_v61 = vpop.permute.xlu1 %5000  ;;  %4294 = vrot.lane.b32.xlu0 %v13080_v55, %s6910_s12 }
 0x4cf   :  { %5096 = vst.msk [vmem:[#allocation3] sm:$0xff] %vm2242_vm13, %v5001_v61 }
 0x4d0   :  { %4130 = vrot.lane.b32.xlu1 %v10482_v20, %s6909_s28  ;;  %v4279_v14 = vpop.permute.xlu0 %4278  ;;  %v5129_v58 = vld [vmem:[#allocation3 + $0x8] sm:$0xff] }
 0x4d1   :  { %4371 = vst.msk [vmem:[#allocation3 + $0x18] sm:$0xff] %vm1509_vm8, %v4279_v14  ;;  %v3187_v14 = vld [vmem:[#allocation2 + $0x188] sm:$0xff] }
 0x4d2   :  { %v4115_v29 = vpop.permute.xlu1 %4114  ;;  %4446 = vrot.lane.b32.xlu0 %v13081_v34, %s6911_s15 }
 0x4d3   :  { %4208 = vst.msk [vmem:[#allocation3 + $0x10] sm:$0xff] %vm1346_vm7, %v4115_v29  ;;  %v3186_v29 = vld [vmem:[#allocation2 + $0x180] sm:$0xff] }
 0x4d4   :  { %4292 = vrot.lane.b32.xlu1 %v13078_v62, %s6910_s12  ;;  %v4431_v52 = vpop.permute.xlu0 %4430  ;;  %v13085_v62 = vld [vmem:[#allocation32_spill] sm:$0xff] }
 0x4d5   :  { %4523 = vst.msk [vmem:[#allocation3 + $0x18] sm:$0xff] %vm1662_vm9, %v4431_v52  ;;  %v4407_v52 = vrot.slane %v3187_v14, 1 }
 0x4d6   :  { %v4277_v9 = vpop.permute.xlu1 %4276  ;;  %v5128_v20 = vld [vmem:[#allocation3] sm:$0xff]  ;;  %4592 = vrot.lane.b32.xlu0 %v10497_v49, %s6912_s18 }
 0x4d7   :  { %4370 = vst.msk [vmem:[#allocation3 + $0x10] sm:$0xff] %vm1509_vm8, %v4277_v9  ;;  %6759 = vmatprep.mubr.bf16.mxu1 %v5128_v20  ;;  %v4406_v20 = vrot.slane %v3186_v29, 1 }
 0x4d8   :  { %4444 = vrot.lane.b32.xlu1 %v13079_v10, %s6911_s15  ;;  %6760 = vmatmul.mubr.bf16.vlgmr.msra.gmra.mrb[0].mxu1 %v5129_v58  ;;  %v4577_v7 = vpop.permute.xlu0 %4576 }
 0x4d9   :  { %4669 = vst.msk [vmem:[#allocation3 + $0x18] sm:$0xff] %vm1809_vm10, %v4577_v7 }
 0x4da   :  { %v4429_v8 = vpop.permute.xlu1 %4428  ;;  %4724 = vrot.lane.b32.xlu0 %v13082_v24, %s6913_s21 }
 0x4db   :  { %4522 = vst.msk [vmem:[#allocation3 + $0x10] sm:$0xff] %vm1662_vm9, %v4429_v8 }
 0x4dc   :  { %4590 = vrot.lane.b32.xlu1 %v10490_v32, %s6912_s18  ;;  %v4709_v30 = vpop.permute.xlu0 %4708 }
 0x4dd   :  { %4801 = vst.msk [vmem:[#allocation3 + $0x18] sm:$0xff] %vm1942_vm11, %v4709_v30  ;;  %v4552_v30 = vrot.slane %v3186_v29, 2 }
 0x4de   :  { %v4575_v25 = vpop.permute.xlu1 %4574  ;;  %4876 = vrot.lane.b32.xlu0 %v13083_v43, %s6914_s22 }
 0x4df   :  { %4668 = vst.msk [vmem:[#allocation3 + $0x10] sm:$0xff] %vm1809_vm10, %v4575_v25  ;;  %v4238_v25 = vpack.c.bf16 %v3187_v14, %v3186_v29 }
 0x4e0   :  { %4722 = vrot.lane.b32.xlu1 %v13080_v55, %s6913_s21  ;;  %v4861_v32 = vpop.permute.xlu0 %4860 }
 0x4e1   :  { %4953 = vst.msk [vmem:[#allocation3 + $0x18] sm:$0xff] %vm2095_vm12, %v4861_v32 }
 0x4e2   :  { %v4707_v41 = vpop.permute.xlu1 %4706  ;;  %5022 = vrot.lane.b32.xlu0 %v10514_v39, %s6915_s23 }
 0x4e3   :  { %4800 = vst.msk [vmem:[#allocation3 + $0x10] sm:$0xff] %vm1942_vm11, %v4707_v41  ;;  %v4408_v41 = vsel %vm543_vm4, %v4406_v20, %v4407_v52 }
 0x4e4   :  { %4874 = vrot.lane.b32.xlu1 %v13081_v34, %s6914_s22  ;;  %v5007_v4 = vpop.permute.xlu0 %5006  ;;  %v3188_v34 = vld [vmem:[#allocation2 + $0x190] sm:$0x3] }
 0x4e5   :  { %5099 = vst.msk [vmem:[#allocation3 + $0x18] sm:$0xff] %vm2242_vm13, %v5007_v4  ;;  %v4409_v8 = vrot.slane %v3188_v34, 1 }
 0x4e6   :  { %v4859_v53 = vpop.permute.xlu1 %4858  ;;  %4136 = vrot.lane.b32.xlu0 %v10514_v39, %s6909_s28 }
 0x4e7   :  { %4952 = vst.msk [vmem:[#allocation3 + $0x10] sm:$0xff] %vm2095_vm12, %v4859_v53  ;;  %v4410_v32 = vsel %vm543_vm4, %v4407_v52, %v4409_v8  ;;  %v4555_v53 = vrot.slane %v3188_v34, 2 }
 0x4e8   :  { %5020 = vrot.lane.b32.xlu1 %v10497_v49, %s6915_s23  ;;  %v4121_v36 = vpop.permute.xlu0 %4120 }
 0x4e9   :  { %4211 = vst.msk [vmem:[#allocation3 + $0x28] sm:$0xff] %vm1346_vm7, %v4121_v36  ;;  %v4420_v36 = vpack.c.bf16 %v4410_v32, %v4408_v41  ;;  %v6905_v32 = vld [vmem:[#allocation2 + $0x1c0] sm:$0x3] }
 0x4ea   :  { %v5005_v37 = vpop.permute.xlu1 %5004  ;;  %4298 = vrot.lane.b32.xlu0 %v13084_v56, %s6910_s12 }
 0x4eb   :  { %5098 = vst.msk [vmem:[#allocation3 + $0x10] sm:$0xff] %vm2242_vm13, %v5005_v37 }
 0x4ec   :  { %4134 = vrot.lane.b32.xlu1 %v10497_v49, %s6909_s28  ;;  %v4283_v17 = vpop.permute.xlu0 %4282  ;;  %v5131_v1 = vld [vmem:[#allocation3 + $0x18] sm:$0xff] }
 0x4ed   :  { %4373 = vst.msk [vmem:[#allocation3 + $0x28] sm:$0xff] %vm1509_vm8, %v4283_v17  ;;  %v3191_v17 = vld [vmem:[#allocation2 + $0x1a8] sm:$0x3] }
 0x4ee   :  { %v4119_v42 = vpop.permute.xlu1 %4118  ;;  %4450 = vrot.lane.b32.xlu0 %v13085_v62, %s6911_s15 }
 0x4ef   :  { %4210 = vst.msk [vmem:[#allocation3 + $0x20] sm:$0xff] %vm1346_vm7, %v4119_v42  ;;  %v3190_v42 = vld [vmem:[#allocation2 + $0x1a0] sm:$0xff] }
 0x4f0   :  { %4296 = vrot.lane.b32.xlu1 %v13082_v24, %s6910_s12  ;;  %v4435_v10 = vpop.permute.xlu0 %4434  ;;  %v4983_v29 = vrot.slane %v3190_v42, 2 }
 0x4f1   :  { %4525 = vst.msk [vmem:[#allocation3 + $0x28] sm:$0xff] %vm1662_vm9, %v4435_v10 }
 0x4f2   :  { %v4281_v50 = vpop.permute.xlu1 %4280  ;;  %v5130_v49 = vld [vmem:[#allocation3 + $0x10] sm:$0xff]  ;;  %4596 = vrot.lane.b32.xlu0 %v10520_v27, %s6912_s18 }
 0x4f3   :  { %4372 = vst.msk [vmem:[#allocation3 + $0x20] sm:$0xff] %vm1509_vm8, %v4281_v50  ;;  %6763 = vmatprep.mubr.bf16.mxu1 %v5130_v49 }
 0x4f4   :  { %4448 = vrot.lane.b32.xlu1 %v13083_v43, %s6911_s15  ;;  %6764 = vmatmul.mubr.bf16.gmra.mrb[4].mxu1 %v5131_v1  ;;  %v4581_v45 = vpop.permute.xlu0 %4580  ;;  %v4553_v43 = vrot.slane %v3187_v14, 2 }
 0x4f5   :  { %4671 = vst.msk [vmem:[#allocation3 + $0x28] sm:$0xff] %vm1809_vm10, %v4581_v45  ;;  %v4839_v45 = vrot.slane %v3191_v17, 1 }
 0x4f6   :  { %v4433_v60 = vpop.permute.xlu1 %4432  ;;  %4728 = vrot.lane.b32.xlu0 %v13086_v13, %s6913_s21 }
 0x4f7   :  { %4524 = vst.msk [vmem:[#allocation3 + $0x20] sm:$0xff] %vm1662_vm9, %v4433_v60  ;;  %v4837_v60 = vrot.slane %v3190_v42, 1 }
 0x4f8   :  { %4594 = vrot.lane.b32.xlu1 %v10514_v39, %s6912_s18  ;;  %v4713_v61 = vpop.permute.xlu0 %4712 }
 0x4f9   :  { %4803 = vst.msk [vmem:[#allocation3 + $0x28] sm:$0xff] %vm1942_vm11, %v4713_v61  ;;  %v4840_v34 = vsel %vm543_vm4, %v4837_v60, %v4839_v45 }
 0x4fa   :  { %v4579_v46 = vpop.permute.xlu1 %4578  ;;  %4880 = vrot.lane.b32.xlu0 %v13087_v15, %s6914_s22 }
 0x4fb   :  { %4670 = vst.msk [vmem:[#allocation3 + $0x20] sm:$0xff] %vm1809_vm10, %v4579_v46 }
 0x4fc   :  { %4726 = vrot.lane.b32.xlu1 %v13084_v56, %s6913_s21  ;;  %v4865_v39 = vpop.permute.xlu0 %4864  ;;  %v3189_v56 = vld [vmem:[#allocation2 + $0x198] sm:$0xff] }
 0x4fd   :  { %4955 = vst.msk [vmem:[#allocation3 + $0x28] sm:$0xff] %vm2095_vm12, %v4865_v39  ;;  %v4836_v10 = vrot.slane %v3189_v56, 1 }
 0x4fe   :  { %v4711_v55 = vpop.permute.xlu1 %4710  ;;  %5026 = vrot.lane.b32.xlu0 %v10525_v16, %s6915_s23 }
 0x4ff   :  { %4802 = vst.msk [vmem:[#allocation3 + $0x20] sm:$0xff] %vm1942_vm11, %v4711_v55  ;;  %v4982_v55 = vrot.slane %v3189_v56, 2  ;;  %v4838_v14 = vsel %vm543_vm4, %v4836_v10, %v4837_v60  ;;  %v13089_v10 = vld [vmem:[#allocation72_spill] sm:$0xff]  ;;  %v13090_v60 = vld [vmem:[#allocation53_spill] sm:$0xff] }
 0x500   :  { %4878 = vrot.lane.b32.xlu1 %v13085_v62, %s6914_s22  ;;  %v5011_v9 = vpop.permute.xlu0 %5010  ;;  %v4556_v62 = vsel %vm961_vm5, %v4553_v43, %v4555_v53  ;;  %v3905_v53 = vrot.slane %v6905_v32, 2 }
 0x501   :  { %5101 = vst.msk [vmem:[#allocation3 + $0x28] sm:$0xff] %vm2242_vm13, %v5011_v9  ;;  %v4984_v52 = vsel %vm961_vm5, %v4982_v55, %v4983_v29  ;;  %v13091_v55 = vld [vmem:[#allocation57_spill] sm:$0xff] }
 0x502   :  { %v4863_v58 = vpop.permute.xlu1 %4862  ;;  %4140 = vrot.lane.b32.xlu0 %v10525_v16, %s6909_s28 }
 0x503   :  { %4954 = vst.msk [vmem:[#allocation3 + $0x20] sm:$0xff] %vm2095_vm12, %v4863_v58  ;;  %v4985_v58 = vrot.slane %v3191_v17, 2 }
 0x504   :  { %5024 = vrot.lane.b32.xlu1 %v10520_v27, %s6915_s23  ;;  %v4125_v24 = vpop.permute.xlu0 %4124 }
 0x505   :  { %4213 = vst.msk [vmem:[#allocation3 + $0x38] sm:$0xff] %vm1346_vm7, %v4125_v24  ;;  %v4986_v8 = vsel %vm961_vm5, %v4983_v29, %v4985_v58  ;;  %v6903_v24 = vld [vmem:[#allocation2 + $0x1b0] sm:$0xff] }
 0x506   :  { %v5009_v7 = vpop.permute.xlu1 %5008  ;;  %4302 = vrot.lane.b32.xlu0 %v4238_v25, %s6910_s12 }
 0x507   :  { %5100 = vst.msk [vmem:[#allocation3 + $0x20] sm:$0xff] %vm2242_vm13, %v5009_v7 }
 0x508   :  { %4138 = vrot.lane.b32.xlu1 %v10520_v27, %s6909_s28  ;;  %v4287_v37 = vpop.permute.xlu0 %4286  ;;  %v4554_v27 = vsel %vm961_vm5, %v4552_v30, %v4553_v43  ;;  %v5133_v1 = vld [vmem:[#allocation3 + $0x28] sm:$0xff]  ;;  %v3902_v30 = vrot.slane %v6903_v24, 2  ;;  %v6904_v43 = vld [vmem:[#allocation2 + $0x1b8] sm:$0xff] }
 0x509   :  { %4375 = vst.msk [vmem:[#allocation3 + $0x38] sm:$0xff] %vm1509_vm8, %v4287_v37  ;;  %v4566_v61 = vpack.c.bf16 %v4556_v62, %v4554_v27  ;;  %v3903_v41 = vrot.slane %v6904_v43, 2  ;;  %v13095_v43 = vld [vmem:[#allocation24_spill] sm:$0xff] }
 0x50a   :  { %v4123_v4 = vpop.permute.xlu1 %4122  ;;  %4454 = vrot.lane.b32.xlu0 %v4420_v36, %s6911_s15 }
 0x50b   :  { %4212 = vst.msk [vmem:[#allocation3 + $0x30] sm:$0xff] %vm1346_vm7, %v4123_v4 }
 0x50c   :  { %4300 = vrot.lane.b32.xlu1 %v13086_v13, %s6910_s12  ;;  %v4439_v46 = vpop.permute.xlu0 %4438  ;;  %v4698_v13 = vpack.c.bf16 %v3190_v42, %v3189_v56  ;;  %v3906_v56 = vsel %vm961_vm5, %v3903_v41, %v3905_v53 }
 0x50d   :  { %4527 = vst.msk [vmem:[#allocation3 + $0x38] sm:$0xff] %vm1662_vm9, %v4439_v46 }
 0x50e   :  { %v4285_v50 = vpop.permute.xlu1 %4284  ;;  %v5132_v49 = vld [vmem:[#allocation3 + $0x20] sm:$0xff]  ;;  %4600 = vrot.lane.b32.xlu0 %v4566_v61, %s6912_s18 }
 0x50f   :  { %4374 = vst.msk [vmem:[#allocation3 + $0x30] sm:$0xff] %vm1509_vm8, %v4285_v50  ;;  %6767 = vmatprep.mubr.bf16.mxu1 %v5132_v49 }
 0x510   :  { %4452 = vrot.lane.b32.xlu1 %v13087_v15, %s6911_s15  ;;  %6768 = vmatmul.mubr.bf16.gmra.mrb[8].mxu1 %v5133_v1  ;;  %v4585_v9 = vpop.permute.xlu0 %4584  ;;  %v4850_v15 = vpack.c.bf16 %v4840_v34, %v4838_v14  ;;  %v13088_v1 = vld [vmem:[#allocation71_spill] sm:$0xff] }
 0x511   :  { %4673 = vst.msk [vmem:[#allocation3 + $0x38] sm:$0xff] %vm1809_vm10, %v4585_v9  ;;  %v13092_v14 = vld [vmem:[#allocation27_spill] sm:$0xff]  ;;  %v13093_v9 = vld [vmem:[#allocation28_spill] sm:$0xff] }
 0x512   :  { %v4437_v39 = vpop.permute.xlu1 %4436  ;;  %4732 = vrot.lane.b32.xlu0 %v4698_v13, %s6913_s21 }
 0x513   :  { %4526 = vst.msk [vmem:[#allocation3 + $0x30] sm:$0xff] %vm1662_vm9, %v4437_v39 }
 0x514   :  { %4598 = vrot.lane.b32.xlu1 %v10525_v16, %s6912_s18  ;;  %v4717_v7 = vpop.permute.xlu0 %4716  ;;  %v4996_v16 = vpack.c.bf16 %v4986_v8, %v4984_v52 }
 0x515   :  { %4805 = vst.msk [vmem:[#allocation3 + $0x38] sm:$0xff] %vm1942_vm11, %v4717_v7 }
 0x516   :  { %v4583_v20 = vpop.permute.xlu1 %4582  ;;  %4884 = vrot.lane.b32.xlu0 %v4850_v15, %s6914_s22 }
 0x517   :  { %4672 = vst.msk [vmem:[#allocation3 + $0x30] sm:$0xff] %vm1809_vm10, %v4583_v20 }
 0x518   :  { %4730 = vrot.lane.b32.xlu1 %v4238_v25, %s6913_s21  ;;  %v4869_v37 = vpop.permute.xlu0 %4868  ;;  %v3904_v25 = vsel %vm961_vm5, %v3902_v30, %v3903_v41 }
 0x519   :  { %4957 = vst.msk [vmem:[#allocation3 + $0x38] sm:$0xff] %vm2095_vm12, %v4869_v37  ;;  %v4062_v27 = vpack.c.bf16 %v3906_v56, %v3904_v25  ;;  %v13096_v25 = vld [vmem:[#allocation12_spill] sm:$0xff] }
 0x51a   :  { %v4715_v4 = vpop.permute.xlu1 %4714  ;;  %5030 = vrot.lane.b32.xlu0 %v4996_v16, %s6915_s23  ;;  %v13094_v16 = vld [vmem:[#allocation23_spill] sm:$0xff] }
 0x51b   :  { %4804 = vst.msk [vmem:[#allocation3 + $0x30] sm:$0xff] %vm1942_vm11, %v4715_v4 }
 0x51c   :  { %4882 = vrot.lane.b32.xlu1 %v4420_v36, %s6914_s22  ;;  %v5015_v17 = vpop.permute.xlu0 %5014 }
 0x51d   :  { %5103 = vst.msk [vmem:[#allocation3 + $0x38] sm:$0xff] %vm2242_vm13, %v5015_v17  ;;  %v13097_v17 = vld [vmem:[#allocation47_spill] sm:$0xff] }
 0x51e   :  { %v4867_v42 = vpop.permute.xlu1 %4866  ;;  %4144 = vrot.lane.b32.xlu0 %v10540_v11, %s6909_s28 }
 0x51f   :  { %4956 = vst.msk [vmem:[#allocation3 + $0x30] sm:$0xff] %vm2095_vm12, %v4867_v42 }
 0x520   :  { %5028 = vrot.lane.b32.xlu1 %v4566_v61, %s6915_s23  ;;  %v4129_v62 = vpop.permute.xlu0 %4128 }
 0x521   :  { %4215 = vst.msk [vmem:[#allocation3 + $0x48] sm:$0xff] %vm1346_vm7, %v4129_v62 }
 0x522   :  { %v5013_v36 = vpop.permute.xlu1 %5012  ;;  %4306 = vrot.lane.b32.xlu0 %v13088_v1, %s6910_s12 }
 0x523   :  { %5102 = vst.msk [vmem:[#allocation3 + $0x30] sm:$0xff] %vm2242_vm13, %v5013_v36 }
 0x524   :  { %4142 = vrot.lane.b32.xlu1 %v4062_v27, %s6909_s28  ;;  %v4291_v49 = vpop.permute.xlu0 %4290  ;;  %v5135_v45 = vld [vmem:[#allocation3 + $0x38] sm:$0xff] }
 0x525   :  { %4377 = vst.msk [vmem:[#allocation3 + $0x48] sm:$0xff] %vm1509_vm8, %v4291_v49  ;;  %v13098_v49 = vld [vmem:[#allocation30_spill] sm:$0xff] }
 0x526   :  { %v4127_v50 = vpop.permute.xlu1 %4126  ;;  %4458 = vrot.lane.b32.xlu0 %v13090_v60, %s6911_s15 }
 0x527   :  { %4214 = vst.msk [vmem:[#allocation3 + $0x40] sm:$0xff] %vm1346_vm7, %v4127_v50 }
 0x528   :  { %4304 = vrot.lane.b32.xlu1 %v13089_v10, %s6910_s12  ;;  %v4443_v13 = vpop.permute.xlu0 %4442 }
 0x529   :  { %4529 = vst.msk [vmem:[#allocation3 + $0x48] sm:$0xff] %vm1662_vm9, %v4443_v13 }
 0x52a   :  { %v4289_v46 = vpop.permute.xlu1 %4288  ;;  %v5134_v61 = vld [vmem:[#allocation3 + $0x30] sm:$0xff]  ;;  %4604 = vrot.lane.b32.xlu0 %v10558_v21, %s6912_s18 }
 0x52b   :  { %4376 = vst.msk [vmem:[#allocation3 + $0x40] sm:$0xff] %vm1509_vm8, %v4289_v46  ;;  %6771 = vmatprep.mubr.bf16.mxu1 %v5134_v61 }
 0x52c   :  { %4456 = vrot.lane.b32.xlu1 %v13091_v55, %s6911_s15  ;;  %6772 = vmatmul.mubr.bf16.gmra.mrb[12].mxu1 %v5135_v45  ;;  %v4589_v29 = vpop.permute.xlu0 %4588  ;;  %v13099_v45 = vld [vmem:[#allocation6_spill] sm:$0xff] }
 0x52d   :  { %4675 = vst.msk [vmem:[#allocation3 + $0x48] sm:$0xff] %vm1809_vm10, %v4589_v29  ;;  %v13100_v29 = vld [vmem:[#allocation35_spill] sm:$0xff] }
 0x52e   :  { %v4441_v39 = vpop.permute.xlu1 %4440  ;;  %4736 = vrot.lane.b32.xlu0 %v13092_v14, %s6913_s21 }
 0x52f   :  { %4528 = vst.msk [vmem:[#allocation3 + $0x40] sm:$0xff] %vm1662_vm9, %v4441_v39 }
 0x530   :  { %4602 = vrot.lane.b32.xlu1 %v10540_v11, %s6912_s18  ;;  %v4721_v58 = vpop.permute.xlu0 %4720 }
 0x531   :  { %4807 = vst.msk [vmem:[#allocation3 + $0x48] sm:$0xff] %vm1942_vm11, %v4721_v58  ;;  %v13101_v58 = vld [vmem:[#allocation8_spill] sm:$0xff] }
 0x532   :  { %v4587_v34 = vpop.permute.xlu1 %4586  ;;  %4888 = vrot.lane.b32.xlu0 %v13093_v9, %s6914_s22 }
 0x533   :  { %4674 = vst.msk [vmem:[#allocation3 + $0x40] sm:$0xff] %vm1809_vm10, %v4587_v34 }
 0x534   :  { %4734 = vrot.lane.b32.xlu1 %v13088_v1, %s6913_s21  ;;  %v4873_v11 = vpop.permute.xlu0 %4872 }
 0x535   :  { %4959 = vst.msk [vmem:[#allocation3 + $0x48] sm:$0xff] %vm2095_vm12, %v4873_v11 }
 0x536   :  { %v4719_v15 = vpop.permute.xlu1 %4718  ;;  %5034 = vrot.lane.b32.xlu0 %v10565_v31, %s6915_s23 }
 0x537   :  { %4806 = vst.msk [vmem:[#allocation3 + $0x40] sm:$0xff] %vm1942_vm11, %v4719_v15 }
 0x538   :  { %4886 = vrot.lane.b32.xlu1 %v13090_v60, %s6914_s22  ;;  %v5019_v52 = vpop.permute.xlu0 %5018 }
 0x539   :  { %5105 = vst.msk [vmem:[#allocation3 + $0x48] sm:$0xff] %vm2242_vm13, %v5019_v52 }
 0x53a   :  { %v4871_v20 = vpop.permute.xlu1 %4870  ;;  %4148 = vrot.lane.b32.xlu0 %v10565_v31, %s6909_s28 }
 0x53b   :  { %4958 = vst.msk [vmem:[#allocation3 + $0x40] sm:$0xff] %vm2095_vm12, %v4871_v20 }
 0x53c   :  { %5032 = vrot.lane.b32.xlu1 %v10558_v21, %s6915_s23  ;;  %v4133_v7 = vpop.permute.xlu0 %4132 }
 0x53d   :  { %4217 = vst.msk [vmem:[#allocation3 + $0x58] sm:$0xff] %vm1346_vm7, %v4133_v7 }
 0x53e   :  { %v5017_v8 = vpop.permute.xlu1 %5016  ;;  %4310 = vrot.lane.b32.xlu0 %v13094_v16, %s6910_s12 }
 0x53f   :  { %5104 = vst.msk [vmem:[#allocation3 + $0x40] sm:$0xff] %vm2242_vm13, %v5017_v8  ;;  %v13102_v8 = vld [vmem:[#allocation40_spill] sm:$0xff] }
 0x540   :  { %4146 = vrot.lane.b32.xlu1 %v10558_v21, %s6909_s28  ;;  %v4295_v30 = vpop.permute.xlu0 %4294  ;;  %v5137_v41 = vld [vmem:[#allocation3 + $0x48] sm:$0xff] }
 0x541   :  { %4379 = vst.msk [vmem:[#allocation3 + $0x58] sm:$0xff] %vm1509_vm8, %v4295_v30 }
 0x542   :  { %v4131_v24 = vpop.permute.xlu1 %4130  ;;  %4462 = vrot.lane.b32.xlu0 %v13095_v43, %s6911_s15 }
 0x543   :  { %4216 = vst.msk [vmem:[#allocation3 + $0x50] sm:$0xff] %vm1346_vm7, %v4131_v24  ;;  %v13103_v24 = vld [vmem:[#allocation7_spill] sm:$0xff] }
 0x544   :  { %4308 = vrot.lane.b32.xlu1 %v13092_v14, %s6910_s12  ;;  %v4447_v53 = vpop.permute.xlu0 %4446 }
 0x545   :  { %4531 = vst.msk [vmem:[#allocation3 + $0x58] sm:$0xff] %vm1662_vm9, %v4447_v53 }
 0x546   :  { %v4293_v32 = vpop.permute.xlu1 %4292  ;;  %v5136_v21 = vld [vmem:[#allocation3 + $0x40] sm:$0xff]  ;;  %4608 = vrot.lane.b32.xlu0 %v10570_v0, %s6912_s18 }
 0x547   :  { %4378 = vst.msk [vmem:[#allocation3 + $0x50] sm:$0xff] %vm1509_vm8, %v4293_v32  ;;  %6775 = vmatprep.mubr.bf16.mxu1 %v5136_v21 }
 0x548   :  { %4460 = vrot.lane.b32.xlu1 %v13093_v9, %s6911_s15  ;;  %6776 = vmatmul.mubr.bf16.gmra.mrb[16].mxu1 %v5137_v41  ;;  %v4593_v37 = vpop.permute.xlu0 %4592 }
 0x549   :  { %4677 = vst.msk [vmem:[#allocation3 + $0x58] sm:$0xff] %vm1809_vm10, %v4593_v37  ;;  %v13104_v37 = vld [vmem:[#allocation10_spill] sm:$0xff] }
 0x54a   :  { %v4445_v4 = vpop.permute.xlu1 %4444  ;;  %4740 = vrot.lane.b32.xlu0 %v13096_v25, %s6913_s21 }
 0x54b   :  { %4530 = vst.msk [vmem:[#allocation3 + $0x50] sm:$0xff] %vm1662_vm9, %v4445_v4 }
 0x54c   :  { %4606 = vrot.lane.b32.xlu1 %v10565_v31, %s6912_s18  ;;  %v4725_v42 = vpop.permute.xlu0 %4724 }
 0x54d   :  { %4809 = vst.msk [vmem:[#allocation3 + $0x58] sm:$0xff] %vm1942_vm11, %v4725_v42 }
 0x54e   :  { %v4591_v56 = vpop.permute.xlu1 %4590  ;;  %4892 = vrot.lane.b32.xlu0 %v13097_v17, %s6914_s22 }
 0x54f   :  { %4676 = vst.msk [vmem:[#allocation3 + $0x50] sm:$0xff] %vm1809_vm10, %v4591_v56 }
 0x550   :  { %4738 = vrot.lane.b32.xlu1 %v13094_v16, %s6913_s21  ;;  %v4877_v31 = vpop.permute.xlu0 %4876 }
 0x551   :  { %4961 = vst.msk [vmem:[#allocation3 + $0x58] sm:$0xff] %vm2095_vm12, %v4877_v31 }
 0x552   :  { %v4723_v27 = vpop.permute.xlu1 %4722  ;;  %5038 = vrot.lane.b32.xlu0 %v10581_v44, %s6915_s23 }
 0x553   :  { %4808 = vst.msk [vmem:[#allocation3 + $0x50] sm:$0xff] %vm1942_vm11, %v4723_v27 }
 0x554   :  { %4890 = vrot.lane.b32.xlu1 %v13095_v43, %s6914_s22  ;;  %v5023_v62 = vpop.permute.xlu0 %5022 }
 0x555   :  { %5107 = vst.msk [vmem:[#allocation3 + $0x58] sm:$0xff] %vm2242_vm13, %v5023_v62  ;;  %v13105_v62 = vld [vmem:[#allocation9_spill] sm:$0xff] }
 0x556   :  { %v4875_v36 = vpop.permute.xlu1 %4874  ;;  %4152 = vrot.lane.b32.xlu0 %v10581_v44, %s6909_s28 }
 0x557   :  { %4960 = vst.msk [vmem:[#allocation3 + $0x50] sm:$0xff] %vm2095_vm12, %v4875_v36 }
 0x558   :  { %5036 = vrot.lane.b32.xlu1 %v10570_v0, %s6915_s23  ;;  %v4137_v50 = vpop.permute.xlu0 %4136 }
 0x559   :  { %4219 = vst.msk [vmem:[#allocation3 + $0x68] sm:$0xff] %vm1346_vm7, %v4137_v50 }
 0x55a   :  { %v5021_v1 = vpop.permute.xlu1 %5020  ;;  %4314 = vrot.lane.b32.xlu0 %v13098_v49, %s6910_s12 }
 0x55b   :  { %5106 = vst.msk [vmem:[#allocation3 + $0x50] sm:$0xff] %vm2242_vm13, %v5021_v1 }
 0x55c   :  { %4150 = vrot.lane.b32.xlu1 %v10570_v0, %s6909_s28  ;;  %v4299_v60 = vpop.permute.xlu0 %4298  ;;  %v5139_v46 = vld [vmem:[#allocation3 + $0x58] sm:$0xff] }
 0x55d   :  { %4381 = vst.msk [vmem:[#allocation3 + $0x68] sm:$0xff] %vm1509_vm8, %v4299_v60 }
 0x55e   :  { %v4135_v10 = vpop.permute.xlu1 %4134  ;;  %4466 = vrot.lane.b32.xlu0 %v13099_v45, %s6911_s15 }
 0x55f   :  { %4218 = vst.msk [vmem:[#allocation3 + $0x60] sm:$0xff] %vm1346_vm7, %v4135_v10 }
 0x560   :  { %4312 = vrot.lane.b32.xlu1 %v13096_v25, %s6910_s12  ;;  %v4451_v13 = vpop.permute.xlu0 %4450 }
 0x561   :  { %4533 = vst.msk [vmem:[#allocation3 + $0x68] sm:$0xff] %vm1662_vm9, %v4451_v13 }
 0x562   :  { %v4297_v61 = vpop.permute.xlu1 %4296  ;;  %v5138_v0 = vld [vmem:[#allocation3 + $0x50] sm:$0xff]  ;;  %4612 = vrot.lane.b32.xlu0 %v10588_v6, %s6912_s18 }
 0x563   :  { %4380 = vst.msk [vmem:[#allocation3 + $0x60] sm:$0xff] %vm1509_vm8, %v4297_v61  ;;  %6779 = vmatprep.mubr.bf16.mxu1 %v5138_v0 }
 0x564   :  { %4464 = vrot.lane.b32.xlu1 %v13097_v17, %s6911_s15  ;;  %6780 = vmatmul.mubr.bf16.gmra.mrb[20].mxu1 %v5139_v46  ;;  %v4597_v39 = vpop.permute.xlu0 %4596 }
 0x565   :  { %4679 = vst.msk [vmem:[#allocation3 + $0x68] sm:$0xff] %vm1809_vm10, %v4597_v39 }
 0x566   :  { %v4449_v55 = vpop.permute.xlu1 %4448  ;;  %4744 = vrot.lane.b32.xlu0 %v13100_v29, %s6913_s21 }
 0x567   :  { %4532 = vst.msk [vmem:[#allocation3 + $0x60] sm:$0xff] %vm1662_vm9, %v4449_v55 }
 0x568   :  { %4610 = vrot.lane.b32.xlu1 %v10581_v44, %s6912_s18  ;;  %v4729_v34 = vpop.permute.xlu0 %4728 }
 0x569   :  { %4811 = vst.msk [vmem:[#allocation3 + $0x68] sm:$0xff] %vm1942_vm11, %v4729_v34 }
 0x56a   :  { %v4595_v14 = vpop.permute.xlu1 %4594  ;;  %4896 = vrot.lane.b32.xlu0 %v13101_v58, %s6914_s22 }
 0x56b   :  { %4678 = vst.msk [vmem:[#allocation3 + $0x60] sm:$0xff] %vm1809_vm10, %v4595_v14 }
 0x56c   :  { %4742 = vrot.lane.b32.xlu1 %v13098_v49, %s6913_s21  ;;  %v4881_v44 = vpop.permute.xlu0 %4880 }
 0x56d   :  { %4963 = vst.msk [vmem:[#allocation3 + $0x68] sm:$0xff] %vm2095_vm12, %v4881_v44 }
 0x56e   :  { %v4727_v9 = vpop.permute.xlu1 %4726  ;;  %5042 = vrot.lane.b32.xlu0 %v10597_v19, %s6915_s23 }
 0x56f   :  { %4810 = vst.msk [vmem:[#allocation3 + $0x60] sm:$0xff] %vm1942_vm11, %v4727_v9 }
 0x570   :  { %4894 = vrot.lane.b32.xlu1 %v13099_v45, %s6914_s22  ;;  %v5027_v11 = vpop.permute.xlu0 %5026 }
 0x571   :  { %5109 = vst.msk [vmem:[#allocation3 + $0x68] sm:$0xff] %vm2242_vm13, %v5027_v11 }
 0x572   :  { %v4879_v15 = vpop.permute.xlu1 %4878  ;;  %4156 = vrot.lane.b32.xlu0 %v10597_v19, %s6909_s28 }
 0x573   :  { %4962 = vst.msk [vmem:[#allocation3 + $0x60] sm:$0xff] %vm2095_vm12, %v4879_v15 }
 0x574   :  { %5040 = vrot.lane.b32.xlu1 %v10588_v6, %s6915_s23  ;;  %v4141_v52 = vpop.permute.xlu0 %4140 }
 0x575   :  { %4221 = vst.msk [vmem:[#allocation3 + $0x78] sm:$0xff] %vm1346_vm7, %v4141_v52 }
 0x576   :  { %v5025_v20 = vpop.permute.xlu1 %5024  ;;  %4318 = vrot.lane.b32.xlu0 %v13102_v8, %s6910_s12 }
 0x577   :  { %5108 = vst.msk [vmem:[#allocation3 + $0x60] sm:$0xff] %vm2242_vm13, %v5025_v20 }
 0x578   :  { %4154 = vrot.lane.b32.xlu1 %v10588_v6, %s6909_s28  ;;  %v4303_v16 = vpop.permute.xlu0 %4302  ;;  %v5141_v30 = vld [vmem:[#allocation3 + $0x68] sm:$0xff] }
 0x579   :  { %4383 = vst.msk [vmem:[#allocation3 + $0x78] sm:$0xff] %vm1509_vm8, %v4303_v16 }
 0x57a   :  { %v4139_v7 = vpop.permute.xlu1 %4138  ;;  %4470 = vrot.lane.b32.xlu0 %v13103_v24, %s6911_s15 }
 0x57b   :  { %4220 = vst.msk [vmem:[#allocation3 + $0x70] sm:$0xff] %vm1346_vm7, %v4139_v7 }
 0x57c   :  { %4316 = vrot.lane.b32.xlu1 %v13100_v29, %s6910_s12  ;;  %v4455_v41 = vpop.permute.xlu0 %4454 }
 0x57d   :  { %4535 = vst.msk [vmem:[#allocation3 + $0x78] sm:$0xff] %vm1662_vm9, %v4455_v41 }
 0x57e   :  { %v4301_v43 = vpop.permute.xlu1 %4300  ;;  %v5140_v6 = vld [vmem:[#allocation3 + $0x60] sm:$0xff]  ;;  %4616 = vrot.lane.b32.xlu0 %v10610_v22, %s6912_s18 }
 0x57f   :  { %4382 = vst.msk [vmem:[#allocation3 + $0x70] sm:$0xff] %vm1509_vm8, %v4301_v43  ;;  %6783 = vmatprep.mubr.bf16.mxu1 %v5140_v6 }
 0x580   :  { %4468 = vrot.lane.b32.xlu1 %v13101_v58, %s6911_s15  ;;  %6784 = vmatmul.mubr.bf16.gmra.mrb[24].mxu1 %v5141_v30  ;;  %v4601_v21 = vpop.permute.xlu0 %4600 }
 0x581   :  { %4681 = vst.msk [vmem:[#allocation3 + $0x78] sm:$0xff] %vm1809_vm10, %v4601_v21 }
 0x582   :  { %v4453_v32 = vpop.permute.xlu1 %4452  ;;  %4748 = vrot.lane.b32.xlu0 %v10452_v12, %s6913_s21 }
 0x583   :  { %4534 = vst.msk [vmem:[#allocation3 + $0x70] sm:$0xff] %vm1662_vm9, %v4453_v32 }
 0x584   :  { %4614 = vrot.lane.b32.xlu1 %v10597_v19, %s6912_s18  ;;  %v4733_v4 = vpop.permute.xlu0 %4732 }
 0x585   :  { %4813 = vst.msk [vmem:[#allocation3 + $0x78] sm:$0xff] %vm1942_vm11, %v4733_v4 }
 0x586   :  { %v4599_v53 = vpop.permute.xlu1 %4598  ;;  %4900 = vrot.lane.b32.xlu0 %v13104_v37, %s6914_s22 }
 0x587   :  { %4680 = vst.msk [vmem:[#allocation3 + $0x70] sm:$0xff] %vm1809_vm10, %v4599_v53 }
 0x588   :  { %4746 = vrot.lane.b32.xlu1 %v13102_v8, %s6913_s21  ;;  %v4885_v19 = vpop.permute.xlu0 %4884 }
 0x589   :  { %4965 = vst.msk [vmem:[#allocation3 + $0x78] sm:$0xff] %vm2095_vm12, %v4885_v19 }
 0x58a   :  { %v4731_v25 = vpop.permute.xlu1 %4730  ;;  %5046 = vrot.lane.b32.xlu0 %v10615_v5, %s6915_s23 }
 0x58b   :  { %4812 = vst.msk [vmem:[#allocation3 + $0x70] sm:$0xff] %vm1942_vm11, %v4731_v25 }
 0x58c   :  { %4898 = vrot.lane.b32.xlu1 %v13103_v24, %s6914_s22  ;;  %v5031_v42 = vpop.permute.xlu0 %5030 }
 0x58d   :  { %5111 = vst.msk [vmem:[#allocation3 + $0x78] sm:$0xff] %vm2242_vm13, %v5031_v42 }
 0x58e   :  { %v4883_v56 = vpop.permute.xlu1 %4882  ;;  %4160 = vrot.lane.b32.xlu0 %v10615_v5, %s6909_s28 }
 0x58f   :  { %4964 = vst.msk [vmem:[#allocation3 + $0x70] sm:$0xff] %vm2095_vm12, %v4883_v56 }
 0x590   :  { %5044 = vrot.lane.b32.xlu1 %v10610_v22, %s6915_s23  ;;  %v4145_v27 = vpop.permute.xlu0 %4144 }
 0x591   :  { %4223 = vst.msk [vmem:[#allocation3 + $0x88] sm:$0xff] %vm1346_vm7, %v4145_v27 }
 0x592   :  { %v5029_v17 = vpop.permute.xlu1 %5028  ;;  %4322 = vrot.lane.b32.xlu0 %v10448_v2, %s6910_s12 }
 0x593   :  { %5110 = vst.msk [vmem:[#allocation3 + $0x70] sm:$0xff] %vm2242_vm13, %v5029_v17 }
 0x594   :  { %4158 = vrot.lane.b32.xlu1 %v10610_v22, %s6909_s28  ;;  %v4307_v36 = vpop.permute.xlu0 %4306  ;;  %v5143_v1 = vld [vmem:[#allocation3 + $0x78] sm:$0xff] }
 0x595   :  { %4385 = vst.msk [vmem:[#allocation3 + $0x88] sm:$0xff] %vm1509_vm8, %v4307_v36 }
 0x596   :  { %v4143_v31 = vpop.permute.xlu1 %4142  ;;  %4474 = vrot.lane.b32.xlu0 %v13105_v62, %s6911_s15 }
 0x597   :  { %4222 = vst.msk [vmem:[#allocation3 + $0x80] sm:$0xff] %vm1346_vm7, %v4143_v31 }
 0x598   :  { %4320 = vrot.lane.b32.xlu1 %v10452_v12, %s6910_s12  ;;  %v4459_v49 = vpop.permute.xlu0 %4458 }
 0x599   :  { %4537 = vst.msk [vmem:[#allocation3 + $0x88] sm:$0xff] %vm1662_vm9, %v4459_v49 }
 0x59a   :  { %v4305_v50 = vpop.permute.xlu1 %4304  ;;  %v5142_v22 = vld [vmem:[#allocation3 + $0x70] sm:$0xff]  ;;  %4620 = vrot.lane.b32.xlu0 %v10619_v47, %s6912_s18 }
 0x59b   :  { %4384 = vst.msk [vmem:[#allocation3 + $0x80] sm:$0xff] %vm1509_vm8, %v4305_v50  ;;  %6787 = vmatprep.mubr.bf16.mxu1 %v5142_v22 }
 0x59c   :  { %4472 = vrot.lane.b32.xlu1 %v13104_v37, %s6911_s15  ;;  %6788 = vmatmul.mubr.bf16.gmra.mrb[28].mxu1 %v5143_v1  ;;  %v4605_v10 = vpop.permute.xlu0 %4604 }
 0x59d   :  { %4683 = vst.msk [vmem:[#allocation3 + $0x88] sm:$0xff] %vm1809_vm10, %v4605_v10 }
 0x59e   :  { %v4457_v12 = vpop.permute.xlu1 %4456  ;;  %4752 = vrot.lane.b32.xlu0 %v10613_v3, %s6913_s21 }
 0x59f   :  { %4536 = vst.msk [vmem:[#allocation3 + $0x80] sm:$0xff] %vm1662_vm9, %v4457_v12 }
 0x5a0   :  { %4618 = vrot.lane.b32.xlu1 %v10615_v5, %s6912_s18  ;;  %v4737_v45 = vpop.permute.xlu0 %4736 }
 0x5a1   :  { %4815 = vst.msk [vmem:[#allocation3 + $0x88] sm:$0xff] %vm1942_vm11, %v4737_v45 }
 0x5a2   :  { %v4603_v60 = vpop.permute.xlu1 %4602  ;;  %4904 = vrot.lane.b32.xlu0 %v10632_v57, %s6914_s22 }
 0x5a3   :  { %4682 = vst.msk [vmem:[#allocation3 + $0x80] sm:$0xff] %vm1809_vm10, %v4603_v60 }
 0x5a4   :  { %4750 = vrot.lane.b32.xlu1 %v10448_v2, %s6913_s21  ;;  %v4889_v5 = vpop.permute.xlu0 %4888 }
 0x5a5   :  { %4967 = vst.msk [vmem:[#allocation3 + $0x88] sm:$0xff] %vm2095_vm12, %v4889_v5 }
 0x5a6   :  { %v4735_v46 = vpop.permute.xlu1 %4734  ;;  %5050 = vrot.lane.b32.xlu0 %v10637_v23, %s6915_s23 }
 0x5a7   :  { %4814 = vst.msk [vmem:[#allocation3 + $0x80] sm:$0xff] %vm1942_vm11, %v4735_v46 }
 0x5a8   :  { %4902 = vrot.lane.b32.xlu1 %v13105_v62, %s6914_s22  ;;  %v5035_v0 = vpop.permute.xlu0 %5034 }
 0x5a9   :  { %5113 = vst.msk [vmem:[#allocation3 + $0x88] sm:$0xff] %vm2242_vm13, %v5035_v0 }
 0x5aa   :  { %v4887_v61 = vpop.permute.xlu1 %4886  ;;  %4162 = vrot.lane.b32.xlu0 %v10619_v47, %s6909_s28 }
 0x5ab   :  { %4966 = vst.msk [vmem:[#allocation3 + $0x80] sm:$0xff] %vm2095_vm12, %v4887_v61  ;;  %v11161_v2 = vpop.f32.mrb[0].mxu1 }
 0x5ac   :  { %5048 = vrot.lane.b32.xlu1 %v10619_v47, %s6915_s23  ;;  %v11165_v13 = vpop.f32.mrb[1].mxu1  ;;  %v4149_v9 = vpop.permute.xlu0 %4148  ;;  %v5568_v47 = vmul.f32 %v11161_v2, %v11161_v2 }
 0x5ad   :  { %v11168_v55 = vpop.f32.mrb[2].mxu1  ;;  %v5566_v14 = vmul.f32 %v11165_v13, %v11165_v13  ;;  %4225 = vst.msk [vmem:[#allocation3 + $0x98] sm:$0xff] %vm1346_vm7, %v4149_v9 }
 0x5ae   :  { %v5033_v39 = vpop.permute.xlu1 %5032  ;;  %v11172_v29 = vpop.f32.mrb[3].mxu1  ;;  %4324 = vrot.lane.b32.xlu0 %v10613_v3, %s6910_s12  ;;  %v5569_v20 = vmul.f32 %v11168_v55, %v11168_v55 }
 0x5af   :  { %5112 = vst.msk [vmem:[#allocation3 + $0x80] sm:$0xff] %vm2242_vm13, %v5033_v39  ;;  %v5497_v34 = vadd.f32 %v11172_v29, %v11165_v13  ;;  %v5567_v58 = vmul.f32 %v11172_v29, %v11172_v29 }
 0x5b0   :  { %3748 = vrot.lane.b32.xlu1 %v10632_v57, %s6908_s27  ;;  %v4311_v8 = vpop.permute.xlu0 %4310  ;;  %v5145_v16 = vld [vmem:[#allocation3 + $0x88] sm:$0xff] }
 0x5b1   :  { %v5498_v44 = vadd.f32 %v11161_v2, %v5497_v34  ;;  %v5630_v15 = vadd.f32 %v5567_v58, %v5566_v14  ;;  %4387 = vst.msk [vmem:[#allocation3 + $0x98] sm:$0xff] %vm1509_vm8, %v4311_v8 }
 0x5b2   :  { %v4147_v11 = vpop.permute.xlu1 %4146  ;;  %4476 = vrot.lane.b32.xlu0 %v10632_v57, %s6911_s15 }
 0x5b3   :  { %v5631_v52 = vadd.f32 %v5630_v15, %v5568_v47  ;;  %4224 = vst.msk [vmem:[#allocation3 + $0x90] sm:$0xff] %vm1346_vm7, %v4147_v11  ;;  %v5499_v7 = vadd.f32 %v11168_v55, %v5498_v44 }
 0x5b4   :  { %4164 = vrot.lane.b32.xlu1 %v10637_v23, %s6909_s28  ;;  %v4463_v43 = vpop.permute.xlu0 %4462 }
 0x5b5   :  { %v5632_v3 = vadd.f32 %v5631_v52, %v5569_v20  ;;  %4539 = vst.msk [vmem:[#allocation3 + $0x98] sm:$0xff] %vm1662_vm9, %v4463_v43 }
 0x5b6   :  { %v4309_v24 = vpop.permute.xlu1 %4308  ;;  %v5144_v30 = vld [vmem:[#allocation3 + $0x80] sm:$0xff]  ;;  %4622 = vrot.lane.b32.xlu0 %v10637_v23, %s6912_s18 }
 0x5b7   :  { %4386 = vst.msk [vmem:[#allocation3 + $0x90] sm:$0xff] %vm1509_vm8, %v4309_v24  ;;  %6791 = vmatprep.mubr.bf16.mxu1 %v5144_v30 }
 0x5b8   :  { %4326 = vrot.lane.b32.xlu1 %v10626_v28, %s6910_s12  ;;  %6792 = vmatmul.mubr.bf16.gmra.mrb[32].mxu1 %v5145_v16  ;;  %v4609_v57 = vpop.permute.xlu0 %4608 }
 0x5b9   :  { %4685 = vst.msk [vmem:[#allocation3 + $0x98] sm:$0xff] %vm1809_vm10, %v4609_v57 }
 0x5ba   :  { %v4461_v6 = vpop.permute.xlu1 %4460  ;;  %4754 = vrot.lane.b32.xlu0 %v10626_v28, %s6913_s21 }
 0x5bb   :  { %4538 = vst.msk [vmem:[#allocation3 + $0x90] sm:$0xff] %vm1662_vm9, %v4461_v6 }
 0x5bc   :  { %4478 = vrot.lane.b32.xlu1 %v10648_v18, %s6911_s15  ;;  %v4741_v32 = vpop.permute.xlu0 %4740 }
 0x5bd   :  { %4817 = vst.msk [vmem:[#allocation3 + $0x98] sm:$0xff] %vm1942_vm11, %v4741_v32 }
 0x5be   :  { %v4607_v41 = vpop.permute.xlu1 %4606  ;;  %4906 = vrot.lane.b32.xlu0 %v10648_v18, %s6914_s22 }
 0x5bf   :  { %4684 = vst.msk [vmem:[#allocation3 + $0x90] sm:$0xff] %vm1809_vm10, %v4607_v41 }
 0x5c0   :  { %4624 = vrot.lane.b32.xlu1 %v10653_v33, %s6912_s18  ;;  %v4893_v21 = vpop.permute.xlu0 %4892 }
 0x5c1   :  { %4969 = vst.msk [vmem:[#allocation3 + $0x98] sm:$0xff] %vm2095_vm12, %v4893_v21 }
 0x5c2   :  { %v4739_v23 = vpop.permute.xlu1 %4738  ;;  %5052 = vrot.lane.b32.xlu0 %v10653_v33, %s6915_s23 }
 0x5c3   :  { %4816 = vst.msk [vmem:[#allocation3 + $0x90] sm:$0xff] %vm1942_vm11, %v4739_v23 }
 0x5c4   :  { %4756 = vrot.lane.b32.xlu1 %v10640_v54, %s6913_s21  ;;  %v5039_v4 = vpop.permute.xlu0 %5038 }
 0x5c5   :  { %5115 = vst.msk [vmem:[#allocation3 + $0x98] sm:$0xff] %vm2242_vm13, %v5039_v4 }
 0x5c6   :  { %v4891_v28 = vpop.permute.xlu1 %4890  ;;  %5054 = vrot.lane.b32.xlu0 %v10667_v38, %s6915_s23 }
 0x5c7   :  { %4968 = vst.msk [vmem:[#allocation3 + $0x90] sm:$0xff] %vm2095_vm12, %v4891_v28  ;;  %v11223_v53 = vpop.f32.mrb[4].mxu1 }
 0x5c8   :  { %4908 = vrot.lane.b32.xlu1 %v10665_v35, %s6914_s22  ;;  %v11227_v37 = vpop.f32.mrb[5].mxu1  ;;  %v4153_v62 = vpop.permute.xlu0 %4152  ;;  %v5572_v1 = vmul.f32 %v11223_v53, %v11223_v53 }
 0x5c9   :  { %v5500_v25 = vadd.f32 %v5499_v7, %v11227_v37  ;;  %v5570_v19 = vmul.f32 %v11227_v37, %v11227_v37  ;;  %v11233_v56 = vpop.f32.mrb[6].mxu1  ;;  %4227 = vst.msk [vmem:[#allocation3 + $0xa8] sm:$0xff] %vm1346_vm7, %v4153_v62 }
 0x5ca   :  { %v5037_v42 = vpop.permute.xlu1 %5036  ;;  %v11237_v17 = vpop.f32.mrb[7].mxu1  ;;  %4166 = vrot.lane.b32.xlu0 %v10653_v33, %s6909_s28  ;;  %v5573_v12 = vmul.f32 %v11233_v56, %v11233_v56 }
 0x5cb   :  { %v5633_v27 = vadd.f32 %v5632_v3, %v5570_v19  ;;  %5114 = vst.msk [vmem:[#allocation3 + $0x90] sm:$0xff] %vm2242_vm13, %v5037_v42  ;;  %v5501_v31 = vadd.f32 %v5500_v25, %v11237_v17  ;;  %v5571_v36 = vmul.f32 %v11237_v17, %v11237_v17  ;;  %v3241_v19 = vld [vmem:[#allocation2 + $0x338] sm:$0xff]  ;;  %v3242_v42 = vld [vmem:[#allocation2 + $0x340] sm:$0x3] }
 0x5cc   :  { %3750 = vrot.lane.b32.xlu1 %v10648_v18, %s6908_s27  ;;  %v4315_v60 = vpop.permute.xlu0 %4314  ;;  %v5147_v45 = vld [vmem:[#allocation3 + $0x98] sm:$0xff]  ;;  %v4414_v62 = vrot.slane %v3242_v42, 1 }
 0x5cd   :  { %v5502_v50 = vadd.f32 %v11223_v53, %v5501_v31  ;;  %v5634_v22 = vadd.f32 %v5633_v27, %v5571_v36  ;;  %4389 = vst.msk [vmem:[#allocation3 + $0xa8] sm:$0xff] %vm1509_vm8, %v4315_v60  ;;  %v4412_v36 = vrot.slane %v3241_v19, 1  ;;  %v4560_v60 = vrot.slane %v3242_v42, 2 }
 0x5ce   :  { %v4151_v49 = vpop.permute.xlu1 %4150  ;;  %4328 = vrot.lane.b32.xlu0 %v10640_v54, %s6910_s12 }
 0x5cf   :  { %v5635_v10 = vadd.f32 %v5634_v22, %v5572_v1  ;;  %4226 = vst.msk [vmem:[#allocation3 + $0xa0] sm:$0xff] %vm1346_vm7, %v4151_v49  ;;  %v5503_v18 = vadd.f32 %v11233_v56, %v5502_v50 }
 0x5d0   :  { %3752 = vrot.lane.b32.xlu1 %v10665_v35, %s6908_s27  ;;  %v4467_v61 = vpop.permute.xlu0 %4466 }
 0x5d1   :  { %v5636_v33 = vadd.f32 %v5635_v10, %v5573_v12  ;;  %4541 = vst.msk [vmem:[#allocation3 + $0xa8] sm:$0xff] %vm1662_vm9, %v4467_v61  ;;  %v4415_v10 = vsel %vm543_vm4, %v4412_v36, %v4414_v62 }
 0x5d2   :  { %v4313_v46 = vpop.permute.xlu1 %4312  ;;  %v5146_v5 = vld [vmem:[#allocation3 + $0x90] sm:$0xff]  ;;  %4480 = vrot.lane.b32.xlu0 %v10665_v35, %s6911_s15 }
 0x5d3   :  { %4388 = vst.msk [vmem:[#allocation3 + $0xa0] sm:$0xff] %vm1509_vm8, %v4313_v46  ;;  %6795 = vmatprep.mubr.bf16.mxu1 %v5146_v5  ;;  %v3245_v46 = vld [vmem:[#allocation2 + $0x358] sm:$0x3] }
 0x5d4   :  { %4168 = vrot.lane.b32.xlu1 %v10667_v38, %s6909_s28  ;;  %6796 = vmatmul.mubr.bf16.gmra.mrb[36].mxu1 %v5147_v45  ;;  %v4613_v54 = vpop.permute.xlu0 %4612 }
 0x5d5   :  { %4687 = vst.msk [vmem:[#allocation3 + $0xa8] sm:$0xff] %vm1809_vm10, %v4613_v54 }
 0x5d6   :  { %v4465_v0 = vpop.permute.xlu1 %4464  ;;  %4626 = vrot.lane.b32.xlu0 %v10667_v38, %s6912_s18 }
 0x5d7   :  { %4540 = vst.msk [vmem:[#allocation3 + $0xa0] sm:$0xff] %vm1662_vm9, %v4465_v0 }
 0x5d8   :  { %4330 = vrot.lane.b32.xlu1 %v10657_v40, %s6910_s12  ;;  %v4745_v14 = vpop.permute.xlu0 %4744 }
 0x5d9   :  { %4819 = vst.msk [vmem:[#allocation3 + $0xa8] sm:$0xff] %vm1942_vm11, %v4745_v14 }
 0x5da   :  { %v4611_v39 = vpop.permute.xlu1 %4610  ;;  %4758 = vrot.lane.b32.xlu0 %v10657_v40, %s6913_s21 }
 0x5db   :  { %4686 = vst.msk [vmem:[#allocation3 + $0xa0] sm:$0xff] %vm1809_vm10, %v4611_v39 }
 0x5dc   :  { %4482 = vrot.lane.b32.xlu1 %v10678_v51, %s6911_s15  ;;  %v4897_v34 = vpop.permute.xlu0 %4896 }
 0x5dd   :  { %4971 = vst.msk [vmem:[#allocation3 + $0xa8] sm:$0xff] %vm2095_vm12, %v4897_v34 }
 0x5de   :  { %v4743_v35 = vpop.permute.xlu1 %4742  ;;  %4910 = vrot.lane.b32.xlu0 %v10678_v51, %s6914_s22 }
 0x5df   :  { %4818 = vst.msk [vmem:[#allocation3 + $0xa0] sm:$0xff] %vm1942_vm11, %v4743_v35 }
 0x5e0   :  { %4628 = vrot.lane.b32.xlu1 %v10685_v59, %s6912_s18  ;;  %v5043_v9 = vpop.permute.xlu0 %5042 }
 0x5e1   :  { %5117 = vst.msk [vmem:[#allocation3 + $0xa8] sm:$0xff] %vm2242_vm13, %v5043_v9 }
 0x5e2   :  { %v4895_v38 = vpop.permute.xlu1 %4894  ;;  %5056 = vrot.lane.b32.xlu0 %v10685_v59, %s6915_s23 }
 0x5e3   :  { %4970 = vst.msk [vmem:[#allocation3 + $0xa0] sm:$0xff] %vm2095_vm12, %v4895_v38  ;;  %v11285_v58 = vpop.f32.mrb[8].mxu1 }
 0x5e4   :  { %4760 = vrot.lane.b32.xlu1 %v10673_v26, %s6913_s21  ;;  %v11289_v40 = vpop.f32.mrb[9].mxu1  ;;  %v4157_v16 = vpop.permute.xlu0 %4156  ;;  %v5576_v3 = vmul.f32 %v11285_v58, %v11285_v58 }
 0x5e5   :  { %v5504_v47 = vadd.f32 %v5503_v18, %v11289_v40  ;;  %v5574_v44 = vmul.f32 %v11289_v40, %v11289_v40  ;;  %v11295_v15 = vpop.f32.mrb[10].mxu1  ;;  %4229 = vst.msk [vmem:[#allocation3 + $0xb8] sm:$0xff] %vm1346_vm7, %v4157_v16  ;;  %v3244_v18 = vld [vmem:[#allocation2 + $0x350] sm:$0xff] }
 0x5e6   :  { %v5041_v11 = vpop.permute.xlu1 %5040  ;;  %v11299_v20 = vpop.f32.mrb[11].mxu1  ;;  %5058 = vrot.lane.b32.xlu0 %v10693_v48, %s6915_s23  ;;  %v5577_v6 = vmul.f32 %v11295_v15, %v11295_v15  ;;  %v4842_v39 = vrot.slane %v3244_v18, 1 }
 0x5e7   :  { %v5637_v52 = vadd.f32 %v5636_v33, %v5574_v44  ;;  %5116 = vst.msk [vmem:[#allocation3 + $0xa0] sm:$0xff] %vm2242_vm13, %v5041_v11  ;;  %v5505_v8 = vadd.f32 %v5504_v47, %v11299_v20  ;;  %v5575_v7 = vmul.f32 %v11299_v20, %v11299_v20  ;;  %v4988_v11 = vrot.slane %v3244_v18, 2 }
 0x5e8   :  { %4912 = vrot.lane.b32.xlu1 %v10691_v63, %s6914_s22  ;;  %v4319_v41 = vpop.permute.xlu0 %4318  ;;  %v5149_v23 = vld [vmem:[#allocation3 + $0xa8] sm:$0xff] }
 0x5e9   :  { %v5506_v24 = vadd.f32 %v11285_v58, %v5505_v8  ;;  %v5638_v30 = vadd.f32 %v5637_v52, %v5575_v7  ;;  %4391 = vst.msk [vmem:[#allocation3 + $0xb8] sm:$0xff] %vm1509_vm8, %v4319_v41 }
 0x5ea   :  { %v4155_v43 = vpop.permute.xlu1 %4154  ;;  %4170 = vrot.lane.b32.xlu0 %v10685_v59, %s6909_s28 }
 0x5eb   :  { %v5639_v57 = vadd.f32 %v5638_v30, %v5576_v3  ;;  %4228 = vst.msk [vmem:[#allocation3 + $0xb0] sm:$0xff] %vm1346_vm7, %v4155_v43  ;;  %v11317_v32 = vadd.f32 %v11295_v15, %v5506_v24  ;;  %v4990_v24 = vrot.slane %v3245_v46, 2 }
 0x5ec   :  { %3754 = vrot.lane.b32.xlu1 %v10678_v51, %s6908_s27  ;;  %v4471_v25 = vpop.permute.xlu0 %4470  ;;  %v3240_v51 = vld [vmem:[#allocation2 + $0x330] sm:$0xff] }
 0x5ed   :  { %v11324_v21 = vadd.f32 %v5639_v57, %v5577_v6  ;;  %4543 = vst.msk [vmem:[#allocation3 + $0xb8] sm:$0xff] %vm1662_vm9, %v4471_v25  ;;  %v4411_v31 = vrot.slane %v3240_v51, 1  ;;  %v4239_v50 = vpack.c.bf16 %v3241_v19, %v3240_v51  ;;  %v4557_v22 = vrot.slane %v3240_v51, 2 }
 0x5ee   :  { %v4317_v28 = vpop.permute.xlu1 %4316  ;;  %v5148_v4 = vld [vmem:[#allocation3 + $0xa0] sm:$0xff]  ;;  %4332 = vrot.lane.b32.xlu0 %v10673_v26, %s6910_s12  ;;  %v4558_v26 = vrot.slane %v3241_v19, 2  ;;  %v4991_v51 = vsel %vm961_vm5, %v4988_v11, %v4990_v24 }
 0x5ef   :  { %4390 = vst.msk [vmem:[#allocation3 + $0xb0] sm:$0xff] %vm1509_vm8, %v4317_v28  ;;  %6799 = vmatprep.mubr.bf16.mxu1 %v5148_v4  ;;  %v4413_v12 = vsel %vm543_vm4, %v4411_v31, %v4412_v36 }
 0x5f0   :  { %3756 = vrot.lane.b32.xlu1 %v10691_v63, %s6908_s27  ;;  %6800 = vmatmul.mubr.bf16.gmra.mrb[40].mxu1 %v5149_v23  ;;  %v4617_v27 = vpop.permute.xlu0 %4616  ;;  %v4421_v33 = vpack.c.bf16 %v4415_v10, %v4413_v12  ;;  %v4559_v61 = vsel %vm961_vm5, %v4557_v22, %v4558_v26  ;;  %v4561_v0 = vsel %vm961_vm5, %v4558_v26, %v4560_v60 }
 0x5f1   :  { %4689 = vst.msk [vmem:[#allocation3 + $0xb8] sm:$0xff] %vm1809_vm10, %v4617_v27  ;;  %v4567_v35 = vpack.c.bf16 %v4561_v0, %v4559_v61 }
 0x5f2   :  { %v4469_v59 = vpop.permute.xlu1 %4468  ;;  %4484 = vrot.lane.b32.xlu0 %v10691_v63, %s6911_s15  ;;  %v3243_v63 = vld [vmem:[#allocation2 + $0x348] sm:$0xff] }
 0x5f3   :  { %4542 = vst.msk [vmem:[#allocation3 + $0xb0] sm:$0xff] %vm1662_vm9, %v4469_v59  ;;  %v4841_v54 = vrot.slane %v3243_v63, 1  ;;  %v4699_v47 = vpack.c.bf16 %v3244_v18, %v3243_v63  ;;  %v4987_v44 = vrot.slane %v3243_v63, 2 }
 0x5f4   :  { %4172 = vrot.lane.b32.xlu1 %v10693_v48, %s6909_s28  ;;  %v4749_v49 = vpop.permute.xlu0 %4748 }
 0x5f5   :  { %4821 = vst.msk [vmem:[#allocation3 + $0xb8] sm:$0xff] %vm1942_vm11, %v4749_v49  ;;  %v4843_v52 = vsel %vm543_vm4, %v4841_v54, %v4842_v39  ;;  %v4989_v28 = vsel %vm961_vm5, %v4987_v44, %v4988_v11 }
 0x5f6   :  { %v4615_v1 = vpop.permute.xlu1 %4614  ;;  %4630 = vrot.lane.b32.xlu0 %v10693_v48, %s6912_s18  ;;  %v4844_v48 = vrot.slane %v3245_v46, 1  ;;  %v4997_v36 = vpack.c.bf16 %v4991_v51, %v4989_v28 }
 0x5f7   :  { %4688 = vst.msk [vmem:[#allocation3 + $0xb0] sm:$0xff] %vm1809_vm10, %v4615_v1 }
 0x5f8   :  { %4334 = vrot.lane.b32.xlu1 %v4239_v50, %s6910_s12  ;;  %v4901_v5 = vpop.permute.xlu0 %4900  ;;  %v4845_v3 = vsel %vm543_vm4, %v4842_v39, %v4844_v48 }
 0x5f9   :  { %4973 = vst.msk [vmem:[#allocation3 + $0xb8] sm:$0xff] %vm2095_vm12, %v4901_v5  ;;  %v4851_v23 = vpack.c.bf16 %v4845_v3, %v4843_v52 }
 0x5fa   :  { %v4747_v45 = vpop.permute.xlu1 %4746  ;;  %4762 = vrot.lane.b32.xlu0 %v4239_v50, %s6913_s21 }
 0x5fb   :  { %4820 = vst.msk [vmem:[#allocation3 + $0xb0] sm:$0xff] %vm1942_vm11, %v4747_v45 }
 0x5fc   :  { %4486 = vrot.lane.b32.xlu1 %v4421_v33, %s6911_s15  ;;  %v5047_v38 = vpop.permute.xlu0 %5046 }
 0x5fd   :  { %5119 = vst.msk [vmem:[#allocation3 + $0xb8] sm:$0xff] %vm2242_vm13, %v5047_v38 }
 0x5fe   :  { %v4899_v14 = vpop.permute.xlu1 %4898  ;;  %4914 = vrot.lane.b32.xlu0 %v4421_v33, %s6914_s22 }
 0x5ff   :  { %4972 = vst.msk [vmem:[#allocation3 + $0xb0] sm:$0xff] %vm2095_vm12, %v4899_v14  ;;  %v11352_v34 = vpop.f32.mrb[12].mxu1 }
 0x600   :  { %4632 = vrot.lane.b32.xlu1 %v4567_v35, %s6912_s18  ;;  %v11355_v9 = vpop.f32.mrb[13].mxu1  ;;  %v5580_v4 = vmul.f32 %v11352_v34, %v11352_v34 }
 0x601   :  { %v5508_v8 = vadd.f32 %v11317_v32, %v11355_v9  ;;  %v5578_v7 = vmul.f32 %v11355_v9, %v11355_v9  ;;  %v11363_v16 = vpop.f32.mrb[14].mxu1  ;;  %v4161_v32 = vpop.permute.xlu0 %4160 }
 0x602   :  { %v5045_v30 = vpop.permute.xlu1 %5044  ;;  %v11367_v43 = vpop.f32.mrb[15].mxu1  ;;  %4231 = vst.msk [vmem:[#allocation3 + $0xc8] sm:$0xff] %vm1346_vm7, %v4161_v32  ;;  %5060 = vrot.lane.b32.xlu0 %v4567_v35, %s6915_s23  ;;  %v5581_v42 = vmul.f32 %v11363_v16, %v11363_v16 }
 0x603   :  { %v5641_v6 = vadd.f32 %v11324_v21, %v5578_v7  ;;  %5118 = vst.msk [vmem:[#allocation3 + $0xb0] sm:$0xff] %vm2242_vm13, %v5045_v30  ;;  %v5509_v57 = vadd.f32 %v5508_v8, %v11367_v43  ;;  %v5579_v41 = vmul.f32 %v11367_v43, %v11367_v43 }
 0x604   :  { %4764 = vrot.lane.b32.xlu1 %v4699_v47, %s6913_s21  ;;  %v5151_v62 = vld [vmem:[#allocation3 + $0xb8] sm:$0xff] }
 0x605   :  { %v5510_v21 = vadd.f32 %v11352_v34, %v5509_v57  ;;  %v5642_v25 = vadd.f32 %v5641_v6, %v5579_v41  ;;  %v4323_v27 = vpop.permute.xlu0 %4322 }
 0x606   :  { %v4159_v19 = vpop.permute.xlu1 %4158  ;;  %4393 = vst.msk [vmem:[#allocation3 + $0xc8] sm:$0xff] %vm1509_vm8, %v4323_v27 }
 0x607   :  { %v5643_v59 = vadd.f32 %v5642_v25, %v5580_v4  ;;  %4230 = vst.msk [vmem:[#allocation3 + $0xc0] sm:$0xff] %vm1346_vm7, %v4159_v19  ;;  %v5511_v31 = vadd.f32 %v11363_v16, %v5510_v21 }
 0x608   :  { %4916 = vrot.lane.b32.xlu1 %v4851_v23, %s6914_s22 }
 0x609   :  { %v5644_v1 = vadd.f32 %v5643_v59, %v5581_v42  ;;  %v4475_v26 = vpop.permute.xlu0 %4474 }
 0x60a   :  { %v4321_v50 = vpop.permute.xlu1 %4320  ;;  %v5150_v22 = vld [vmem:[#allocation3 + $0xb0] sm:$0xff]  ;;  %4545 = vst.msk [vmem:[#allocation3 + $0xc8] sm:$0xff] %vm1662_vm9, %v4475_v26 }
 0x60b   :  { %4392 = vst.msk [vmem:[#allocation3 + $0xc0] sm:$0xff] %vm1509_vm8, %v4321_v50  ;;  %6803 = vmatprep.mubr.bf16.mxu1 %v5150_v22 }
 0x60c   :  { %5062 = vrot.lane.b32.xlu1 %v4997_v36, %s6915_s23  ;;  %6804 = vmatmul.mubr.bf16.gmra.mrb[44].mxu1 %v5151_v62 }
 0x60d   :  { %v4621_v12 = vpop.permute.xlu0 %4620 }
 0x60e   :  { %v4473_v49 = vpop.permute.xlu1 %4472  ;;  %4691 = vst.msk [vmem:[#allocation3 + $0xc8] sm:$0xff] %vm1809_vm10, %v4621_v12 }
 0x60f   :  { %4544 = vst.msk [vmem:[#allocation3 + $0xc0] sm:$0xff] %vm1662_vm9, %v4473_v49 }
 0x611   :  { %v4753_v60 = vpop.permute.xlu0 %4752 }
 0x612   :  { %v4619_v10 = vpop.permute.xlu1 %4618  ;;  %4823 = vst.msk [vmem:[#allocation3 + $0xc8] sm:$0xff] %vm1942_vm11, %v4753_v60 }
 0x613   :  { %4690 = vst.msk [vmem:[#allocation3 + $0xc0] sm:$0xff] %vm1809_vm10, %v4619_v10 }
 0x615   :  { %v4905_v18 = vpop.permute.xlu0 %4904 }
 0x616   :  { %v4751_v63 = vpop.permute.xlu1 %4750  ;;  %4975 = vst.msk [vmem:[#allocation3 + $0xc8] sm:$0xff] %vm2095_vm12, %v4905_v18 }
 0x617   :  { %4822 = vst.msk [vmem:[#allocation3 + $0xc0] sm:$0xff] %vm1942_vm11, %v4751_v63 }
 0x619   :  { %v5051_v46 = vpop.permute.xlu0 %5050 }
 0x61a   :  { %v4903_v45 = vpop.permute.xlu1 %4902  ;;  %5121 = vst.msk [vmem:[#allocation3 + $0xc8] sm:$0xff] %vm2242_vm13, %v5051_v46 }
 0x61b   :  { %4974 = vst.msk [vmem:[#allocation3 + $0xc0] sm:$0xff] %vm2095_vm12, %v4903_v45  ;;  %v11398_v33 = vpop.f32.mrb[16].mxu1 }
 0x61c   :  { %v11400_v5 = vpop.f32.mrb[17].mxu1  ;;  %v5584_v44 = vmul.f32 %v11398_v33, %v11398_v33 }
 0x61d   :  { %v5512_v61 = vadd.f32 %v5511_v31, %v11400_v5  ;;  %v5582_v0 = vmul.f32 %v11400_v5, %v11400_v5  ;;  %v11406_v54 = vpop.f32.mrb[18].mxu1  ;;  %v4163_v47 = vpop.permute.xlu0 %4162 }
 0x61e   :  { %v5049_v39 = vpop.permute.xlu1 %5048  ;;  %v11408_v48 = vpop.f32.mrb[19].mxu1  ;;  %4232 = vst.msk [vmem:[#allocation3 + $0xd0] sm:$0xff] %vm1346_vm7, %v4163_v47  ;;  %v5585_v7 = vmul.f32 %v11406_v54, %v11406_v54 }
 0x61f   :  { %v5645_v14 = vadd.f32 %v5644_v1, %v5582_v0  ;;  %5120 = vst.msk [vmem:[#allocation3 + $0xc0] sm:$0xff] %vm2242_vm13, %v5049_v39  ;;  %v5513_v35 = vadd.f32 %v5512_v61, %v11408_v48  ;;  %v5583_v38 = vmul.f32 %v11408_v48, %v11408_v48 }
 0x621   :  { %v5514_v11 = vadd.f32 %v11398_v33, %v5513_v35  ;;  %v5646_v52 = vadd.f32 %v5645_v14, %v5583_v38  ;;  %v4325_v24 = vpop.permute.xlu0 %4324  ;;  %v5153_v6 = vld [vmem:[#allocation3 + $0xc8] sm:$0xff] }
 0x622   :  { %v3749_v8 = vpop.permute.xlu1 %3748  ;;  %4394 = vst.msk [vmem:[#allocation3 + $0xd0] sm:$0xff] %vm1509_vm8, %v4325_v24 }
 0x623   :  { %v5647_v3 = vadd.f32 %v5646_v52, %v5584_v44  ;;  %3817 = vst.msk [vmem:[#allocation3 + $0xd8] sm:$0xff] %vm928_vm6, %v3749_v8  ;;  %v5515_v30 = vadd.f32 %v11406_v54, %v5514_v11 }
 0x625   :  { %v5648_v57 = vadd.f32 %v5647_v3, %v5585_v7  ;;  %v4477_v23 = vpop.permute.xlu0 %4476 }
 0x626   :  { %v4165_v41 = vpop.permute.xlu1 %4164  ;;  %v5152_v32 = vld [vmem:[#allocation3 + $0xc0] sm:$0xff]  ;;  %4546 = vst.msk [vmem:[#allocation3 + $0xd0] sm:$0xff] %vm1662_vm9, %v4477_v23 }
 0x627   :  { %4233 = vst.msk [vmem:[#allocation3 + $0xd8] sm:$0xff] %vm1346_vm7, %v4165_v41  ;;  %6807 = vmatprep.mubr.bf16.mxu1 %v5152_v32 }
 0x628   :  { %6808 = vmatmul.mubr.bf16.gmra.mrb[48].mxu1 %v5153_v6 }
 0x629   :  { %v4623_v4 = vpop.permute.xlu0 %4622 }
 0x62a   :  { %v4327_v28 = vpop.permute.xlu1 %4326  ;;  %4692 = vst.msk [vmem:[#allocation3 + $0xd0] sm:$0xff] %vm1809_vm10, %v4623_v4 }
 0x62b   :  { %4395 = vst.msk [vmem:[#allocation3 + $0xd8] sm:$0xff] %vm1509_vm8, %v4327_v28 }
 0x62d   :  { %v4755_v25 = vpop.permute.xlu0 %4754 }
 0x62e   :  { %v4479_v21 = vpop.permute.xlu1 %4478  ;;  %4824 = vst.msk [vmem:[#allocation3 + $0xd0] sm:$0xff] %vm1942_vm11, %v4755_v25 }
 0x62f   :  { %4547 = vst.msk [vmem:[#allocation3 + $0xd8] sm:$0xff] %vm1662_vm9, %v4479_v21 }
 0x631   :  { %v4907_v19 = vpop.permute.xlu0 %4906 }
 0x632   :  { %v4625_v51 = vpop.permute.xlu1 %4624  ;;  %4976 = vst.msk [vmem:[#allocation3 + $0xd0] sm:$0xff] %vm2095_vm12, %v4907_v19 }
 0x633   :  { %4693 = vst.msk [vmem:[#allocation3 + $0xd8] sm:$0xff] %vm1809_vm10, %v4625_v51 }
 0x635   :  { %v5053_v27 = vpop.permute.xlu0 %5052 }
 0x636   :  { %v4757_v42 = vpop.permute.xlu1 %4756  ;;  %5122 = vst.msk [vmem:[#allocation3 + $0xd0] sm:$0xff] %vm2242_vm13, %v5053_v27 }
 0x637   :  { %4825 = vst.msk [vmem:[#allocation3 + $0xd8] sm:$0xff] %vm1942_vm11, %v4757_v42  ;;  %v11432_v59 = vpop.f32.mrb[20].mxu1 }
 0x638   :  { %v11434_v31 = vpop.f32.mrb[21].mxu1  ;;  %v5588_v60 = vmul.f32 %v11432_v59, %v11432_v59 }
 0x639   :  { %v5516_v36 = vadd.f32 %v5515_v30, %v11434_v31  ;;  %v5586_v62 = vmul.f32 %v11434_v31, %v11434_v31  ;;  %v11440_v1 = vpop.f32.mrb[22].mxu1  ;;  %v5055_v10 = vpop.permute.xlu0 %5054 }
 0x63a   :  { %v4909_v50 = vpop.permute.xlu1 %4908  ;;  %v11442_v22 = vpop.f32.mrb[23].mxu1  ;;  %v5589_v46 = vmul.f32 %v11440_v1, %v11440_v1 }
 0x63b   :  { %v5649_v26 = vadd.f32 %v5648_v57, %v5586_v62  ;;  %4977 = vst.msk [vmem:[#allocation3 + $0xd8] sm:$0xff] %vm2095_vm12, %v4909_v50  ;;  %v5517_v49 = vadd.f32 %v5516_v36, %v11442_v22  ;;  %v5587_v12 = vmul.f32 %v11442_v22, %v11442_v22 }
 0x63c   :  { %5123 = vst.msk [vmem:[#allocation3 + $0xd8] sm:$0xff] %vm2242_vm13, %v5055_v10 }
 0x63d   :  { %v5518_v63 = vadd.f32 %v11432_v59, %v5517_v49  ;;  %v5650_v18 = vadd.f32 %v5649_v26, %v5587_v12  ;;  %v4167_v0 = vpop.permute.xlu0 %4166  ;;  %v5154_v39 = vld [vmem:[#allocation3 + $0xd0] sm:$0xff] }
 0x63e   :  { %v3751_v45 = vpop.permute.xlu1 %3750  ;;  %6811 = vmatprep.mubr.bf16.mxu1 %v5154_v39 }
 0x63f   :  { %v5651_v61 = vadd.f32 %v5650_v18, %v5588_v60  ;;  %3818 = vst.msk [vmem:[#allocation3 + $0xe0] sm:$0xff] %vm928_vm6, %v3751_v45  ;;  %v5519_v14 = vadd.f32 %v11440_v1, %v5518_v63 }
 0x640   :  { %4234 = vst.msk [vmem:[#allocation3 + $0xe0] sm:$0xff] %vm1346_vm7, %v4167_v0 }
 0x641   :  { %v5652_v35 = vadd.f32 %v5651_v61, %v5589_v46  ;;  %v4329_v47 = vpop.permute.xlu0 %4328 }
 0x642   :  { %v3753_v38 = vpop.permute.xlu1 %3752  ;;  %4396 = vst.msk [vmem:[#allocation3 + $0xe0] sm:$0xff] %vm1509_vm8, %v4329_v47 }
 0x643   :  { %3819 = vst.msk [vmem:[#allocation3 + $0xe8] sm:$0xff] %vm928_vm6, %v3753_v38  ;;  %v5155_v44 = vld [vmem:[#allocation3 + $0xd8] sm:$0xff] }
 0x644   :  { %6812 = vmatmul.mubr.bf16.gmra.mrb[52].mxu1 %v5155_v44 }
 0x645   :  { %v4481_v52 = vpop.permute.xlu0 %4480 }
 0x646   :  { %v4169_v11 = vpop.permute.xlu1 %4168  ;;  %4548 = vst.msk [vmem:[#allocation3 + $0xe0] sm:$0xff] %vm1662_vm9, %v4481_v52 }
 0x647   :  { %4235 = vst.msk [vmem:[#allocation3 + $0xe8] sm:$0xff] %vm1346_vm7, %v4169_v11 }
 0x649   :  { %v4627_v7 = vpop.permute.xlu0 %4626 }
 0x64a   :  { %v4331_v8 = vpop.permute.xlu1 %4330  ;;  %4694 = vst.msk [vmem:[#allocation3 + $0xe0] sm:$0xff] %vm1809_vm10, %v4627_v7 }
 0x64b   :  { %4397 = vst.msk [vmem:[#allocation3 + $0xe8] sm:$0xff] %vm1509_vm8, %v4331_v8 }
 0x64d   :  { %v4759_v24 = vpop.permute.xlu0 %4758 }
 0x64e   :  { %v4483_v3 = vpop.permute.xlu1 %4482  ;;  %4826 = vst.msk [vmem:[#allocation3 + $0xe0] sm:$0xff] %vm1942_vm11, %v4759_v24 }
 0x64f   :  { %4549 = vst.msk [vmem:[#allocation3 + $0xe8] sm:$0xff] %vm1662_vm9, %v4483_v3 }
 0x651   :  { %v4911_v57 = vpop.permute.xlu0 %4910 }
 0x652   :  { %v4629_v30 = vpop.permute.xlu1 %4628  ;;  %4978 = vst.msk [vmem:[#allocation3 + $0xe0] sm:$0xff] %vm2095_vm12, %v4911_v57 }
 0x653   :  { %4695 = vst.msk [vmem:[#allocation3 + $0xe8] sm:$0xff] %vm1809_vm10, %v4629_v30  ;;  %v11466_v6 = vpop.f32.mrb[24].mxu1 }
 0x654   :  { %v11468_v41 = vpop.f32.mrb[25].mxu1  ;;  %v5592_v27 = vmul.f32 %v11466_v6, %v11466_v6 }
 0x655   :  { %v5520_v32 = vadd.f32 %v5519_v14, %v11468_v41  ;;  %v5590_v23 = vmul.f32 %v11468_v41, %v11468_v41  ;;  %v11474_v28 = vpop.f32.mrb[26].mxu1  ;;  %v5057_v42 = vpop.permute.xlu0 %5056 }
 0x656   :  { %v4761_v4 = vpop.permute.xlu1 %4760  ;;  %v11476_v21 = vpop.f32.mrb[27].mxu1  ;;  %5124 = vst.msk [vmem:[#allocation3 + $0xe0] sm:$0xff] %vm2242_vm13, %v5057_v42  ;;  %v5593_v26 = vmul.f32 %v11474_v28, %v11474_v28 }
 0x657   :  { %v5653_v25 = vadd.f32 %v5652_v35, %v5590_v23  ;;  %4827 = vst.msk [vmem:[#allocation3 + $0xe8] sm:$0xff] %vm1942_vm11, %v4761_v4  ;;  %v5521_v51 = vadd.f32 %v5520_v32, %v11476_v21  ;;  %v5591_v19 = vmul.f32 %v11476_v21, %v11476_v21 }
 0x659   :  { %v5522_v36 = vadd.f32 %v11466_v6, %v5521_v51  ;;  %v5654_v62 = vadd.f32 %v5653_v25, %v5591_v19  ;;  %v5059_v12 = vpop.permute.xlu0 %5058 }
 0x65a   :  { %v4913_v50 = vpop.permute.xlu1 %4912 }
 0x65b   :  { %v5655_v49 = vadd.f32 %v5654_v62, %v5592_v27  ;;  %4979 = vst.msk [vmem:[#allocation3 + $0xe8] sm:$0xff] %vm2095_vm12, %v4913_v50  ;;  %v5523_v10 = vadd.f32 %v11474_v28, %v5522_v36 }
 0x65c   :  { %5125 = vst.msk [vmem:[#allocation3 + $0xe8] sm:$0xff] %vm2242_vm13, %v5059_v12 }
 0x65d   :  { %v5656_v60 = vadd.f32 %v5655_v49, %v5593_v26  ;;  %v4171_v18 = vpop.permute.xlu0 %4170  ;;  %v5156_v45 = vld [vmem:[#allocation3 + $0xe0] sm:$0xff] }
 0x65e   :  { %v3755_v63 = vpop.permute.xlu1 %3754  ;;  %6815 = vmatprep.mubr.bf16.mxu1 %v5156_v45 }
 0x65f   :  { %3820 = vst.msk [vmem:[#allocation3 + $0xf0] sm:$0xff] %vm928_vm6, %v3755_v63 }
 0x660   :  { %4236 = vst.msk [vmem:[#allocation3 + $0xf0] sm:$0xff] %vm1346_vm7, %v4171_v18 }
 0x661   :  { %v4333_v61 = vpop.permute.xlu0 %4332 }
 0x662   :  { %v3757_v46 = vpop.permute.xlu1 %3756  ;;  %4398 = vst.msk [vmem:[#allocation3 + $0xf0] sm:$0xff] %vm1509_vm8, %v4333_v61 }
 0x663   :  { %3821 = vst.msk [vmem:[#allocation3 + $0xf8] sm:$0xff] %vm928_vm6, %v3757_v46  ;;  %v5157_v0 = vld [vmem:[#allocation3 + $0xe8] sm:$0xff] }
 0x664   :  { %6816 = vmatmul.mubr.bf16.gmra.mrb[56].mxu1 %v5157_v0 }
 0x665   :  { %v4485_v14 = vpop.permute.xlu0 %4484 }
 0x666   :  { %v4173_v39 = vpop.permute.xlu1 %4172  ;;  %4550 = vst.msk [vmem:[#allocation3 + $0xf0] sm:$0xff] %vm1662_vm9, %v4485_v14 }
 0x667   :  { %4237 = vst.msk [vmem:[#allocation3 + $0xf8] sm:$0xff] %vm1346_vm7, %v4173_v39 }
 0x669   :  { %v4631_v38 = vpop.permute.xlu0 %4630 }
 0x66a   :  { %v4335_v35 = vpop.permute.xlu1 %4334  ;;  %4696 = vst.msk [vmem:[#allocation3 + $0xf0] sm:$0xff] %vm1809_vm10, %v4631_v38 }
 0x66b   :  { %4399 = vst.msk [vmem:[#allocation3 + $0xf8] sm:$0xff] %vm1509_vm8, %v4335_v35 }
 0x66d   :  { %v4763_v11 = vpop.permute.xlu0 %4762 }
 0x66e   :  { %v4487_v47 = vpop.permute.xlu1 %4486  ;;  %4828 = vst.msk [vmem:[#allocation3 + $0xf0] sm:$0xff] %vm1942_vm11, %v4763_v11 }
 0x66f   :  { %4551 = vst.msk [vmem:[#allocation3 + $0xf8] sm:$0xff] %vm1662_vm9, %v4487_v47  ;;  %v11500_v44 = vpop.f32.mrb[28].mxu1 }
 0x670   :  { %v11502_v52 = vpop.f32.mrb[29].mxu1  ;;  %v5596_v25 = vmul.f32 %v11500_v44, %v11500_v44 }
 0x671   :  { %v5524_v8 = vadd.f32 %v5523_v10, %v11502_v52  ;;  %v5594_v7 = vmul.f32 %v11502_v52, %v11502_v52  ;;  %v11508_v3 = vpop.f32.mrb[30].mxu1  ;;  %v4915_v4 = vpop.permute.xlu0 %4914 }
 0x672   :  { %v4633_v24 = vpop.permute.xlu1 %4632  ;;  %v11510_v30 = vpop.f32.mrb[31].mxu1  ;;  %4980 = vst.msk [vmem:[#allocation3 + $0xf0] sm:$0xff] %vm2095_vm12, %v4915_v4  ;;  %v5597_v27 = vmul.f32 %v11508_v3, %v11508_v3 }
 0x673   :  { %v5657_v57 = vadd.f32 %v5656_v60, %v5594_v7  ;;  %4697 = vst.msk [vmem:[#allocation3 + $0xf8] sm:$0xff] %vm1809_vm10, %v4633_v24  ;;  %v5525_v32 = vadd.f32 %v5524_v8, %v11510_v30  ;;  %v5595_v23 = vmul.f32 %v11510_v30, %v11510_v30 }
 0x675   :  { %v5526_v51 = vadd.f32 %v11500_v44, %v5525_v32  ;;  %v5658_v19 = vadd.f32 %v5657_v57, %v5595_v23  ;;  %v5061_v62 = vpop.permute.xlu0 %5060 }
 0x676   :  { %v4765_v42 = vpop.permute.xlu1 %4764  ;;  %5126 = vst.msk [vmem:[#allocation3 + $0xf0] sm:$0xff] %vm2242_vm13, %v5061_v62 }
 0x677   :  { %v5659_v36 = vadd.f32 %v5658_v19, %v5596_v25  ;;  %4829 = vst.msk [vmem:[#allocation3 + $0xf8] sm:$0xff] %vm1942_vm11, %v4765_v42  ;;  %v5527_v50 = vadd.f32 %v11508_v3, %v5526_v51 }
 0x679   :  { %v5660_v26 = vadd.f32 %v5659_v36, %v5597_v27 }
 0x67a   :  { %v4917_v49 = vpop.permute.xlu1 %4916 }
 0x67b   :  { %4981 = vst.msk [vmem:[#allocation3 + $0xf8] sm:$0xff] %vm2095_vm12, %v4917_v49 }
 0x67d   :  { %v5158_v10 = vld [vmem:[#allocation3 + $0xf0] sm:$0xff] }
 0x67e   :  { %v5063_v12 = vpop.permute.xlu1 %5062  ;;  %6819 = vmatprep.mubr.bf16.mxu1 %v5158_v10 }
 0x67f   :  { %5127 = vst.msk [vmem:[#allocation3 + $0xf8] sm:$0xff] %vm2242_vm13, %v5063_v12 }
 0x686   :  { %v5159_v60 = vld [vmem:[#allocation3 + $0xf8] sm:$0xff] }
 0x687   :  { %6820 = vmatmul.mubr.bf16.gmra.mrb[60].mxu1 %v5159_v60 }
 0x68b   :  { %v11527_v63 = vpop.f32.mrb[32].mxu1 }
 0x68c   :  { %v11529_v18 = vpop.f32.mrb[33].mxu1  ;;  %v5600_v38 = vmul.f32 %v11527_v63, %v11527_v63 }
 0x68d   :  { %v5528_v45 = vadd.f32 %v5527_v50, %v11529_v18  ;;  %v5598_v46 = vmul.f32 %v11529_v18, %v11529_v18  ;;  %v11534_v61 = vpop.f32.mrb[34].mxu1 }
 0x68e   :  { %v11536_v0 = vpop.f32.mrb[35].mxu1  ;;  %v5601_v8 = vmul.f32 %v11534_v61, %v11534_v61 }
 0x68f   :  { %v5661_v39 = vadd.f32 %v5660_v26, %v5598_v46  ;;  %v5529_v14 = vadd.f32 %v5528_v45, %v11536_v0  ;;  %v5599_v35 = vmul.f32 %v11536_v0, %v11536_v0 }
 0x691   :  { %v5530_v47 = vadd.f32 %v11527_v63, %v5529_v14  ;;  %v5662_v11 = vadd.f32 %v5661_v39, %v5599_v35 }
 0x693   :  { %v5663_v7 = vadd.f32 %v5662_v11, %v5600_v38  ;;  %v5531_v24 = vadd.f32 %v11534_v61, %v5530_v47 }
 0x695   :  { %v5664_v57 = vadd.f32 %v5663_v7, %v5601_v8 }
 0x6a7   :  { %v11547_v32 = vpop.f32.mrb[36].mxu1 }
 0x6a8   :  { %v11549_v23 = vpop.f32.mrb[37].mxu1  ;;  %v5604_v62 = vmul.f32 %v11547_v32, %v11547_v32 }
 0x6a9   :  { %v5532_v4 = vadd.f32 %v5531_v24, %v11549_v23  ;;  %v5602_v25 = vmul.f32 %v11549_v23, %v11549_v23  ;;  %v11554_v51 = vpop.f32.mrb[38].mxu1 }
 0x6aa   :  { %13106 = vst [vmem:[#allocation41_spill] sm:$0xff] %v11554_v51  ;;  %v11556_v19 = vpop.f32.mrb[39].mxu1  ;;  %v5605_v49 = vmul.f32 %v11554_v51, %v11554_v51 }
 0x6ab   :  { %v5665_v42 = vadd.f32 %v5664_v57, %v5602_v25  ;;  %v5533_v27 = vadd.f32 %v5532_v4, %v11556_v19  ;;  %v5603_v36 = vmul.f32 %v11556_v19, %v11556_v19 }
 0x6ad   :  { %v5534_v50 = vadd.f32 %v11547_v32, %v5533_v27  ;;  %v5666_v26 = vadd.f32 %v5665_v42, %v5603_v36 }
 0x6af   :  { %v5667_v12 = vadd.f32 %v5666_v26, %v5604_v62  ;;  %v5535_v10 = vadd.f32 %v11554_v51, %v5534_v50 }
 0x6b1   :  { %v5668_v60 = vadd.f32 %v5667_v12, %v5605_v49 }
 0x6c3   :  { %v11567_v45 = vpop.f32.mrb[40].mxu1 }
 0x6c4   :  { %13107 = vst [vmem:[#allocation43_spill] sm:$0xff] %v11567_v45  ;;  %v11569_v46 = vpop.f32.mrb[41].mxu1  ;;  %v5608_v7 = vmul.f32 %v11567_v45, %v11567_v45 }
 0x6c5   :  { %13108 = vst [vmem:[#allocation49_spill] sm:$0xff] %v11569_v46  ;;  %v5536_v39 = vadd.f32 %v5535_v10, %v11569_v46  ;;  %v5606_v14 = vmul.f32 %v11569_v46, %v11569_v46  ;;  %v11574_v35 = vpop.f32.mrb[42].mxu1 }
 0x6c6   :  { %13109 = vst [vmem:[#allocation48_spill] sm:$0xff] %v11574_v35  ;;  %v11576_v38 = vpop.f32.mrb[43].mxu1  ;;  %v5609_v4 = vmul.f32 %v11574_v35, %v11574_v35 }
 0x6c7   :  { %13110 = vst [vmem:[#allocation56_spill] sm:$0xff] %v11576_v38  ;;  %v5669_v47 = vadd.f32 %v5668_v60, %v5606_v14  ;;  %v5537_v11 = vadd.f32 %v5536_v39, %v11576_v38  ;;  %v5607_v8 = vmul.f32 %v11576_v38, %v11576_v38 }
 0x6c9   :  { %v5538_v24 = vadd.f32 %v11567_v45, %v5537_v11  ;;  %v5670_v57 = vadd.f32 %v5669_v47, %v5607_v8 }
 0x6cb   :  { %v5671_v25 = vadd.f32 %v5670_v57, %v5608_v7  ;;  %v5539_v42 = vadd.f32 %v11574_v35, %v5538_v24 }
 0x6cd   :  { %v5672_v27 = vadd.f32 %v5671_v25, %v5609_v4 }
 0x6df   :  { %v11587_v36 = vpop.f32.mrb[44].mxu1 }
 0x6e0   :  { %13111 = vst [vmem:[#allocation58_spill] sm:$0xff] %v11587_v36  ;;  %v11589_v62 = vpop.f32.mrb[45].mxu1  ;;  %v5612_v14 = vmul.f32 %v11587_v36, %v11587_v36 }
 0x6e1   :  { %13112 = vst [vmem:[#allocation61_spill] sm:$0xff] %v11589_v62  ;;  %v5540_v50 = vadd.f32 %v5539_v42, %v11589_v62  ;;  %v5610_v26 = vmul.f32 %v11589_v62, %v11589_v62  ;;  %v11594_v49 = vpop.f32.mrb[46].mxu1 }
 0x6e2   :  { %13113 = vst [vmem:[#allocation59_spill] sm:$0xff] %v11594_v49  ;;  %v11596_v12 = vpop.f32.mrb[47].mxu1  ;;  %v5613_v8 = vmul.f32 %v11594_v49, %v11594_v49 }
 0x6e3   :  { %13114 = vst [vmem:[#allocation52_spill] sm:$0xff] %v11596_v12  ;;  %v5673_v10 = vadd.f32 %v5672_v27, %v5610_v26  ;;  %v5541_v60 = vadd.f32 %v5540_v50, %v11596_v12  ;;  %v5611_v39 = vmul.f32 %v11596_v12, %v11596_v12 }
 0x6e5   :  { %v5542_v47 = vadd.f32 %v11587_v36, %v5541_v60  ;;  %v5674_v11 = vadd.f32 %v5673_v10, %v5611_v39 }
 0x6e7   :  { %v5675_v7 = vadd.f32 %v5674_v11, %v5612_v14  ;;  %v5543_v24 = vadd.f32 %v11594_v49, %v5542_v47 }
 0x6e9   :  { %v5676_v57 = vadd.f32 %v5675_v7, %v5613_v8 }
 0x6fb   :  { %v11607_v4 = vpop.f32.mrb[48].mxu1 }
 0x6fc   :  { %13115 = vst [vmem:[#allocation45_spill] sm:$0xff] %v11607_v4  ;;  %v11609_v25 = vpop.f32.mrb[49].mxu1  ;;  %v5616_v14 = vmul.f32 %v11607_v4, %v11607_v4 }
 0x6fd   :  { %13116 = vst [vmem:[#allocation46_spill] sm:$0xff] %v11609_v25  ;;  %v5544_v42 = vadd.f32 %v5543_v24, %v11609_v25  ;;  %v5614_v27 = vmul.f32 %v11609_v25, %v11609_v25  ;;  %v11614_v50 = vpop.f32.mrb[50].mxu1 }
 0x6fe   :  { %13117 = vst [vmem:[#allocation18_spill] sm:$0xff] %v11614_v50  ;;  %v11616_v26 = vpop.f32.mrb[51].mxu1  ;;  %v5617_v8 = vmul.f32 %v11614_v50, %v11614_v50 }
 0x6ff   :  { %13118 = vst [vmem:[#allocation15_spill] sm:$0xff] %v11616_v26  ;;  %v5677_v10 = vadd.f32 %v5676_v57, %v5614_v27  ;;  %v5545_v60 = vadd.f32 %v5544_v42, %v11616_v26  ;;  %v5615_v39 = vmul.f32 %v11616_v26, %v11616_v26 }
 0x701   :  { %v5546_v47 = vadd.f32 %v11607_v4, %v5545_v60  ;;  %v5678_v11 = vadd.f32 %v5677_v10, %v5615_v39 }
 0x703   :  { %v5679_v7 = vadd.f32 %v5678_v11, %v5616_v14  ;;  %v5547_v24 = vadd.f32 %v11614_v50, %v5546_v47 }
 0x705   :  { %v5680_v25 = vadd.f32 %v5679_v7, %v5617_v8 }
 0x717   :  { %v11627_v49 = vpop.f32.mrb[52].mxu1 }
 0x718   :  { %13119 = vst [vmem:[#allocation63_spill] sm:$0xff] %v11627_v49  ;;  %v11629_v57 = vpop.f32.mrb[53].mxu1  ;;  %v5620_v47 = vmul.f32 %v11627_v49, %v11627_v49 }
 0x719   :  { %13120 = vst [vmem:[#allocation19_spill] sm:$0xff] %v11629_v57  ;;  %v5548_v42 = vadd.f32 %v5547_v24, %v11629_v57  ;;  %v5618_v27 = vmul.f32 %v11629_v57, %v11629_v57  ;;  %v11634_v26 = vpop.f32.mrb[54].mxu1 }
 0x71a   :  { %13121 = vst [vmem:[#allocation70_spill] sm:$0xff] %v11634_v26  ;;  %v11636_v60 = vpop.f32.mrb[55].mxu1  ;;  %v5621_v7 = vmul.f32 %v11634_v26, %v11634_v26 }
 0x71b   :  { %13122 = vst [vmem:[#allocation29_spill] sm:$0xff] %v11636_v60  ;;  %v5681_v10 = vadd.f32 %v5680_v25, %v5618_v27  ;;  %v5549_v39 = vadd.f32 %v5548_v42, %v11636_v60  ;;  %v5619_v14 = vmul.f32 %v11636_v60, %v11636_v60 }
 0x71d   :  { %v5550_v11 = vadd.f32 %v11627_v49, %v5549_v39  ;;  %v5682_v8 = vadd.f32 %v5681_v10, %v5619_v14 }
 0x71f   :  { %v5683_v24 = vadd.f32 %v5682_v8, %v5620_v47  ;;  %v5551_v57 = vadd.f32 %v11634_v26, %v5550_v11 }
 0x721   :  { %v5684_v50 = vadd.f32 %v5683_v24, %v5621_v7 }
 0x737   :  { %v11647_v4 = vpop.f32.mrb[56].mxu1 }
 0x738   :  { %13123 = vst [vmem:[#allocation67_spill] sm:$0xff] %v11647_v4  ;;  %v11649_v25 = vpop.f32.mrb[57].mxu1  ;;  %v5624_v11 = vmul.f32 %v11647_v4, %v11647_v4 }
 0x739   :  { %13124 = vst [vmem:[#allocation73_spill] sm:$0xff] %v11649_v25  ;;  %v5552_v42 = vadd.f32 %v5551_v57, %v11649_v25  ;;  %v5622_v27 = vmul.f32 %v11649_v25, %v11649_v25  ;;  %v11654_v60 = vpop.f32.mrb[58].mxu1 }
 0x73a   :  { %13125 = vst [vmem:[#allocation34_spill] sm:$0xff] %v11654_v60  ;;  %v11656_v39 = vpop.f32.mrb[59].mxu1  ;;  %v5625_v57 = vmul.f32 %v11654_v60, %v11654_v60 }
 0x73b   :  { %13126 = vst [vmem:[#allocation31_spill] sm:$0xff] %v11656_v39  ;;  %v5685_v10 = vadd.f32 %v5684_v50, %v5622_v27  ;;  %v5553_v14 = vadd.f32 %v5552_v42, %v11656_v39  ;;  %v5623_v47 = vmul.f32 %v11656_v39, %v11656_v39 }
 0x73d   :  { %v5554_v8 = vadd.f32 %v11647_v4, %v5553_v14  ;;  %v5686_v7 = vadd.f32 %v5685_v10, %v5623_v47 }
 0x73f   :  { %v5687_v24 = vadd.f32 %v5686_v7, %v5624_v11  ;;  %v5555_v25 = vadd.f32 %v11654_v60, %v5554_v8 }
 0x741   :  { %v5688_v26 = vadd.f32 %v5687_v24, %v5625_v57 }
 0x75a   :  { %v11667_v49 = vpop.f32.mrb[60].mxu1 }
 0x75b   :  { %13127 = vst [vmem:[#allocation22_spill] sm:$0xff] %v11667_v49  ;;  %v11669_v50 = vpop.f32.mrb[61].mxu1  ;;  %v5628_v8 = vmul.f32 %v11667_v49, %v11667_v49 }
 0x75c   :  { %13128 = vst [vmem:[#allocation42_spill] sm:$0xff] %v11669_v50  ;;  %v5556_v42 = vadd.f32 %v5555_v25, %v11669_v50  ;;  %v5626_v27 = vmul.f32 %v11669_v50, %v11669_v50  ;;  %v11674_v39 = vpop.f32.mrb[62].mxu1 }
 0x75d   :  { %v11676_v14 = vpop.f32.mrb[63].mxu1  ;;  %v5629_v25 = vmul.f32 %v11674_v39, %v11674_v39 }
 0x75e   :  { %13129 = vst [vmem:[#allocation36_spill] sm:$0xff] %v11676_v14  ;;  %v5689_v10 = vadd.f32 %v5688_v26, %v5626_v27  ;;  %v5557_v47 = vadd.f32 %v5556_v42, %v11676_v14  ;;  %v5627_v11 = vmul.f32 %v11676_v14, %v11676_v14 }
 0x760   :  { %v5558_v7 = vadd.f32 %v11667_v49, %v5557_v47  ;;  %v5690_v57 = vadd.f32 %v5689_v10, %v5627_v11 }
 0x762   :  { %v5559_v24 = vadd.f32 %v11674_v39, %v5558_v7  ;;  %v5691_v50 = vadd.f32 %v5690_v57, %v5628_v8  ;;  %v13132_v7 = vld [vmem:[#allocation49_spill] sm:$0xff]  ;;  %v13133_v57 = vld [vmem:[#allocation56_spill] sm:$0xff] }
 0x764   :  { %v5560_v60 = vrot.slane %v5559_v24, 4  ;;  %v5692_v4 = vadd.f32 %v5691_v50, %v5629_v25  ;;  %v13134_v25 = vld [vmem:[#allocation43_spill] sm:$0xff] }
 0x766   :  { %v5561_v26 = vadd.f32 %v5560_v60, %v5559_v24  ;;  %v5693_v27 = vrot.slane %v5692_v4, 4  ;;  %v3136_v60 = vld [vmem:[%s12392_s2 + $0x2] sm:$0x1] }
 0x767   :  { %v13135_v24 = vld [vmem:[#allocation48_spill] sm:$0xff] }
 0x768   :  { %v5562_v42 = vrot.slane %v5561_v26, 2  ;;  %v5694_v36 = vadd.f32 %v5693_v27, %v5692_v4  ;;  %v11693_v4 = vld [vmem:[%s12392_s2 + $0x3] sm:$0x1] }
 0x76a   :  { %v5563_v12 = vadd.f32 %v5562_v42, %v5561_v26  ;;  %v5695_v14 = vrot.slane %v5694_v36, 2  ;;  %v13136_v26 = vld [vmem:[#allocation61_spill] sm:$0xff]  ;;  %v13137_v42 = vld [vmem:[#allocation52_spill] sm:$0xff] }
 0x76c   :  { %v5564_v62 = vrot.slane %v5563_v12, 1  ;;  %v5696_v35 = vadd.f32 %v5695_v14, %v5694_v36  ;;  %v13131_v14 = vld [vmem:[#allocation41_spill] sm:$0xff] }
 0x76e   :  { %v5565_v45 = vadd.f32 %v5564_v62, %v5563_v12  ;;  %v5697_v38 = vrot.slane %v5696_v35, 1 }
 0x770   :  { %v5698_v47 = vadd.f32 %v5697_v38, %v5696_v35  ;;  %v5699_v10 = vmul.f32 0.001953125, %v5565_v45  ;;  %v13130_v35 = vld [vmem:[#allocation62_spill] sm:$0xff] }
 0x772   :  { %v5700_v11 = vmul.f32 0.001953125, %v5698_v47  ;;  %v5701_v49 = vmul.f32 %v5699_v10, %v5699_v10 }
 0x774   :  { %v5702_v46 = vsub.f32 %v5700_v11, %v5701_v49 }
 0x776   :  { %v5703_v51 = vadd.f32 1e-05, %v5702_v46  ;;  %v13150_v46 = vld [vmem:[#allocation29_spill] sm:$0xff] }
 0x778   :  { %6851 = vrsqrt.f32 %v5703_v51 }
 0x782   :  { %v6852_v50 = vpop.eup %6851 }
 0x783   :  { %v5705_v8 = vmul.f32 %v6852_v50, %v3136_v60  ;;  %v13139_v60 = vld [vmem:[#allocation59_spill] sm:$0xff] }
 0x785   :  { %v11695_v36 = vmul.f32 %v5705_v8, %v5699_v10  ;;  %v11698_v45 = vrot.slane %v5705_v8, %v13130_v35  ;;  %v13138_v10 = vld [vmem:[#allocation58_spill] sm:$0xff] }
 0x786   :  { %v13140_v8 = vld [vmem:[#allocation46_spill] sm:$0xff] }
 0x787   :  { %v11704_v51 = vmul.f32 %v11698_v45, %v11165_v13  ;;  %v11708_v38 = vmul.f32 %v11698_v45, %v11172_v29  ;;  %v11712_v62 = vmul.f32 %v11161_v2, %v11698_v45  ;;  %v11716_v49 = vmul.f32 %v11168_v55, %v11698_v45 }
 0x788   :  { %v11720_v12 = vmul.f32 %v11698_v45, %v11227_v37  ;;  %v11724_v13 = vmul.f32 %v11698_v45, %v11237_v17  ;;  %v11728_v29 = vmul.f32 %v11223_v53, %v11698_v45  ;;  %v11732_v2 = vmul.f32 %v11233_v56, %v11698_v45 }
 0x789   :  { %v11736_v55 = vmul.f32 %v11698_v45, %v11289_v40  ;;  %v11740_v37 = vmul.f32 %v11698_v45, %v11299_v20  ;;  %v11744_v17 = vmul.f32 %v11285_v58, %v11698_v45  ;;  %v11748_v53 = vmul.f32 %v11295_v15, %v11698_v45 }
 0x78a   :  { %v11752_v56 = vmul.f32 %v11698_v45, %v11355_v9  ;;  %v11756_v40 = vmul.f32 %v11698_v45, %v11367_v43  ;;  %v11760_v20 = vmul.f32 %v11352_v34, %v11698_v45  ;;  %v11764_v58 = vmul.f32 %v11363_v16, %v11698_v45 }
 0x78b   :  { %v11768_v15 = vmul.f32 %v11698_v45, %v11400_v5  ;;  %v11772_v9 = vmul.f32 %v11698_v45, %v11408_v48  ;;  %v11776_v43 = vmul.f32 %v11398_v33, %v11698_v45  ;;  %v11780_v34 = vmul.f32 %v11406_v54, %v11698_v45 }
 0x78c   :  { %v11784_v16 = vmul.f32 %v11698_v45, %v11434_v31  ;;  %v11788_v5 = vmul.f32 %v11698_v45, %v11442_v22  ;;  %v11792_v48 = vmul.f32 %v11432_v59, %v11698_v45  ;;  %v11796_v33 = vmul.f32 %v11440_v1, %v11698_v45 }
 0x78d   :  { %v11800_v54 = vmul.f32 %v11698_v45, %v11468_v41  ;;  %v11804_v31 = vmul.f32 %v11698_v45, %v11476_v21  ;;  %v11808_v22 = vmul.f32 %v11466_v6, %v11698_v45  ;;  %v11812_v59 = vmul.f32 %v11474_v28, %v11698_v45 }
 0x78e   :  { %v11816_v1 = vmul.f32 %v11698_v45, %v11502_v52  ;;  %v11820_v41 = vmul.f32 %v11698_v45, %v11510_v30  ;;  %v11824_v21 = vmul.f32 %v11500_v44, %v11698_v45  ;;  %v11828_v6 = vmul.f32 %v11508_v3, %v11698_v45 }
 0x78f   :  { %v11832_v28 = vmul.f32 %v11698_v45, %v11529_v18  ;;  %v11836_v52 = vmul.f32 %v11698_v45, %v11536_v0  ;;  %v11840_v30 = vmul.f32 %v11527_v63, %v11698_v45  ;;  %v11844_v44 = vmul.f32 %v11534_v61, %v11698_v45 }
 0x790   :  { %v11848_v3 = vmul.f32 %v11698_v45, %v11549_v23  ;;  %v11852_v18 = vmul.f32 %v11698_v45, %v11556_v19  ;;  %v11856_v0 = vmul.f32 %v11547_v32, %v11698_v45  ;;  %v11860_v63 = vmul.f32 %v13131_v14, %v11698_v45 }
 0x791   :  { %v11864_v61 = vmul.f32 %v11698_v45, %v13132_v7  ;;  %v11868_v23 = vmul.f32 %v11698_v45, %v13133_v57  ;;  %v11872_v19 = vmul.f32 %v13134_v25, %v11698_v45  ;;  %v11876_v32 = vmul.f32 %v13135_v24, %v11698_v45  ;;  %v13142_v7 = vld [vmem:[#allocation15_spill] sm:$0xff]  ;;  %v13144_v25 = vld [vmem:[#allocation45_spill] sm:$0xff] }
 0x792   :  { %v11880_v27 = vmul.f32 %v11698_v45, %v13136_v26  ;;  %v11884_v47 = vmul.f32 %v11698_v45, %v13137_v42  ;;  %v11888_v11 = vmul.f32 %v13138_v10, %v11698_v45  ;;  %v11892_v50 = vmul.f32 %v13139_v60, %v11698_v45  ;;  %v13146_v26 = vld [vmem:[#allocation18_spill] sm:$0xff]  ;;  %v13148_v10 = vld [vmem:[#allocation19_spill] sm:$0xff] }
 0x793   :  { %v11896_v14 = vmul.f32 %v11698_v45, %v13140_v8  ;;  %v11900_v57 = vmul.f32 %v11698_v45, %v13142_v7  ;;  %v11904_v24 = vmul.f32 %v13144_v25, %v11698_v45  ;;  %v11908_v42 = vmul.f32 %v13146_v26, %v11698_v45 }
 0x794   :  { %v11912_v60 = vmul.f32 %v11698_v45, %v13148_v10  ;;  %v11916_v8 = vmul.f32 %v11698_v45, %v13150_v46 }
 0x795   :  { %13141 = vst [vmem:[#allocation44_spill] sm:$0xff] %v11896_v14  ;;  %13143 = vst [vmem:[#allocation54_spill] sm:$0xff] %v11900_v57  ;;  %v13152_v14 = vld [vmem:[#allocation63_spill] sm:$0xff]  ;;  %v13154_v57 = vld [vmem:[#allocation70_spill] sm:$0xff] }
 0x796   :  { %13145 = vst [vmem:[#allocation51_spill] sm:$0xff] %v11904_v24  ;;  %13147 = vst [vmem:[#allocation4_spill] sm:$0xff] %v11908_v42  ;;  %v11920_v7 = vmul.f32 %v13152_v14, %v11698_v45  ;;  %v11924_v25 = vmul.f32 %v13154_v57, %v11698_v45  ;;  %v13156_v24 = vld [vmem:[#allocation73_spill] sm:$0xff]  ;;  %v13158_v42 = vld [vmem:[#allocation31_spill] sm:$0xff] }
 0x797   :  { %13149 = vst [vmem:[#allocation21_spill] sm:$0xff] %v11912_v60  ;;  %13151 = vst [vmem:[#allocation5_spill] sm:$0xff] %v11916_v8  ;;  %v11928_v26 = vmul.f32 %v11698_v45, %v13156_v24  ;;  %v11932_v10 = vmul.f32 %v11698_v45, %v13158_v42  ;;  %v13159_v60 = vld [vmem:[#allocation67_spill] sm:$0xff]  ;;  %v13160_v8 = vld [vmem:[#allocation34_spill] sm:$0xff] }
 0x798   :  { %13153 = vst [vmem:[#allocation37_spill] sm:$0xff] %v11920_v7  ;;  %13155 = vst [vmem:[#allocation17_spill] sm:$0xff] %v11924_v25  ;;  %v11936_v46 = vmul.f32 %v13159_v60, %v11698_v45  ;;  %v11940_v14 = vmul.f32 %v13160_v8, %v11698_v45  ;;  %v13162_v7 = vld [vmem:[#allocation42_spill] sm:$0xff]  ;;  %v13163_v25 = vld [vmem:[#allocation36_spill] sm:$0xff]  ;;  %v11956_v60 = vmul.f32 %v11674_v39, %v11698_v45 }
 0x799   :  { %13157 = vst [vmem:[#allocation50_spill] sm:$0xff] %v11928_v26  ;;  %v11944_v57 = vmul.f32 %v11698_v45, %v13162_v7  ;;  %v11948_v24 = vmul.f32 %v11698_v45, %v13163_v25  ;;  %v13164_v26 = vld [vmem:[#allocation22_spill] sm:$0xff]  ;;  %v13165_v8 = vsub.f32 %v11693_v4, %v11695_v36 }
 0x79a   :  { %13161 = vst [vmem:[#allocation60_spill] sm:$0xff] %v11940_v14  ;;  %v11952_v42 = vmul.f32 %v13164_v26, %v11698_v45 }
 0x79b   :  { %v11962_v14 = vrot.slane %v13165_v8, %v13130_v35 }
 0x79d   :  { %v11966_v7 = vadd.f32 %v11962_v14, %v11704_v51  ;;  %v11970_v25 = vadd.f32 %v11962_v14, %v11708_v38  ;;  %v11974_v26 = vadd.f32 %v11962_v14, %v11712_v62  ;;  %v11978_v39 = vadd.f32 %v11962_v14, %v11716_v49  ;;  %v13179_v8 = vld [vmem:[#allocation4_spill] sm:$0xff] }
 0x79e   :  { %v11982_v4 = vadd.f32 %v11962_v14, %v11720_v12  ;;  %v11986_v36 = vadd.f32 %v11962_v14, %v11724_v13  ;;  %v11990_v35 = vadd.f32 %v11962_v14, %v11728_v29  ;;  %v11994_v45 = vadd.f32 %v11962_v14, %v11732_v2 }
 0x79f   :  { %13166 = vst [vmem:[#allocation11_spill] sm:$0xff] %v11966_v7  ;;  %13167 = vst [vmem:[#allocation55_spill] sm:$0xff] %v11970_v25  ;;  %v11998_v51 = vadd.f32 %v11962_v14, %v11736_v55  ;;  %v12002_v38 = vadd.f32 %v11962_v14, %v11740_v37  ;;  %v12006_v62 = vadd.f32 %v11962_v14, %v11744_v17 }
 0x7a0   :  { %13168 = vst [vmem:[#allocation38_spill] sm:$0xff] %v11974_v26  ;;  %13169 = vst [vmem:[#allocation14_spill] sm:$0xff] %v11978_v39  ;;  %v12010_v49 = vadd.f32 %v11962_v14, %v11748_v53  ;;  %v12014_v12 = vadd.f32 %v11962_v14, %v11752_v56  ;;  %v12018_v13 = vadd.f32 %v11962_v14, %v11756_v40 }
 0x7a1   :  { %13170 = vst [vmem:[#allocation68_spill] sm:$0xff] %v11982_v4  ;;  %v12022_v29 = vadd.f32 %v11962_v14, %v11760_v20  ;;  %v12026_v2 = vadd.f32 %v11962_v14, %v11764_v58  ;;  %v12030_v55 = vadd.f32 %v11962_v14, %v11768_v15  ;;  %v12034_v37 = vadd.f32 %v11962_v14, %v11772_v9 }
 0x7a2   :  { %v12038_v17 = vadd.f32 %v11962_v14, %v11776_v43  ;;  %v12042_v53 = vadd.f32 %v11962_v14, %v11780_v34  ;;  %v12046_v56 = vadd.f32 %v11962_v14, %v11784_v16  ;;  %v12050_v40 = vadd.f32 %v11962_v14, %v11788_v5 }
 0x7a3   :  { %v12054_v20 = vadd.f32 %v11962_v14, %v11792_v48  ;;  %v12058_v58 = vadd.f32 %v11962_v14, %v11796_v33  ;;  %v12062_v15 = vadd.f32 %v11962_v14, %v11800_v54  ;;  %v12066_v9 = vadd.f32 %v11962_v14, %v11804_v31 }
 0x7a4   :  { %v12070_v43 = vadd.f32 %v11962_v14, %v11808_v22  ;;  %v12074_v34 = vadd.f32 %v11962_v14, %v11812_v59  ;;  %v12078_v16 = vadd.f32 %v11962_v14, %v11816_v1  ;;  %v12082_v5 = vadd.f32 %v11962_v14, %v11820_v41 }
 0x7a5   :  { %v12086_v48 = vadd.f32 %v11962_v14, %v11824_v21  ;;  %v12090_v33 = vadd.f32 %v11962_v14, %v11828_v6  ;;  %v12094_v54 = vadd.f32 %v11962_v14, %v11832_v28  ;;  %v12098_v31 = vadd.f32 %v11962_v14, %v11836_v52 }
 0x7a6   :  { %v12102_v22 = vadd.f32 %v11962_v14, %v11840_v30  ;;  %v12106_v59 = vadd.f32 %v11962_v14, %v11844_v44  ;;  %v12110_v1 = vadd.f32 %v11962_v14, %v11848_v3  ;;  %v12114_v41 = vadd.f32 %v11962_v14, %v11852_v18 }
 0x7a7   :  { %v12118_v21 = vadd.f32 %v11962_v14, %v11856_v0  ;;  %v12122_v6 = vadd.f32 %v11962_v14, %v11860_v63  ;;  %v12126_v28 = vadd.f32 %v11962_v14, %v11864_v61  ;;  %v12130_v52 = vadd.f32 %v11962_v14, %v11868_v23  ;;  %v13173_v61 = vld [vmem:[#allocation44_spill] sm:$0xff] }
 0x7a8   :  { %v12134_v30 = vadd.f32 %v11962_v14, %v11872_v19  ;;  %v12138_v44 = vadd.f32 %v11962_v14, %v11876_v32  ;;  %v12142_v3 = vadd.f32 %v11962_v14, %v11880_v27  ;;  %v12146_v18 = vadd.f32 %v11962_v14, %v11884_v47  ;;  %v13175_v19 = vld [vmem:[#allocation54_spill] sm:$0xff]  ;;  %v13177_v27 = vld [vmem:[#allocation51_spill] sm:$0xff] }
 0x7a9   :  { %v12150_v0 = vadd.f32 %v11962_v14, %v11888_v11  ;;  %v12154_v63 = vadd.f32 %v11962_v14, %v11892_v50  ;;  %v12158_v23 = vadd.f32 %v11962_v14, %v13173_v61  ;;  %v12162_v32 = vadd.f32 %v11962_v14, %v13175_v19 }
 0x7aa   :  { %v12166_v47 = vadd.f32 %v11962_v14, %v13177_v27  ;;  %v12170_v11 = vadd.f32 %v11962_v14, %v13179_v8 }
 0x7ab   :  { %13171 = vst [vmem:[#allocation13_spill] sm:$0xff] %v12150_v0  ;;  %13172 = vst [vmem:[#allocation64_spill] sm:$0xff] %v12154_v63  ;;  %v13180_v0 = vld [vmem:[#allocation21_spill] sm:$0xff] }
 0x7ac   :  { %13174 = vst [vmem:[#allocation25_spill] sm:$0xff] %v12158_v23  ;;  %13176 = vst [vmem:[#allocation26_spill] sm:$0xff] %v12162_v32  ;;  %v12174_v50 = vadd.f32 %v11962_v14, %v13180_v0  ;;  %v13181_v63 = vld [vmem:[#allocation5_spill] sm:$0xff]  ;;  %v12194_v0 = vadd.f32 %v11962_v14, %v11932_v10  ;;  %v12214_v10 = vadd.f32 %v11962_v14, %v11952_v42  ;;  %v5851_v42 = vmax.f32 %v11994_v45, 0.0 }
 0x7ad   :  { %13178 = vst [vmem:[#allocation16_spill] sm:$0xff] %v12166_v47  ;;  %v12178_v61 = vadd.f32 %v11962_v14, %v13181_v63  ;;  %v13183_v23 = vld [vmem:[#allocation37_spill] sm:$0xff]  ;;  %v13185_v47 = vld [vmem:[#allocation50_spill] sm:$0xff]  ;;  %v12198_v63 = vadd.f32 %v11962_v14, %v11936_v46  ;;  %v12218_v46 = vadd.f32 %v11962_v14, %v11956_v60  ;;  %v5854_v60 = vmax.f32 %v12006_v62, 0.0 }
 0x7ae   :  { %v12182_v19 = vadd.f32 %v11962_v14, %v13183_v23  ;;  %v13184_v32 = vld [vmem:[#allocation17_spill] sm:$0xff]  ;;  %v12190_v8 = vadd.f32 %v11962_v14, %v13185_v47  ;;  %v12210_v47 = vadd.f32 %v11962_v14, %v11948_v24  ;;  %13191 = vst [vmem:[#allocation69_spill] sm:$0xff] %v12214_v10  ;;  %v5849_v24 = vmax.f32 %v11986_v36, 0.0 }
 0x7af   :  { %13182 = vst [vmem:[#allocation20_spill] sm:$0xff] %v12178_v61  ;;  %v12186_v27 = vadd.f32 %v11962_v14, %v13184_v32  ;;  %13186 = vst [vmem:[#allocation65_spill] sm:$0xff] %v12198_v63  ;;  %v13187_v61 = vld [vmem:[#allocation60_spill] sm:$0xff]  ;;  %v12206_v32 = vadd.f32 %v11962_v14, %v11944_v57  ;;  %v5852_v10 = vmax.f32 %v11998_v51, 0.0  ;;  %v5857_v57 = vmax.f32 %v12018_v13, 0.0 }
 0x7b0   :  { %v12202_v23 = vadd.f32 %v11962_v14, %v13187_v61  ;;  %13190 = vst [vmem:[#allocation32_spill] sm:$0xff] %v12210_v47  ;;  %13192 = vst [vmem:[#allocation39_spill] sm:$0xff] %v12218_v46  ;;  %v5850_v47 = vmax.f32 %v11990_v35, 0.0  ;;  %v5853_v14 = vmax.f32 %v12002_v38, 0.0  ;;  %v5855_v61 = vmax.f32 %v12010_v49, 0.0 }
 0x7b1   :  { %13189 = vst [vmem:[#allocation66_spill] sm:$0xff] %v12206_v32  ;;  %v5858_v32 = vmax.f32 %v12022_v29, 0.0  ;;  %v5859_v36 = vmax.f32 %v12026_v2, 0.0  ;;  %v5860_v35 = vmax.f32 %v12030_v55, 0.0  ;;  %v5861_v45 = vmax.f32 %v12034_v37, 0.0 }
 0x7b2   :  { %13188 = vst [vmem:[#allocation33_spill] sm:$0xff] %v12202_v23  ;;  %v5856_v23 = vmax.f32 %v12014_v12, 0.0  ;;  %v5862_v51 = vmax.f32 %v12038_v17, 0.0  ;;  %v5863_v38 = vmax.f32 %v12042_v53, 0.0  ;;  %v5864_v62 = vmax.f32 %v12046_v56, 0.0  ;;  %v13193_v63 = vld [vmem:[#allocation13_spill] sm:$0xff] }
 0x7b3   :  { %v5865_v49 = vmax.f32 %v12050_v40, 0.0  ;;  %v5866_v12 = vmax.f32 %v12054_v20, 0.0  ;;  %v5867_v13 = vmax.f32 %v12058_v58, 0.0  ;;  %v5868_v29 = vmax.f32 %v12062_v15, 0.0  ;;  %v13194_v4 = vld [vmem:[#allocation64_spill] sm:$0xff]  ;;  %v13195_v39 = vld [vmem:[#allocation25_spill] sm:$0xff] }
 0x7b4   :  { %v5869_v2 = vmax.f32 %v12066_v9, 0.0  ;;  %v5870_v55 = vmax.f32 %v12070_v43, 0.0  ;;  %v5871_v37 = vmax.f32 %v12074_v34, 0.0  ;;  %v5872_v17 = vmax.f32 %v12078_v16, 0.0  ;;  %v13196_v26 = vld [vmem:[#allocation26_spill] sm:$0xff]  ;;  %v13197_v25 = vld [vmem:[#allocation16_spill] sm:$0xff] }
 0x7b5   :  { %v5873_v53 = vmax.f32 %v12082_v5, 0.0  ;;  %v5874_v56 = vmax.f32 %v12086_v48, 0.0  ;;  %v5875_v40 = vmax.f32 %v12090_v33, 0.0  ;;  %v5876_v20 = vmax.f32 %v12094_v54, 0.0 }
 0x7b6   :  { %v5877_v58 = vmax.f32 %v12098_v31, 0.0  ;;  %v5878_v15 = vmax.f32 %v12102_v22, 0.0  ;;  %v5879_v9 = vmax.f32 %v12106_v59, 0.0  ;;  %v5880_v43 = vmax.f32 %v12110_v1, 0.0  ;;  %v13198_v7 = vld [vmem:[#allocation20_spill] sm:$0xff]  ;;  %v13199_v46 = vld [vmem:[#allocation65_spill] sm:$0xff] }
 0x7b7   :  { %v5881_v34 = vmax.f32 %v12114_v41, 0.0  ;;  %v5882_v16 = vmax.f32 %v12118_v21, 0.0  ;;  %v5883_v5 = vmax.f32 %v12122_v6, 0.0  ;;  %v5884_v48 = vmax.f32 %v12126_v28, 0.0 }
 0x7b8   :  { %v5885_v33 = vmax.f32 %v12130_v52, 0.0  ;;  %v5886_v54 = vmax.f32 %v12134_v30, 0.0  ;;  %v5887_v31 = vmax.f32 %v12138_v44, 0.0  ;;  %v5888_v22 = vmax.f32 %v12142_v3, 0.0 }
 0x7b9   :  { %v5889_v59 = vmax.f32 %v12146_v18, 0.0  ;;  %v5890_v1 = vmax.f32 %v13193_v63, 0.0  ;;  %v5891_v41 = vmax.f32 %v13194_v4, 0.0  ;;  %v5892_v21 = vmax.f32 %v13195_v39, 0.0 }
 0x7ba   :  { %v5893_v6 = vmax.f32 %v13196_v26, 0.0  ;;  %v5894_v28 = vmax.f32 %v13197_v25, 0.0  ;;  %v5895_v52 = vmax.f32 %v12170_v11, 0.0  ;;  %v5896_v30 = vmax.f32 %v12174_v50, 0.0  ;;  %v13200_v26 = vld [vmem:[#allocation33_spill] sm:$0xff]  ;;  %v13201_v11 = vld [vmem:[#allocation66_spill] sm:$0xff] }
 0x7bb   :  { %v5897_v44 = vmax.f32 %v13198_v7, 0.0  ;;  %v5898_v3 = vmax.f32 %v12182_v19, 0.0  ;;  %v5899_v18 = vmax.f32 %v12186_v27, 0.0  ;;  %v5900_v63 = vmax.f32 %v12190_v8, 0.0  ;;  %v13202_v7 = vld [vmem:[#allocation32_spill] sm:$0xff]  ;;  %v13203_v27 = vld [vmem:[#allocation69_spill] sm:$0xff] }
 0x7bc   :  { %v5901_v4 = vmax.f32 %v12194_v0, 0.0  ;;  %v5902_v39 = vmax.f32 %v13199_v46, 0.0  ;;  %v5903_v25 = vmax.f32 %v13200_v26, 0.0  ;;  %v5904_v50 = vmax.f32 %v13201_v11, 0.0  ;;  %v13204_v0 = vld [vmem:[#allocation39_spill] sm:$0xff] }
 0x7bd   :  { %v5905_v19 = vmax.f32 %v13202_v7, 0.0  ;;  %v5906_v8 = vmax.f32 %v13203_v27, 0.0  ;;  %v5907_v46 = vmax.f32 %v13204_v0, 0.0  ;;  %v13205_v26 = vld [vmem:[#allocation11_spill] sm:$0xff] }
 0x7be   :  { %v13206_v11 = vmax.f32 %v13205_v26, 0.0  ;;  %v13207_v7 = vld [vmem:[#allocation55_spill] sm:$0xff]  ;;  %v13209_v26 = vld [vmem:[#allocation38_spill] sm:$0xff] }
 0x7bf   :  { %v13208_v27 = vmax.f32 %v13207_v7, 0.0  ;;  %v13210_v7 = vmax.f32 %v13209_v26, 0.0 }
 0x7c1   :  { %v6395_v0 = vpack.c.bf16 %v13208_v27, %v13206_v11  ;;  %v13211_v11 = vld [vmem:[#allocation14_spill] sm:$0xff] }
 0x7c2   :  { %v13212_v27 = vmax.f32 %v13211_v11, 0.0  ;;  %v13213_v11 = vld [vmem:[#allocation68_spill] sm:$0xff] }
 0x7c3   :  { %6396 = vst [vmem:[%s12393_s3] sm:$0xff] %v6395_v0  }
 0x7c4   :  { %v6400_v26 = vpack.c.bf16 %v13212_v27, %v13210_v7  ;;  %v13214_v7 = vmax.f32 %v13213_v11, 0.0  ;;  %v6410_v11 = vpack.c.bf16 %v5851_v42, %v5850_v47  ;;  %v6425_v42 = vpack.c.bf16 %v5857_v57, %v5856_v23 }
 0x7c5   :  { %v6430_v47 = vpack.c.bf16 %v5859_v36, %v5858_v32  ;;  %v6445_v23 = vpack.c.bf16 %v5865_v49, %v5864_v62  ;;  %v6450_v32 = vpack.c.bf16 %v5867_v13, %v5866_v12  ;;  %v6455_v57 = vpack.c.bf16 %v5869_v2, %v5868_v29 }
 0x7c6   :  { %v6405_v27 = vpack.c.bf16 %v5849_v24, %v13214_v7  ;;  %v6415_v7 = vpack.c.bf16 %v5853_v14, %v5852_v10  ;;  %v6420_v24 = vpack.c.bf16 %v5855_v61, %v5854_v60  ;;  %6552 = vst [vmem:[%s12393_s3 + $0x8] sm:$0xff] %v6400_v26   ;;  %6554 = vst [vmem:[%s12393_s3 + $0x18] sm:$0xff] %v6410_v11  }
 0x7c7   :  { %v6435_v10 = vpack.c.bf16 %v5861_v45, %v5860_v35  ;;  %v6440_v61 = vpack.c.bf16 %v5863_v38, %v5862_v51  ;;  %6557 = vst [vmem:[%s12393_s3 + $0x30] sm:$0xff] %v6425_v42   ;;  %6558 = vst [vmem:[%s12393_s3 + $0x38] sm:$0xff] %v6430_v47   ;;  %v6460_v14 = vpack.c.bf16 %v5871_v37, %v5870_v55 }
 0x7c8   :  { %6553 = vst [vmem:[%s12393_s3 + $0x10] sm:$0xff] %v6405_v27   ;;  %6555 = vst [vmem:[%s12393_s3 + $0x20] sm:$0xff] %v6415_v7   ;;  %v6465_v60 = vpack.c.bf16 %v5873_v53, %v5872_v17  ;;  %v6470_v36 = vpack.c.bf16 %v5875_v40, %v5874_v56  ;;  %v6475_v35 = vpack.c.bf16 %v5877_v58, %v5876_v20 }
 0x7c9   :  { %6556 = vst [vmem:[%s12393_s3 + $0x28] sm:$0xff] %v6420_v24   ;;  %6559 = vst [vmem:[%s12393_s3 + $0x40] sm:$0xff] %v6435_v10   ;;  %v6480_v45 = vpack.c.bf16 %v5879_v9, %v5878_v15  ;;  %v6485_v51 = vpack.c.bf16 %v5881_v34, %v5880_v43  ;;  %v6490_v38 = vpack.c.bf16 %v5883_v5, %v5882_v16 }
 0x7ca   :  { %6560 = vst [vmem:[%s12393_s3 + $0x48] sm:$0xff] %v6440_v61   ;;  %6561 = vst [vmem:[%s12393_s3 + $0x50] sm:$0xff] %v6445_v23   ;;  %v6495_v62 = vpack.c.bf16 %v5885_v33, %v5884_v48  ;;  %v6500_v49 = vpack.c.bf16 %v5887_v31, %v5886_v54  ;;  %v6505_v12 = vpack.c.bf16 %v5889_v59, %v5888_v22 }
 0x7cb   :  { %6562 = vst [vmem:[%s12393_s3 + $0x58] sm:$0xff] %v6450_v32   ;;  %6563 = vst [vmem:[%s12393_s3 + $0x60] sm:$0xff] %v6455_v57   ;;  %v6510_v13 = vpack.c.bf16 %v5891_v41, %v5890_v1  ;;  %v6515_v29 = vpack.c.bf16 %v5893_v6, %v5892_v21  ;;  %v6520_v2 = vpack.c.bf16 %v5895_v52, %v5894_v28 }
 0x7cc   :  { %6564 = vst [vmem:[%s12393_s3 + $0x68] sm:$0xff] %v6460_v14   ;;  %6565 = vst [vmem:[%s12393_s3 + $0x70] sm:$0xff] %v6465_v60   ;;  %v6525_v55 = vpack.c.bf16 %v5897_v44, %v5896_v30  ;;  %v6530_v37 = vpack.c.bf16 %v5899_v18, %v5898_v3  ;;  %v6535_v17 = vpack.c.bf16 %v5901_v4, %v5900_v63 }
 0x7cd   :  { %6566 = vst [vmem:[%s12393_s3 + $0x78] sm:$0xff] %v6470_v36   ;;  %6567 = vst [vmem:[%s12393_s3 + $0x80] sm:$0xff] %v6475_v35   ;;  %v6540_v53 = vpack.c.bf16 %v5903_v25, %v5902_v39  ;;  %v6545_v56 = vpack.c.bf16 %v5905_v19, %v5904_v50  ;;  %v6550_v40 = vpack.c.bf16 %v5907_v46, %v5906_v8 }
 0x7ce   :  { %6568 = vst [vmem:[%s12393_s3 + $0x88] sm:$0xff] %v6480_v45   ;;  %6569 = vst [vmem:[%s12393_s3 + $0x90] sm:$0xff] %v6485_v51  }
 0x7cf   :  { %6570 = vst [vmem:[%s12393_s3 + $0x98] sm:$0xff] %v6490_v38   ;;  %6571 = vst [vmem:[%s12393_s3 + $0xa0] sm:$0xff] %v6495_v62  }
 0x7d0   :  { %6572 = vst [vmem:[%s12393_s3 + $0xa8] sm:$0xff] %v6500_v49   ;;  %6573 = vst [vmem:[%s12393_s3 + $0xb0] sm:$0xff] %v6505_v12  }
 0x7d1   :  { %6574 = vst [vmem:[%s12393_s3 + $0xb8] sm:$0xff] %v6510_v13   ;;  %6575 = vst [vmem:[%s12393_s3 + $0xc0] sm:$0xff] %v6515_v29  }
 0x7d2   :  { %6576 = vst [vmem:[%s12393_s3 + $0xc8] sm:$0xff] %v6520_v2   ;;  %6577 = vst [vmem:[%s12393_s3 + $0xd0] sm:$0xff] %v6525_v55  }
 0x7d3   :  { %6578 = vst [vmem:[%s12393_s3 + $0xd8] sm:$0xff] %v6530_v37   ;;  %6579 = vst [vmem:[%s12393_s3 + $0xe0] sm:$0xff] %v6535_v17  }
 0x7d4   :  { %6580 = vst [vmem:[%s12393_s3 + $0xe8] sm:$0xff] %v6540_v53   ;;  %6581 = vst [vmem:[%s12393_s3 + $0xf0] sm:$0xff] %v6545_v56  }
 0x7d5   :  { %6582 = vst [vmem:[%s12393_s3 + $0xf8] sm:$0xff] %v6550_v40  }

</bundles_post_ra>
